<compile_context>
chip_gen: v5e
topology: v5e:2x2
jax: 0.10.0
libtpu: 0.0.40
codegen_flags: <defaults>
</compile_context>

<pallas_src>
import functools

import numpy as np

import jax
import jax.numpy as jnp
from jax.experimental import pallas as pl
from jax.experimental.pallas import tpu as pltpu


# ---------------------------------------------------------------------------
# Static tap metadata (shared by host-side packing and the kernel body).
# ---------------------------------------------------------------------------
def _conv_offsets(K, dil):
    p = dil * (K - 1) // 2
    return tuple((dil * kh - p, dil * kw - p) for kh in range(K) for kw in range(K))


_O3 = _conv_offsets(3, 1)      # 3x3 dil=1 (maxpool/avgpool/sep3 taps)
_O5 = _conv_offsets(5, 1)      # 5x5 dil=1 (sep5)
_D3 = _conv_offsets(3, 2)      # 3x3 dil=2 (dil3)
_D5 = _conv_offsets(5, 2)      # 5x5 dil=2 (dil5)

_ALL_OFFS = tuple(sorted(set(_O5) | set(_D5)))     # 41 unique offsets (contains O3, D3)
_OFF_ROW = {o: i for i, o in enumerate(_ALL_OFFS)}
_N_OFF = len(_ALL_OFFS)
_O3_SET = frozenset(_O3)

# offset -> flattened KxK weight index, per depthwise conv
_IDX = {
    "s3_1": {o: t for t, o in enumerate(_O3)},
    "s5_1": {o: t for t, o in enumerate(_O5)},
    "d3":   {o: t for t, o in enumerate(_D3)},
    "d5":   {o: t for t, o in enumerate(_D5)},
    "s3_2": {o: t for t, o in enumerate(_O3)},
    "s5_2": {o: t for t, o in enumerate(_O5)},
}
_DW_ORDER = ("s3_1", "s5_1", "d3", "d5", "s3_2", "s5_2")
_DW_BASE = {}
_col = 0
for _name in _DW_ORDER:
    _DW_BASE[_name] = _col
    _col += len(_IDX[_name])
_DW_COLS = _col                                   # 9+25+9+25+9+25 = 102

_PW_ORDER = ("s3_1", "s5_1", "d3", "d5", "s3_2", "s5_2")
_PW_IDX = {n: i for i, n in enumerate(_PW_ORDER)}


# ---------------------------------------------------------------------------
# Fused kernel: pools + all conv branches + training-mode BN + alpha mix +
# concat-with-skip + channel shuffle, whole batch in one invocation.
# ---------------------------------------------------------------------------
def _mixed_op_kernel(x_ref, alpha_ref, const_ref, dw_ref, pw_ref, o_ref,
                     *, N, C, Cop, k, H, W):
    HW = H * W
    R = N * Cop                       # batch folded onto sublanes: working tiles (R, HW)
    f32 = jnp.float32
    inv_count = 1.0 / float(N * HW)   # BatchNorm reduces over (N, H, W)
    eps = 1e-5

    # ---- op-input slice, batch packed onto sublanes: (R, HW) --------------
    xop = jnp.concatenate(
        [x_ref[n * C:n * C + Cop, :] for n in range(N)], axis=0).astype(f32)
    relu_x = jnp.maximum(xop, 0.0)

    dw_all = dw_ref[...].astype(f32)  # (R, 102) depthwise weights, loaded once

    def mask_row(off):                # (1, HW) border mask, precomputed host-side
        i = _OFF_ROW[off]
        return const_ref[i:i + 1, :]

    def dw_col(name, off):            # (R, 1) weight column, sliced from register
        c = _DW_BASE[name] + _IDX[name][off]
        return dw_all[:, c:c + 1]

    def pw_apply(y, which):           # 1x1 conv as block-diagonal VPU broadcast-MAC
        wb = pw_ref[_PW_IDX[which]]   # (R, R)
        out = wb[:, 0:1] * y[0:1, :]
        for ci in range(1, R):
            out = out + wb[:, ci:ci + 1] * y[ci:ci + 1, :]
        return out

    def bn_rows(v):                   # training-mode BN stats over the full batch
        s = jnp.sum(v, axis=1, keepdims=True)                 # (R, 1)
        tot = s[0:Cop]
        for n in range(1, N):
            tot = tot + s[n * Cop:(n + 1) * Cop]
        mean_c = tot * inv_count                              # (Cop, 1)
        mean_r = jnp.concatenate([mean_c] * N, axis=0) if N > 1 else mean_c
        d = v - mean_r                                        # two-pass variance
        q = jnp.sum(d * d, axis=1, keepdims=True)
        qt = q[0:Cop]
        for n in range(1, N):
            qt = qt + q[n * Cop:(n + 1) * Cop]
        var_c = qt * inv_count
        rstd_c = jax.lax.rsqrt(var_c + eps)
        rstd_r = jnp.concatenate([rstd_c] * N, axis=0) if N > 1 else rstd_c
        return mean_r, rstd_r

    # ---- pass 1: one rolled tap per unique offset, shared by all branches --
    acc_mp = xop                      # maxpool center
    acc_ap = xop                      # avgpool center
    accs = {"s3_1": None, "s5_1": None, "d3": None, "d5": None}
    for off in _ALL_OFFS:
        oh, ow = off
        if off == (0, 0):
            t = xop
            tz = xop
            tr = relu_x
            m = None
        else:
            shift = (-(oh * W + ow)) % HW
            t = pltpu.roll(xop, shift, 1)           # XLU lane rotation, done once
            m = mask_row(off)
            tz = t * m                              # zero-filled tap
            tr = jnp.maximum(tz, 0.0)               # relu-then-conv tap (relu(0)=0)
        if off in _O3_SET and off != (0, 0):
            acc_mp = jnp.maximum(acc_mp, jnp.where(m > 0.0, t, f32(-1e30)))
            acc_ap = acc_ap + tz
        for name in ("s3_1", "s5_1", "d3", "d5"):
            if off in _IDX[name]:
                term = tr * dw_col(name, off)
                accs[name] = term if accs[name] is None else accs[name] + term

    inv_cnt = const_ref[_N_OFF:_N_OFF + 1, :]       # avgpool 1/valid_count row
    mp = acc_mp
    ap = acc_ap * inv_cnt                           # count_include_pad=False
    s3_1 = pw_apply(accs["s3_1"], "s3_1")
    s5_1 = pw_apply(accs["s5_1"], "s5_1")
    d3 = pw_apply(accs["d3"], "d3")
    d5 = pw_apply(accs["d5"], "d5")

    # ---- pass 2: BN -> relu -> dw -> pw (second half of both SepConvs) -----
    def sep_stage2(v, name):
        mean_r, rstd_r = bn_rows(v)
        vb = (v - mean_r) * rstd_r                  # BN(affine=False), batch stats
        acc = None
        for off in _IDX[name]:
            oh, ow = off
            if off == (0, 0):
                tap = jnp.maximum(vb, 0.0)
            else:
                shift = (-(oh * W + ow)) % HW
                tap = jnp.maximum(pltpu.roll(vb, shift, 1) * mask_row(off), 0.0)
            term = tap * dw_col(name, off)
            acc = term if acc is None else acc + term
        return pw_apply(acc, name)

    s3_2 = sep_stage2(s3_1, "s3_2")
    s5_2 = sep_stage2(s5_1, "s5_2")

    # ---- pass 3: alpha-weighted mix with BN folded; single combined bias ---
    # PRIMITIVES order: none, max_pool_3x3, avg_pool_3x3, skip_connect,
    #                   sep_conv_3x3, sep_conv_5x5, dil_conv_3x3, dil_conv_5x5
    a = [alpha_ref[i] for i in range(8)]
    mix = a[3] * xop                                # skip_connect; 'none' == 0
    bias = None
    for v, ai in ((mp, a[1]), (ap, a[2]), (s3_2, a[4]), (s5_2, a[5]),
                  (d3, a[6]), (d5, a[7])):
        mean_r, rstd_r = bn_rows(v)
        sc = rstd_r * ai                            # (R, 1)
        mix = mix + v * sc
        b = mean_r * sc
        bias = b if bias is None else bias + b
    mix = (mix - bias).astype(o_ref.dtype)          # one bias subtract total

    # ---- output: channel_shuffle(cat([mix, skip]), k) assembled in registers
    #      and written with one dense (C, HW) store per sample.
    #      out channel cp*k + g  <-  mix[cp] if g == 0 else x[g*Cop + cp]
    for n in range(N):
        xg = [x_ref[n * C + g * Cop:n * C + (g + 1) * Cop, :] for g in range(1, k)]
        mix_n = mix[n * Cop:(n + 1) * Cop, :]
        rows = []
        for cp in range(Cop):
            rows.append(mix_n[cp:cp + 1, :])
            for g in range(1, k):
                rows.append(xg[g - 1][cp:cp + 1, :])
        o_ref[n * C:(n + 1) * C, :] = jnp.concatenate(rows, axis=0)


# ---------------------------------------------------------------------------
# Host-side constant / weight packing
# ---------------------------------------------------------------------------
def _build_consts(H, W):
    """(n_unique_offsets + 1, H*W): border masks per offset + avgpool 1/count."""
    HW = H * W
    hh, ww = np.meshgrid(np.arange(H), np.arange(W), indexing="ij")
    hh = hh.reshape(HW)
    ww = ww.reshape(HW)
    rows = []
    for (oh, ow) in _ALL_OFFS:
        valid = ((hh + oh >= 0) & (hh + oh < H) & (ww + ow >= 0) & (ww + ow < W))
        rows.append(valid.astype(np.float32))
    cnt_h = 3.0 - (hh == 0).astype(np.float32) - (hh == H - 1).astype(np.float32)
    cnt_w = 3.0 - (ww == 0).astype(np.float32) - (ww == W - 1).astype(np.float32)
    rows.append((1.0 / (cnt_h * cnt_w)).astype(np.float32))
    return np.stack(rows, axis=0)


def _pack_dw(params, N, Cop):
    """All depthwise weights -> one (N*Cop, 102) buffer (tiled over the batch)."""
    segs = {
        "s3_1": (params["sep3"]["dw1"], 3), "s5_1": (params["sep5"]["dw1"], 5),
        "d3": (params["dil3"]["dw"], 3),    "d5": (params["dil5"]["dw"], 5),
        "s3_2": (params["sep3"]["dw2"], 3), "s5_2": (params["sep5"]["dw2"], 5),
    }
    cols = []
    for name in _DW_ORDER:
        w, K = segs[name]
        cols.append(jnp.tile(w.reshape(Cop, K * K).astype(jnp.float32), (N, 1)))
    return jnp.concatenate(cols, axis=1)


def _pack_pw(params, N):
    """All 1x1-conv weights -> (6, N*Cop, N*Cop) block-diagonal buffers."""
    mats = {
        "s3_1": params["sep3"]["pw1"], "s5_1": params["sep5"]["pw1"],
        "d3": params["dil3"]["pw"],    "d5": params["dil5"]["pw"],
        "s3_2": params["sep3"]["pw2"], "s5_2": params["sep5"]["pw2"],
    }
    eye = jnp.eye(N, dtype=jnp.float32)
    return jnp.stack(
        [jnp.kron(eye, mats[n].astype(jnp.float32)) for n in _PW_ORDER], axis=0)


# ---------------------------------------------------------------------------
# Wrapper
# ---------------------------------------------------------------------------
def mixed_op_forward(x_nchw, weights_alpha, params, k=4):
    """MixedOp.forward, stride=1.  x: (N, C, H, W) NCHW; weights_alpha: (8,)."""
    N, C, H, W = x_nchw.shape
    assert C % k == 0, (C, k)
    Cop = C // k
    HW = H * W

    x_flat = x_nchw.reshape(N * C, HW)                       # free row-major view
    alpha = jnp.asarray(weights_alpha, jnp.float32).reshape(8)
    consts = jnp.asarray(_build_consts(H, W))                # compile-time constant
    dw_all = _pack_dw(params, N, Cop)
    pw_all = _pack_pw(params, N)

    out_flat = pl.pallas_call(
        functools.partial(_mixed_op_kernel, N=N, C=C, Cop=Cop, k=k, H=H, W=W),
        in_specs=[
            pl.BlockSpec(memory_space=pltpu.MemorySpace.VMEM),   # x
            pl.BlockSpec(memory_space=pltpu.MemorySpace.SMEM),   # alpha scalars
            pl.BlockSpec(memory_space=pltpu.MemorySpace.VMEM),   # masks + 1/count
            pl.BlockSpec(memory_space=pltpu.MemorySpace.VMEM),   # packed dw weights
            pl.BlockSpec(memory_space=pltpu.MemorySpace.VMEM),   # packed pw weights
        ],
        out_specs=pl.BlockSpec(memory_space=pltpu.MemorySpace.VMEM),
        out_shape=jax.ShapeDtypeStruct((N * C, HW), x_nchw.dtype),
    )(x_flat, alpha, consts, dw_all, pw_all)

    return out_flat.reshape(N, C, H, W)


def init_params(key, Cop):
    ks = jax.random.split(key, 12)
    dw = lambda kk, K: jax.random.normal(kk, (Cop, K, K), jnp.float32) * 0.1
    pw = lambda kk: jax.random.normal(kk, (Cop, Cop), jnp.float32) * 0.1
    return {
        "sep3": {"dw1": dw(ks[0], 3), "pw1": pw(ks[1]),
                 "dw2": dw(ks[2], 3), "pw2": pw(ks[3])},
        "sep5": {"dw1": dw(ks[4], 5), "pw1": pw(ks[5]),
                 "dw2": dw(ks[6], 5), "pw2": pw(ks[7])},
        "dil3": {"dw": dw(ks[8], 3), "pw": pw(ks[9])},
        "dil5": {"dw": dw(ks[10], 5), "pw": pw(ks[11])},
    }


if __name__ == "__main__":
    key = jax.random.PRNGKey(0)
    kx, ka, kp = jax.random.split(key, 3)

    N, C, H, W = 2, 16, 16, 16      # NCHW, C divisible by k=4 (Cop = 4)
    k = 4
    num_ops = 8

    x = jax.random.normal(kx, (N, C, H, W), jnp.float32)
    weights_alpha = jax.nn.softmax(jax.random.normal(ka, (num_ops,), jnp.float32))
    params = init_params(kp, C // k)

    fwd = jax.jit(functools.partial(mixed_op_forward, k=k))
    out = fwd(x, weights_alpha, params)
    out = jax.block_until_ready(out)
    assert out.shape == (N, C, H, W), out.shape
    assert bool(jnp.all(jnp.isfinite(out)))
    print("KERNEL_OK")
</pallas_src>

<mosaic_0001>
module attributes {stable_mosaic.version = 11 : i64} {
  func.func @_mixed_op_kernel(%arg0: memref<32x256xf32, #tpu.memory_space<vmem>>, %arg1: memref<8xf32, #tpu.memory_space<smem>>, %arg2: memref<42x256xf32, #tpu.memory_space<vmem>>, %arg3: memref<8x102xf32, #tpu.memory_space<vmem>>, %arg4: memref<6x8x8xf32, #tpu.memory_space<vmem>>, %arg5: memref<32x256xf32, #tpu.memory_space<vmem>>) attributes {dimension_semantics = [], scalar_prefetch = 0 : i64, scratch_operands = 0 : i64, tpu.core_type = #tpu.core_type<tc>} {
    %c0 = arith.constant 0 : index
    %c0_0 = arith.constant 0 : index
    %0 = vector.load %arg0[%c0, %c0_0] : memref<32x256xf32, #tpu.memory_space<vmem>>, vector<4x256xf32>
    %c16 = arith.constant 16 : index
    %c0_1 = arith.constant 0 : index
    %1 = vector.load %arg0[%c16, %c0_1] : memref<32x256xf32, #tpu.memory_space<vmem>>, vector<4x256xf32>
    %2 = tpu.concatenate %0, %1 in 0 : vector<4x256xf32>, vector<4x256xf32> -> vector<8x256xf32>
    %cst = arith.constant 0.000000e+00 : f32
    %3 = vector.broadcast %cst : f32 to vector<8x256xf32>
    %4 = arith.maximumf %2, %3 : vector<8x256xf32>
    %c0_2 = arith.constant 0 : index
    %c0_3 = arith.constant 0 : index
    %5 = vector.load %arg3[%c0_2, %c0_3] : memref<8x102xf32, #tpu.memory_space<vmem>>, vector<8x102xf32>
    %c68_i32 = arith.constant 68 : i32
    %6 = tpu.dynamic_rotate %2 by %c68_i32 dim 1 : vector<8x256xf32>, i32 -> vector<8x256xf32>
    %c0_4 = arith.constant 0 : index
    %c0_5 = arith.constant 0 : index
    %7 = vector.load %arg2[%c0_4, %c0_5] : memref<42x256xf32, #tpu.memory_space<vmem>>, vector<1x256xf32>
    %8 = vector.broadcast %7 : vector<1x256xf32> to vector<8x256xf32>
    %9 = arith.mulf %6, %8 : vector<8x256xf32>
    %cst_6 = arith.constant 0.000000e+00 : f32
    %10 = vector.broadcast %cst_6 : f32 to vector<8x256xf32>
    %11 = arith.maximumf %9, %10 : vector<8x256xf32>
    %12 = vector.extract_strided_slice %5 {offsets = [0, 43], sizes = [8, 1], strides = [1, 1]} : vector<8x102xf32> to vector<8x1xf32>
    %13 = vector.broadcast %12 : vector<8x1xf32> to vector<8x256xf32>
    %14 = arith.mulf %11, %13 : vector<8x256xf32>
    %c66_i32 = arith.constant 66 : i32
    %15 = tpu.dynamic_rotate %2 by %c66_i32 dim 1 : vector<8x256xf32>, i32 -> vector<8x256xf32>
    %c1 = arith.constant 1 : index
    %c0_7 = arith.constant 0 : index
    %16 = vector.load %arg2[%c1, %c0_7] : memref<42x256xf32, #tpu.memory_space<vmem>>, vector<1x256xf32>
    %17 = vector.broadcast %16 : vector<1x256xf32> to vector<8x256xf32>
    %18 = arith.mulf %15, %17 : vector<8x256xf32>
    %cst_8 = arith.constant 0.000000e+00 : f32
    %19 = vector.broadcast %cst_8 : f32 to vector<8x256xf32>
    %20 = arith.maximumf %18, %19 : vector<8x256xf32>
    %21 = vector.extract_strided_slice %5 {offsets = [0, 44], sizes = [8, 1], strides = [1, 1]} : vector<8x102xf32> to vector<8x1xf32>
    %22 = vector.broadcast %21 : vector<8x1xf32> to vector<8x256xf32>
    %23 = arith.mulf %20, %22 : vector<8x256xf32>
    %24 = arith.addf %14, %23 : vector<8x256xf32>
    %c64_i32 = arith.constant 64 : i32
    %25 = tpu.dynamic_rotate %2 by %c64_i32 dim 1 : vector<8x256xf32>, i32 -> vector<8x256xf32>
    %c2 = arith.constant 2 : index
    %c0_9 = arith.constant 0 : index
    %26 = vector.load %arg2[%c2, %c0_9] : memref<42x256xf32, #tpu.memory_space<vmem>>, vector<1x256xf32>
    %27 = vector.broadcast %26 : vector<1x256xf32> to vector<8x256xf32>
    %28 = arith.mulf %25, %27 : vector<8x256xf32>
    %cst_10 = arith.constant 0.000000e+00 : f32
    %29 = vector.broadcast %cst_10 : f32 to vector<8x256xf32>
    %30 = arith.maximumf %28, %29 : vector<8x256xf32>
    %31 = vector.extract_strided_slice %5 {offsets = [0, 45], sizes = [8, 1], strides = [1, 1]} : vector<8x102xf32> to vector<8x1xf32>
    %32 = vector.broadcast %31 : vector<8x1xf32> to vector<8x256xf32>
    %33 = arith.mulf %30, %32 : vector<8x256xf32>
    %34 = arith.addf %24, %33 : vector<8x256xf32>
    %c62_i32 = arith.constant 62 : i32
    %35 = tpu.dynamic_rotate %2 by %c62_i32 dim 1 : vector<8x256xf32>, i32 -> vector<8x256xf32>
    %c3 = arith.constant 3 : index
    %c0_11 = arith.constant 0 : index
    %36 = vector.load %arg2[%c3, %c0_11] : memref<42x256xf32, #tpu.memory_space<vmem>>, vector<1x256xf32>
    %37 = vector.broadcast %36 : vector<1x256xf32> to vector<8x256xf32>
    %38 = arith.mulf %35, %37 : vector<8x256xf32>
    %cst_12 = arith.constant 0.000000e+00 : f32
    %39 = vector.broadcast %cst_12 : f32 to vector<8x256xf32>
    %40 = arith.maximumf %38, %39 : vector<8x256xf32>
    %41 = vector.extract_strided_slice %5 {offsets = [0, 46], sizes = [8, 1], strides = [1, 1]} : vector<8x102xf32> to vector<8x1xf32>
    %42 = vector.broadcast %41 : vector<8x1xf32> to vector<8x256xf32>
    %43 = arith.mulf %40, %42 : vector<8x256xf32>
    %44 = arith.addf %34, %43 : vector<8x256xf32>
    %c60_i32 = arith.constant 60 : i32
    %45 = tpu.dynamic_rotate %2 by %c60_i32 dim 1 : vector<8x256xf32>, i32 -> vector<8x256xf32>
    %c4 = arith.constant 4 : index
    %c0_13 = arith.constant 0 : index
    %46 = vector.load %arg2[%c4, %c0_13] : memref<42x256xf32, #tpu.memory_space<vmem>>, vector<1x256xf32>
    %47 = vector.broadcast %46 : vector<1x256xf32> to vector<8x256xf32>
    %48 = arith.mulf %45, %47 : vector<8x256xf32>
    %cst_14 = arith.constant 0.000000e+00 : f32
    %49 = vector.broadcast %cst_14 : f32 to vector<8x256xf32>
    %50 = arith.maximumf %48, %49 : vector<8x256xf32>
    %51 = vector.extract_strided_slice %5 {offsets = [0, 47], sizes = [8, 1], strides = [1, 1]} : vector<8x102xf32> to vector<8x1xf32>
    %52 = vector.broadcast %51 : vector<8x1xf32> to vector<8x256xf32>
    %53 = arith.mulf %50, %52 : vector<8x256xf32>
    %54 = arith.addf %44, %53 : vector<8x256xf32>
    %c36_i32 = arith.constant 36 : i32
    %55 = tpu.dynamic_rotate %2 by %c36_i32 dim 1 : vector<8x256xf32>, i32 -> vector<8x256xf32>
    %c5 = arith.constant 5 : index
    %c0_15 = arith.constant 0 : index
    %56 = vector.load %arg2[%c5, %c0_15] : memref<42x256xf32, #tpu.memory_space<vmem>>, vector<1x256xf32>
    %57 = vector.broadcast %56 : vector<1x256xf32> to vector<8x256xf32>
    %58 = arith.mulf %55, %57 : vector<8x256xf32>
    %cst_16 = arith.constant 0.000000e+00 : f32
    %59 = vector.broadcast %cst_16 : f32 to vector<8x256xf32>
    %60 = arith.maximumf %58, %59 : vector<8x256xf32>
    %61 = vector.extract_strided_slice %5 {offsets = [0, 48], sizes = [8, 1], strides = [1, 1]} : vector<8x102xf32> to vector<8x1xf32>
    %62 = vector.broadcast %61 : vector<8x1xf32> to vector<8x256xf32>
    %63 = arith.mulf %60, %62 : vector<8x256xf32>
    %64 = arith.addf %54, %63 : vector<8x256xf32>
    %c34_i32 = arith.constant 34 : i32
    %65 = tpu.dynamic_rotate %2 by %c34_i32 dim 1 : vector<8x256xf32>, i32 -> vector<8x256xf32>
    %c6 = arith.constant 6 : index
    %c0_17 = arith.constant 0 : index
    %66 = vector.load %arg2[%c6, %c0_17] : memref<42x256xf32, #tpu.memory_space<vmem>>, vector<1x256xf32>
    %67 = vector.broadcast %66 : vector<1x256xf32> to vector<8x256xf32>
    %68 = arith.mulf %65, %67 : vector<8x256xf32>
    %cst_18 = arith.constant 0.000000e+00 : f32
    %69 = vector.broadcast %cst_18 : f32 to vector<8x256xf32>
    %70 = arith.maximumf %68, %69 : vector<8x256xf32>
    %71 = vector.extract_strided_slice %5 {offsets = [0, 9], sizes = [8, 1], strides = [1, 1]} : vector<8x102xf32> to vector<8x1xf32>
    %72 = vector.broadcast %71 : vector<8x1xf32> to vector<8x256xf32>
    %73 = arith.mulf %70, %72 : vector<8x256xf32>
    %74 = vector.extract_strided_slice %5 {offsets = [0, 34], sizes = [8, 1], strides = [1, 1]} : vector<8x102xf32> to vector<8x1xf32>
    %75 = vector.broadcast %74 : vector<8x1xf32> to vector<8x256xf32>
    %76 = arith.mulf %70, %75 : vector<8x256xf32>
    %77 = vector.extract_strided_slice %5 {offsets = [0, 49], sizes = [8, 1], strides = [1, 1]} : vector<8x102xf32> to vector<8x1xf32>
    %78 = vector.broadcast %77 : vector<8x1xf32> to vector<8x256xf32>
    %79 = arith.mulf %70, %78 : vector<8x256xf32>
    %80 = arith.addf %64, %79 : vector<8x256xf32>
    %c33_i32 = arith.constant 33 : i32
    %81 = tpu.dynamic_rotate %2 by %c33_i32 dim 1 : vector<8x256xf32>, i32 -> vector<8x256xf32>
    %c7 = arith.constant 7 : index
    %c0_19 = arith.constant 0 : index
    %82 = vector.load %arg2[%c7, %c0_19] : memref<42x256xf32, #tpu.memory_space<vmem>>, vector<1x256xf32>
    %83 = vector.broadcast %82 : vector<1x256xf32> to vector<8x256xf32>
    %84 = arith.mulf %81, %83 : vector<8x256xf32>
    %cst_20 = arith.constant 0.000000e+00 : f32
    %85 = vector.broadcast %cst_20 : f32 to vector<8x256xf32>
    %86 = arith.maximumf %84, %85 : vector<8x256xf32>
    %87 = vector.extract_strided_slice %5 {offsets = [0, 10], sizes = [8, 1], strides = [1, 1]} : vector<8x102xf32> to vector<8x1xf32>
    %88 = vector.broadcast %87 : vector<8x1xf32> to vector<8x256xf32>
    %89 = arith.mulf %86, %88 : vector<8x256xf32>
    %90 = arith.addf %73, %89 : vector<8x256xf32>
    %c32_i32 = arith.constant 32 : i32
    %91 = tpu.dynamic_rotate %2 by %c32_i32 dim 1 : vector<8x256xf32>, i32 -> vector<8x256xf32>
    %c8 = arith.constant 8 : index
    %c0_21 = arith.constant 0 : index
    %92 = vector.load %arg2[%c8, %c0_21] : memref<42x256xf32, #tpu.memory_space<vmem>>, vector<1x256xf32>
    %93 = vector.broadcast %92 : vector<1x256xf32> to vector<8x256xf32>
    %94 = arith.mulf %91, %93 : vector<8x256xf32>
    %cst_22 = arith.constant 0.000000e+00 : f32
    %95 = vector.broadcast %cst_22 : f32 to vector<8x256xf32>
    %96 = arith.maximumf %94, %95 : vector<8x256xf32>
    %97 = vector.extract_strided_slice %5 {offsets = [0, 11], sizes = [8, 1], strides = [1, 1]} : vector<8x102xf32> to vector<8x1xf32>
    %98 = vector.broadcast %97 : vector<8x1xf32> to vector<8x256xf32>
    %99 = arith.mulf %96, %98 : vector<8x256xf32>
    %100 = arith.addf %90, %99 : vector<8x256xf32>
    %101 = vector.extract_strided_slice %5 {offsets = [0, 35], sizes = [8, 1], strides = [1, 1]} : vector<8x102xf32> to vector<8x1xf32>
    %102 = vector.broadcast %101 : vector<8x1xf32> to vector<8x256xf32>
    %103 = arith.mulf %96, %102 : vector<8x256xf32>
    %104 = arith.addf %76, %103 : vector<8x256xf32>
    %105 = vector.extract_strided_slice %5 {offsets = [0, 50], sizes = [8, 1], strides = [1, 1]} : vector<8x102xf32> to vector<8x1xf32>
    %106 = vector.broadcast %105 : vector<8x1xf32> to vector<8x256xf32>
    %107 = arith.mulf %96, %106 : vector<8x256xf32>
    %108 = arith.addf %80, %107 : vector<8x256xf32>
    %c31_i32 = arith.constant 31 : i32
    %109 = tpu.dynamic_rotate %2 by %c31_i32 dim 1 : vector<8x256xf32>, i32 -> vector<8x256xf32>
    %c9 = arith.constant 9 : index
    %c0_23 = arith.constant 0 : index
    %110 = vector.load %arg2[%c9, %c0_23] : memref<42x256xf32, #tpu.memory_space<vmem>>, vector<1x256xf32>
    %111 = vector.broadcast %110 : vector<1x256xf32> to vector<8x256xf32>
    %112 = arith.mulf %109, %111 : vector<8x256xf32>
    %cst_24 = arith.constant 0.000000e+00 : f32
    %113 = vector.broadcast %cst_24 : f32 to vector<8x256xf32>
    %114 = arith.maximumf %112, %113 : vector<8x256xf32>
    %115 = vector.extract_strided_slice %5 {offsets = [0, 12], sizes = [8, 1], strides = [1, 1]} : vector<8x102xf32> to vector<8x1xf32>
    %116 = vector.broadcast %115 : vector<8x1xf32> to vector<8x256xf32>
    %117 = arith.mulf %114, %116 : vector<8x256xf32>
    %118 = arith.addf %100, %117 : vector<8x256xf32>
    %c30_i32 = arith.constant 30 : i32
    %119 = tpu.dynamic_rotate %2 by %c30_i32 dim 1 : vector<8x256xf32>, i32 -> vector<8x256xf32>
    %c10 = arith.constant 10 : index
    %c0_25 = arith.constant 0 : index
    %120 = vector.load %arg2[%c10, %c0_25] : memref<42x256xf32, #tpu.memory_space<vmem>>, vector<1x256xf32>
    %121 = vector.broadcast %120 : vector<1x256xf32> to vector<8x256xf32>
    %122 = arith.mulf %119, %121 : vector<8x256xf32>
    %cst_26 = arith.constant 0.000000e+00 : f32
    %123 = vector.broadcast %cst_26 : f32 to vector<8x256xf32>
    %124 = arith.maximumf %122, %123 : vector<8x256xf32>
    %125 = vector.extract_strided_slice %5 {offsets = [0, 13], sizes = [8, 1], strides = [1, 1]} : vector<8x102xf32> to vector<8x1xf32>
    %126 = vector.broadcast %125 : vector<8x1xf32> to vector<8x256xf32>
    %127 = arith.mulf %124, %126 : vector<8x256xf32>
    %128 = arith.addf %118, %127 : vector<8x256xf32>
    %129 = vector.extract_strided_slice %5 {offsets = [0, 36], sizes = [8, 1], strides = [1, 1]} : vector<8x102xf32> to vector<8x1xf32>
    %130 = vector.broadcast %129 : vector<8x1xf32> to vector<8x256xf32>
    %131 = arith.mulf %124, %130 : vector<8x256xf32>
    %132 = arith.addf %104, %131 : vector<8x256xf32>
    %133 = vector.extract_strided_slice %5 {offsets = [0, 51], sizes = [8, 1], strides = [1, 1]} : vector<8x102xf32> to vector<8x1xf32>
    %134 = vector.broadcast %133 : vector<8x1xf32> to vector<8x256xf32>
    %135 = arith.mulf %124, %134 : vector<8x256xf32>
    %136 = arith.addf %108, %135 : vector<8x256xf32>
    %c28_i32 = arith.constant 28 : i32
    %137 = tpu.dynamic_rotate %2 by %c28_i32 dim 1 : vector<8x256xf32>, i32 -> vector<8x256xf32>
    %c11 = arith.constant 11 : index
    %c0_27 = arith.constant 0 : index
    %138 = vector.load %arg2[%c11, %c0_27] : memref<42x256xf32, #tpu.memory_space<vmem>>, vector<1x256xf32>
    %139 = vector.broadcast %138 : vector<1x256xf32> to vector<8x256xf32>
    %140 = arith.mulf %137, %139 : vector<8x256xf32>
    %cst_28 = arith.constant 0.000000e+00 : f32
    %141 = vector.broadcast %cst_28 : f32 to vector<8x256xf32>
    %142 = arith.maximumf %140, %141 : vector<8x256xf32>
    %143 = vector.extract_strided_slice %5 {offsets = [0, 52], sizes = [8, 1], strides = [1, 1]} : vector<8x102xf32> to vector<8x1xf32>
    %144 = vector.broadcast %143 : vector<8x1xf32> to vector<8x256xf32>
    %145 = arith.mulf %142, %144 : vector<8x256xf32>
    %146 = arith.addf %136, %145 : vector<8x256xf32>
    %c18_i32 = arith.constant 18 : i32
    %147 = tpu.dynamic_rotate %2 by %c18_i32 dim 1 : vector<8x256xf32>, i32 -> vector<8x256xf32>
    %c12 = arith.constant 12 : index
    %c0_29 = arith.constant 0 : index
    %148 = vector.load %arg2[%c12, %c0_29] : memref<42x256xf32, #tpu.memory_space<vmem>>, vector<1x256xf32>
    %149 = vector.broadcast %148 : vector<1x256xf32> to vector<8x256xf32>
    %150 = arith.mulf %147, %149 : vector<8x256xf32>
    %cst_30 = arith.constant 0.000000e+00 : f32
    %151 = vector.broadcast %cst_30 : f32 to vector<8x256xf32>
    %152 = arith.maximumf %150, %151 : vector<8x256xf32>
    %153 = vector.extract_strided_slice %5 {offsets = [0, 14], sizes = [8, 1], strides = [1, 1]} : vector<8x102xf32> to vector<8x1xf32>
    %154 = vector.broadcast %153 : vector<8x1xf32> to vector<8x256xf32>
    %155 = arith.mulf %152, %154 : vector<8x256xf32>
    %156 = arith.addf %128, %155 : vector<8x256xf32>
    %c17_i32 = arith.constant 17 : i32
    %157 = tpu.dynamic_rotate %2 by %c17_i32 dim 1 : vector<8x256xf32>, i32 -> vector<8x256xf32>
    %c13 = arith.constant 13 : index
    %c0_31 = arith.constant 0 : index
    %158 = vector.load %arg2[%c13, %c0_31] : memref<42x256xf32, #tpu.memory_space<vmem>>, vector<1x256xf32>
    %159 = vector.broadcast %158 : vector<1x256xf32> to vector<8x256xf32>
    %160 = arith.mulf %157, %159 : vector<8x256xf32>
    %cst_32 = arith.constant 0.000000e+00 : f32
    %161 = vector.broadcast %cst_32 : f32 to vector<8x256xf32>
    %162 = arith.maximumf %160, %161 : vector<8x256xf32>
    %cst_33 = arith.constant 0.000000e+00 : f32
    %163 = vector.broadcast %cst_33 : f32 to vector<1x256xf32>
    %164 = arith.cmpf ogt, %158, %163 : vector<1x256xf32>
    %cst_34 = arith.constant -1.000000e+30 : f32
    %165 = vector.shape_cast %164 : vector<1x256xi1> to vector<1x256xi1>
    %166 = vector.broadcast %165 : vector<1x256xi1> to vector<8x256xi1>
    %167 = vector.broadcast %cst_34 : f32 to vector<8x256xf32>
    %168 = arith.select %166, %157, %167 : vector<8x256xi1>, vector<8x256xf32>
    %169 = arith.maximumf %2, %168 : vector<8x256xf32>
    %170 = arith.addf %2, %160 : vector<8x256xf32>
    %171 = vector.extract_strided_slice %5 {offsets = [0, 0], sizes = [8, 1], strides = [1, 1]} : vector<8x102xf32> to vector<8x1xf32>
    %172 = vector.broadcast %171 : vector<8x1xf32> to vector<8x256xf32>
    %173 = arith.mulf %162, %172 : vector<8x256xf32>
    %174 = vector.extract_strided_slice %5 {offsets = [0, 15], sizes = [8, 1], strides = [1, 1]} : vector<8x102xf32> to vector<8x1xf32>
    %175 = vector.broadcast %174 : vector<8x1xf32> to vector<8x256xf32>
    %176 = arith.mulf %162, %175 : vector<8x256xf32>
    %177 = arith.addf %156, %176 : vector<8x256xf32>
    %c16_i32 = arith.constant 16 : i32
    %178 = tpu.dynamic_rotate %2 by %c16_i32 dim 1 : vector<8x256xf32>, i32 -> vector<8x256xf32>
    %c14 = arith.constant 14 : index
    %c0_35 = arith.constant 0 : index
    %179 = vector.load %arg2[%c14, %c0_35] : memref<42x256xf32, #tpu.memory_space<vmem>>, vector<1x256xf32>
    %180 = vector.broadcast %179 : vector<1x256xf32> to vector<8x256xf32>
    %181 = arith.mulf %178, %180 : vector<8x256xf32>
    %cst_36 = arith.constant 0.000000e+00 : f32
    %182 = vector.broadcast %cst_36 : f32 to vector<8x256xf32>
    %183 = arith.maximumf %181, %182 : vector<8x256xf32>
    %cst_37 = arith.constant 0.000000e+00 : f32
    %184 = vector.broadcast %cst_37 : f32 to vector<1x256xf32>
    %185 = arith.cmpf ogt, %179, %184 : vector<1x256xf32>
    %cst_38 = arith.constant -1.000000e+30 : f32
    %186 = vector.shape_cast %185 : vector<1x256xi1> to vector<1x256xi1>
    %187 = vector.broadcast %186 : vector<1x256xi1> to vector<8x256xi1>
    %188 = vector.broadcast %cst_38 : f32 to vector<8x256xf32>
    %189 = arith.select %187, %178, %188 : vector<8x256xi1>, vector<8x256xf32>
    %190 = arith.maximumf %169, %189 : vector<8x256xf32>
    %191 = arith.addf %170, %181 : vector<8x256xf32>
    %192 = vector.extract_strided_slice %5 {offsets = [0, 1], sizes = [8, 1], strides = [1, 1]} : vector<8x102xf32> to vector<8x1xf32>
    %193 = vector.broadcast %192 : vector<8x1xf32> to vector<8x256xf32>
    %194 = arith.mulf %183, %193 : vector<8x256xf32>
    %195 = arith.addf %173, %194 : vector<8x256xf32>
    %196 = vector.extract_strided_slice %5 {offsets = [0, 16], sizes = [8, 1], strides = [1, 1]} : vector<8x102xf32> to vector<8x1xf32>
    %197 = vector.broadcast %196 : vector<8x1xf32> to vector<8x256xf32>
    %198 = arith.mulf %183, %197 : vector<8x256xf32>
    %199 = arith.addf %177, %198 : vector<8x256xf32>
    %c15_i32 = arith.constant 15 : i32
    %200 = tpu.dynamic_rotate %2 by %c15_i32 dim 1 : vector<8x256xf32>, i32 -> vector<8x256xf32>
    %c15 = arith.constant 15 : index
    %c0_39 = arith.constant 0 : index
    %201 = vector.load %arg2[%c15, %c0_39] : memref<42x256xf32, #tpu.memory_space<vmem>>, vector<1x256xf32>
    %202 = vector.broadcast %201 : vector<1x256xf32> to vector<8x256xf32>
    %203 = arith.mulf %200, %202 : vector<8x256xf32>
    %cst_40 = arith.constant 0.000000e+00 : f32
    %204 = vector.broadcast %cst_40 : f32 to vector<8x256xf32>
    %205 = arith.maximumf %203, %204 : vector<8x256xf32>
    %cst_41 = arith.constant 0.000000e+00 : f32
    %206 = vector.broadcast %cst_41 : f32 to vector<1x256xf32>
    %207 = arith.cmpf ogt, %201, %206 : vector<1x256xf32>
    %cst_42 = arith.constant -1.000000e+30 : f32
    %208 = vector.shape_cast %207 : vector<1x256xi1> to vector<1x256xi1>
    %209 = vector.broadcast %208 : vector<1x256xi1> to vector<8x256xi1>
    %210 = vector.broadcast %cst_42 : f32 to vector<8x256xf32>
    %211 = arith.select %209, %200, %210 : vector<8x256xi1>, vector<8x256xf32>
    %212 = arith.maximumf %190, %211 : vector<8x256xf32>
    %213 = arith.addf %191, %203 : vector<8x256xf32>
    %214 = vector.extract_strided_slice %5 {offsets = [0, 2], sizes = [8, 1], strides = [1, 1]} : vector<8x102xf32> to vector<8x1xf32>
    %215 = vector.broadcast %214 : vector<8x1xf32> to vector<8x256xf32>
    %216 = arith.mulf %205, %215 : vector<8x256xf32>
    %217 = arith.addf %195, %216 : vector<8x256xf32>
    %218 = vector.extract_strided_slice %5 {offsets = [0, 17], sizes = [8, 1], strides = [1, 1]} : vector<8x102xf32> to vector<8x1xf32>
    %219 = vector.broadcast %218 : vector<8x1xf32> to vector<8x256xf32>
    %220 = arith.mulf %205, %219 : vector<8x256xf32>
    %221 = arith.addf %199, %220 : vector<8x256xf32>
    %c14_i32 = arith.constant 14 : i32
    %222 = tpu.dynamic_rotate %2 by %c14_i32 dim 1 : vector<8x256xf32>, i32 -> vector<8x256xf32>
    %c16_43 = arith.constant 16 : index
    %c0_44 = arith.constant 0 : index
    %223 = vector.load %arg2[%c16_43, %c0_44] : memref<42x256xf32, #tpu.memory_space<vmem>>, vector<1x256xf32>
    %224 = vector.broadcast %223 : vector<1x256xf32> to vector<8x256xf32>
    %225 = arith.mulf %222, %224 : vector<8x256xf32>
    %cst_45 = arith.constant 0.000000e+00 : f32
    %226 = vector.broadcast %cst_45 : f32 to vector<8x256xf32>
    %227 = arith.maximumf %225, %226 : vector<8x256xf32>
    %228 = vector.extract_strided_slice %5 {offsets = [0, 18], sizes = [8, 1], strides = [1, 1]} : vector<8x102xf32> to vector<8x1xf32>
    %229 = vector.broadcast %228 : vector<8x1xf32> to vector<8x256xf32>
    %230 = arith.mulf %227, %229 : vector<8x256xf32>
    %231 = arith.addf %221, %230 : vector<8x256xf32>
    %c4_i32 = arith.constant 4 : i32
    %232 = tpu.dynamic_rotate %2 by %c4_i32 dim 1 : vector<8x256xf32>, i32 -> vector<8x256xf32>
    %c17 = arith.constant 17 : index
    %c0_46 = arith.constant 0 : index
    %233 = vector.load %arg2[%c17, %c0_46] : memref<42x256xf32, #tpu.memory_space<vmem>>, vector<1x256xf32>
    %234 = vector.broadcast %233 : vector<1x256xf32> to vector<8x256xf32>
    %235 = arith.mulf %232, %234 : vector<8x256xf32>
    %cst_47 = arith.constant 0.000000e+00 : f32
    %236 = vector.broadcast %cst_47 : f32 to vector<8x256xf32>
    %237 = arith.maximumf %235, %236 : vector<8x256xf32>
    %238 = vector.extract_strided_slice %5 {offsets = [0, 53], sizes = [8, 1], strides = [1, 1]} : vector<8x102xf32> to vector<8x1xf32>
    %239 = vector.broadcast %238 : vector<8x1xf32> to vector<8x256xf32>
    %240 = arith.mulf %237, %239 : vector<8x256xf32>
    %241 = arith.addf %146, %240 : vector<8x256xf32>
    %c2_i32 = arith.constant 2 : i32
    %242 = tpu.dynamic_rotate %2 by %c2_i32 dim 1 : vector<8x256xf32>, i32 -> vector<8x256xf32>
    %c18 = arith.constant 18 : index
    %c0_48 = arith.constant 0 : index
    %243 = vector.load %arg2[%c18, %c0_48] : memref<42x256xf32, #tpu.memory_space<vmem>>, vector<1x256xf32>
    %244 = vector.broadcast %243 : vector<1x256xf32> to vector<8x256xf32>
    %245 = arith.mulf %242, %244 : vector<8x256xf32>
    %cst_49 = arith.constant 0.000000e+00 : f32
    %246 = vector.broadcast %cst_49 : f32 to vector<8x256xf32>
    %247 = arith.maximumf %245, %246 : vector<8x256xf32>
    %248 = vector.extract_strided_slice %5 {offsets = [0, 19], sizes = [8, 1], strides = [1, 1]} : vector<8x102xf32> to vector<8x1xf32>
    %249 = vector.broadcast %248 : vector<8x1xf32> to vector<8x256xf32>
    %250 = arith.mulf %247, %249 : vector<8x256xf32>
    %251 = arith.addf %231, %250 : vector<8x256xf32>
    %252 = vector.extract_strided_slice %5 {offsets = [0, 37], sizes = [8, 1], strides = [1, 1]} : vector<8x102xf32> to vector<8x1xf32>
    %253 = vector.broadcast %252 : vector<8x1xf32> to vector<8x256xf32>
    %254 = arith.mulf %247, %253 : vector<8x256xf32>
    %255 = arith.addf %132, %254 : vector<8x256xf32>
    %256 = vector.extract_strided_slice %5 {offsets = [0, 54], sizes = [8, 1], strides = [1, 1]} : vector<8x102xf32> to vector<8x1xf32>
    %257 = vector.broadcast %256 : vector<8x1xf32> to vector<8x256xf32>
    %258 = arith.mulf %247, %257 : vector<8x256xf32>
    %259 = arith.addf %241, %258 : vector<8x256xf32>
    %c1_i32 = arith.constant 1 : i32
    %260 = tpu.dynamic_rotate %2 by %c1_i32 dim 1 : vector<8x256xf32>, i32 -> vector<8x256xf32>
    %c19 = arith.constant 19 : index
    %c0_50 = arith.constant 0 : index
    %261 = vector.load %arg2[%c19, %c0_50] : memref<42x256xf32, #tpu.memory_space<vmem>>, vector<1x256xf32>
    %262 = vector.broadcast %261 : vector<1x256xf32> to vector<8x256xf32>
    %263 = arith.mulf %260, %262 : vector<8x256xf32>
    %cst_51 = arith.constant 0.000000e+00 : f32
    %264 = vector.broadcast %cst_51 : f32 to vector<8x256xf32>
    %265 = arith.maximumf %263, %264 : vector<8x256xf32>
    %cst_52 = arith.constant 0.000000e+00 : f32
    %266 = vector.broadcast %cst_52 : f32 to vector<1x256xf32>
    %267 = arith.cmpf ogt, %261, %266 : vector<1x256xf32>
    %cst_53 = arith.constant -1.000000e+30 : f32
    %268 = vector.shape_cast %267 : vector<1x256xi1> to vector<1x256xi1>
    %269 = vector.broadcast %268 : vector<1x256xi1> to vector<8x256xi1>
    %270 = vector.broadcast %cst_53 : f32 to vector<8x256xf32>
    %271 = arith.select %269, %260, %270 : vector<8x256xi1>, vector<8x256xf32>
    %272 = arith.maximumf %212, %271 : vector<8x256xf32>
    %273 = arith.addf %213, %263 : vector<8x256xf32>
    %274 = vector.extract_strided_slice %5 {offsets = [0, 3], sizes = [8, 1], strides = [1, 1]} : vector<8x102xf32> to vector<8x1xf32>
    %275 = vector.broadcast %274 : vector<8x1xf32> to vector<8x256xf32>
    %276 = arith.mulf %265, %275 : vector<8x256xf32>
    %277 = arith.addf %217, %276 : vector<8x256xf32>
    %278 = vector.extract_strided_slice %5 {offsets = [0, 20], sizes = [8, 1], strides = [1, 1]} : vector<8x102xf32> to vector<8x1xf32>
    %279 = vector.broadcast %278 : vector<8x1xf32> to vector<8x256xf32>
    %280 = arith.mulf %265, %279 : vector<8x256xf32>
    %281 = arith.addf %251, %280 : vector<8x256xf32>
    %282 = vector.extract_strided_slice %5 {offsets = [0, 4], sizes = [8, 1], strides = [1, 1]} : vector<8x102xf32> to vector<8x1xf32>
    %283 = vector.broadcast %282 : vector<8x1xf32> to vector<8x256xf32>
    %284 = arith.mulf %4, %283 : vector<8x256xf32>
    %285 = arith.addf %277, %284 : vector<8x256xf32>
    %286 = vector.extract_strided_slice %5 {offsets = [0, 21], sizes = [8, 1], strides = [1, 1]} : vector<8x102xf32> to vector<8x1xf32>
    %287 = vector.broadcast %286 : vector<8x1xf32> to vector<8x256xf32>
    %288 = arith.mulf %4, %287 : vector<8x256xf32>
    %289 = arith.addf %281, %288 : vector<8x256xf32>
    %290 = vector.extract_strided_slice %5 {offsets = [0, 38], sizes = [8, 1], strides = [1, 1]} : vector<8x102xf32> to vector<8x1xf32>
    %291 = vector.broadcast %290 : vector<8x1xf32> to vector<8x256xf32>
    %292 = arith.mulf %4, %291 : vector<8x256xf32>
    %293 = arith.addf %255, %292 : vector<8x256xf32>
    %294 = vector.extract_strided_slice %5 {offsets = [0, 55], sizes = [8, 1], strides = [1, 1]} : vector<8x102xf32> to vector<8x1xf32>
    %295 = vector.broadcast %294 : vector<8x1xf32> to vector<8x256xf32>
    %296 = arith.mulf %4, %295 : vector<8x256xf32>
    %297 = arith.addf %259, %296 : vector<8x256xf32>
    %c255_i32 = arith.constant 255 : i32
    %298 = tpu.dynamic_rotate %2 by %c255_i32 dim 1 : vector<8x256xf32>, i32 -> vector<8x256xf32>
    %c21 = arith.constant 21 : index
    %c0_54 = arith.constant 0 : index
    %299 = vector.load %arg2[%c21, %c0_54] : memref<42x256xf32, #tpu.memory_space<vmem>>, vector<1x256xf32>
    %300 = vector.broadcast %299 : vector<1x256xf32> to vector<8x256xf32>
    %301 = arith.mulf %298, %300 : vector<8x256xf32>
    %cst_55 = arith.constant 0.000000e+00 : f32
    %302 = vector.broadcast %cst_55 : f32 to vector<8x256xf32>
    %303 = arith.maximumf %301, %302 : vector<8x256xf32>
    %cst_56 = arith.constant 0.000000e+00 : f32
    %304 = vector.broadcast %cst_56 : f32 to vector<1x256xf32>
    %305 = arith.cmpf ogt, %299, %304 : vector<1x256xf32>
    %cst_57 = arith.constant -1.000000e+30 : f32
    %306 = vector.shape_cast %305 : vector<1x256xi1> to vector<1x256xi1>
    %307 = vector.broadcast %306 : vector<1x256xi1> to vector<8x256xi1>
    %308 = vector.broadcast %cst_57 : f32 to vector<8x256xf32>
    %309 = arith.select %307, %298, %308 : vector<8x256xi1>, vector<8x256xf32>
    %310 = arith.maximumf %272, %309 : vector<8x256xf32>
    %311 = arith.addf %273, %301 : vector<8x256xf32>
    %312 = vector.extract_strided_slice %5 {offsets = [0, 5], sizes = [8, 1], strides = [1, 1]} : vector<8x102xf32> to vector<8x1xf32>
    %313 = vector.broadcast %312 : vector<8x1xf32> to vector<8x256xf32>
    %314 = arith.mulf %303, %313 : vector<8x256xf32>
    %315 = arith.addf %285, %314 : vector<8x256xf32>
    %316 = vector.extract_strided_slice %5 {offsets = [0, 22], sizes = [8, 1], strides = [1, 1]} : vector<8x102xf32> to vector<8x1xf32>
    %317 = vector.broadcast %316 : vector<8x1xf32> to vector<8x256xf32>
    %318 = arith.mulf %303, %317 : vector<8x256xf32>
    %319 = arith.addf %289, %318 : vector<8x256xf32>
    %c254_i32 = arith.constant 254 : i32
    %320 = tpu.dynamic_rotate %2 by %c254_i32 dim 1 : vector<8x256xf32>, i32 -> vector<8x256xf32>
    %c22 = arith.constant 22 : index
    %c0_58 = arith.constant 0 : index
    %321 = vector.load %arg2[%c22, %c0_58] : memref<42x256xf32, #tpu.memory_space<vmem>>, vector<1x256xf32>
    %322 = vector.broadcast %321 : vector<1x256xf32> to vector<8x256xf32>
    %323 = arith.mulf %320, %322 : vector<8x256xf32>
    %cst_59 = arith.constant 0.000000e+00 : f32
    %324 = vector.broadcast %cst_59 : f32 to vector<8x256xf32>
    %325 = arith.maximumf %323, %324 : vector<8x256xf32>
    %326 = vector.extract_strided_slice %5 {offsets = [0, 23], sizes = [8, 1], strides = [1, 1]} : vector<8x102xf32> to vector<8x1xf32>
    %327 = vector.broadcast %326 : vector<8x1xf32> to vector<8x256xf32>
    %328 = arith.mulf %325, %327 : vector<8x256xf32>
    %329 = arith.addf %319, %328 : vector<8x256xf32>
    %330 = vector.extract_strided_slice %5 {offsets = [0, 39], sizes = [8, 1], strides = [1, 1]} : vector<8x102xf32> to vector<8x1xf32>
    %331 = vector.broadcast %330 : vector<8x1xf32> to vector<8x256xf32>
    %332 = arith.mulf %325, %331 : vector<8x256xf32>
    %333 = arith.addf %293, %332 : vector<8x256xf32>
    %334 = vector.extract_strided_slice %5 {offsets = [0, 56], sizes = [8, 1], strides = [1, 1]} : vector<8x102xf32> to vector<8x1xf32>
    %335 = vector.broadcast %334 : vector<8x1xf32> to vector<8x256xf32>
    %336 = arith.mulf %325, %335 : vector<8x256xf32>
    %337 = arith.addf %297, %336 : vector<8x256xf32>
    %c252_i32 = arith.constant 252 : i32
    %338 = tpu.dynamic_rotate %2 by %c252_i32 dim 1 : vector<8x256xf32>, i32 -> vector<8x256xf32>
    %c23 = arith.constant 23 : index
    %c0_60 = arith.constant 0 : index
    %339 = vector.load %arg2[%c23, %c0_60] : memref<42x256xf32, #tpu.memory_space<vmem>>, vector<1x256xf32>
    %340 = vector.broadcast %339 : vector<1x256xf32> to vector<8x256xf32>
    %341 = arith.mulf %338, %340 : vector<8x256xf32>
    %cst_61 = arith.constant 0.000000e+00 : f32
    %342 = vector.broadcast %cst_61 : f32 to vector<8x256xf32>
    %343 = arith.maximumf %341, %342 : vector<8x256xf32>
    %344 = vector.extract_strided_slice %5 {offsets = [0, 57], sizes = [8, 1], strides = [1, 1]} : vector<8x102xf32> to vector<8x1xf32>
    %345 = vector.broadcast %344 : vector<8x1xf32> to vector<8x256xf32>
    %346 = arith.mulf %343, %345 : vector<8x256xf32>
    %347 = arith.addf %337, %346 : vector<8x256xf32>
    %c242_i32 = arith.constant 242 : i32
    %348 = tpu.dynamic_rotate %2 by %c242_i32 dim 1 : vector<8x256xf32>, i32 -> vector<8x256xf32>
    %c24 = arith.constant 24 : index
    %c0_62 = arith.constant 0 : index
    %349 = vector.load %arg2[%c24, %c0_62] : memref<42x256xf32, #tpu.memory_space<vmem>>, vector<1x256xf32>
    %350 = vector.broadcast %349 : vector<1x256xf32> to vector<8x256xf32>
    %351 = arith.mulf %348, %350 : vector<8x256xf32>
    %cst_63 = arith.constant 0.000000e+00 : f32
    %352 = vector.broadcast %cst_63 : f32 to vector<8x256xf32>
    %353 = arith.maximumf %351, %352 : vector<8x256xf32>
    %354 = vector.extract_strided_slice %5 {offsets = [0, 24], sizes = [8, 1], strides = [1, 1]} : vector<8x102xf32> to vector<8x1xf32>
    %355 = vector.broadcast %354 : vector<8x1xf32> to vector<8x256xf32>
    %356 = arith.mulf %353, %355 : vector<8x256xf32>
    %357 = arith.addf %329, %356 : vector<8x256xf32>
    %c241_i32 = arith.constant 241 : i32
    %358 = tpu.dynamic_rotate %2 by %c241_i32 dim 1 : vector<8x256xf32>, i32 -> vector<8x256xf32>
    %c25 = arith.constant 25 : index
    %c0_64 = arith.constant 0 : index
    %359 = vector.load %arg2[%c25, %c0_64] : memref<42x256xf32, #tpu.memory_space<vmem>>, vector<1x256xf32>
    %360 = vector.broadcast %359 : vector<1x256xf32> to vector<8x256xf32>
    %361 = arith.mulf %358, %360 : vector<8x256xf32>
    %cst_65 = arith.constant 0.000000e+00 : f32
    %362 = vector.broadcast %cst_65 : f32 to vector<8x256xf32>
    %363 = arith.maximumf %361, %362 : vector<8x256xf32>
    %cst_66 = arith.constant 0.000000e+00 : f32
    %364 = vector.broadcast %cst_66 : f32 to vector<1x256xf32>
    %365 = arith.cmpf ogt, %359, %364 : vector<1x256xf32>
    %cst_67 = arith.constant -1.000000e+30 : f32
    %366 = vector.shape_cast %365 : vector<1x256xi1> to vector<1x256xi1>
    %367 = vector.broadcast %366 : vector<1x256xi1> to vector<8x256xi1>
    %368 = vector.broadcast %cst_67 : f32 to vector<8x256xf32>
    %369 = arith.select %367, %358, %368 : vector<8x256xi1>, vector<8x256xf32>
    %370 = arith.maximumf %310, %369 : vector<8x256xf32>
    %371 = arith.addf %311, %361 : vector<8x256xf32>
    %372 = vector.extract_strided_slice %5 {offsets = [0, 6], sizes = [8, 1], strides = [1, 1]} : vector<8x102xf32> to vector<8x1xf32>
    %373 = vector.broadcast %372 : vector<8x1xf32> to vector<8x256xf32>
    %374 = arith.mulf %363, %373 : vector<8x256xf32>
    %375 = arith.addf %315, %374 : vector<8x256xf32>
    %376 = vector.extract_strided_slice %5 {offsets = [0, 25], sizes = [8, 1], strides = [1, 1]} : vector<8x102xf32> to vector<8x1xf32>
    %377 = vector.broadcast %376 : vector<8x1xf32> to vector<8x256xf32>
    %378 = arith.mulf %363, %377 : vector<8x256xf32>
    %379 = arith.addf %357, %378 : vector<8x256xf32>
    %c240_i32 = arith.constant 240 : i32
    %380 = tpu.dynamic_rotate %2 by %c240_i32 dim 1 : vector<8x256xf32>, i32 -> vector<8x256xf32>
    %c26 = arith.constant 26 : index
    %c0_68 = arith.constant 0 : index
    %381 = vector.load %arg2[%c26, %c0_68] : memref<42x256xf32, #tpu.memory_space<vmem>>, vector<1x256xf32>
    %382 = vector.broadcast %381 : vector<1x256xf32> to vector<8x256xf32>
    %383 = arith.mulf %380, %382 : vector<8x256xf32>
    %cst_69 = arith.constant 0.000000e+00 : f32
    %384 = vector.broadcast %cst_69 : f32 to vector<8x256xf32>
    %385 = arith.maximumf %383, %384 : vector<8x256xf32>
    %cst_70 = arith.constant 0.000000e+00 : f32
    %386 = vector.broadcast %cst_70 : f32 to vector<1x256xf32>
    %387 = arith.cmpf ogt, %381, %386 : vector<1x256xf32>
    %cst_71 = arith.constant -1.000000e+30 : f32
    %388 = vector.shape_cast %387 : vector<1x256xi1> to vector<1x256xi1>
    %389 = vector.broadcast %388 : vector<1x256xi1> to vector<8x256xi1>
    %390 = vector.broadcast %cst_71 : f32 to vector<8x256xf32>
    %391 = arith.select %389, %380, %390 : vector<8x256xi1>, vector<8x256xf32>
    %392 = arith.maximumf %370, %391 : vector<8x256xf32>
    %393 = arith.addf %371, %383 : vector<8x256xf32>
    %394 = vector.extract_strided_slice %5 {offsets = [0, 7], sizes = [8, 1], strides = [1, 1]} : vector<8x102xf32> to vector<8x1xf32>
    %395 = vector.broadcast %394 : vector<8x1xf32> to vector<8x256xf32>
    %396 = arith.mulf %385, %395 : vector<8x256xf32>
    %397 = arith.addf %375, %396 : vector<8x256xf32>
    %398 = vector.extract_strided_slice %5 {offsets = [0, 26], sizes = [8, 1], strides = [1, 1]} : vector<8x102xf32> to vector<8x1xf32>
    %399 = vector.broadcast %398 : vector<8x1xf32> to vector<8x256xf32>
    %400 = arith.mulf %385, %399 : vector<8x256xf32>
    %401 = arith.addf %379, %400 : vector<8x256xf32>
    %c239_i32 = arith.constant 239 : i32
    %402 = tpu.dynamic_rotate %2 by %c239_i32 dim 1 : vector<8x256xf32>, i32 -> vector<8x256xf32>
    %c27 = arith.constant 27 : index
    %c0_72 = arith.constant 0 : index
    %403 = vector.load %arg2[%c27, %c0_72] : memref<42x256xf32, #tpu.memory_space<vmem>>, vector<1x256xf32>
    %404 = vector.broadcast %403 : vector<1x256xf32> to vector<8x256xf32>
    %405 = arith.mulf %402, %404 : vector<8x256xf32>
    %cst_73 = arith.constant 0.000000e+00 : f32
    %406 = vector.broadcast %cst_73 : f32 to vector<8x256xf32>
    %407 = arith.maximumf %405, %406 : vector<8x256xf32>
    %cst_74 = arith.constant 0.000000e+00 : f32
    %408 = vector.broadcast %cst_74 : f32 to vector<1x256xf32>
    %409 = arith.cmpf ogt, %403, %408 : vector<1x256xf32>
    %cst_75 = arith.constant -1.000000e+30 : f32
    %410 = vector.shape_cast %409 : vector<1x256xi1> to vector<1x256xi1>
    %411 = vector.broadcast %410 : vector<1x256xi1> to vector<8x256xi1>
    %412 = vector.broadcast %cst_75 : f32 to vector<8x256xf32>
    %413 = arith.select %411, %402, %412 : vector<8x256xi1>, vector<8x256xf32>
    %414 = arith.maximumf %392, %413 : vector<8x256xf32>
    %415 = arith.addf %393, %405 : vector<8x256xf32>
    %416 = vector.extract_strided_slice %5 {offsets = [0, 8], sizes = [8, 1], strides = [1, 1]} : vector<8x102xf32> to vector<8x1xf32>
    %417 = vector.broadcast %416 : vector<8x1xf32> to vector<8x256xf32>
    %418 = arith.mulf %407, %417 : vector<8x256xf32>
    %419 = arith.addf %397, %418 : vector<8x256xf32>
    %420 = vector.extract_strided_slice %5 {offsets = [0, 27], sizes = [8, 1], strides = [1, 1]} : vector<8x102xf32> to vector<8x1xf32>
    %421 = vector.broadcast %420 : vector<8x1xf32> to vector<8x256xf32>
    %422 = arith.mulf %407, %421 : vector<8x256xf32>
    %423 = arith.addf %401, %422 : vector<8x256xf32>
    %c238_i32 = arith.constant 238 : i32
    %424 = tpu.dynamic_rotate %2 by %c238_i32 dim 1 : vector<8x256xf32>, i32 -> vector<8x256xf32>
    %c28 = arith.constant 28 : index
    %c0_76 = arith.constant 0 : index
    %425 = vector.load %arg2[%c28, %c0_76] : memref<42x256xf32, #tpu.memory_space<vmem>>, vector<1x256xf32>
    %426 = vector.broadcast %425 : vector<1x256xf32> to vector<8x256xf32>
    %427 = arith.mulf %424, %426 : vector<8x256xf32>
    %cst_77 = arith.constant 0.000000e+00 : f32
    %428 = vector.broadcast %cst_77 : f32 to vector<8x256xf32>
    %429 = arith.maximumf %427, %428 : vector<8x256xf32>
    %430 = vector.extract_strided_slice %5 {offsets = [0, 28], sizes = [8, 1], strides = [1, 1]} : vector<8x102xf32> to vector<8x1xf32>
    %431 = vector.broadcast %430 : vector<8x1xf32> to vector<8x256xf32>
    %432 = arith.mulf %429, %431 : vector<8x256xf32>
    %433 = arith.addf %423, %432 : vector<8x256xf32>
    %c228_i32 = arith.constant 228 : i32
    %434 = tpu.dynamic_rotate %2 by %c228_i32 dim 1 : vector<8x256xf32>, i32 -> vector<8x256xf32>
    %c29 = arith.constant 29 : index
    %c0_78 = arith.constant 0 : index
    %435 = vector.load %arg2[%c29, %c0_78] : memref<42x256xf32, #tpu.memory_space<vmem>>, vector<1x256xf32>
    %436 = vector.broadcast %435 : vector<1x256xf32> to vector<8x256xf32>
    %437 = arith.mulf %434, %436 : vector<8x256xf32>
    %cst_79 = arith.constant 0.000000e+00 : f32
    %438 = vector.broadcast %cst_79 : f32 to vector<8x256xf32>
    %439 = arith.maximumf %437, %438 : vector<8x256xf32>
    %440 = vector.extract_strided_slice %5 {offsets = [0, 58], sizes = [8, 1], strides = [1, 1]} : vector<8x102xf32> to vector<8x1xf32>
    %441 = vector.broadcast %440 : vector<8x1xf32> to vector<8x256xf32>
    %442 = arith.mulf %439, %441 : vector<8x256xf32>
    %443 = arith.addf %347, %442 : vector<8x256xf32>
    %c226_i32 = arith.constant 226 : i32
    %444 = tpu.dynamic_rotate %2 by %c226_i32 dim 1 : vector<8x256xf32>, i32 -> vector<8x256xf32>
    %c30 = arith.constant 30 : index
    %c0_80 = arith.constant 0 : index
    %445 = vector.load %arg2[%c30, %c0_80] : memref<42x256xf32, #tpu.memory_space<vmem>>, vector<1x256xf32>
    %446 = vector.broadcast %445 : vector<1x256xf32> to vector<8x256xf32>
    %447 = arith.mulf %444, %446 : vector<8x256xf32>
    %cst_81 = arith.constant 0.000000e+00 : f32
    %448 = vector.broadcast %cst_81 : f32 to vector<8x256xf32>
    %449 = arith.maximumf %447, %448 : vector<8x256xf32>
    %450 = vector.extract_strided_slice %5 {offsets = [0, 29], sizes = [8, 1], strides = [1, 1]} : vector<8x102xf32> to vector<8x1xf32>
    %451 = vector.broadcast %450 : vector<8x1xf32> to vector<8x256xf32>
    %452 = arith.mulf %449, %451 : vector<8x256xf32>
    %453 = arith.addf %433, %452 : vector<8x256xf32>
    %454 = vector.extract_strided_slice %5 {offsets = [0, 40], sizes = [8, 1], strides = [1, 1]} : vector<8x102xf32> to vector<8x1xf32>
    %455 = vector.broadcast %454 : vector<8x1xf32> to vector<8x256xf32>
    %456 = arith.mulf %449, %455 : vector<8x256xf32>
    %457 = arith.addf %333, %456 : vector<8x256xf32>
    %458 = vector.extract_strided_slice %5 {offsets = [0, 59], sizes = [8, 1], strides = [1, 1]} : vector<8x102xf32> to vector<8x1xf32>
    %459 = vector.broadcast %458 : vector<8x1xf32> to vector<8x256xf32>
    %460 = arith.mulf %449, %459 : vector<8x256xf32>
    %461 = arith.addf %443, %460 : vector<8x256xf32>
    %c225_i32 = arith.constant 225 : i32
    %462 = tpu.dynamic_rotate %2 by %c225_i32 dim 1 : vector<8x256xf32>, i32 -> vector<8x256xf32>
    %c31 = arith.constant 31 : index
    %c0_82 = arith.constant 0 : index
    %463 = vector.load %arg2[%c31, %c0_82] : memref<42x256xf32, #tpu.memory_space<vmem>>, vector<1x256xf32>
    %464 = vector.broadcast %463 : vector<1x256xf32> to vector<8x256xf32>
    %465 = arith.mulf %462, %464 : vector<8x256xf32>
    %cst_83 = arith.constant 0.000000e+00 : f32
    %466 = vector.broadcast %cst_83 : f32 to vector<8x256xf32>
    %467 = arith.maximumf %465, %466 : vector<8x256xf32>
    %468 = vector.extract_strided_slice %5 {offsets = [0, 30], sizes = [8, 1], strides = [1, 1]} : vector<8x102xf32> to vector<8x1xf32>
    %469 = vector.broadcast %468 : vector<8x1xf32> to vector<8x256xf32>
    %470 = arith.mulf %467, %469 : vector<8x256xf32>
    %471 = arith.addf %453, %470 : vector<8x256xf32>
    %c224_i32 = arith.constant 224 : i32
    %472 = tpu.dynamic_rotate %2 by %c224_i32 dim 1 : vector<8x256xf32>, i32 -> vector<8x256xf32>
    %c32 = arith.constant 32 : index
    %c0_84 = arith.constant 0 : index
    %473 = vector.load %arg2[%c32, %c0_84] : memref<42x256xf32, #tpu.memory_space<vmem>>, vector<1x256xf32>
    %474 = vector.broadcast %473 : vector<1x256xf32> to vector<8x256xf32>
    %475 = arith.mulf %472, %474 : vector<8x256xf32>
    %cst_85 = arith.constant 0.000000e+00 : f32
    %476 = vector.broadcast %cst_85 : f32 to vector<8x256xf32>
    %477 = arith.maximumf %475, %476 : vector<8x256xf32>
    %478 = vector.extract_strided_slice %5 {offsets = [0, 31], sizes = [8, 1], strides = [1, 1]} : vector<8x102xf32> to vector<8x1xf32>
    %479 = vector.broadcast %478 : vector<8x1xf32> to vector<8x256xf32>
    %480 = arith.mulf %477, %479 : vector<8x256xf32>
    %481 = arith.addf %471, %480 : vector<8x256xf32>
    %482 = vector.extract_strided_slice %5 {offsets = [0, 41], sizes = [8, 1], strides = [1, 1]} : vector<8x102xf32> to vector<8x1xf32>
    %483 = vector.broadcast %482 : vector<8x1xf32> to vector<8x256xf32>
    %484 = arith.mulf %477, %483 : vector<8x256xf32>
    %485 = arith.addf %457, %484 : vector<8x256xf32>
    %486 = vector.extract_strided_slice %5 {offsets = [0, 60], sizes = [8, 1], strides = [1, 1]} : vector<8x102xf32> to vector<8x1xf32>
    %487 = vector.broadcast %486 : vector<8x1xf32> to vector<8x256xf32>
    %488 = arith.mulf %477, %487 : vector<8x256xf32>
    %489 = arith.addf %461, %488 : vector<8x256xf32>
    %c223_i32 = arith.constant 223 : i32
    %490 = tpu.dynamic_rotate %2 by %c223_i32 dim 1 : vector<8x256xf32>, i32 -> vector<8x256xf32>
    %c33 = arith.constant 33 : index
    %c0_86 = arith.constant 0 : index
    %491 = vector.load %arg2[%c33, %c0_86] : memref<42x256xf32, #tpu.memory_space<vmem>>, vector<1x256xf32>
    %492 = vector.broadcast %491 : vector<1x256xf32> to vector<8x256xf32>
    %493 = arith.mulf %490, %492 : vector<8x256xf32>
    %cst_87 = arith.constant 0.000000e+00 : f32
    %494 = vector.broadcast %cst_87 : f32 to vector<8x256xf32>
    %495 = arith.maximumf %493, %494 : vector<8x256xf32>
    %496 = vector.extract_strided_slice %5 {offsets = [0, 32], sizes = [8, 1], strides = [1, 1]} : vector<8x102xf32> to vector<8x1xf32>
    %497 = vector.broadcast %496 : vector<8x1xf32> to vector<8x256xf32>
    %498 = arith.mulf %495, %497 : vector<8x256xf32>
    %499 = arith.addf %481, %498 : vector<8x256xf32>
    %c222_i32 = arith.constant 222 : i32
    %500 = tpu.dynamic_rotate %2 by %c222_i32 dim 1 : vector<8x256xf32>, i32 -> vector<8x256xf32>
    %c34 = arith.constant 34 : index
    %c0_88 = arith.constant 0 : index
    %501 = vector.load %arg2[%c34, %c0_88] : memref<42x256xf32, #tpu.memory_space<vmem>>, vector<1x256xf32>
    %502 = vector.broadcast %501 : vector<1x256xf32> to vector<8x256xf32>
    %503 = arith.mulf %500, %502 : vector<8x256xf32>
    %cst_89 = arith.constant 0.000000e+00 : f32
    %504 = vector.broadcast %cst_89 : f32 to vector<8x256xf32>
    %505 = arith.maximumf %503, %504 : vector<8x256xf32>
    %506 = vector.extract_strided_slice %5 {offsets = [0, 33], sizes = [8, 1], strides = [1, 1]} : vector<8x102xf32> to vector<8x1xf32>
    %507 = vector.broadcast %506 : vector<8x1xf32> to vector<8x256xf32>
    %508 = arith.mulf %505, %507 : vector<8x256xf32>
    %509 = arith.addf %499, %508 : vector<8x256xf32>
    %510 = vector.extract_strided_slice %5 {offsets = [0, 42], sizes = [8, 1], strides = [1, 1]} : vector<8x102xf32> to vector<8x1xf32>
    %511 = vector.broadcast %510 : vector<8x1xf32> to vector<8x256xf32>
    %512 = arith.mulf %505, %511 : vector<8x256xf32>
    %513 = arith.addf %485, %512 : vector<8x256xf32>
    %514 = vector.extract_strided_slice %5 {offsets = [0, 61], sizes = [8, 1], strides = [1, 1]} : vector<8x102xf32> to vector<8x1xf32>
    %515 = vector.broadcast %514 : vector<8x1xf32> to vector<8x256xf32>
    %516 = arith.mulf %505, %515 : vector<8x256xf32>
    %517 = arith.addf %489, %516 : vector<8x256xf32>
    %c220_i32 = arith.constant 220 : i32
    %518 = tpu.dynamic_rotate %2 by %c220_i32 dim 1 : vector<8x256xf32>, i32 -> vector<8x256xf32>
    %c35 = arith.constant 35 : index
    %c0_90 = arith.constant 0 : index
    %519 = vector.load %arg2[%c35, %c0_90] : memref<42x256xf32, #tpu.memory_space<vmem>>, vector<1x256xf32>
    %520 = vector.broadcast %519 : vector<1x256xf32> to vector<8x256xf32>
    %521 = arith.mulf %518, %520 : vector<8x256xf32>
    %cst_91 = arith.constant 0.000000e+00 : f32
    %522 = vector.broadcast %cst_91 : f32 to vector<8x256xf32>
    %523 = arith.maximumf %521, %522 : vector<8x256xf32>
    %524 = vector.extract_strided_slice %5 {offsets = [0, 62], sizes = [8, 1], strides = [1, 1]} : vector<8x102xf32> to vector<8x1xf32>
    %525 = vector.broadcast %524 : vector<8x1xf32> to vector<8x256xf32>
    %526 = arith.mulf %523, %525 : vector<8x256xf32>
    %527 = arith.addf %517, %526 : vector<8x256xf32>
    %c196_i32 = arith.constant 196 : i32
    %528 = tpu.dynamic_rotate %2 by %c196_i32 dim 1 : vector<8x256xf32>, i32 -> vector<8x256xf32>
    %c36 = arith.constant 36 : index
    %c0_92 = arith.constant 0 : index
    %529 = vector.load %arg2[%c36, %c0_92] : memref<42x256xf32, #tpu.memory_space<vmem>>, vector<1x256xf32>
    %530 = vector.broadcast %529 : vector<1x256xf32> to vector<8x256xf32>
    %531 = arith.mulf %528, %530 : vector<8x256xf32>
    %cst_93 = arith.constant 0.000000e+00 : f32
    %532 = vector.broadcast %cst_93 : f32 to vector<8x256xf32>
    %533 = arith.maximumf %531, %532 : vector<8x256xf32>
    %534 = vector.extract_strided_slice %5 {offsets = [0, 63], sizes = [8, 1], strides = [1, 1]} : vector<8x102xf32> to vector<8x1xf32>
    %535 = vector.broadcast %534 : vector<8x1xf32> to vector<8x256xf32>
    %536 = arith.mulf %533, %535 : vector<8x256xf32>
    %537 = arith.addf %527, %536 : vector<8x256xf32>
    %c194_i32 = arith.constant 194 : i32
    %538 = tpu.dynamic_rotate %2 by %c194_i32 dim 1 : vector<8x256xf32>, i32 -> vector<8x256xf32>
    %c37 = arith.constant 37 : index
    %c0_94 = arith.constant 0 : index
    %539 = vector.load %arg2[%c37, %c0_94] : memref<42x256xf32, #tpu.memory_space<vmem>>, vector<1x256xf32>
    %540 = vector.broadcast %539 : vector<1x256xf32> to vector<8x256xf32>
    %541 = arith.mulf %538, %540 : vector<8x256xf32>
    %cst_95 = arith.constant 0.000000e+00 : f32
    %542 = vector.broadcast %cst_95 : f32 to vector<8x256xf32>
    %543 = arith.maximumf %541, %542 : vector<8x256xf32>
    %544 = vector.extract_strided_slice %5 {offsets = [0, 64], sizes = [8, 1], strides = [1, 1]} : vector<8x102xf32> to vector<8x1xf32>
    %545 = vector.broadcast %544 : vector<8x1xf32> to vector<8x256xf32>
    %546 = arith.mulf %543, %545 : vector<8x256xf32>
    %547 = arith.addf %537, %546 : vector<8x256xf32>
    %c192_i32 = arith.constant 192 : i32
    %548 = tpu.dynamic_rotate %2 by %c192_i32 dim 1 : vector<8x256xf32>, i32 -> vector<8x256xf32>
    %c38 = arith.constant 38 : index
    %c0_96 = arith.constant 0 : index
    %549 = vector.load %arg2[%c38, %c0_96] : memref<42x256xf32, #tpu.memory_space<vmem>>, vector<1x256xf32>
    %550 = vector.broadcast %549 : vector<1x256xf32> to vector<8x256xf32>
    %551 = arith.mulf %548, %550 : vector<8x256xf32>
    %cst_97 = arith.constant 0.000000e+00 : f32
    %552 = vector.broadcast %cst_97 : f32 to vector<8x256xf32>
    %553 = arith.maximumf %551, %552 : vector<8x256xf32>
    %554 = vector.extract_strided_slice %5 {offsets = [0, 65], sizes = [8, 1], strides = [1, 1]} : vector<8x102xf32> to vector<8x1xf32>
    %555 = vector.broadcast %554 : vector<8x1xf32> to vector<8x256xf32>
    %556 = arith.mulf %553, %555 : vector<8x256xf32>
    %557 = arith.addf %547, %556 : vector<8x256xf32>
    %c190_i32 = arith.constant 190 : i32
    %558 = tpu.dynamic_rotate %2 by %c190_i32 dim 1 : vector<8x256xf32>, i32 -> vector<8x256xf32>
    %c39 = arith.constant 39 : index
    %c0_98 = arith.constant 0 : index
    %559 = vector.load %arg2[%c39, %c0_98] : memref<42x256xf32, #tpu.memory_space<vmem>>, vector<1x256xf32>
    %560 = vector.broadcast %559 : vector<1x256xf32> to vector<8x256xf32>
    %561 = arith.mulf %558, %560 : vector<8x256xf32>
    %cst_99 = arith.constant 0.000000e+00 : f32
    %562 = vector.broadcast %cst_99 : f32 to vector<8x256xf32>
    %563 = arith.maximumf %561, %562 : vector<8x256xf32>
    %564 = vector.extract_strided_slice %5 {offsets = [0, 66], sizes = [8, 1], strides = [1, 1]} : vector<8x102xf32> to vector<8x1xf32>
    %565 = vector.broadcast %564 : vector<8x1xf32> to vector<8x256xf32>
    %566 = arith.mulf %563, %565 : vector<8x256xf32>
    %567 = arith.addf %557, %566 : vector<8x256xf32>
    %c188_i32 = arith.constant 188 : i32
    %568 = tpu.dynamic_rotate %2 by %c188_i32 dim 1 : vector<8x256xf32>, i32 -> vector<8x256xf32>
    %c40 = arith.constant 40 : index
    %c0_100 = arith.constant 0 : index
    %569 = vector.load %arg2[%c40, %c0_100] : memref<42x256xf32, #tpu.memory_space<vmem>>, vector<1x256xf32>
    %570 = vector.broadcast %569 : vector<1x256xf32> to vector<8x256xf32>
    %571 = arith.mulf %568, %570 : vector<8x256xf32>
    %cst_101 = arith.constant 0.000000e+00 : f32
    %572 = vector.broadcast %cst_101 : f32 to vector<8x256xf32>
    %573 = arith.maximumf %571, %572 : vector<8x256xf32>
    %574 = vector.extract_strided_slice %5 {offsets = [0, 67], sizes = [8, 1], strides = [1, 1]} : vector<8x102xf32> to vector<8x1xf32>
    %575 = vector.broadcast %574 : vector<8x1xf32> to vector<8x256xf32>
    %576 = arith.mulf %573, %575 : vector<8x256xf32>
    %577 = arith.addf %567, %576 : vector<8x256xf32>
    %c41 = arith.constant 41 : index
    %c0_102 = arith.constant 0 : index
    %578 = vector.load %arg2[%c41, %c0_102] : memref<42x256xf32, #tpu.memory_space<vmem>>, vector<1x256xf32>
    %579 = vector.broadcast %578 : vector<1x256xf32> to vector<8x256xf32>
    %580 = arith.mulf %415, %579 : vector<8x256xf32>
    %c0_103 = arith.constant 0 : index
    %c0_104 = arith.constant 0 : index
    %c0_105 = arith.constant 0 : index
    %581 = vector.load %arg4[%c0_103, %c0_104, %c0_105] : memref<6x8x8xf32, #tpu.memory_space<vmem>>, vector<1x8x8xf32>
    %582 = vector.shape_cast %581 : vector<1x8x8xf32> to vector<8x8xf32>
    %583 = vector.extract_strided_slice %582 {offsets = [0, 0], sizes = [8, 1], strides = [1, 1]} : vector<8x8xf32> to vector<8x1xf32>
    %584 = vector.extract_strided_slice %419 {offsets = [0, 0], sizes = [1, 256], strides = [1, 1]} : vector<8x256xf32> to vector<1x256xf32>
    %585 = vector.broadcast %583 : vector<8x1xf32> to vector<8x256xf32>
    %586 = vector.broadcast %584 : vector<1x256xf32> to vector<8x256xf32>
    %587 = arith.mulf %585, %586 : vector<8x256xf32>
    %588 = vector.extract_strided_slice %582 {offsets = [0, 1], sizes = [8, 1], strides = [1, 1]} : vector<8x8xf32> to vector<8x1xf32>
    %589 = vector.extract_strided_slice %419 {offsets = [1, 0], sizes = [1, 256], strides = [1, 1]} : vector<8x256xf32> to vector<1x256xf32>
    %590 = vector.broadcast %588 : vector<8x1xf32> to vector<8x256xf32>
    %591 = vector.broadcast %589 : vector<1x256xf32> to vector<8x256xf32>
    %592 = arith.mulf %590, %591 : vector<8x256xf32>
    %593 = arith.addf %587, %592 : vector<8x256xf32>
    %594 = vector.extract_strided_slice %582 {offsets = [0, 2], sizes = [8, 1], strides = [1, 1]} : vector<8x8xf32> to vector<8x1xf32>
    %595 = vector.extract_strided_slice %419 {offsets = [2, 0], sizes = [1, 256], strides = [1, 1]} : vector<8x256xf32> to vector<1x256xf32>
    %596 = vector.broadcast %594 : vector<8x1xf32> to vector<8x256xf32>
    %597 = vector.broadcast %595 : vector<1x256xf32> to vector<8x256xf32>
    %598 = arith.mulf %596, %597 : vector<8x256xf32>
    %599 = arith.addf %593, %598 : vector<8x256xf32>
    %600 = vector.extract_strided_slice %582 {offsets = [0, 3], sizes = [8, 1], strides = [1, 1]} : vector<8x8xf32> to vector<8x1xf32>
    %601 = vector.extract_strided_slice %419 {offsets = [3, 0], sizes = [1, 256], strides = [1, 1]} : vector<8x256xf32> to vector<1x256xf32>
    %602 = vector.broadcast %600 : vector<8x1xf32> to vector<8x256xf32>
    %603 = vector.broadcast %601 : vector<1x256xf32> to vector<8x256xf32>
    %604 = arith.mulf %602, %603 : vector<8x256xf32>
    %605 = arith.addf %599, %604 : vector<8x256xf32>
    %606 = vector.extract_strided_slice %582 {offsets = [0, 4], sizes = [8, 1], strides = [1, 1]} : vector<8x8xf32> to vector<8x1xf32>
    %607 = vector.extract_strided_slice %419 {offsets = [4, 0], sizes = [1, 256], strides = [1, 1]} : vector<8x256xf32> to vector<1x256xf32>
    %608 = vector.broadcast %606 : vector<8x1xf32> to vector<8x256xf32>
    %609 = vector.broadcast %607 : vector<1x256xf32> to vector<8x256xf32>
    %610 = arith.mulf %608, %609 : vector<8x256xf32>
    %611 = arith.addf %605, %610 : vector<8x256xf32>
    %612 = vector.extract_strided_slice %582 {offsets = [0, 5], sizes = [8, 1], strides = [1, 1]} : vector<8x8xf32> to vector<8x1xf32>
    %613 = vector.extract_strided_slice %419 {offsets = [5, 0], sizes = [1, 256], strides = [1, 1]} : vector<8x256xf32> to vector<1x256xf32>
    %614 = vector.broadcast %612 : vector<8x1xf32> to vector<8x256xf32>
    %615 = vector.broadcast %613 : vector<1x256xf32> to vector<8x256xf32>
    %616 = arith.mulf %614, %615 : vector<8x256xf32>
    %617 = arith.addf %611, %616 : vector<8x256xf32>
    %618 = vector.extract_strided_slice %582 {offsets = [0, 6], sizes = [8, 1], strides = [1, 1]} : vector<8x8xf32> to vector<8x1xf32>
    %619 = vector.extract_strided_slice %419 {offsets = [6, 0], sizes = [1, 256], strides = [1, 1]} : vector<8x256xf32> to vector<1x256xf32>
    %620 = vector.broadcast %618 : vector<8x1xf32> to vector<8x256xf32>
    %621 = vector.broadcast %619 : vector<1x256xf32> to vector<8x256xf32>
    %622 = arith.mulf %620, %621 : vector<8x256xf32>
    %623 = arith.addf %617, %622 : vector<8x256xf32>
    %624 = vector.extract_strided_slice %582 {offsets = [0, 7], sizes = [8, 1], strides = [1, 1]} : vector<8x8xf32> to vector<8x1xf32>
    %625 = vector.extract_strided_slice %419 {offsets = [7, 0], sizes = [1, 256], strides = [1, 1]} : vector<8x256xf32> to vector<1x256xf32>
    %626 = vector.broadcast %624 : vector<8x1xf32> to vector<8x256xf32>
    %627 = vector.broadcast %625 : vector<1x256xf32> to vector<8x256xf32>
    %628 = arith.mulf %626, %627 : vector<8x256xf32>
    %629 = arith.addf %623, %628 : vector<8x256xf32>
    %c1_106 = arith.constant 1 : index
    %c0_107 = arith.constant 0 : index
    %c0_108 = arith.constant 0 : index
    %630 = vector.load %arg4[%c1_106, %c0_107, %c0_108] : memref<6x8x8xf32, #tpu.memory_space<vmem>>, vector<1x8x8xf32>
    %631 = vector.shape_cast %630 : vector<1x8x8xf32> to vector<8x8xf32>
    %632 = vector.extract_strided_slice %631 {offsets = [0, 0], sizes = [8, 1], strides = [1, 1]} : vector<8x8xf32> to vector<8x1xf32>
    %633 = vector.extract_strided_slice %509 {offsets = [0, 0], sizes = [1, 256], strides = [1, 1]} : vector<8x256xf32> to vector<1x256xf32>
    %634 = vector.broadcast %632 : vector<8x1xf32> to vector<8x256xf32>
    %635 = vector.broadcast %633 : vector<1x256xf32> to vector<8x256xf32>
    %636 = arith.mulf %634, %635 : vector<8x256xf32>
    %637 = vector.extract_strided_slice %631 {offsets = [0, 1], sizes = [8, 1], strides = [1, 1]} : vector<8x8xf32> to vector<8x1xf32>
    %638 = vector.extract_strided_slice %509 {offsets = [1, 0], sizes = [1, 256], strides = [1, 1]} : vector<8x256xf32> to vector<1x256xf32>
    %639 = vector.broadcast %637 : vector<8x1xf32> to vector<8x256xf32>
    %640 = vector.broadcast %638 : vector<1x256xf32> to vector<8x256xf32>
    %641 = arith.mulf %639, %640 : vector<8x256xf32>
    %642 = arith.addf %636, %641 : vector<8x256xf32>
    %643 = vector.extract_strided_slice %631 {offsets = [0, 2], sizes = [8, 1], strides = [1, 1]} : vector<8x8xf32> to vector<8x1xf32>
    %644 = vector.extract_strided_slice %509 {offsets = [2, 0], sizes = [1, 256], strides = [1, 1]} : vector<8x256xf32> to vector<1x256xf32>
    %645 = vector.broadcast %643 : vector<8x1xf32> to vector<8x256xf32>
    %646 = vector.broadcast %644 : vector<1x256xf32> to vector<8x256xf32>
    %647 = arith.mulf %645, %646 : vector<8x256xf32>
    %648 = arith.addf %642, %647 : vector<8x256xf32>
    %649 = vector.extract_strided_slice %631 {offsets = [0, 3], sizes = [8, 1], strides = [1, 1]} : vector<8x8xf32> to vector<8x1xf32>
    %650 = vector.extract_strided_slice %509 {offsets = [3, 0], sizes = [1, 256], strides = [1, 1]} : vector<8x256xf32> to vector<1x256xf32>
    %651 = vector.broadcast %649 : vector<8x1xf32> to vector<8x256xf32>
    %652 = vector.broadcast %650 : vector<1x256xf32> to vector<8x256xf32>
    %653 = arith.mulf %651, %652 : vector<8x256xf32>
    %654 = arith.addf %648, %653 : vector<8x256xf32>
    %655 = vector.extract_strided_slice %631 {offsets = [0, 4], sizes = [8, 1], strides = [1, 1]} : vector<8x8xf32> to vector<8x1xf32>
    %656 = vector.extract_strided_slice %509 {offsets = [4, 0], sizes = [1, 256], strides = [1, 1]} : vector<8x256xf32> to vector<1x256xf32>
    %657 = vector.broadcast %655 : vector<8x1xf32> to vector<8x256xf32>
    %658 = vector.broadcast %656 : vector<1x256xf32> to vector<8x256xf32>
    %659 = arith.mulf %657, %658 : vector<8x256xf32>
    %660 = arith.addf %654, %659 : vector<8x256xf32>
    %661 = vector.extract_strided_slice %631 {offsets = [0, 5], sizes = [8, 1], strides = [1, 1]} : vector<8x8xf32> to vector<8x1xf32>
    %662 = vector.extract_strided_slice %509 {offsets = [5, 0], sizes = [1, 256], strides = [1, 1]} : vector<8x256xf32> to vector<1x256xf32>
    %663 = vector.broadcast %661 : vector<8x1xf32> to vector<8x256xf32>
    %664 = vector.broadcast %662 : vector<1x256xf32> to vector<8x256xf32>
    %665 = arith.mulf %663, %664 : vector<8x256xf32>
    %666 = arith.addf %660, %665 : vector<8x256xf32>
    %667 = vector.extract_strided_slice %631 {offsets = [0, 6], sizes = [8, 1], strides = [1, 1]} : vector<8x8xf32> to vector<8x1xf32>
    %668 = vector.extract_strided_slice %509 {offsets = [6, 0], sizes = [1, 256], strides = [1, 1]} : vector<8x256xf32> to vector<1x256xf32>
    %669 = vector.broadcast %667 : vector<8x1xf32> to vector<8x256xf32>
    %670 = vector.broadcast %668 : vector<1x256xf32> to vector<8x256xf32>
    %671 = arith.mulf %669, %670 : vector<8x256xf32>
    %672 = arith.addf %666, %671 : vector<8x256xf32>
    %673 = vector.extract_strided_slice %631 {offsets = [0, 7], sizes = [8, 1], strides = [1, 1]} : vector<8x8xf32> to vector<8x1xf32>
    %674 = vector.extract_strided_slice %509 {offsets = [7, 0], sizes = [1, 256], strides = [1, 1]} : vector<8x256xf32> to vector<1x256xf32>
    %675 = vector.broadcast %673 : vector<8x1xf32> to vector<8x256xf32>
    %676 = vector.broadcast %674 : vector<1x256xf32> to vector<8x256xf32>
    %677 = arith.mulf %675, %676 : vector<8x256xf32>
    %678 = arith.addf %672, %677 : vector<8x256xf32>
    %c2_109 = arith.constant 2 : index
    %c0_110 = arith.constant 0 : index
    %c0_111 = arith.constant 0 : index
    %679 = vector.load %arg4[%c2_109, %c0_110, %c0_111] : memref<6x8x8xf32, #tpu.memory_space<vmem>>, vector<1x8x8xf32>
    %680 = vector.shape_cast %679 : vector<1x8x8xf32> to vector<8x8xf32>
    %681 = vector.extract_strided_slice %680 {offsets = [0, 0], sizes = [8, 1], strides = [1, 1]} : vector<8x8xf32> to vector<8x1xf32>
    %682 = vector.extract_strided_slice %513 {offsets = [0, 0], sizes = [1, 256], strides = [1, 1]} : vector<8x256xf32> to vector<1x256xf32>
    %683 = vector.broadcast %681 : vector<8x1xf32> to vector<8x256xf32>
    %684 = vector.broadcast %682 : vector<1x256xf32> to vector<8x256xf32>
    %685 = arith.mulf %683, %684 : vector<8x256xf32>
    %686 = vector.extract_strided_slice %680 {offsets = [0, 1], sizes = [8, 1], strides = [1, 1]} : vector<8x8xf32> to vector<8x1xf32>
    %687 = vector.extract_strided_slice %513 {offsets = [1, 0], sizes = [1, 256], strides = [1, 1]} : vector<8x256xf32> to vector<1x256xf32>
    %688 = vector.broadcast %686 : vector<8x1xf32> to vector<8x256xf32>
    %689 = vector.broadcast %687 : vector<1x256xf32> to vector<8x256xf32>
    %690 = arith.mulf %688, %689 : vector<8x256xf32>
    %691 = arith.addf %685, %690 : vector<8x256xf32>
    %692 = vector.extract_strided_slice %680 {offsets = [0, 2], sizes = [8, 1], strides = [1, 1]} : vector<8x8xf32> to vector<8x1xf32>
    %693 = vector.extract_strided_slice %513 {offsets = [2, 0], sizes = [1, 256], strides = [1, 1]} : vector<8x256xf32> to vector<1x256xf32>
    %694 = vector.broadcast %692 : vector<8x1xf32> to vector<8x256xf32>
    %695 = vector.broadcast %693 : vector<1x256xf32> to vector<8x256xf32>
    %696 = arith.mulf %694, %695 : vector<8x256xf32>
    %697 = arith.addf %691, %696 : vector<8x256xf32>
    %698 = vector.extract_strided_slice %680 {offsets = [0, 3], sizes = [8, 1], strides = [1, 1]} : vector<8x8xf32> to vector<8x1xf32>
    %699 = vector.extract_strided_slice %513 {offsets = [3, 0], sizes = [1, 256], strides = [1, 1]} : vector<8x256xf32> to vector<1x256xf32>
    %700 = vector.broadcast %698 : vector<8x1xf32> to vector<8x256xf32>
    %701 = vector.broadcast %699 : vector<1x256xf32> to vector<8x256xf32>
    %702 = arith.mulf %700, %701 : vector<8x256xf32>
    %703 = arith.addf %697, %702 : vector<8x256xf32>
    %704 = vector.extract_strided_slice %680 {offsets = [0, 4], sizes = [8, 1], strides = [1, 1]} : vector<8x8xf32> to vector<8x1xf32>
    %705 = vector.extract_strided_slice %513 {offsets = [4, 0], sizes = [1, 256], strides = [1, 1]} : vector<8x256xf32> to vector<1x256xf32>
    %706 = vector.broadcast %704 : vector<8x1xf32> to vector<8x256xf32>
    %707 = vector.broadcast %705 : vector<1x256xf32> to vector<8x256xf32>
    %708 = arith.mulf %706, %707 : vector<8x256xf32>
    %709 = arith.addf %703, %708 : vector<8x256xf32>
    %710 = vector.extract_strided_slice %680 {offsets = [0, 5], sizes = [8, 1], strides = [1, 1]} : vector<8x8xf32> to vector<8x1xf32>
    %711 = vector.extract_strided_slice %513 {offsets = [5, 0], sizes = [1, 256], strides = [1, 1]} : vector<8x256xf32> to vector<1x256xf32>
    %712 = vector.broadcast %710 : vector<8x1xf32> to vector<8x256xf32>
    %713 = vector.broadcast %711 : vector<1x256xf32> to vector<8x256xf32>
    %714 = arith.mulf %712, %713 : vector<8x256xf32>
    %715 = arith.addf %709, %714 : vector<8x256xf32>
    %716 = vector.extract_strided_slice %680 {offsets = [0, 6], sizes = [8, 1], strides = [1, 1]} : vector<8x8xf32> to vector<8x1xf32>
    %717 = vector.extract_strided_slice %513 {offsets = [6, 0], sizes = [1, 256], strides = [1, 1]} : vector<8x256xf32> to vector<1x256xf32>
    %718 = vector.broadcast %716 : vector<8x1xf32> to vector<8x256xf32>
    %719 = vector.broadcast %717 : vector<1x256xf32> to vector<8x256xf32>
    %720 = arith.mulf %718, %719 : vector<8x256xf32>
    %721 = arith.addf %715, %720 : vector<8x256xf32>
    %722 = vector.extract_strided_slice %680 {offsets = [0, 7], sizes = [8, 1], strides = [1, 1]} : vector<8x8xf32> to vector<8x1xf32>
    %723 = vector.extract_strided_slice %513 {offsets = [7, 0], sizes = [1, 256], strides = [1, 1]} : vector<8x256xf32> to vector<1x256xf32>
    %724 = vector.broadcast %722 : vector<8x1xf32> to vector<8x256xf32>
    %725 = vector.broadcast %723 : vector<1x256xf32> to vector<8x256xf32>
    %726 = arith.mulf %724, %725 : vector<8x256xf32>
    %727 = arith.addf %721, %726 : vector<8x256xf32>
    %c3_112 = arith.constant 3 : index
    %c0_113 = arith.constant 0 : index
    %c0_114 = arith.constant 0 : index
    %728 = vector.load %arg4[%c3_112, %c0_113, %c0_114] : memref<6x8x8xf32, #tpu.memory_space<vmem>>, vector<1x8x8xf32>
    %729 = vector.shape_cast %728 : vector<1x8x8xf32> to vector<8x8xf32>
    %730 = vector.extract_strided_slice %729 {offsets = [0, 0], sizes = [8, 1], strides = [1, 1]} : vector<8x8xf32> to vector<8x1xf32>
    %731 = vector.extract_strided_slice %577 {offsets = [0, 0], sizes = [1, 256], strides = [1, 1]} : vector<8x256xf32> to vector<1x256xf32>
    %732 = vector.broadcast %730 : vector<8x1xf32> to vector<8x256xf32>
    %733 = vector.broadcast %731 : vector<1x256xf32> to vector<8x256xf32>
    %734 = arith.mulf %732, %733 : vector<8x256xf32>
    %735 = vector.extract_strided_slice %729 {offsets = [0, 1], sizes = [8, 1], strides = [1, 1]} : vector<8x8xf32> to vector<8x1xf32>
    %736 = vector.extract_strided_slice %577 {offsets = [1, 0], sizes = [1, 256], strides = [1, 1]} : vector<8x256xf32> to vector<1x256xf32>
    %737 = vector.broadcast %735 : vector<8x1xf32> to vector<8x256xf32>
    %738 = vector.broadcast %736 : vector<1x256xf32> to vector<8x256xf32>
    %739 = arith.mulf %737, %738 : vector<8x256xf32>
    %740 = arith.addf %734, %739 : vector<8x256xf32>
    %741 = vector.extract_strided_slice %729 {offsets = [0, 2], sizes = [8, 1], strides = [1, 1]} : vector<8x8xf32> to vector<8x1xf32>
    %742 = vector.extract_strided_slice %577 {offsets = [2, 0], sizes = [1, 256], strides = [1, 1]} : vector<8x256xf32> to vector<1x256xf32>
    %743 = vector.broadcast %741 : vector<8x1xf32> to vector<8x256xf32>
    %744 = vector.broadcast %742 : vector<1x256xf32> to vector<8x256xf32>
    %745 = arith.mulf %743, %744 : vector<8x256xf32>
    %746 = arith.addf %740, %745 : vector<8x256xf32>
    %747 = vector.extract_strided_slice %729 {offsets = [0, 3], sizes = [8, 1], strides = [1, 1]} : vector<8x8xf32> to vector<8x1xf32>
    %748 = vector.extract_strided_slice %577 {offsets = [3, 0], sizes = [1, 256], strides = [1, 1]} : vector<8x256xf32> to vector<1x256xf32>
    %749 = vector.broadcast %747 : vector<8x1xf32> to vector<8x256xf32>
    %750 = vector.broadcast %748 : vector<1x256xf32> to vector<8x256xf32>
    %751 = arith.mulf %749, %750 : vector<8x256xf32>
    %752 = arith.addf %746, %751 : vector<8x256xf32>
    %753 = vector.extract_strided_slice %729 {offsets = [0, 4], sizes = [8, 1], strides = [1, 1]} : vector<8x8xf32> to vector<8x1xf32>
    %754 = vector.extract_strided_slice %577 {offsets = [4, 0], sizes = [1, 256], strides = [1, 1]} : vector<8x256xf32> to vector<1x256xf32>
    %755 = vector.broadcast %753 : vector<8x1xf32> to vector<8x256xf32>
    %756 = vector.broadcast %754 : vector<1x256xf32> to vector<8x256xf32>
    %757 = arith.mulf %755, %756 : vector<8x256xf32>
    %758 = arith.addf %752, %757 : vector<8x256xf32>
    %759 = vector.extract_strided_slice %729 {offsets = [0, 5], sizes = [8, 1], strides = [1, 1]} : vector<8x8xf32> to vector<8x1xf32>
    %760 = vector.extract_strided_slice %577 {offsets = [5, 0], sizes = [1, 256], strides = [1, 1]} : vector<8x256xf32> to vector<1x256xf32>
    %761 = vector.broadcast %759 : vector<8x1xf32> to vector<8x256xf32>
    %762 = vector.broadcast %760 : vector<1x256xf32> to vector<8x256xf32>
    %763 = arith.mulf %761, %762 : vector<8x256xf32>
    %764 = arith.addf %758, %763 : vector<8x256xf32>
    %765 = vector.extract_strided_slice %729 {offsets = [0, 6], sizes = [8, 1], strides = [1, 1]} : vector<8x8xf32> to vector<8x1xf32>
    %766 = vector.extract_strided_slice %577 {offsets = [6, 0], sizes = [1, 256], strides = [1, 1]} : vector<8x256xf32> to vector<1x256xf32>
    %767 = vector.broadcast %765 : vector<8x1xf32> to vector<8x256xf32>
    %768 = vector.broadcast %766 : vector<1x256xf32> to vector<8x256xf32>
    %769 = arith.mulf %767, %768 : vector<8x256xf32>
    %770 = arith.addf %764, %769 : vector<8x256xf32>
    %771 = vector.extract_strided_slice %729 {offsets = [0, 7], sizes = [8, 1], strides = [1, 1]} : vector<8x8xf32> to vector<8x1xf32>
    %772 = vector.extract_strided_slice %577 {offsets = [7, 0], sizes = [1, 256], strides = [1, 1]} : vector<8x256xf32> to vector<1x256xf32>
    %773 = vector.broadcast %771 : vector<8x1xf32> to vector<8x256xf32>
    %774 = vector.broadcast %772 : vector<1x256xf32> to vector<8x256xf32>
    %775 = arith.mulf %773, %774 : vector<8x256xf32>
    %776 = arith.addf %770, %775 : vector<8x256xf32>
    %cst_115 = arith.constant dense<0.000000e+00> : vector<8xf32>
    %777 = vector.multi_reduction <add>, %629, %cst_115 [1] : vector<8x256xf32> to vector<8xf32>
    %778 = vector.shape_cast %777 : vector<8xf32> to vector<8x1xf32>
    %779 = vector.extract_strided_slice %778 {offsets = [0, 0], sizes = [4, 1], strides = [1, 1]} : vector<8x1xf32> to vector<4x1xf32>
    %780 = vector.extract_strided_slice %778 {offsets = [4, 0], sizes = [4, 1], strides = [1, 1]} : vector<8x1xf32> to vector<4x1xf32>
    %781 = arith.addf %779, %780 : vector<4x1xf32>
    %cst_116 = arith.constant 0.001953125 : f32
    %782 = vector.broadcast %cst_116 : f32 to vector<4x1xf32>
    %783 = arith.mulf %781, %782 : vector<4x1xf32>
    %784 = tpu.concatenate %783, %783 in 0 : vector<4x1xf32>, vector<4x1xf32> -> vector<8x1xf32>
    %785 = vector.broadcast %784 : vector<8x1xf32> to vector<8x256xf32>
    %786 = arith.subf %629, %785 : vector<8x256xf32>
    %787 = arith.mulf %786, %786 : vector<8x256xf32>
    %cst_117 = arith.constant dense<0.000000e+00> : vector<8xf32>
    %788 = vector.multi_reduction <add>, %787, %cst_117 [1] : vector<8x256xf32> to vector<8xf32>
    %789 = vector.shape_cast %788 : vector<8xf32> to vector<8x1xf32>
    %790 = vector.extract_strided_slice %789 {offsets = [0, 0], sizes = [4, 1], strides = [1, 1]} : vector<8x1xf32> to vector<4x1xf32>
    %791 = vector.extract_strided_slice %789 {offsets = [4, 0], sizes = [4, 1], strides = [1, 1]} : vector<8x1xf32> to vector<4x1xf32>
    %792 = arith.addf %790, %791 : vector<4x1xf32>
    %cst_118 = arith.constant 0.001953125 : f32
    %793 = vector.broadcast %cst_118 : f32 to vector<4x1xf32>
    %794 = arith.mulf %792, %793 : vector<4x1xf32>
    %cst_119 = arith.constant 9.99999974E-6 : f32
    %795 = vector.broadcast %cst_119 : f32 to vector<4x1xf32>
    %796 = arith.addf %794, %795 : vector<4x1xf32>
    %797 = math.rsqrt %796 : vector<4x1xf32>
    %798 = tpu.concatenate %797, %797 in 0 : vector<4x1xf32>, vector<4x1xf32> -> vector<8x1xf32>
    %799 = vector.broadcast %784 : vector<8x1xf32> to vector<8x256xf32>
    %800 = arith.subf %629, %799 : vector<8x256xf32>
    %801 = vector.broadcast %798 : vector<8x1xf32> to vector<8x256xf32>
    %802 = arith.mulf %800, %801 : vector<8x256xf32>
    %c17_i32_120 = arith.constant 17 : i32
    %803 = tpu.dynamic_rotate %802 by %c17_i32_120 dim 1 : vector<8x256xf32>, i32 -> vector<8x256xf32>
    %c13_121 = arith.constant 13 : index
    %c0_122 = arith.constant 0 : index
    %804 = vector.load %arg2[%c13_121, %c0_122] : memref<42x256xf32, #tpu.memory_space<vmem>>, vector<1x256xf32>
    %805 = vector.broadcast %804 : vector<1x256xf32> to vector<8x256xf32>
    %806 = arith.mulf %803, %805 : vector<8x256xf32>
    %cst_123 = arith.constant 0.000000e+00 : f32
    %807 = vector.broadcast %cst_123 : f32 to vector<8x256xf32>
    %808 = arith.maximumf %806, %807 : vector<8x256xf32>
    %809 = vector.extract_strided_slice %5 {offsets = [0, 68], sizes = [8, 1], strides = [1, 1]} : vector<8x102xf32> to vector<8x1xf32>
    %810 = vector.broadcast %809 : vector<8x1xf32> to vector<8x256xf32>
    %811 = arith.mulf %808, %810 : vector<8x256xf32>
    %c16_i32_124 = arith.constant 16 : i32
    %812 = tpu.dynamic_rotate %802 by %c16_i32_124 dim 1 : vector<8x256xf32>, i32 -> vector<8x256xf32>
    %c14_125 = arith.constant 14 : index
    %c0_126 = arith.constant 0 : index
    %813 = vector.load %arg2[%c14_125, %c0_126] : memref<42x256xf32, #tpu.memory_space<vmem>>, vector<1x256xf32>
    %814 = vector.broadcast %813 : vector<1x256xf32> to vector<8x256xf32>
    %815 = arith.mulf %812, %814 : vector<8x256xf32>
    %cst_127 = arith.constant 0.000000e+00 : f32
    %816 = vector.broadcast %cst_127 : f32 to vector<8x256xf32>
    %817 = arith.maximumf %815, %816 : vector<8x256xf32>
    %818 = vector.extract_strided_slice %5 {offsets = [0, 69], sizes = [8, 1], strides = [1, 1]} : vector<8x102xf32> to vector<8x1xf32>
    %819 = vector.broadcast %818 : vector<8x1xf32> to vector<8x256xf32>
    %820 = arith.mulf %817, %819 : vector<8x256xf32>
    %821 = arith.addf %811, %820 : vector<8x256xf32>
    %c15_i32_128 = arith.constant 15 : i32
    %822 = tpu.dynamic_rotate %802 by %c15_i32_128 dim 1 : vector<8x256xf32>, i32 -> vector<8x256xf32>
    %c15_129 = arith.constant 15 : index
    %c0_130 = arith.constant 0 : index
    %823 = vector.load %arg2[%c15_129, %c0_130] : memref<42x256xf32, #tpu.memory_space<vmem>>, vector<1x256xf32>
    %824 = vector.broadcast %823 : vector<1x256xf32> to vector<8x256xf32>
    %825 = arith.mulf %822, %824 : vector<8x256xf32>
    %cst_131 = arith.constant 0.000000e+00 : f32
    %826 = vector.broadcast %cst_131 : f32 to vector<8x256xf32>
    %827 = arith.maximumf %825, %826 : vector<8x256xf32>
    %828 = vector.extract_strided_slice %5 {offsets = [0, 70], sizes = [8, 1], strides = [1, 1]} : vector<8x102xf32> to vector<8x1xf32>
    %829 = vector.broadcast %828 : vector<8x1xf32> to vector<8x256xf32>
    %830 = arith.mulf %827, %829 : vector<8x256xf32>
    %831 = arith.addf %821, %830 : vector<8x256xf32>
    %c1_i32_132 = arith.constant 1 : i32
    %832 = tpu.dynamic_rotate %802 by %c1_i32_132 dim 1 : vector<8x256xf32>, i32 -> vector<8x256xf32>
    %c19_133 = arith.constant 19 : index
    %c0_134 = arith.constant 0 : index
    %833 = vector.load %arg2[%c19_133, %c0_134] : memref<42x256xf32, #tpu.memory_space<vmem>>, vector<1x256xf32>
    %834 = vector.broadcast %833 : vector<1x256xf32> to vector<8x256xf32>
    %835 = arith.mulf %832, %834 : vector<8x256xf32>
    %cst_135 = arith.constant 0.000000e+00 : f32
    %836 = vector.broadcast %cst_135 : f32 to vector<8x256xf32>
    %837 = arith.maximumf %835, %836 : vector<8x256xf32>
    %838 = vector.extract_strided_slice %5 {offsets = [0, 71], sizes = [8, 1], strides = [1, 1]} : vector<8x102xf32> to vector<8x1xf32>
    %839 = vector.broadcast %838 : vector<8x1xf32> to vector<8x256xf32>
    %840 = arith.mulf %837, %839 : vector<8x256xf32>
    %841 = arith.addf %831, %840 : vector<8x256xf32>
    %cst_136 = arith.constant 0.000000e+00 : f32
    %842 = vector.broadcast %cst_136 : f32 to vector<8x256xf32>
    %843 = arith.maximumf %802, %842 : vector<8x256xf32>
    %844 = vector.extract_strided_slice %5 {offsets = [0, 72], sizes = [8, 1], strides = [1, 1]} : vector<8x102xf32> to vector<8x1xf32>
    %845 = vector.broadcast %844 : vector<8x1xf32> to vector<8x256xf32>
    %846 = arith.mulf %843, %845 : vector<8x256xf32>
    %847 = arith.addf %841, %846 : vector<8x256xf32>
    %c255_i32_137 = arith.constant 255 : i32
    %848 = tpu.dynamic_rotate %802 by %c255_i32_137 dim 1 : vector<8x256xf32>, i32 -> vector<8x256xf32>
    %c21_138 = arith.constant 21 : index
    %c0_139 = arith.constant 0 : index
    %849 = vector.load %arg2[%c21_138, %c0_139] : memref<42x256xf32, #tpu.memory_space<vmem>>, vector<1x256xf32>
    %850 = vector.broadcast %849 : vector<1x256xf32> to vector<8x256xf32>
    %851 = arith.mulf %848, %850 : vector<8x256xf32>
    %cst_140 = arith.constant 0.000000e+00 : f32
    %852 = vector.broadcast %cst_140 : f32 to vector<8x256xf32>
    %853 = arith.maximumf %851, %852 : vector<8x256xf32>
    %854 = vector.extract_strided_slice %5 {offsets = [0, 73], sizes = [8, 1], strides = [1, 1]} : vector<8x102xf32> to vector<8x1xf32>
    %855 = vector.broadcast %854 : vector<8x1xf32> to vector<8x256xf32>
    %856 = arith.mulf %853, %855 : vector<8x256xf32>
    %857 = arith.addf %847, %856 : vector<8x256xf32>
    %c241_i32_141 = arith.constant 241 : i32
    %858 = tpu.dynamic_rotate %802 by %c241_i32_141 dim 1 : vector<8x256xf32>, i32 -> vector<8x256xf32>
    %c25_142 = arith.constant 25 : index
    %c0_143 = arith.constant 0 : index
    %859 = vector.load %arg2[%c25_142, %c0_143] : memref<42x256xf32, #tpu.memory_space<vmem>>, vector<1x256xf32>
    %860 = vector.broadcast %859 : vector<1x256xf32> to vector<8x256xf32>
    %861 = arith.mulf %858, %860 : vector<8x256xf32>
    %cst_144 = arith.constant 0.000000e+00 : f32
    %862 = vector.broadcast %cst_144 : f32 to vector<8x256xf32>
    %863 = arith.maximumf %861, %862 : vector<8x256xf32>
    %864 = vector.extract_strided_slice %5 {offsets = [0, 74], sizes = [8, 1], strides = [1, 1]} : vector<8x102xf32> to vector<8x1xf32>
    %865 = vector.broadcast %864 : vector<8x1xf32> to vector<8x256xf32>
    %866 = arith.mulf %863, %865 : vector<8x256xf32>
    %867 = arith.addf %857, %866 : vector<8x256xf32>
    %c240_i32_145 = arith.constant 240 : i32
    %868 = tpu.dynamic_rotate %802 by %c240_i32_145 dim 1 : vector<8x256xf32>, i32 -> vector<8x256xf32>
    %c26_146 = arith.constant 26 : index
    %c0_147 = arith.constant 0 : index
    %869 = vector.load %arg2[%c26_146, %c0_147] : memref<42x256xf32, #tpu.memory_space<vmem>>, vector<1x256xf32>
    %870 = vector.broadcast %869 : vector<1x256xf32> to vector<8x256xf32>
    %871 = arith.mulf %868, %870 : vector<8x256xf32>
    %cst_148 = arith.constant 0.000000e+00 : f32
    %872 = vector.broadcast %cst_148 : f32 to vector<8x256xf32>
    %873 = arith.maximumf %871, %872 : vector<8x256xf32>
    %874 = vector.extract_strided_slice %5 {offsets = [0, 75], sizes = [8, 1], strides = [1, 1]} : vector<8x102xf32> to vector<8x1xf32>
    %875 = vector.broadcast %874 : vector<8x1xf32> to vector<8x256xf32>
    %876 = arith.mulf %873, %875 : vector<8x256xf32>
    %877 = arith.addf %867, %876 : vector<8x256xf32>
    %c239_i32_149 = arith.constant 239 : i32
    %878 = tpu.dynamic_rotate %802 by %c239_i32_149 dim 1 : vector<8x256xf32>, i32 -> vector<8x256xf32>
    %c27_150 = arith.constant 27 : index
    %c0_151 = arith.constant 0 : index
    %879 = vector.load %arg2[%c27_150, %c0_151] : memref<42x256xf32, #tpu.memory_space<vmem>>, vector<1x256xf32>
    %880 = vector.broadcast %879 : vector<1x256xf32> to vector<8x256xf32>
    %881 = arith.mulf %878, %880 : vector<8x256xf32>
    %cst_152 = arith.constant 0.000000e+00 : f32
    %882 = vector.broadcast %cst_152 : f32 to vector<8x256xf32>
    %883 = arith.maximumf %881, %882 : vector<8x256xf32>
    %884 = vector.extract_strided_slice %5 {offsets = [0, 76], sizes = [8, 1], strides = [1, 1]} : vector<8x102xf32> to vector<8x1xf32>
    %885 = vector.broadcast %884 : vector<8x1xf32> to vector<8x256xf32>
    %886 = arith.mulf %883, %885 : vector<8x256xf32>
    %887 = arith.addf %877, %886 : vector<8x256xf32>
    %c4_153 = arith.constant 4 : index
    %c0_154 = arith.constant 0 : index
    %c0_155 = arith.constant 0 : index
    %888 = vector.load %arg4[%c4_153, %c0_154, %c0_155] : memref<6x8x8xf32, #tpu.memory_space<vmem>>, vector<1x8x8xf32>
    %889 = vector.shape_cast %888 : vector<1x8x8xf32> to vector<8x8xf32>
    %890 = vector.extract_strided_slice %889 {offsets = [0, 0], sizes = [8, 1], strides = [1, 1]} : vector<8x8xf32> to vector<8x1xf32>
    %891 = vector.extract_strided_slice %887 {offsets = [0, 0], sizes = [1, 256], strides = [1, 1]} : vector<8x256xf32> to vector<1x256xf32>
    %892 = vector.broadcast %890 : vector<8x1xf32> to vector<8x256xf32>
    %893 = vector.broadcast %891 : vector<1x256xf32> to vector<8x256xf32>
    %894 = arith.mulf %892, %893 : vector<8x256xf32>
    %895 = vector.extract_strided_slice %889 {offsets = [0, 1], sizes = [8, 1], strides = [1, 1]} : vector<8x8xf32> to vector<8x1xf32>
    %896 = vector.extract_strided_slice %887 {offsets = [1, 0], sizes = [1, 256], strides = [1, 1]} : vector<8x256xf32> to vector<1x256xf32>
    %897 = vector.broadcast %895 : vector<8x1xf32> to vector<8x256xf32>
    %898 = vector.broadcast %896 : vector<1x256xf32> to vector<8x256xf32>
    %899 = arith.mulf %897, %898 : vector<8x256xf32>
    %900 = arith.addf %894, %899 : vector<8x256xf32>
    %901 = vector.extract_strided_slice %889 {offsets = [0, 2], sizes = [8, 1], strides = [1, 1]} : vector<8x8xf32> to vector<8x1xf32>
    %902 = vector.extract_strided_slice %887 {offsets = [2, 0], sizes = [1, 256], strides = [1, 1]} : vector<8x256xf32> to vector<1x256xf32>
    %903 = vector.broadcast %901 : vector<8x1xf32> to vector<8x256xf32>
    %904 = vector.broadcast %902 : vector<1x256xf32> to vector<8x256xf32>
    %905 = arith.mulf %903, %904 : vector<8x256xf32>
    %906 = arith.addf %900, %905 : vector<8x256xf32>
    %907 = vector.extract_strided_slice %889 {offsets = [0, 3], sizes = [8, 1], strides = [1, 1]} : vector<8x8xf32> to vector<8x1xf32>
    %908 = vector.extract_strided_slice %887 {offsets = [3, 0], sizes = [1, 256], strides = [1, 1]} : vector<8x256xf32> to vector<1x256xf32>
    %909 = vector.broadcast %907 : vector<8x1xf32> to vector<8x256xf32>
    %910 = vector.broadcast %908 : vector<1x256xf32> to vector<8x256xf32>
    %911 = arith.mulf %909, %910 : vector<8x256xf32>
    %912 = arith.addf %906, %911 : vector<8x256xf32>
    %913 = vector.extract_strided_slice %889 {offsets = [0, 4], sizes = [8, 1], strides = [1, 1]} : vector<8x8xf32> to vector<8x1xf32>
    %914 = vector.extract_strided_slice %887 {offsets = [4, 0], sizes = [1, 256], strides = [1, 1]} : vector<8x256xf32> to vector<1x256xf32>
    %915 = vector.broadcast %913 : vector<8x1xf32> to vector<8x256xf32>
    %916 = vector.broadcast %914 : vector<1x256xf32> to vector<8x256xf32>
    %917 = arith.mulf %915, %916 : vector<8x256xf32>
    %918 = arith.addf %912, %917 : vector<8x256xf32>
    %919 = vector.extract_strided_slice %889 {offsets = [0, 5], sizes = [8, 1], strides = [1, 1]} : vector<8x8xf32> to vector<8x1xf32>
    %920 = vector.extract_strided_slice %887 {offsets = [5, 0], sizes = [1, 256], strides = [1, 1]} : vector<8x256xf32> to vector<1x256xf32>
    %921 = vector.broadcast %919 : vector<8x1xf32> to vector<8x256xf32>
    %922 = vector.broadcast %920 : vector<1x256xf32> to vector<8x256xf32>
    %923 = arith.mulf %921, %922 : vector<8x256xf32>
    %924 = arith.addf %918, %923 : vector<8x256xf32>
    %925 = vector.extract_strided_slice %889 {offsets = [0, 6], sizes = [8, 1], strides = [1, 1]} : vector<8x8xf32> to vector<8x1xf32>
    %926 = vector.extract_strided_slice %887 {offsets = [6, 0], sizes = [1, 256], strides = [1, 1]} : vector<8x256xf32> to vector<1x256xf32>
    %927 = vector.broadcast %925 : vector<8x1xf32> to vector<8x256xf32>
    %928 = vector.broadcast %926 : vector<1x256xf32> to vector<8x256xf32>
    %929 = arith.mulf %927, %928 : vector<8x256xf32>
    %930 = arith.addf %924, %929 : vector<8x256xf32>
    %931 = vector.extract_strided_slice %889 {offsets = [0, 7], sizes = [8, 1], strides = [1, 1]} : vector<8x8xf32> to vector<8x1xf32>
    %932 = vector.extract_strided_slice %887 {offsets = [7, 0], sizes = [1, 256], strides = [1, 1]} : vector<8x256xf32> to vector<1x256xf32>
    %933 = vector.broadcast %931 : vector<8x1xf32> to vector<8x256xf32>
    %934 = vector.broadcast %932 : vector<1x256xf32> to vector<8x256xf32>
    %935 = arith.mulf %933, %934 : vector<8x256xf32>
    %936 = arith.addf %930, %935 : vector<8x256xf32>
    %cst_156 = arith.constant dense<0.000000e+00> : vector<8xf32>
    %937 = vector.multi_reduction <add>, %678, %cst_156 [1] : vector<8x256xf32> to vector<8xf32>
    %938 = vector.shape_cast %937 : vector<8xf32> to vector<8x1xf32>
    %939 = vector.extract_strided_slice %938 {offsets = [0, 0], sizes = [4, 1], strides = [1, 1]} : vector<8x1xf32> to vector<4x1xf32>
    %940 = vector.extract_strided_slice %938 {offsets = [4, 0], sizes = [4, 1], strides = [1, 1]} : vector<8x1xf32> to vector<4x1xf32>
    %941 = arith.addf %939, %940 : vector<4x1xf32>
    %cst_157 = arith.constant 0.001953125 : f32
    %942 = vector.broadcast %cst_157 : f32 to vector<4x1xf32>
    %943 = arith.mulf %941, %942 : vector<4x1xf32>
    %944 = tpu.concatenate %943, %943 in 0 : vector<4x1xf32>, vector<4x1xf32> -> vector<8x1xf32>
    %945 = vector.broadcast %944 : vector<8x1xf32> to vector<8x256xf32>
    %946 = arith.subf %678, %945 : vector<8x256xf32>
    %947 = arith.mulf %946, %946 : vector<8x256xf32>
    %cst_158 = arith.constant dense<0.000000e+00> : vector<8xf32>
    %948 = vector.multi_reduction <add>, %947, %cst_158 [1] : vector<8x256xf32> to vector<8xf32>
    %949 = vector.shape_cast %948 : vector<8xf32> to vector<8x1xf32>
    %950 = vector.extract_strided_slice %949 {offsets = [0, 0], sizes = [4, 1], strides = [1, 1]} : vector<8x1xf32> to vector<4x1xf32>
    %951 = vector.extract_strided_slice %949 {offsets = [4, 0], sizes = [4, 1], strides = [1, 1]} : vector<8x1xf32> to vector<4x1xf32>
    %952 = arith.addf %950, %951 : vector<4x1xf32>
    %cst_159 = arith.constant 0.001953125 : f32
    %953 = vector.broadcast %cst_159 : f32 to vector<4x1xf32>
    %954 = arith.mulf %952, %953 : vector<4x1xf32>
    %cst_160 = arith.constant 9.99999974E-6 : f32
    %955 = vector.broadcast %cst_160 : f32 to vector<4x1xf32>
    %956 = arith.addf %954, %955 : vector<4x1xf32>
    %957 = math.rsqrt %956 : vector<4x1xf32>
    %958 = tpu.concatenate %957, %957 in 0 : vector<4x1xf32>, vector<4x1xf32> -> vector<8x1xf32>
    %959 = vector.broadcast %944 : vector<8x1xf32> to vector<8x256xf32>
    %960 = arith.subf %678, %959 : vector<8x256xf32>
    %961 = vector.broadcast %958 : vector<8x1xf32> to vector<8x256xf32>
    %962 = arith.mulf %960, %961 : vector<8x256xf32>
    %c34_i32_161 = arith.constant 34 : i32
    %963 = tpu.dynamic_rotate %962 by %c34_i32_161 dim 1 : vector<8x256xf32>, i32 -> vector<8x256xf32>
    %c6_162 = arith.constant 6 : index
    %c0_163 = arith.constant 0 : index
    %964 = vector.load %arg2[%c6_162, %c0_163] : memref<42x256xf32, #tpu.memory_space<vmem>>, vector<1x256xf32>
    %965 = vector.broadcast %964 : vector<1x256xf32> to vector<8x256xf32>
    %966 = arith.mulf %963, %965 : vector<8x256xf32>
    %cst_164 = arith.constant 0.000000e+00 : f32
    %967 = vector.broadcast %cst_164 : f32 to vector<8x256xf32>
    %968 = arith.maximumf %966, %967 : vector<8x256xf32>
    %969 = vector.extract_strided_slice %5 {offsets = [0, 77], sizes = [8, 1], strides = [1, 1]} : vector<8x102xf32> to vector<8x1xf32>
    %970 = vector.broadcast %969 : vector<8x1xf32> to vector<8x256xf32>
    %971 = arith.mulf %968, %970 : vector<8x256xf32>
    %c33_i32_165 = arith.constant 33 : i32
    %972 = tpu.dynamic_rotate %962 by %c33_i32_165 dim 1 : vector<8x256xf32>, i32 -> vector<8x256xf32>
    %c7_166 = arith.constant 7 : index
    %c0_167 = arith.constant 0 : index
    %973 = vector.load %arg2[%c7_166, %c0_167] : memref<42x256xf32, #tpu.memory_space<vmem>>, vector<1x256xf32>
    %974 = vector.broadcast %973 : vector<1x256xf32> to vector<8x256xf32>
    %975 = arith.mulf %972, %974 : vector<8x256xf32>
    %cst_168 = arith.constant 0.000000e+00 : f32
    %976 = vector.broadcast %cst_168 : f32 to vector<8x256xf32>
    %977 = arith.maximumf %975, %976 : vector<8x256xf32>
    %978 = vector.extract_strided_slice %5 {offsets = [0, 78], sizes = [8, 1], strides = [1, 1]} : vector<8x102xf32> to vector<8x1xf32>
    %979 = vector.broadcast %978 : vector<8x1xf32> to vector<8x256xf32>
    %980 = arith.mulf %977, %979 : vector<8x256xf32>
    %981 = arith.addf %971, %980 : vector<8x256xf32>
    %c32_i32_169 = arith.constant 32 : i32
    %982 = tpu.dynamic_rotate %962 by %c32_i32_169 dim 1 : vector<8x256xf32>, i32 -> vector<8x256xf32>
    %c8_170 = arith.constant 8 : index
    %c0_171 = arith.constant 0 : index
    %983 = vector.load %arg2[%c8_170, %c0_171] : memref<42x256xf32, #tpu.memory_space<vmem>>, vector<1x256xf32>
    %984 = vector.broadcast %983 : vector<1x256xf32> to vector<8x256xf32>
    %985 = arith.mulf %982, %984 : vector<8x256xf32>
    %cst_172 = arith.constant 0.000000e+00 : f32
    %986 = vector.broadcast %cst_172 : f32 to vector<8x256xf32>
    %987 = arith.maximumf %985, %986 : vector<8x256xf32>
    %988 = vector.extract_strided_slice %5 {offsets = [0, 79], sizes = [8, 1], strides = [1, 1]} : vector<8x102xf32> to vector<8x1xf32>
    %989 = vector.broadcast %988 : vector<8x1xf32> to vector<8x256xf32>
    %990 = arith.mulf %987, %989 : vector<8x256xf32>
    %991 = arith.addf %981, %990 : vector<8x256xf32>
    %c31_i32_173 = arith.constant 31 : i32
    %992 = tpu.dynamic_rotate %962 by %c31_i32_173 dim 1 : vector<8x256xf32>, i32 -> vector<8x256xf32>
    %c9_174 = arith.constant 9 : index
    %c0_175 = arith.constant 0 : index
    %993 = vector.load %arg2[%c9_174, %c0_175] : memref<42x256xf32, #tpu.memory_space<vmem>>, vector<1x256xf32>
    %994 = vector.broadcast %993 : vector<1x256xf32> to vector<8x256xf32>
    %995 = arith.mulf %992, %994 : vector<8x256xf32>
    %cst_176 = arith.constant 0.000000e+00 : f32
    %996 = vector.broadcast %cst_176 : f32 to vector<8x256xf32>
    %997 = arith.maximumf %995, %996 : vector<8x256xf32>
    %998 = vector.extract_strided_slice %5 {offsets = [0, 80], sizes = [8, 1], strides = [1, 1]} : vector<8x102xf32> to vector<8x1xf32>
    %999 = vector.broadcast %998 : vector<8x1xf32> to vector<8x256xf32>
    %1000 = arith.mulf %997, %999 : vector<8x256xf32>
    %1001 = arith.addf %991, %1000 : vector<8x256xf32>
    %c30_i32_177 = arith.constant 30 : i32
    %1002 = tpu.dynamic_rotate %962 by %c30_i32_177 dim 1 : vector<8x256xf32>, i32 -> vector<8x256xf32>
    %c10_178 = arith.constant 10 : index
    %c0_179 = arith.constant 0 : index
    %1003 = vector.load %arg2[%c10_178, %c0_179] : memref<42x256xf32, #tpu.memory_space<vmem>>, vector<1x256xf32>
    %1004 = vector.broadcast %1003 : vector<1x256xf32> to vector<8x256xf32>
    %1005 = arith.mulf %1002, %1004 : vector<8x256xf32>
    %cst_180 = arith.constant 0.000000e+00 : f32
    %1006 = vector.broadcast %cst_180 : f32 to vector<8x256xf32>
    %1007 = arith.maximumf %1005, %1006 : vector<8x256xf32>
    %1008 = vector.extract_strided_slice %5 {offsets = [0, 81], sizes = [8, 1], strides = [1, 1]} : vector<8x102xf32> to vector<8x1xf32>
    %1009 = vector.broadcast %1008 : vector<8x1xf32> to vector<8x256xf32>
    %1010 = arith.mulf %1007, %1009 : vector<8x256xf32>
    %1011 = arith.addf %1001, %1010 : vector<8x256xf32>
    %c18_i32_181 = arith.constant 18 : i32
    %1012 = tpu.dynamic_rotate %962 by %c18_i32_181 dim 1 : vector<8x256xf32>, i32 -> vector<8x256xf32>
    %c12_182 = arith.constant 12 : index
    %c0_183 = arith.constant 0 : index
    %1013 = vector.load %arg2[%c12_182, %c0_183] : memref<42x256xf32, #tpu.memory_space<vmem>>, vector<1x256xf32>
    %1014 = vector.broadcast %1013 : vector<1x256xf32> to vector<8x256xf32>
    %1015 = arith.mulf %1012, %1014 : vector<8x256xf32>
    %cst_184 = arith.constant 0.000000e+00 : f32
    %1016 = vector.broadcast %cst_184 : f32 to vector<8x256xf32>
    %1017 = arith.maximumf %1015, %1016 : vector<8x256xf32>
    %1018 = vector.extract_strided_slice %5 {offsets = [0, 82], sizes = [8, 1], strides = [1, 1]} : vector<8x102xf32> to vector<8x1xf32>
    %1019 = vector.broadcast %1018 : vector<8x1xf32> to vector<8x256xf32>
    %1020 = arith.mulf %1017, %1019 : vector<8x256xf32>
    %1021 = arith.addf %1011, %1020 : vector<8x256xf32>
    %c17_i32_185 = arith.constant 17 : i32
    %1022 = tpu.dynamic_rotate %962 by %c17_i32_185 dim 1 : vector<8x256xf32>, i32 -> vector<8x256xf32>
    %c13_186 = arith.constant 13 : index
    %c0_187 = arith.constant 0 : index
    %1023 = vector.load %arg2[%c13_186, %c0_187] : memref<42x256xf32, #tpu.memory_space<vmem>>, vector<1x256xf32>
    %1024 = vector.broadcast %1023 : vector<1x256xf32> to vector<8x256xf32>
    %1025 = arith.mulf %1022, %1024 : vector<8x256xf32>
    %cst_188 = arith.constant 0.000000e+00 : f32
    %1026 = vector.broadcast %cst_188 : f32 to vector<8x256xf32>
    %1027 = arith.maximumf %1025, %1026 : vector<8x256xf32>
    %1028 = vector.extract_strided_slice %5 {offsets = [0, 83], sizes = [8, 1], strides = [1, 1]} : vector<8x102xf32> to vector<8x1xf32>
    %1029 = vector.broadcast %1028 : vector<8x1xf32> to vector<8x256xf32>
    %1030 = arith.mulf %1027, %1029 : vector<8x256xf32>
    %1031 = arith.addf %1021, %1030 : vector<8x256xf32>
    %c16_i32_189 = arith.constant 16 : i32
    %1032 = tpu.dynamic_rotate %962 by %c16_i32_189 dim 1 : vector<8x256xf32>, i32 -> vector<8x256xf32>
    %c14_190 = arith.constant 14 : index
    %c0_191 = arith.constant 0 : index
    %1033 = vector.load %arg2[%c14_190, %c0_191] : memref<42x256xf32, #tpu.memory_space<vmem>>, vector<1x256xf32>
    %1034 = vector.broadcast %1033 : vector<1x256xf32> to vector<8x256xf32>
    %1035 = arith.mulf %1032, %1034 : vector<8x256xf32>
    %cst_192 = arith.constant 0.000000e+00 : f32
    %1036 = vector.broadcast %cst_192 : f32 to vector<8x256xf32>
    %1037 = arith.maximumf %1035, %1036 : vector<8x256xf32>
    %1038 = vector.extract_strided_slice %5 {offsets = [0, 84], sizes = [8, 1], strides = [1, 1]} : vector<8x102xf32> to vector<8x1xf32>
    %1039 = vector.broadcast %1038 : vector<8x1xf32> to vector<8x256xf32>
    %1040 = arith.mulf %1037, %1039 : vector<8x256xf32>
    %1041 = arith.addf %1031, %1040 : vector<8x256xf32>
    %c15_i32_193 = arith.constant 15 : i32
    %1042 = tpu.dynamic_rotate %962 by %c15_i32_193 dim 1 : vector<8x256xf32>, i32 -> vector<8x256xf32>
    %c15_194 = arith.constant 15 : index
    %c0_195 = arith.constant 0 : index
    %1043 = vector.load %arg2[%c15_194, %c0_195] : memref<42x256xf32, #tpu.memory_space<vmem>>, vector<1x256xf32>
    %1044 = vector.broadcast %1043 : vector<1x256xf32> to vector<8x256xf32>
    %1045 = arith.mulf %1042, %1044 : vector<8x256xf32>
    %cst_196 = arith.constant 0.000000e+00 : f32
    %1046 = vector.broadcast %cst_196 : f32 to vector<8x256xf32>
    %1047 = arith.maximumf %1045, %1046 : vector<8x256xf32>
    %1048 = vector.extract_strided_slice %5 {offsets = [0, 85], sizes = [8, 1], strides = [1, 1]} : vector<8x102xf32> to vector<8x1xf32>
    %1049 = vector.broadcast %1048 : vector<8x1xf32> to vector<8x256xf32>
    %1050 = arith.mulf %1047, %1049 : vector<8x256xf32>
    %1051 = arith.addf %1041, %1050 : vector<8x256xf32>
    %c14_i32_197 = arith.constant 14 : i32
    %1052 = tpu.dynamic_rotate %962 by %c14_i32_197 dim 1 : vector<8x256xf32>, i32 -> vector<8x256xf32>
    %c16_198 = arith.constant 16 : index
    %c0_199 = arith.constant 0 : index
    %1053 = vector.load %arg2[%c16_198, %c0_199] : memref<42x256xf32, #tpu.memory_space<vmem>>, vector<1x256xf32>
    %1054 = vector.broadcast %1053 : vector<1x256xf32> to vector<8x256xf32>
    %1055 = arith.mulf %1052, %1054 : vector<8x256xf32>
    %cst_200 = arith.constant 0.000000e+00 : f32
    %1056 = vector.broadcast %cst_200 : f32 to vector<8x256xf32>
    %1057 = arith.maximumf %1055, %1056 : vector<8x256xf32>
    %1058 = vector.extract_strided_slice %5 {offsets = [0, 86], sizes = [8, 1], strides = [1, 1]} : vector<8x102xf32> to vector<8x1xf32>
    %1059 = vector.broadcast %1058 : vector<8x1xf32> to vector<8x256xf32>
    %1060 = arith.mulf %1057, %1059 : vector<8x256xf32>
    %1061 = arith.addf %1051, %1060 : vector<8x256xf32>
    %c2_i32_201 = arith.constant 2 : i32
    %1062 = tpu.dynamic_rotate %962 by %c2_i32_201 dim 1 : vector<8x256xf32>, i32 -> vector<8x256xf32>
    %c18_202 = arith.constant 18 : index
    %c0_203 = arith.constant 0 : index
    %1063 = vector.load %arg2[%c18_202, %c0_203] : memref<42x256xf32, #tpu.memory_space<vmem>>, vector<1x256xf32>
    %1064 = vector.broadcast %1063 : vector<1x256xf32> to vector<8x256xf32>
    %1065 = arith.mulf %1062, %1064 : vector<8x256xf32>
    %cst_204 = arith.constant 0.000000e+00 : f32
    %1066 = vector.broadcast %cst_204 : f32 to vector<8x256xf32>
    %1067 = arith.maximumf %1065, %1066 : vector<8x256xf32>
    %1068 = vector.extract_strided_slice %5 {offsets = [0, 87], sizes = [8, 1], strides = [1, 1]} : vector<8x102xf32> to vector<8x1xf32>
    %1069 = vector.broadcast %1068 : vector<8x1xf32> to vector<8x256xf32>
    %1070 = arith.mulf %1067, %1069 : vector<8x256xf32>
    %1071 = arith.addf %1061, %1070 : vector<8x256xf32>
    %c1_i32_205 = arith.constant 1 : i32
    %1072 = tpu.dynamic_rotate %962 by %c1_i32_205 dim 1 : vector<8x256xf32>, i32 -> vector<8x256xf32>
    %c19_206 = arith.constant 19 : index
    %c0_207 = arith.constant 0 : index
    %1073 = vector.load %arg2[%c19_206, %c0_207] : memref<42x256xf32, #tpu.memory_space<vmem>>, vector<1x256xf32>
    %1074 = vector.broadcast %1073 : vector<1x256xf32> to vector<8x256xf32>
    %1075 = arith.mulf %1072, %1074 : vector<8x256xf32>
    %cst_208 = arith.constant 0.000000e+00 : f32
    %1076 = vector.broadcast %cst_208 : f32 to vector<8x256xf32>
    %1077 = arith.maximumf %1075, %1076 : vector<8x256xf32>
    %1078 = vector.extract_strided_slice %5 {offsets = [0, 88], sizes = [8, 1], strides = [1, 1]} : vector<8x102xf32> to vector<8x1xf32>
    %1079 = vector.broadcast %1078 : vector<8x1xf32> to vector<8x256xf32>
    %1080 = arith.mulf %1077, %1079 : vector<8x256xf32>
    %1081 = arith.addf %1071, %1080 : vector<8x256xf32>
    %cst_209 = arith.constant 0.000000e+00 : f32
    %1082 = vector.broadcast %cst_209 : f32 to vector<8x256xf32>
    %1083 = arith.maximumf %962, %1082 : vector<8x256xf32>
    %1084 = vector.extract_strided_slice %5 {offsets = [0, 89], sizes = [8, 1], strides = [1, 1]} : vector<8x102xf32> to vector<8x1xf32>
    %1085 = vector.broadcast %1084 : vector<8x1xf32> to vector<8x256xf32>
    %1086 = arith.mulf %1083, %1085 : vector<8x256xf32>
    %1087 = arith.addf %1081, %1086 : vector<8x256xf32>
    %c255_i32_210 = arith.constant 255 : i32
    %1088 = tpu.dynamic_rotate %962 by %c255_i32_210 dim 1 : vector<8x256xf32>, i32 -> vector<8x256xf32>
    %c21_211 = arith.constant 21 : index
    %c0_212 = arith.constant 0 : index
    %1089 = vector.load %arg2[%c21_211, %c0_212] : memref<42x256xf32, #tpu.memory_space<vmem>>, vector<1x256xf32>
    %1090 = vector.broadcast %1089 : vector<1x256xf32> to vector<8x256xf32>
    %1091 = arith.mulf %1088, %1090 : vector<8x256xf32>
    %cst_213 = arith.constant 0.000000e+00 : f32
    %1092 = vector.broadcast %cst_213 : f32 to vector<8x256xf32>
    %1093 = arith.maximumf %1091, %1092 : vector<8x256xf32>
    %1094 = vector.extract_strided_slice %5 {offsets = [0, 90], sizes = [8, 1], strides = [1, 1]} : vector<8x102xf32> to vector<8x1xf32>
    %1095 = vector.broadcast %1094 : vector<8x1xf32> to vector<8x256xf32>
    %1096 = arith.mulf %1093, %1095 : vector<8x256xf32>
    %1097 = arith.addf %1087, %1096 : vector<8x256xf32>
    %c254_i32_214 = arith.constant 254 : i32
    %1098 = tpu.dynamic_rotate %962 by %c254_i32_214 dim 1 : vector<8x256xf32>, i32 -> vector<8x256xf32>
    %c22_215 = arith.constant 22 : index
    %c0_216 = arith.constant 0 : index
    %1099 = vector.load %arg2[%c22_215, %c0_216] : memref<42x256xf32, #tpu.memory_space<vmem>>, vector<1x256xf32>
    %1100 = vector.broadcast %1099 : vector<1x256xf32> to vector<8x256xf32>
    %1101 = arith.mulf %1098, %1100 : vector<8x256xf32>
    %cst_217 = arith.constant 0.000000e+00 : f32
    %1102 = vector.broadcast %cst_217 : f32 to vector<8x256xf32>
    %1103 = arith.maximumf %1101, %1102 : vector<8x256xf32>
    %1104 = vector.extract_strided_slice %5 {offsets = [0, 91], sizes = [8, 1], strides = [1, 1]} : vector<8x102xf32> to vector<8x1xf32>
    %1105 = vector.broadcast %1104 : vector<8x1xf32> to vector<8x256xf32>
    %1106 = arith.mulf %1103, %1105 : vector<8x256xf32>
    %1107 = arith.addf %1097, %1106 : vector<8x256xf32>
    %c242_i32_218 = arith.constant 242 : i32
    %1108 = tpu.dynamic_rotate %962 by %c242_i32_218 dim 1 : vector<8x256xf32>, i32 -> vector<8x256xf32>
    %c24_219 = arith.constant 24 : index
    %c0_220 = arith.constant 0 : index
    %1109 = vector.load %arg2[%c24_219, %c0_220] : memref<42x256xf32, #tpu.memory_space<vmem>>, vector<1x256xf32>
    %1110 = vector.broadcast %1109 : vector<1x256xf32> to vector<8x256xf32>
    %1111 = arith.mulf %1108, %1110 : vector<8x256xf32>
    %cst_221 = arith.constant 0.000000e+00 : f32
    %1112 = vector.broadcast %cst_221 : f32 to vector<8x256xf32>
    %1113 = arith.maximumf %1111, %1112 : vector<8x256xf32>
    %1114 = vector.extract_strided_slice %5 {offsets = [0, 92], sizes = [8, 1], strides = [1, 1]} : vector<8x102xf32> to vector<8x1xf32>
    %1115 = vector.broadcast %1114 : vector<8x1xf32> to vector<8x256xf32>
    %1116 = arith.mulf %1113, %1115 : vector<8x256xf32>
    %1117 = arith.addf %1107, %1116 : vector<8x256xf32>
    %c241_i32_222 = arith.constant 241 : i32
    %1118 = tpu.dynamic_rotate %962 by %c241_i32_222 dim 1 : vector<8x256xf32>, i32 -> vector<8x256xf32>
    %c25_223 = arith.constant 25 : index
    %c0_224 = arith.constant 0 : index
    %1119 = vector.load %arg2[%c25_223, %c0_224] : memref<42x256xf32, #tpu.memory_space<vmem>>, vector<1x256xf32>
    %1120 = vector.broadcast %1119 : vector<1x256xf32> to vector<8x256xf32>
    %1121 = arith.mulf %1118, %1120 : vector<8x256xf32>
    %cst_225 = arith.constant 0.000000e+00 : f32
    %1122 = vector.broadcast %cst_225 : f32 to vector<8x256xf32>
    %1123 = arith.maximumf %1121, %1122 : vector<8x256xf32>
    %1124 = vector.extract_strided_slice %5 {offsets = [0, 93], sizes = [8, 1], strides = [1, 1]} : vector<8x102xf32> to vector<8x1xf32>
    %1125 = vector.broadcast %1124 : vector<8x1xf32> to vector<8x256xf32>
    %1126 = arith.mulf %1123, %1125 : vector<8x256xf32>
    %1127 = arith.addf %1117, %1126 : vector<8x256xf32>
    %c240_i32_226 = arith.constant 240 : i32
    %1128 = tpu.dynamic_rotate %962 by %c240_i32_226 dim 1 : vector<8x256xf32>, i32 -> vector<8x256xf32>
    %c26_227 = arith.constant 26 : index
    %c0_228 = arith.constant 0 : index
    %1129 = vector.load %arg2[%c26_227, %c0_228] : memref<42x256xf32, #tpu.memory_space<vmem>>, vector<1x256xf32>
    %1130 = vector.broadcast %1129 : vector<1x256xf32> to vector<8x256xf32>
    %1131 = arith.mulf %1128, %1130 : vector<8x256xf32>
    %cst_229 = arith.constant 0.000000e+00 : f32
    %1132 = vector.broadcast %cst_229 : f32 to vector<8x256xf32>
    %1133 = arith.maximumf %1131, %1132 : vector<8x256xf32>
    %1134 = vector.extract_strided_slice %5 {offsets = [0, 94], sizes = [8, 1], strides = [1, 1]} : vector<8x102xf32> to vector<8x1xf32>
    %1135 = vector.broadcast %1134 : vector<8x1xf32> to vector<8x256xf32>
    %1136 = arith.mulf %1133, %1135 : vector<8x256xf32>
    %1137 = arith.addf %1127, %1136 : vector<8x256xf32>
    %c239_i32_230 = arith.constant 239 : i32
    %1138 = tpu.dynamic_rotate %962 by %c239_i32_230 dim 1 : vector<8x256xf32>, i32 -> vector<8x256xf32>
    %c27_231 = arith.constant 27 : index
    %c0_232 = arith.constant 0 : index
    %1139 = vector.load %arg2[%c27_231, %c0_232] : memref<42x256xf32, #tpu.memory_space<vmem>>, vector<1x256xf32>
    %1140 = vector.broadcast %1139 : vector<1x256xf32> to vector<8x256xf32>
    %1141 = arith.mulf %1138, %1140 : vector<8x256xf32>
    %cst_233 = arith.constant 0.000000e+00 : f32
    %1142 = vector.broadcast %cst_233 : f32 to vector<8x256xf32>
    %1143 = arith.maximumf %1141, %1142 : vector<8x256xf32>
    %1144 = vector.extract_strided_slice %5 {offsets = [0, 95], sizes = [8, 1], strides = [1, 1]} : vector<8x102xf32> to vector<8x1xf32>
    %1145 = vector.broadcast %1144 : vector<8x1xf32> to vector<8x256xf32>
    %1146 = arith.mulf %1143, %1145 : vector<8x256xf32>
    %1147 = arith.addf %1137, %1146 : vector<8x256xf32>
    %c238_i32_234 = arith.constant 238 : i32
    %1148 = tpu.dynamic_rotate %962 by %c238_i32_234 dim 1 : vector<8x256xf32>, i32 -> vector<8x256xf32>
    %c28_235 = arith.constant 28 : index
    %c0_236 = arith.constant 0 : index
    %1149 = vector.load %arg2[%c28_235, %c0_236] : memref<42x256xf32, #tpu.memory_space<vmem>>, vector<1x256xf32>
    %1150 = vector.broadcast %1149 : vector<1x256xf32> to vector<8x256xf32>
    %1151 = arith.mulf %1148, %1150 : vector<8x256xf32>
    %cst_237 = arith.constant 0.000000e+00 : f32
    %1152 = vector.broadcast %cst_237 : f32 to vector<8x256xf32>
    %1153 = arith.maximumf %1151, %1152 : vector<8x256xf32>
    %1154 = vector.extract_strided_slice %5 {offsets = [0, 96], sizes = [8, 1], strides = [1, 1]} : vector<8x102xf32> to vector<8x1xf32>
    %1155 = vector.broadcast %1154 : vector<8x1xf32> to vector<8x256xf32>
    %1156 = arith.mulf %1153, %1155 : vector<8x256xf32>
    %1157 = arith.addf %1147, %1156 : vector<8x256xf32>
    %c226_i32_238 = arith.constant 226 : i32
    %1158 = tpu.dynamic_rotate %962 by %c226_i32_238 dim 1 : vector<8x256xf32>, i32 -> vector<8x256xf32>
    %c30_239 = arith.constant 30 : index
    %c0_240 = arith.constant 0 : index
    %1159 = vector.load %arg2[%c30_239, %c0_240] : memref<42x256xf32, #tpu.memory_space<vmem>>, vector<1x256xf32>
    %1160 = vector.broadcast %1159 : vector<1x256xf32> to vector<8x256xf32>
    %1161 = arith.mulf %1158, %1160 : vector<8x256xf32>
    %cst_241 = arith.constant 0.000000e+00 : f32
    %1162 = vector.broadcast %cst_241 : f32 to vector<8x256xf32>
    %1163 = arith.maximumf %1161, %1162 : vector<8x256xf32>
    %1164 = vector.extract_strided_slice %5 {offsets = [0, 97], sizes = [8, 1], strides = [1, 1]} : vector<8x102xf32> to vector<8x1xf32>
    %1165 = vector.broadcast %1164 : vector<8x1xf32> to vector<8x256xf32>
    %1166 = arith.mulf %1163, %1165 : vector<8x256xf32>
    %1167 = arith.addf %1157, %1166 : vector<8x256xf32>
    %c225_i32_242 = arith.constant 225 : i32
    %1168 = tpu.dynamic_rotate %962 by %c225_i32_242 dim 1 : vector<8x256xf32>, i32 -> vector<8x256xf32>
    %c31_243 = arith.constant 31 : index
    %c0_244 = arith.constant 0 : index
    %1169 = vector.load %arg2[%c31_243, %c0_244] : memref<42x256xf32, #tpu.memory_space<vmem>>, vector<1x256xf32>
    %1170 = vector.broadcast %1169 : vector<1x256xf32> to vector<8x256xf32>
    %1171 = arith.mulf %1168, %1170 : vector<8x256xf32>
    %cst_245 = arith.constant 0.000000e+00 : f32
    %1172 = vector.broadcast %cst_245 : f32 to vector<8x256xf32>
    %1173 = arith.maximumf %1171, %1172 : vector<8x256xf32>
    %1174 = vector.extract_strided_slice %5 {offsets = [0, 98], sizes = [8, 1], strides = [1, 1]} : vector<8x102xf32> to vector<8x1xf32>
    %1175 = vector.broadcast %1174 : vector<8x1xf32> to vector<8x256xf32>
    %1176 = arith.mulf %1173, %1175 : vector<8x256xf32>
    %1177 = arith.addf %1167, %1176 : vector<8x256xf32>
    %c224_i32_246 = arith.constant 224 : i32
    %1178 = tpu.dynamic_rotate %962 by %c224_i32_246 dim 1 : vector<8x256xf32>, i32 -> vector<8x256xf32>
    %c32_247 = arith.constant 32 : index
    %c0_248 = arith.constant 0 : index
    %1179 = vector.load %arg2[%c32_247, %c0_248] : memref<42x256xf32, #tpu.memory_space<vmem>>, vector<1x256xf32>
    %1180 = vector.broadcast %1179 : vector<1x256xf32> to vector<8x256xf32>
    %1181 = arith.mulf %1178, %1180 : vector<8x256xf32>
    %cst_249 = arith.constant 0.000000e+00 : f32
    %1182 = vector.broadcast %cst_249 : f32 to vector<8x256xf32>
    %1183 = arith.maximumf %1181, %1182 : vector<8x256xf32>
    %1184 = vector.extract_strided_slice %5 {offsets = [0, 99], sizes = [8, 1], strides = [1, 1]} : vector<8x102xf32> to vector<8x1xf32>
    %1185 = vector.broadcast %1184 : vector<8x1xf32> to vector<8x256xf32>
    %1186 = arith.mulf %1183, %1185 : vector<8x256xf32>
    %1187 = arith.addf %1177, %1186 : vector<8x256xf32>
    %c223_i32_250 = arith.constant 223 : i32
    %1188 = tpu.dynamic_rotate %962 by %c223_i32_250 dim 1 : vector<8x256xf32>, i32 -> vector<8x256xf32>
    %c33_251 = arith.constant 33 : index
    %c0_252 = arith.constant 0 : index
    %1189 = vector.load %arg2[%c33_251, %c0_252] : memref<42x256xf32, #tpu.memory_space<vmem>>, vector<1x256xf32>
    %1190 = vector.broadcast %1189 : vector<1x256xf32> to vector<8x256xf32>
    %1191 = arith.mulf %1188, %1190 : vector<8x256xf32>
    %cst_253 = arith.constant 0.000000e+00 : f32
    %1192 = vector.broadcast %cst_253 : f32 to vector<8x256xf32>
    %1193 = arith.maximumf %1191, %1192 : vector<8x256xf32>
    %1194 = vector.extract_strided_slice %5 {offsets = [0, 100], sizes = [8, 1], strides = [1, 1]} : vector<8x102xf32> to vector<8x1xf32>
    %1195 = vector.broadcast %1194 : vector<8x1xf32> to vector<8x256xf32>
    %1196 = arith.mulf %1193, %1195 : vector<8x256xf32>
    %1197 = arith.addf %1187, %1196 : vector<8x256xf32>
    %c222_i32_254 = arith.constant 222 : i32
    %1198 = tpu.dynamic_rotate %962 by %c222_i32_254 dim 1 : vector<8x256xf32>, i32 -> vector<8x256xf32>
    %c34_255 = arith.constant 34 : index
    %c0_256 = arith.constant 0 : index
    %1199 = vector.load %arg2[%c34_255, %c0_256] : memref<42x256xf32, #tpu.memory_space<vmem>>, vector<1x256xf32>
    %1200 = vector.broadcast %1199 : vector<1x256xf32> to vector<8x256xf32>
    %1201 = arith.mulf %1198, %1200 : vector<8x256xf32>
    %cst_257 = arith.constant 0.000000e+00 : f32
    %1202 = vector.broadcast %cst_257 : f32 to vector<8x256xf32>
    %1203 = arith.maximumf %1201, %1202 : vector<8x256xf32>
    %1204 = vector.extract_strided_slice %5 {offsets = [0, 101], sizes = [8, 1], strides = [1, 1]} : vector<8x102xf32> to vector<8x1xf32>
    %1205 = vector.broadcast %1204 : vector<8x1xf32> to vector<8x256xf32>
    %1206 = arith.mulf %1203, %1205 : vector<8x256xf32>
    %1207 = arith.addf %1197, %1206 : vector<8x256xf32>
    %c5_258 = arith.constant 5 : index
    %c0_259 = arith.constant 0 : index
    %c0_260 = arith.constant 0 : index
    %1208 = vector.load %arg4[%c5_258, %c0_259, %c0_260] : memref<6x8x8xf32, #tpu.memory_space<vmem>>, vector<1x8x8xf32>
    %1209 = vector.shape_cast %1208 : vector<1x8x8xf32> to vector<8x8xf32>
    %1210 = vector.extract_strided_slice %1209 {offsets = [0, 0], sizes = [8, 1], strides = [1, 1]} : vector<8x8xf32> to vector<8x1xf32>
    %1211 = vector.extract_strided_slice %1207 {offsets = [0, 0], sizes = [1, 256], strides = [1, 1]} : vector<8x256xf32> to vector<1x256xf32>
    %1212 = vector.broadcast %1210 : vector<8x1xf32> to vector<8x256xf32>
    %1213 = vector.broadcast %1211 : vector<1x256xf32> to vector<8x256xf32>
    %1214 = arith.mulf %1212, %1213 : vector<8x256xf32>
    %1215 = vector.extract_strided_slice %1209 {offsets = [0, 1], sizes = [8, 1], strides = [1, 1]} : vector<8x8xf32> to vector<8x1xf32>
    %1216 = vector.extract_strided_slice %1207 {offsets = [1, 0], sizes = [1, 256], strides = [1, 1]} : vector<8x256xf32> to vector<1x256xf32>
    %1217 = vector.broadcast %1215 : vector<8x1xf32> to vector<8x256xf32>
    %1218 = vector.broadcast %1216 : vector<1x256xf32> to vector<8x256xf32>
    %1219 = arith.mulf %1217, %1218 : vector<8x256xf32>
    %1220 = arith.addf %1214, %1219 : vector<8x256xf32>
    %1221 = vector.extract_strided_slice %1209 {offsets = [0, 2], sizes = [8, 1], strides = [1, 1]} : vector<8x8xf32> to vector<8x1xf32>
    %1222 = vector.extract_strided_slice %1207 {offsets = [2, 0], sizes = [1, 256], strides = [1, 1]} : vector<8x256xf32> to vector<1x256xf32>
    %1223 = vector.broadcast %1221 : vector<8x1xf32> to vector<8x256xf32>
    %1224 = vector.broadcast %1222 : vector<1x256xf32> to vector<8x256xf32>
    %1225 = arith.mulf %1223, %1224 : vector<8x256xf32>
    %1226 = arith.addf %1220, %1225 : vector<8x256xf32>
    %1227 = vector.extract_strided_slice %1209 {offsets = [0, 3], sizes = [8, 1], strides = [1, 1]} : vector<8x8xf32> to vector<8x1xf32>
    %1228 = vector.extract_strided_slice %1207 {offsets = [3, 0], sizes = [1, 256], strides = [1, 1]} : vector<8x256xf32> to vector<1x256xf32>
    %1229 = vector.broadcast %1227 : vector<8x1xf32> to vector<8x256xf32>
    %1230 = vector.broadcast %1228 : vector<1x256xf32> to vector<8x256xf32>
    %1231 = arith.mulf %1229, %1230 : vector<8x256xf32>
    %1232 = arith.addf %1226, %1231 : vector<8x256xf32>
    %1233 = vector.extract_strided_slice %1209 {offsets = [0, 4], sizes = [8, 1], strides = [1, 1]} : vector<8x8xf32> to vector<8x1xf32>
    %1234 = vector.extract_strided_slice %1207 {offsets = [4, 0], sizes = [1, 256], strides = [1, 1]} : vector<8x256xf32> to vector<1x256xf32>
    %1235 = vector.broadcast %1233 : vector<8x1xf32> to vector<8x256xf32>
    %1236 = vector.broadcast %1234 : vector<1x256xf32> to vector<8x256xf32>
    %1237 = arith.mulf %1235, %1236 : vector<8x256xf32>
    %1238 = arith.addf %1232, %1237 : vector<8x256xf32>
    %1239 = vector.extract_strided_slice %1209 {offsets = [0, 5], sizes = [8, 1], strides = [1, 1]} : vector<8x8xf32> to vector<8x1xf32>
    %1240 = vector.extract_strided_slice %1207 {offsets = [5, 0], sizes = [1, 256], strides = [1, 1]} : vector<8x256xf32> to vector<1x256xf32>
    %1241 = vector.broadcast %1239 : vector<8x1xf32> to vector<8x256xf32>
    %1242 = vector.broadcast %1240 : vector<1x256xf32> to vector<8x256xf32>
    %1243 = arith.mulf %1241, %1242 : vector<8x256xf32>
    %1244 = arith.addf %1238, %1243 : vector<8x256xf32>
    %1245 = vector.extract_strided_slice %1209 {offsets = [0, 6], sizes = [8, 1], strides = [1, 1]} : vector<8x8xf32> to vector<8x1xf32>
    %1246 = vector.extract_strided_slice %1207 {offsets = [6, 0], sizes = [1, 256], strides = [1, 1]} : vector<8x256xf32> to vector<1x256xf32>
    %1247 = vector.broadcast %1245 : vector<8x1xf32> to vector<8x256xf32>
    %1248 = vector.broadcast %1246 : vector<1x256xf32> to vector<8x256xf32>
    %1249 = arith.mulf %1247, %1248 : vector<8x256xf32>
    %1250 = arith.addf %1244, %1249 : vector<8x256xf32>
    %1251 = vector.extract_strided_slice %1209 {offsets = [0, 7], sizes = [8, 1], strides = [1, 1]} : vector<8x8xf32> to vector<8x1xf32>
    %1252 = vector.extract_strided_slice %1207 {offsets = [7, 0], sizes = [1, 256], strides = [1, 1]} : vector<8x256xf32> to vector<1x256xf32>
    %1253 = vector.broadcast %1251 : vector<8x1xf32> to vector<8x256xf32>
    %1254 = vector.broadcast %1252 : vector<1x256xf32> to vector<8x256xf32>
    %1255 = arith.mulf %1253, %1254 : vector<8x256xf32>
    %1256 = arith.addf %1250, %1255 : vector<8x256xf32>
    %c1_261 = arith.constant 1 : index
    %1257 = memref.load %arg1[%c1_261] : memref<8xf32, #tpu.memory_space<smem>>
    %c2_262 = arith.constant 2 : index
    %1258 = memref.load %arg1[%c2_262] : memref<8xf32, #tpu.memory_space<smem>>
    %c3_263 = arith.constant 3 : index
    %1259 = memref.load %arg1[%c3_263] : memref<8xf32, #tpu.memory_space<smem>>
    %c4_264 = arith.constant 4 : index
    %1260 = memref.load %arg1[%c4_264] : memref<8xf32, #tpu.memory_space<smem>>
    %c5_265 = arith.constant 5 : index
    %1261 = memref.load %arg1[%c5_265] : memref<8xf32, #tpu.memory_space<smem>>
    %c6_266 = arith.constant 6 : index
    %1262 = memref.load %arg1[%c6_266] : memref<8xf32, #tpu.memory_space<smem>>
    %c7_267 = arith.constant 7 : index
    %1263 = memref.load %arg1[%c7_267] : memref<8xf32, #tpu.memory_space<smem>>
    %1264 = vector.broadcast %1259 : f32 to vector<8x256xf32>
    %1265 = arith.mulf %1264, %2 : vector<8x256xf32>
    %cst_268 = arith.constant dense<0.000000e+00> : vector<8xf32>
    %1266 = vector.multi_reduction <add>, %414, %cst_268 [1] : vector<8x256xf32> to vector<8xf32>
    %1267 = vector.shape_cast %1266 : vector<8xf32> to vector<8x1xf32>
    %1268 = vector.extract_strided_slice %1267 {offsets = [0, 0], sizes = [4, 1], strides = [1, 1]} : vector<8x1xf32> to vector<4x1xf32>
    %1269 = vector.extract_strided_slice %1267 {offsets = [4, 0], sizes = [4, 1], strides = [1, 1]} : vector<8x1xf32> to vector<4x1xf32>
    %1270 = arith.addf %1268, %1269 : vector<4x1xf32>
    %cst_269 = arith.constant 0.001953125 : f32
    %1271 = vector.broadcast %cst_269 : f32 to vector<4x1xf32>
    %1272 = arith.mulf %1270, %1271 : vector<4x1xf32>
    %1273 = tpu.concatenate %1272, %1272 in 0 : vector<4x1xf32>, vector<4x1xf32> -> vector<8x1xf32>
    %1274 = vector.broadcast %1273 : vector<8x1xf32> to vector<8x256xf32>
    %1275 = arith.subf %414, %1274 : vector<8x256xf32>
    %1276 = arith.mulf %1275, %1275 : vector<8x256xf32>
    %cst_270 = arith.constant dense<0.000000e+00> : vector<8xf32>
    %1277 = vector.multi_reduction <add>, %1276, %cst_270 [1] : vector<8x256xf32> to vector<8xf32>
    %1278 = vector.shape_cast %1277 : vector<8xf32> to vector<8x1xf32>
    %1279 = vector.extract_strided_slice %1278 {offsets = [0, 0], sizes = [4, 1], strides = [1, 1]} : vector<8x1xf32> to vector<4x1xf32>
    %1280 = vector.extract_strided_slice %1278 {offsets = [4, 0], sizes = [4, 1], strides = [1, 1]} : vector<8x1xf32> to vector<4x1xf32>
    %1281 = arith.addf %1279, %1280 : vector<4x1xf32>
    %cst_271 = arith.constant 0.001953125 : f32
    %1282 = vector.broadcast %cst_271 : f32 to vector<4x1xf32>
    %1283 = arith.mulf %1281, %1282 : vector<4x1xf32>
    %cst_272 = arith.constant 9.99999974E-6 : f32
    %1284 = vector.broadcast %cst_272 : f32 to vector<4x1xf32>
    %1285 = arith.addf %1283, %1284 : vector<4x1xf32>
    %1286 = math.rsqrt %1285 : vector<4x1xf32>
    %1287 = tpu.concatenate %1286, %1286 in 0 : vector<4x1xf32>, vector<4x1xf32> -> vector<8x1xf32>
    %1288 = vector.broadcast %1257 : f32 to vector<8x1xf32>
    %1289 = arith.mulf %1287, %1288 : vector<8x1xf32>
    %1290 = vector.broadcast %1289 : vector<8x1xf32> to vector<8x256xf32>
    %1291 = arith.mulf %414, %1290 : vector<8x256xf32>
    %1292 = arith.addf %1265, %1291 : vector<8x256xf32>
    %1293 = arith.mulf %1273, %1289 : vector<8x1xf32>
    %cst_273 = arith.constant dense<0.000000e+00> : vector<8xf32>
    %1294 = vector.multi_reduction <add>, %580, %cst_273 [1] : vector<8x256xf32> to vector<8xf32>
    %1295 = vector.shape_cast %1294 : vector<8xf32> to vector<8x1xf32>
    %1296 = vector.extract_strided_slice %1295 {offsets = [0, 0], sizes = [4, 1], strides = [1, 1]} : vector<8x1xf32> to vector<4x1xf32>
    %1297 = vector.extract_strided_slice %1295 {offsets = [4, 0], sizes = [4, 1], strides = [1, 1]} : vector<8x1xf32> to vector<4x1xf32>
    %1298 = arith.addf %1296, %1297 : vector<4x1xf32>
    %cst_274 = arith.constant 0.001953125 : f32
    %1299 = vector.broadcast %cst_274 : f32 to vector<4x1xf32>
    %1300 = arith.mulf %1298, %1299 : vector<4x1xf32>
    %1301 = tpu.concatenate %1300, %1300 in 0 : vector<4x1xf32>, vector<4x1xf32> -> vector<8x1xf32>
    %1302 = vector.broadcast %1301 : vector<8x1xf32> to vector<8x256xf32>
    %1303 = arith.subf %580, %1302 : vector<8x256xf32>
    %1304 = arith.mulf %1303, %1303 : vector<8x256xf32>
    %cst_275 = arith.constant dense<0.000000e+00> : vector<8xf32>
    %1305 = vector.multi_reduction <add>, %1304, %cst_275 [1] : vector<8x256xf32> to vector<8xf32>
    %1306 = vector.shape_cast %1305 : vector<8xf32> to vector<8x1xf32>
    %1307 = vector.extract_strided_slice %1306 {offsets = [0, 0], sizes = [4, 1], strides = [1, 1]} : vector<8x1xf32> to vector<4x1xf32>
    %1308 = vector.extract_strided_slice %1306 {offsets = [4, 0], sizes = [4, 1], strides = [1, 1]} : vector<8x1xf32> to vector<4x1xf32>
    %1309 = arith.addf %1307, %1308 : vector<4x1xf32>
    %cst_276 = arith.constant 0.001953125 : f32
    %1310 = vector.broadcast %cst_276 : f32 to vector<4x1xf32>
    %1311 = arith.mulf %1309, %1310 : vector<4x1xf32>
    %cst_277 = arith.constant 9.99999974E-6 : f32
    %1312 = vector.broadcast %cst_277 : f32 to vector<4x1xf32>
    %1313 = arith.addf %1311, %1312 : vector<4x1xf32>
    %1314 = math.rsqrt %1313 : vector<4x1xf32>
    %1315 = tpu.concatenate %1314, %1314 in 0 : vector<4x1xf32>, vector<4x1xf32> -> vector<8x1xf32>
    %1316 = vector.broadcast %1258 : f32 to vector<8x1xf32>
    %1317 = arith.mulf %1315, %1316 : vector<8x1xf32>
    %1318 = vector.broadcast %1317 : vector<8x1xf32> to vector<8x256xf32>
    %1319 = arith.mulf %580, %1318 : vector<8x256xf32>
    %1320 = arith.addf %1292, %1319 : vector<8x256xf32>
    %1321 = arith.mulf %1301, %1317 : vector<8x1xf32>
    %1322 = arith.addf %1293, %1321 : vector<8x1xf32>
    %cst_278 = arith.constant dense<0.000000e+00> : vector<8xf32>
    %1323 = vector.multi_reduction <add>, %936, %cst_278 [1] : vector<8x256xf32> to vector<8xf32>
    %1324 = vector.shape_cast %1323 : vector<8xf32> to vector<8x1xf32>
    %1325 = vector.extract_strided_slice %1324 {offsets = [0, 0], sizes = [4, 1], strides = [1, 1]} : vector<8x1xf32> to vector<4x1xf32>
    %1326 = vector.extract_strided_slice %1324 {offsets = [4, 0], sizes = [4, 1], strides = [1, 1]} : vector<8x1xf32> to vector<4x1xf32>
    %1327 = arith.addf %1325, %1326 : vector<4x1xf32>
    %cst_279 = arith.constant 0.001953125 : f32
    %1328 = vector.broadcast %cst_279 : f32 to vector<4x1xf32>
    %1329 = arith.mulf %1327, %1328 : vector<4x1xf32>
    %1330 = tpu.concatenate %1329, %1329 in 0 : vector<4x1xf32>, vector<4x1xf32> -> vector<8x1xf32>
    %1331 = vector.broadcast %1330 : vector<8x1xf32> to vector<8x256xf32>
    %1332 = arith.subf %936, %1331 : vector<8x256xf32>
    %1333 = arith.mulf %1332, %1332 : vector<8x256xf32>
    %cst_280 = arith.constant dense<0.000000e+00> : vector<8xf32>
    %1334 = vector.multi_reduction <add>, %1333, %cst_280 [1] : vector<8x256xf32> to vector<8xf32>
    %1335 = vector.shape_cast %1334 : vector<8xf32> to vector<8x1xf32>
    %1336 = vector.extract_strided_slice %1335 {offsets = [0, 0], sizes = [4, 1], strides = [1, 1]} : vector<8x1xf32> to vector<4x1xf32>
    %1337 = vector.extract_strided_slice %1335 {offsets = [4, 0], sizes = [4, 1], strides = [1, 1]} : vector<8x1xf32> to vector<4x1xf32>
    %1338 = arith.addf %1336, %1337 : vector<4x1xf32>
    %cst_281 = arith.constant 0.001953125 : f32
    %1339 = vector.broadcast %cst_281 : f32 to vector<4x1xf32>
    %1340 = arith.mulf %1338, %1339 : vector<4x1xf32>
    %cst_282 = arith.constant 9.99999974E-6 : f32
    %1341 = vector.broadcast %cst_282 : f32 to vector<4x1xf32>
    %1342 = arith.addf %1340, %1341 : vector<4x1xf32>
    %1343 = math.rsqrt %1342 : vector<4x1xf32>
    %1344 = tpu.concatenate %1343, %1343 in 0 : vector<4x1xf32>, vector<4x1xf32> -> vector<8x1xf32>
    %1345 = vector.broadcast %1260 : f32 to vector<8x1xf32>
    %1346 = arith.mulf %1344, %1345 : vector<8x1xf32>
    %1347 = vector.broadcast %1346 : vector<8x1xf32> to vector<8x256xf32>
    %1348 = arith.mulf %936, %1347 : vector<8x256xf32>
    %1349 = arith.addf %1320, %1348 : vector<8x256xf32>
    %1350 = arith.mulf %1330, %1346 : vector<8x1xf32>
    %1351 = arith.addf %1322, %1350 : vector<8x1xf32>
    %cst_283 = arith.constant dense<0.000000e+00> : vector<8xf32>
    %1352 = vector.multi_reduction <add>, %1256, %cst_283 [1] : vector<8x256xf32> to vector<8xf32>
    %1353 = vector.shape_cast %1352 : vector<8xf32> to vector<8x1xf32>
    %1354 = vector.extract_strided_slice %1353 {offsets = [0, 0], sizes = [4, 1], strides = [1, 1]} : vector<8x1xf32> to vector<4x1xf32>
    %1355 = vector.extract_strided_slice %1353 {offsets = [4, 0], sizes = [4, 1], strides = [1, 1]} : vector<8x1xf32> to vector<4x1xf32>
    %1356 = arith.addf %1354, %1355 : vector<4x1xf32>
    %cst_284 = arith.constant 0.001953125 : f32
    %1357 = vector.broadcast %cst_284 : f32 to vector<4x1xf32>
    %1358 = arith.mulf %1356, %1357 : vector<4x1xf32>
    %1359 = tpu.concatenate %1358, %1358 in 0 : vector<4x1xf32>, vector<4x1xf32> -> vector<8x1xf32>
    %1360 = vector.broadcast %1359 : vector<8x1xf32> to vector<8x256xf32>
    %1361 = arith.subf %1256, %1360 : vector<8x256xf32>
    %1362 = arith.mulf %1361, %1361 : vector<8x256xf32>
    %cst_285 = arith.constant dense<0.000000e+00> : vector<8xf32>
    %1363 = vector.multi_reduction <add>, %1362, %cst_285 [1] : vector<8x256xf32> to vector<8xf32>
    %1364 = vector.shape_cast %1363 : vector<8xf32> to vector<8x1xf32>
    %1365 = vector.extract_strided_slice %1364 {offsets = [0, 0], sizes = [4, 1], strides = [1, 1]} : vector<8x1xf32> to vector<4x1xf32>
    %1366 = vector.extract_strided_slice %1364 {offsets = [4, 0], sizes = [4, 1], strides = [1, 1]} : vector<8x1xf32> to vector<4x1xf32>
    %1367 = arith.addf %1365, %1366 : vector<4x1xf32>
    %cst_286 = arith.constant 0.001953125 : f32
    %1368 = vector.broadcast %cst_286 : f32 to vector<4x1xf32>
    %1369 = arith.mulf %1367, %1368 : vector<4x1xf32>
    %cst_287 = arith.constant 9.99999974E-6 : f32
    %1370 = vector.broadcast %cst_287 : f32 to vector<4x1xf32>
    %1371 = arith.addf %1369, %1370 : vector<4x1xf32>
    %1372 = math.rsqrt %1371 : vector<4x1xf32>
    %1373 = tpu.concatenate %1372, %1372 in 0 : vector<4x1xf32>, vector<4x1xf32> -> vector<8x1xf32>
    %1374 = vector.broadcast %1261 : f32 to vector<8x1xf32>
    %1375 = arith.mulf %1373, %1374 : vector<8x1xf32>
    %1376 = vector.broadcast %1375 : vector<8x1xf32> to vector<8x256xf32>
    %1377 = arith.mulf %1256, %1376 : vector<8x256xf32>
    %1378 = arith.addf %1349, %1377 : vector<8x256xf32>
    %1379 = arith.mulf %1359, %1375 : vector<8x1xf32>
    %1380 = arith.addf %1351, %1379 : vector<8x1xf32>
    %cst_288 = arith.constant dense<0.000000e+00> : vector<8xf32>
    %1381 = vector.multi_reduction <add>, %727, %cst_288 [1] : vector<8x256xf32> to vector<8xf32>
    %1382 = vector.shape_cast %1381 : vector<8xf32> to vector<8x1xf32>
    %1383 = vector.extract_strided_slice %1382 {offsets = [0, 0], sizes = [4, 1], strides = [1, 1]} : vector<8x1xf32> to vector<4x1xf32>
    %1384 = vector.extract_strided_slice %1382 {offsets = [4, 0], sizes = [4, 1], strides = [1, 1]} : vector<8x1xf32> to vector<4x1xf32>
    %1385 = arith.addf %1383, %1384 : vector<4x1xf32>
    %cst_289 = arith.constant 0.001953125 : f32
    %1386 = vector.broadcast %cst_289 : f32 to vector<4x1xf32>
    %1387 = arith.mulf %1385, %1386 : vector<4x1xf32>
    %1388 = tpu.concatenate %1387, %1387 in 0 : vector<4x1xf32>, vector<4x1xf32> -> vector<8x1xf32>
    %1389 = vector.broadcast %1388 : vector<8x1xf32> to vector<8x256xf32>
    %1390 = arith.subf %727, %1389 : vector<8x256xf32>
    %1391 = arith.mulf %1390, %1390 : vector<8x256xf32>
    %cst_290 = arith.constant dense<0.000000e+00> : vector<8xf32>
    %1392 = vector.multi_reduction <add>, %1391, %cst_290 [1] : vector<8x256xf32> to vector<8xf32>
    %1393 = vector.shape_cast %1392 : vector<8xf32> to vector<8x1xf32>
    %1394 = vector.extract_strided_slice %1393 {offsets = [0, 0], sizes = [4, 1], strides = [1, 1]} : vector<8x1xf32> to vector<4x1xf32>
    %1395 = vector.extract_strided_slice %1393 {offsets = [4, 0], sizes = [4, 1], strides = [1, 1]} : vector<8x1xf32> to vector<4x1xf32>
    %1396 = arith.addf %1394, %1395 : vector<4x1xf32>
    %cst_291 = arith.constant 0.001953125 : f32
    %1397 = vector.broadcast %cst_291 : f32 to vector<4x1xf32>
    %1398 = arith.mulf %1396, %1397 : vector<4x1xf32>
    %cst_292 = arith.constant 9.99999974E-6 : f32
    %1399 = vector.broadcast %cst_292 : f32 to vector<4x1xf32>
    %1400 = arith.addf %1398, %1399 : vector<4x1xf32>
    %1401 = math.rsqrt %1400 : vector<4x1xf32>
    %1402 = tpu.concatenate %1401, %1401 in 0 : vector<4x1xf32>, vector<4x1xf32> -> vector<8x1xf32>
    %1403 = vector.broadcast %1262 : f32 to vector<8x1xf32>
    %1404 = arith.mulf %1402, %1403 : vector<8x1xf32>
    %1405 = vector.broadcast %1404 : vector<8x1xf32> to vector<8x256xf32>
    %1406 = arith.mulf %727, %1405 : vector<8x256xf32>
    %1407 = arith.addf %1378, %1406 : vector<8x256xf32>
    %1408 = arith.mulf %1388, %1404 : vector<8x1xf32>
    %1409 = arith.addf %1380, %1408 : vector<8x1xf32>
    %cst_293 = arith.constant dense<0.000000e+00> : vector<8xf32>
    %1410 = vector.multi_reduction <add>, %776, %cst_293 [1] : vector<8x256xf32> to vector<8xf32>
    %1411 = vector.shape_cast %1410 : vector<8xf32> to vector<8x1xf32>
    %1412 = vector.extract_strided_slice %1411 {offsets = [0, 0], sizes = [4, 1], strides = [1, 1]} : vector<8x1xf32> to vector<4x1xf32>
    %1413 = vector.extract_strided_slice %1411 {offsets = [4, 0], sizes = [4, 1], strides = [1, 1]} : vector<8x1xf32> to vector<4x1xf32>
    %1414 = arith.addf %1412, %1413 : vector<4x1xf32>
    %cst_294 = arith.constant 0.001953125 : f32
    %1415 = vector.broadcast %cst_294 : f32 to vector<4x1xf32>
    %1416 = arith.mulf %1414, %1415 : vector<4x1xf32>
    %1417 = tpu.concatenate %1416, %1416 in 0 : vector<4x1xf32>, vector<4x1xf32> -> vector<8x1xf32>
    %1418 = vector.broadcast %1417 : vector<8x1xf32> to vector<8x256xf32>
    %1419 = arith.subf %776, %1418 : vector<8x256xf32>
    %1420 = arith.mulf %1419, %1419 : vector<8x256xf32>
    %cst_295 = arith.constant dense<0.000000e+00> : vector<8xf32>
    %1421 = vector.multi_reduction <add>, %1420, %cst_295 [1] : vector<8x256xf32> to vector<8xf32>
    %1422 = vector.shape_cast %1421 : vector<8xf32> to vector<8x1xf32>
    %1423 = vector.extract_strided_slice %1422 {offsets = [0, 0], sizes = [4, 1], strides = [1, 1]} : vector<8x1xf32> to vector<4x1xf32>
    %1424 = vector.extract_strided_slice %1422 {offsets = [4, 0], sizes = [4, 1], strides = [1, 1]} : vector<8x1xf32> to vector<4x1xf32>
    %1425 = arith.addf %1423, %1424 : vector<4x1xf32>
    %cst_296 = arith.constant 0.001953125 : f32
    %1426 = vector.broadcast %cst_296 : f32 to vector<4x1xf32>
    %1427 = arith.mulf %1425, %1426 : vector<4x1xf32>
    %cst_297 = arith.constant 9.99999974E-6 : f32
    %1428 = vector.broadcast %cst_297 : f32 to vector<4x1xf32>
    %1429 = arith.addf %1427, %1428 : vector<4x1xf32>
    %1430 = math.rsqrt %1429 : vector<4x1xf32>
    %1431 = tpu.concatenate %1430, %1430 in 0 : vector<4x1xf32>, vector<4x1xf32> -> vector<8x1xf32>
    %1432 = vector.broadcast %1263 : f32 to vector<8x1xf32>
    %1433 = arith.mulf %1431, %1432 : vector<8x1xf32>
    %1434 = vector.broadcast %1433 : vector<8x1xf32> to vector<8x256xf32>
    %1435 = arith.mulf %776, %1434 : vector<8x256xf32>
    %1436 = arith.addf %1407, %1435 : vector<8x256xf32>
    %1437 = arith.mulf %1417, %1433 : vector<8x1xf32>
    %1438 = arith.addf %1409, %1437 : vector<8x1xf32>
    %1439 = vector.broadcast %1438 : vector<8x1xf32> to vector<8x256xf32>
    %1440 = arith.subf %1436, %1439 : vector<8x256xf32>
    %c4_298 = arith.constant 4 : index
    %c0_299 = arith.constant 0 : index
    %1441 = vector.load %arg0[%c4_298, %c0_299] : memref<32x256xf32, #tpu.memory_space<vmem>>, vector<4x256xf32>
    %c8_300 = arith.constant 8 : index
    %c0_301 = arith.constant 0 : index
    %1442 = vector.load %arg0[%c8_300, %c0_301] : memref<32x256xf32, #tpu.memory_space<vmem>>, vector<4x256xf32>
    %c12_302 = arith.constant 12 : index
    %c0_303 = arith.constant 0 : index
    %1443 = vector.load %arg0[%c12_302, %c0_303] : memref<32x256xf32, #tpu.memory_space<vmem>>, vector<4x256xf32>
    %1444 = vector.extract_strided_slice %1440 {offsets = [0, 0], sizes = [4, 256], strides = [1, 1]} : vector<8x256xf32> to vector<4x256xf32>
    %1445 = vector.extract_strided_slice %1444 {offsets = [0, 0], sizes = [1, 256], strides = [1, 1]} : vector<4x256xf32> to vector<1x256xf32>
    %1446 = vector.extract_strided_slice %1441 {offsets = [0, 0], sizes = [1, 256], strides = [1, 1]} : vector<4x256xf32> to vector<1x256xf32>
    %1447 = vector.extract_strided_slice %1442 {offsets = [0, 0], sizes = [1, 256], strides = [1, 1]} : vector<4x256xf32> to vector<1x256xf32>
    %1448 = vector.extract_strided_slice %1443 {offsets = [0, 0], sizes = [1, 256], strides = [1, 1]} : vector<4x256xf32> to vector<1x256xf32>
    %1449 = vector.extract_strided_slice %1444 {offsets = [1, 0], sizes = [1, 256], strides = [1, 1]} : vector<4x256xf32> to vector<1x256xf32>
    %1450 = vector.extract_strided_slice %1441 {offsets = [1, 0], sizes = [1, 256], strides = [1, 1]} : vector<4x256xf32> to vector<1x256xf32>
    %1451 = vector.extract_strided_slice %1442 {offsets = [1, 0], sizes = [1, 256], strides = [1, 1]} : vector<4x256xf32> to vector<1x256xf32>
    %1452 = vector.extract_strided_slice %1443 {offsets = [1, 0], sizes = [1, 256], strides = [1, 1]} : vector<4x256xf32> to vector<1x256xf32>
    %1453 = vector.extract_strided_slice %1444 {offsets = [2, 0], sizes = [1, 256], strides = [1, 1]} : vector<4x256xf32> to vector<1x256xf32>
    %1454 = vector.extract_strided_slice %1441 {offsets = [2, 0], sizes = [1, 256], strides = [1, 1]} : vector<4x256xf32> to vector<1x256xf32>
    %1455 = vector.extract_strided_slice %1442 {offsets = [2, 0], sizes = [1, 256], strides = [1, 1]} : vector<4x256xf32> to vector<1x256xf32>
    %1456 = vector.extract_strided_slice %1443 {offsets = [2, 0], sizes = [1, 256], strides = [1, 1]} : vector<4x256xf32> to vector<1x256xf32>
    %1457 = vector.extract_strided_slice %1444 {offsets = [3, 0], sizes = [1, 256], strides = [1, 1]} : vector<4x256xf32> to vector<1x256xf32>
    %1458 = vector.extract_strided_slice %1441 {offsets = [3, 0], sizes = [1, 256], strides = [1, 1]} : vector<4x256xf32> to vector<1x256xf32>
    %1459 = vector.extract_strided_slice %1442 {offsets = [3, 0], sizes = [1, 256], strides = [1, 1]} : vector<4x256xf32> to vector<1x256xf32>
    %1460 = vector.extract_strided_slice %1443 {offsets = [3, 0], sizes = [1, 256], strides = [1, 1]} : vector<4x256xf32> to vector<1x256xf32>
    %1461 = tpu.concatenate %1445, %1446, %1447, %1448, %1449, %1450, %1451, %1452, %1453, %1454, %1455, %1456, %1457, %1458, %1459, %1460 in 0 : vector<1x256xf32>, vector<1x256xf32>, vector<1x256xf32>, vector<1x256xf32>, vector<1x256xf32>, vector<1x256xf32>, vector<1x256xf32>, vector<1x256xf32>, vector<1x256xf32>, vector<1x256xf32>, vector<1x256xf32>, vector<1x256xf32>, vector<1x256xf32>, vector<1x256xf32>, vector<1x256xf32>, vector<1x256xf32> -> vector<16x256xf32>
    %c0_304 = arith.constant 0 : index
    %c0_305 = arith.constant 0 : index
    %1462 = vector.load %arg5[%c0_304, %c0_305] : memref<32x256xf32, #tpu.memory_space<vmem>>, vector<16x256xf32>
    tpu.vector_store %arg5[%c0_304, %c0_305], %1461 {strides = array<i32>} : memref<32x256xf32, #tpu.memory_space<vmem>>, vector<16x256xf32>,
    %c20 = arith.constant 20 : index
    %c0_306 = arith.constant 0 : index
    %1463 = vector.load %arg0[%c20, %c0_306] : memref<32x256xf32, #tpu.memory_space<vmem>>, vector<4x256xf32>
    %c24_307 = arith.constant 24 : index
    %c0_308 = arith.constant 0 : index
    %1464 = vector.load %arg0[%c24_307, %c0_308] : memref<32x256xf32, #tpu.memory_space<vmem>>, vector<4x256xf32>
    %c28_309 = arith.constant 28 : index
    %c0_310 = arith.constant 0 : index
    %1465 = vector.load %arg0[%c28_309, %c0_310] : memref<32x256xf32, #tpu.memory_space<vmem>>, vector<4x256xf32>
    %1466 = vector.extract_strided_slice %1440 {offsets = [4, 0], sizes = [4, 256], strides = [1, 1]} : vector<8x256xf32> to vector<4x256xf32>
    %1467 = vector.extract_strided_slice %1466 {offsets = [0, 0], sizes = [1, 256], strides = [1, 1]} : vector<4x256xf32> to vector<1x256xf32>
    %1468 = vector.extract_strided_slice %1463 {offsets = [0, 0], sizes = [1, 256], strides = [1, 1]} : vector<4x256xf32> to vector<1x256xf32>
    %1469 = vector.extract_strided_slice %1464 {offsets = [0, 0], sizes = [1, 256], strides = [1, 1]} : vector<4x256xf32> to vector<1x256xf32>
    %1470 = vector.extract_strided_slice %1465 {offsets = [0, 0], sizes = [1, 256], strides = [1, 1]} : vector<4x256xf32> to vector<1x256xf32>
    %1471 = vector.extract_strided_slice %1466 {offsets = [1, 0], sizes = [1, 256], strides = [1, 1]} : vector<4x256xf32> to vector<1x256xf32>
    %1472 = vector.extract_strided_slice %1463 {offsets = [1, 0], sizes = [1, 256], strides = [1, 1]} : vector<4x256xf32> to vector<1x256xf32>
    %1473 = vector.extract_strided_slice %1464 {offsets = [1, 0], sizes = [1, 256], strides = [1, 1]} : vector<4x256xf32> to vector<1x256xf32>
    %1474 = vector.extract_strided_slice %1465 {offsets = [1, 0], sizes = [1, 256], strides = [1, 1]} : vector<4x256xf32> to vector<1x256xf32>
    %1475 = vector.extract_strided_slice %1466 {offsets = [2, 0], sizes = [1, 256], strides = [1, 1]} : vector<4x256xf32> to vector<1x256xf32>
    %1476 = vector.extract_strided_slice %1463 {offsets = [2, 0], sizes = [1, 256], strides = [1, 1]} : vector<4x256xf32> to vector<1x256xf32>
    %1477 = vector.extract_strided_slice %1464 {offsets = [2, 0], sizes = [1, 256], strides = [1, 1]} : vector<4x256xf32> to vector<1x256xf32>
    %1478 = vector.extract_strided_slice %1465 {offsets = [2, 0], sizes = [1, 256], strides = [1, 1]} : vector<4x256xf32> to vector<1x256xf32>
    %1479 = vector.extract_strided_slice %1466 {offsets = [3, 0], sizes = [1, 256], strides = [1, 1]} : vector<4x256xf32> to vector<1x256xf32>
    %1480 = vector.extract_strided_slice %1463 {offsets = [3, 0], sizes = [1, 256], strides = [1, 1]} : vector<4x256xf32> to vector<1x256xf32>
    %1481 = vector.extract_strided_slice %1464 {offsets = [3, 0], sizes = [1, 256], strides = [1, 1]} : vector<4x256xf32> to vector<1x256xf32>
    %1482 = vector.extract_strided_slice %1465 {offsets = [3, 0], sizes = [1, 256], strides = [1, 1]} : vector<4x256xf32> to vector<1x256xf32>
    %1483 = tpu.concatenate %1467, %1468, %1469, %1470, %1471, %1472, %1473, %1474, %1475, %1476, %1477, %1478, %1479, %1480, %1481, %1482 in 0 : vector<1x256xf32>, vector<1x256xf32>, vector<1x256xf32>, vector<1x256xf32>, vector<1x256xf32>, vector<1x256xf32>, vector<1x256xf32>, vector<1x256xf32>, vector<1x256xf32>, vector<1x256xf32>, vector<1x256xf32>, vector<1x256xf32>, vector<1x256xf32>, vector<1x256xf32>, vector<1x256xf32>, vector<1x256xf32> -> vector<16x256xf32>
    %c16_311 = arith.constant 16 : index
    %c0_312 = arith.constant 0 : index
    %1484 = vector.load %arg5[%c16_311, %c0_312] : memref<32x256xf32, #tpu.memory_space<vmem>>, vector<16x256xf32>
    tpu.vector_store %arg5[%c16_311, %c0_312], %1483 {strides = array<i32>} : memref<32x256xf32, #tpu.memory_space<vmem>>, vector<16x256xf32>,
    return
  }
}

</mosaic_0001>

<bundles_post_ra>
// kernel: mixed_op_forward.1
= control target key start
LH: loop header
LB: loop body
LE: loop exit
PB: predicated region body
PF: predicated region fallthrough
CT: control target
= control target key end

     0   :  { %10 = vsyncpa [#allocation3], 0  ;;  %s3491_s21 = smov [#allocation2]   ;;  %s6294_s0 = inlined_call_operand.vmem [shape: f32[32,256], index: 0, kind: input, shape index: {}]   ;;  %s6295_s1 = inlined_call_operand.vmem [shape: f32[8], index: 1, kind: input, shape index: {}]   ;;  %s6296_s2 = inlined_call_operand.vmem [shape: f32[42,256], index: 2, kind: input, shape index: {}]   ;;  %s6297_s3 = inlined_call_operand.vmem [shape: f32[8,102], index: 3, kind: input, shape index: {}]   ;;  %s6298_s4 = inlined_call_operand.vmem [shape: f32[6,8,8], index: 4, kind: input, shape index: {}]   ;;  %s6299_s5 = inlined_call_operand.vmem [shape: f32[32,256], index: 5, kind: output, shape index: {}]  }
   0x1   :  { %s18_s20 = sshll.u32 %s6295_s1, 4  ;;  %s19_s20 = int_to_ptr.vmem [resolvable:$true] %s18_s20 }
   0x2   :  { %21 = dma.vmem_to_smem %s19_s20, 16, %s3491_s21, [#allocation3]  }
   0x3   :  { %3489 = dma.done.wait [#allocation3], 16  }
   0x4   :  { %3490 = vsyncadd [#allocation3], 4294967280 }
   0x5   :  { %32 = sfence }
   0x6   :  { %v3665_v0 = vld [vmem:[%s6297_s3] sm:$0xff]  ;;  %v34_v1 = vld [vmem:[%s6294_s0 + $0x8] sm:$0xf]  ;;  %v3492_v3 = vmov 43   ;;  %vm43_vm0 = vcmask 1043456   ;;  %v3493_v9 = vmov 44   ;;  %v53_v51 = vlaneseq }
   0x7   :  { %v36_v2 = vld [vmem:[%s6294_s0 + $0x28] sm:$0xf]  ;;  %3305 = vset.pattern.permute.xlu1 %v3492_v3  ;;  %v33_v5 = vld [vmem:[%s6294_s0] sm:$0xf]  ;;  %3306 = vset.pattern.permute.xlu2 %v3493_v9  ;;  %s3494_s6 = smov 66   ;;  %s3495_s7 = smov 68  }
   0x8   :  { %v40_v4 = vrot.slane %v36_v2, 4  ;;  %70 = vperm.xlu1 %3305, %v3665_v0   ;;  %v35_v6 = vld [vmem:[%s6294_s0 + $0x20] sm:$0xf]  ;;  %s3496_s8 = smov 64   ;;  %v3497_v11 = vmov 45   ;;  %v3498_v12 = vmov 49  }
   0x9   :  { %v39_v8 = vrot.slane %v35_v6, 4  ;;  %s3499_s9 = smov 62   ;;  %v3500_v13 = vmov 34   ;;  %v3501_v14 = vmov 46   ;;  %s3502_s10 = smov 60   ;;  %v3503_v15 = vmov 47  }
   0xa   :  { %v3681_v7 = vsel %vm43_vm0, %v34_v1, %v40_v4  ;;  %3312 = vset.pattern.permute.xlu0 %v3500_v13  ;;  %s3504_s11 = smov 36   ;;  %v3505_v16 = vmov 48   ;;  %s3506_s12 = smov 34   ;;  %v3507_v17 = vmov 9   ;;  %v3509_v18 = vmov 10  }
   0xb   :  { %6476 = vst [vmem:[#allocation5_spill] sm:$0xff] %v3681_v7  ;;  %77 = vrot.lane.b32.xlu2 %v3681_v7, %s3494_s6  ;;  %v3685_v10 = vsel %vm43_vm0, %v33_v5, %v39_v8  ;;  %s3508_s13 = smov 33   ;;  %v3510_v19 = vmov 50   ;;  %s3511_s14 = smov 32   ;;  %v3512_v20 = vmov 35   ;;  %v3513_v21 = vmov 11  }
   0xc   :  { %6477 = vst [vmem:[#allocation6_spill] sm:$0xff] %v3685_v10  ;;  %49 = vrot.lane.b32.xlu0 %v3685_v10, %s3495_s7  ;;  %s3514_s15 = smov 30   ;;  %v3515_v22 = vmov 36   ;;  %s3516_s16 = smov 31   ;;  %v3517_v23 = vmov 12   ;;  %v3518_v24 = vmov 51  }
   0xd   :  { %s3519_s17 = smov 18   ;;  %v3520_v27 = vmov 15   ;;  %v3521_v28 = vmov 13   ;;  %s3522_s18 = smov 17   ;;  %v6326_v30 = vmov 1   ;;  %v3525_v32 = vmov 52  }
   0xe   :  { %s3523_s19 = smov 28   ;;  %s3526_s20 = smov 15   ;;  %v3527_v36 = vmov 17   ;;  %v3528_v39 = vmov 14   ;;  %v6328_v43 = vmov 0   ;;  %v3532_v45 = vmov 54  }
   0xf   :  { %s3529_s21 = smov 16   ;;  %s3531_s22 = smov 4   ;;  %v3534_v49 = vmov 16   ;;  %v3535_v53 = vmov 18   ;;  %v3804_v55 = vand.u32 127, %v53_v51  ;;  %v6322_v62 = vmov 2  }
  0x10   :  { %75 = vrot.lane.b32.xlu1 %v3685_v10, %s3494_s6  ;;  %s3533_s23 = smov 2   ;;  %v3115_v57 = vld [vmem:[%s6296_s2 + $0x1] ss:$8 sm:$0x3]  ;;  %s3536_s26 = smov 14   ;;  %v6313_v2 = vmov 4  }
  0x11   :  { %3313 = vset.pattern.permute.xlu1 %v3498_v12  ;;  %vm79_vm1 = vcmp.lt.s32.totalorder %v3804_v55, 66  ;;  %v58_v58 = vld [vmem:[%s6296_s2] ss:$8 sm:$0x3]  ;;  %vm55_vm2 = vcmp.lt.s32.totalorder %v3804_v55, 68  ;;  %v85_v61 = vperm.slane %v3115_v57, 0 }
  0x12   :  { %v60_v1 = vperm.slane %v58_v58, 0  ;;  %v3116_v4 = vld [vmem:[%s6296_s2 + $0x2] ss:$8 sm:$0x3]  ;;  %v86_v5 = vperm.slane %v3115_v57, 1  ;;  %vm105_vm3 = vcmp.lt.s32.totalorder %v3804_v55, 64 }
  0x13   :  { %94 = vperm.xlu2 %3306, %v3665_v0   ;;  %v3117_v6 = vld [vmem:[%s6296_s2 + $0x3] ss:$8 sm:$0x3]  ;;  %v61_v12 = vperm.slane %v58_v58, 1  ;;  %vm131_vm4 = vcmp.lt.s32.totalorder %v3804_v55, 62  ;;  %vm157_vm5 = vcmp.lt.s32.totalorder %v3804_v55, 60 }
  0x14   :  { %51 = vrot.lane.b32.xlu0 %v3681_v7, %s3495_s7  ;;  %vm183_vm6 = vcmp.lt.s32.totalorder %v3804_v55, 36  ;;  %v3541_v57 = vmov 39   ;;  %vm209_vm7 = vcmp.lt.s32.totalorder %v3804_v55, 34  ;;  %s3543_s25 = smov 126   ;;  %vm273_vm8 = vcmp.lt.s32.totalorder %v3804_v55, 32  ;;  %s3547_s28 = smov 114  }
  0x15   :  { %s3549_s29 = smov 113   ;;  %vm6423_vm9 = vcmp.lt.s32.totalorder %v3804_v55, 30  ;;  %vm247_vm10 = vcmp.lt.s32.totalorder %v3804_v55, 33  ;;  %vm315_vm11 = vcmp.lt.s32.totalorder %v3804_v55, 31  ;;  %vm6413_vm13 = vcmp.lt.s32.totalorder %v3804_v55, 18  ;;  %s3563_s27 = smov 124  }
  0x16   :  { %vm435_vm15 = vcmp.lt.s32.totalorder %v3804_v55, 17  ;;  %s6386_s1 = smov 96   ;;  %s3569_s7 = smov 94  }
  0x17   :  { %s3576_s30 = smov 110   ;;  %s3590_s24 = smov 92  }
  0x18   :  { %103 = vrot.lane.b32.xlu1 %v3681_v7, %s3496_s8 }
  0x1b   :  { %3307 = vset.pattern.permute.xlu2 %v3497_v11 }
  0x1c   :  { %120 = vperm.xlu2 %3307, %v3665_v0   ;;  %101 = vrot.lane.b32.xlu0 %v3685_v10, %s3496_s8  ;;  %s3558_s8 = smov 100  }
  0x20   :  { %129 = vrot.lane.b32.xlu1 %v3681_v7, %s3499_s9 }
  0x24   :  { %3308 = vset.pattern.permute.xlu2 %v3501_v14  ;;  %127 = vrot.lane.b32.xlu0 %v3685_v10, %s3499_s9  ;;  %s3554_s9 = smov 111  }
  0x25   :  { %146 = vperm.xlu2 %3308, %v3665_v0  }
  0x28   :  { %155 = vrot.lane.b32.xlu1 %v3681_v7, %s3502_s10 }
  0x2c   :  { %153 = vrot.lane.b32.xlu0 %v3685_v10, %s3502_s10  ;;  %s3561_s10 = smov 98  }
  0x2d   :  { %3309 = vset.pattern.permute.xlu2 %v3503_v15  ;;  %v111_v15 = vperm.slane %v3116_v4, 0 }
  0x2e   :  { %172 = vperm.xlu2 %3309, %v3665_v0  }
  0x30   :  { %181 = vrot.lane.b32.xlu1 %v3681_v7, %s3504_s11 }
  0x34   :  { %179 = vrot.lane.b32.xlu0 %v3685_v10, %s3504_s11  ;;  %s3539_s11 = smov 127  }
  0x36   :  { %3310 = vset.pattern.permute.xlu2 %v3505_v16  ;;  %v112_v16 = vperm.slane %v3116_v4, 1 }
  0x37   :  { %198 = vperm.xlu2 %3310, %v3665_v0  }
  0x38   :  { %207 = vrot.lane.b32.xlu1 %v3681_v7, %s3506_s12 }
  0x3c   :  { %205 = vrot.lane.b32.xlu0 %v3685_v10, %s3506_s12 }
  0x3f   :  { %3311 = vset.pattern.permute.xlu2 %v3507_v17 }
  0x40   :  { %224 = vperm.xlu2 %3311, %v3665_v0   ;;  %236 = vperm.xlu1 %3313, %v3665_v0  }
  0x44   :  { %230 = vperm.xlu0 %3312, %v3665_v0  }
  0x48   :  { %243 = vrot.lane.b32.xlu2 %v3685_v10, %s3508_s13  ;;  %245 = vrot.lane.b32.xlu1 %v3681_v7, %s3508_s13 }
  0x49   :  { %3314 = vset.pattern.permute.xlu2 %v3509_v18  ;;  %3317 = vset.pattern.permute.xlu1 %v3510_v19  ;;  %v137_v18 = vperm.slane %v3117_v6, 0  ;;  %v3118_v19 = vld [vmem:[%s6296_s2 + $0x4] ss:$8 sm:$0x3] }
  0x4c   :  { %269 = vrot.lane.b32.xlu0 %v3685_v10, %s3511_s14 }
  0x4d   :  { %3316 = vset.pattern.permute.xlu0 %v3512_v20 }
  0x50   :  { %262 = vperm.xlu2 %3314, %v3665_v0   ;;  %271 = vrot.lane.b32.xlu1 %v3681_v7, %s3511_s14 }
  0x54   :  { %296 = vperm.xlu0 %3316, %v3665_v0  }
  0x58   :  { %3315 = vset.pattern.permute.xlu2 %v3513_v21  ;;  %304 = vperm.xlu1 %3317, %v3665_v0  }
  0x59   :  { %288 = vperm.xlu2 %3315, %v3665_v0  }
  0x5c   :  { %337 = vrot.lane.b32.xlu0 %v3685_v10, %s3514_s15 }
  0x5d   :  { %3320 = vset.pattern.permute.xlu0 %v3515_v22 }
  0x60   :  { %313 = vrot.lane.b32.xlu1 %v3681_v7, %s3516_s16 }
  0x61   :  { %311 = vrot.lane.b32.xlu2 %v3685_v10, %s3516_s16  ;;  %3321 = vset.pattern.permute.xlu1 %v3518_v24 }
  0x62   :  { %3318 = vset.pattern.permute.xlu2 %v3517_v23 }
  0x64   :  { %364 = vperm.xlu0 %3320, %v3665_v0  }
  0x65   :  { %v3729_v25 = vpop.permute.xlu2 %77 }
  0x68   :  { %339 = vrot.lane.b32.xlu1 %v3681_v7, %s3514_s15 }
  0x69   :  { %330 = vperm.xlu2 %3318, %v3665_v0  }
  0x6c   :  { %405 = vrot.lane.b32.xlu0 %v3685_v10, %s3519_s17 }
  0x6d   :  { %v3736_v26 = vpop.permute.xlu2 %94  ;;  %3325 = vset.pattern.permute.xlu0 %v3520_v27 }
  0x70   :  { %372 = vperm.xlu1 %3321, %v3665_v0  }
  0x71   :  { %3319 = vset.pattern.permute.xlu2 %v3521_v28 }
  0x72   :  { %356 = vperm.xlu2 %3319, %v3665_v0  }
  0x74   :  { %431 = vrot.lane.b32.xlu0 %v3685_v10, %s3522_s18 }
  0x76   :  { %v3742_v29 = vpop.permute.xlu2 %120 }
  0x78   :  { %381 = vrot.lane.b32.xlu1 %v3681_v7, %s3523_s19 }
  0x79   :  { %3326 = vset.pattern.permute.xlu1 %v6326_v30 }
  0x7a   :  { %379 = vrot.lane.b32.xlu2 %v3685_v10, %s3523_s19  ;;  %v3747_v31 = vpop.permute.xlu1 %70  ;;  %s3570_s19 = smov 112  }
  0x7b   :  { %3322 = vset.pattern.permute.xlu2 %v3525_v32 }
  0x7c   :  { %468 = vperm.xlu0 %3325, %v3665_v0  }
  0x7e   :  { %v3750_v33 = vpop.permute.xlu0 %49 }
  0x7f   :  { %v3752_v34 = vpop.permute.xlu2 %146 }
  0x80   :  { %407 = vrot.lane.b32.xlu1 %v3681_v7, %s3519_s17 }
  0x82   :  { %398 = vperm.xlu2 %3322, %v3665_v0   ;;  %v3757_v35 = vpop.permute.xlu1 %75 }
  0x83   :  { %v3827_v63 = vsel %vm79_vm1, %v3729_v25, %v3757_v35  ;;  %v3851_v9 = vsel %vm79_vm1, %v3757_v35, %v3729_v25  ;;  %v163_v35 = vperm.slane %v3118_v19, 0 }
  0x84   :  { %521 = vrot.lane.b32.xlu0 %v3685_v10, %s3526_s20  ;;  %6478 = vst [vmem:[#allocation7_spill] sm:$0xff] %v3827_v63  ;;  %v89_v11 = vmul.f32 %v85_v61, %v3827_v63  ;;  %v90_v20 = vmul.f32 %v86_v5, %v3851_v9 }
  0x85   :  { %3329 = vset.pattern.permute.xlu0 %v3527_v36  ;;  %6480 = vst [vmem:[#allocation9_spill] sm:$0xff] %v3851_v9  ;;  %v3119_v36 = vld [vmem:[%s6296_s2 + $0x5] ss:$8 sm:$0x3] }
  0x86   :  { %v3761_v37 = vpop.permute.xlu0 %51  ;;  %v91_v24 = vmax.f32 %v89_v11, 0.0  ;;  %v3542_v11 = vmov 53  }
  0x87   :  { %v3835_v3 = vsel %vm55_vm2, %v3761_v37, %v3750_v33  ;;  %v3858_v13 = vsel %vm55_vm2, %v3750_v33, %v3761_v37  ;;  %v138_v33 = vperm.slane %v3117_v6, 1 }
  0x88   :  { %v3763_v38 = vpop.permute.xlu2 %172  ;;  %433 = vrot.lane.b32.xlu1 %v3681_v7, %s3522_s18  ;;  %6479 = vst [vmem:[#allocation8_spill] sm:$0xff] %v3835_v3  ;;  %v64_v14 = vmul.f32 %v60_v1, %v3835_v3  ;;  %v65_v25 = vmul.f32 %v61_v12, %v3858_v13  ;;  %v97_v58 = vmul.f32 %v3736_v26, %v91_v24  ;;  %v3926_v1 = vld [vmem:[%s6296_s2 + $0x6] ss:$8 sm:$0x3] }
  0x89   :  { %6481 = vst [vmem:[#allocation10_spill] sm:$0xff] %v3858_v13  ;;  %v3589_v13 = vmov 33  }
  0x8a   :  { %3323 = vset.pattern.permute.xlu2 %v3528_v39  ;;  %v3768_v40 = vpop.permute.xlu1 %103  ;;  %v66_v28 = vmax.f32 %v64_v14, 0.0  ;;  %v164_v39 = vperm.slane %v3118_v19, 1  ;;  %v67_v61 = vmax.f32 %v65_v25, 0.0  ;;  %6488 = vst [vmem:[#allocation17_spill] sm:$0xff] %v3926_v1  ;;  %v190_v14 = vperm.slane %v3119_v36, 1 }
  0x8b   :  { %424 = vperm.xlu2 %3323, %v3665_v0   ;;  %v6309_v19 = vperm.slane %v3926_v1, 0 }
  0x8c   :  { %560 = vperm.xlu0 %3329, %v3665_v0   ;;  %v73_v4 = vmul.f32 %v3747_v31, %v66_v28  ;;  %v74_v25 = vmul.f32 %v3747_v31, %v67_v61 }
  0x8e   :  { %v3771_v41 = vpop.permute.xlu0 %101 }
  0x8f   :  { %v3867_v17 = vsel %vm105_vm3, %v3768_v40, %v3771_v41  ;;  %v3877_v21 = vsel %vm105_vm3, %v3771_v41, %v3768_v40  ;;  %v3540_v40 = vmov 37   ;;  %v92_v41 = vmax.f32 %v90_v20, 0.0 }
  0x90   :  { %475 = vrot.lane.b32.xlu1 %v3685_v10, %s3529_s21  ;;  %6482 = vst [vmem:[#allocation11_spill] sm:$0xff] %v3867_v17  ;;  %v115_v32 = vmul.f32 %v111_v15, %v3867_v17  ;;  %v116_v37 = vmul.f32 %v112_v16, %v3877_v21  ;;  %vm479_vm3 = vcmp.lt.s32.totalorder %v3804_v55, 16 }
  0x91   :  { %v3775_v42 = vpop.permute.xlu2 %198  ;;  %6483 = vst [vmem:[#allocation12_spill] sm:$0xff] %v3877_v21 }
  0x92   :  { %v3778_v44 = vpop.permute.xlu1 %129  ;;  %v117_v5 = vmax.f32 %v115_v32, 0.0  ;;  %v6307_v32 = vperm.slane %v3926_v1, 1 }
  0x93   :  { %3324 = vset.pattern.permute.xlu2 %v6328_v43 }
  0x94   :  { %462 = vperm.xlu2 %3324, %v3665_v0   ;;  %595 = vrot.lane.b32.xlu0 %v3681_v7, %s3531_s22 }
  0x95   :  { %3334 = vset.pattern.permute.xlu0 %v3532_v45 }
  0x96   :  { %v3783_v46 = vpop.permute.xlu0 %127 }
  0x97   :  { %v3889_v27 = vsel %vm131_vm4, %v3778_v44, %v3783_v46  ;;  %v3905_v45 = vsel %vm131_vm4, %v3783_v46, %v3778_v44  ;;  %v189_v46 = vperm.slane %v3119_v36, 0  ;;  %v99_v36 = vadd.f32 %v97_v58, %v73_v4 }
  0x98   :  { %506 = vperm.xlu1 %3326, %v3665_v0   ;;  %6484 = vst [vmem:[#allocation13_spill] sm:$0xff] %v3889_v27 }
  0x99   :  { %6485 = vst [vmem:[#allocation14_spill] sm:$0xff] %v3905_v45 }
  0x9a   :  { %v3786_v47 = vpop.permute.xlu2 %224  ;;  %v3788_v48 = vpop.permute.xlu1 %155 }
  0x9c   :  { %477 = vrot.lane.b32.xlu2 %v3681_v7, %s3529_s21  ;;  %621 = vrot.lane.b32.xlu0 %v3681_v7, %s3533_s23 }
  0x9d   :  { %3327 = vset.pattern.permute.xlu2 %v3534_v49  ;;  %v141_v49 = vmul.f32 %v137_v18, %v3889_v27 }
  0x9e   :  { %v3794_v50 = vpop.permute.xlu0 %153 }
  0x9f   :  { %v3912_v51 = vsel %vm157_vm5, %v3788_v48, %v3794_v50  ;;  %v3921_v44 = vsel %vm157_vm5, %v3794_v50, %v3788_v48  ;;  %v118_v48 = vmax.f32 %v116_v37, 0.0  ;;  %v142_v50 = vmul.f32 %v138_v33, %v3905_v45 }
  0xa0   :  { %523 = vrot.lane.b32.xlu1 %v3681_v7, %s3526_s20  ;;  %6486 = vst [vmem:[#allocation15_spill] sm:$0xff] %v3912_v51  ;;  %v167_v12 = vmul.f32 %v163_v35, %v3912_v51  ;;  %v143_v15 = vmax.f32 %v141_v49, 0.0  ;;  %v168_v16 = vmul.f32 %v164_v39, %v3921_v44  ;;  %v98_v35 = vmul.f32 %v3736_v26, %v92_v41  ;;  %v3967_v26 = vld [vmem:[%s6296_s2 + $0x10] ss:$8 sm:$0x3] }
  0xa1   :  { %3330 = vset.pattern.permute.xlu1 %v3535_v53  ;;  %6487 = vst [vmem:[#allocation16_spill] sm:$0xff] %v3921_v44  ;;  %v124_v31 = vmul.f32 %v3742_v29, %v118_v48  ;;  %v144_v37 = vmax.f32 %v142_v50, 0.0  ;;  %v6302_v4 = vperm.slane %v3967_v26, 1  ;;  %v3544_v48 = vmov 19   ;;  %v4613_v44 = vld [vmem:[%s6298_s4 + $0x10] sm:$0xff] }
  0xa2   :  { %v3798_v52 = vpop.permute.xlu2 %243  ;;  %v3800_v54 = vpop.permute.xlu1 %181  ;;  %v169_v39 = vmax.f32 %v167_v12, 0.0  ;;  %6489 = vst [vmem:[#allocation18_spill] sm:$0xff] %v3967_v26  ;;  %v149_v41 = vmul.f32 %v3752_v34, %v143_v15 }
  0xa4   :  { %514 = vperm.xlu2 %3327, %v3665_v0   ;;  %654 = vperm.xlu0 %3334, %v3665_v0  }
  0xa6   :  { %v3806_v56 = vpop.permute.xlu0 %179 }
  0xa7   :  { %v185_v6 = vsel %vm183_vm6, %v3800_v54, %v3806_v56  ;;  %v184_v18 = vsel %vm183_vm6, %v3806_v56, %v3800_v54  ;;  %v123_v54 = vmul.f32 %v3742_v29, %v117_v5  ;;  %v100_v29 = vadd.f32 %v98_v35, %v74_v25 }
  0xa8   :  { %567 = vrot.lane.b32.xlu1 %v3685_v10, %s3536_s26  ;;  %v193_v28 = vmul.f32 %v189_v46, %v185_v6  ;;  %v6303_v46 = vperm.slane %v3967_v26, 0  ;;  %v150_v5 = vmul.f32 %v3752_v34, %v144_v37  ;;  %v175_v6 = vmul.f32 %v3763_v38, %v169_v39 }
  0xa9   :  { %v125_v61 = vadd.f32 %v123_v54, %v99_v36  ;;  %v126_v50 = vadd.f32 %v124_v31, %v100_v29 }
  0xaa   :  { %v3817_v59 = vpop.permute.xlu2 %262  ;;  %v3820_v60 = vpop.permute.xlu1 %207 }
  0xab   :  { %v151_v12 = vadd.f32 %v149_v41, %v125_v61  ;;  %v152_v36 = vadd.f32 %v150_v5, %v126_v50 }
  0xac   :  { %3328 = vset.pattern.permute.xlu2 %v6322_v62  ;;  %3337 = vset.pattern.permute.xlu0 %v6313_v2  ;;  %v3560_v2 = vmov 56  }
  0xad   :  { %552 = vperm.xlu2 %3328, %v3665_v0   ;;  %708 = vperm.xlu0 %3337, %v3665_v0   ;;  %v177_v54 = vadd.f32 %v175_v6, %v151_v12  ;;  %v6324_v12 = vmov 3  }
  0xae   :  { %v3845_v8 = vpop.permute.xlu0 %205 }
  0xaf   :  { %v211_v33 = vsel %vm209_vm7, %v3820_v60, %v3845_v8  ;;  %v210_v56 = vsel %vm209_vm7, %v3845_v8, %v3820_v60  ;;  %v170_v60 = vmax.f32 %v168_v16, 0.0 }
  0xb0   :  { %586 = vperm.xlu1 %3330, %v3665_v0   ;;  %v219_v8 = vmul.f32 %v6309_v19, %v211_v33  ;;  %v220_v58 = vmul.f32 %v6307_v32, %v210_v56 }
  0xb2   :  { %v3880_v22 = vpop.permute.xlu1 %236  ;;  %v3980_v15 = vmax.f32 %v219_v8, 0.0 }
  0xb3   :  { %v3882_v23 = vpop.permute.xlu2 %288 }
  0xb4   :  { %v239_v31 = vmul.f32 %v3880_v22, %v3980_v15 }
  0xb5   :  { %569 = vrot.lane.b32.xlu2 %v3681_v7, %s3536_s26  ;;  %741 = vrot.lane.b32.xlu0 %v3681_v7, %s3539_s11 }
  0xb6   :  { %3333 = vset.pattern.permute.xlu2 %v3540_v40  ;;  %v3914_v53 = vpop.permute.xlu0 %230  ;;  %3344 = vset.pattern.permute.xlu0 %v3541_v57  ;;  %v194_v40 = vmul.f32 %v190_v14, %v184_v18  ;;  %v195_v57 = vmax.f32 %v193_v28, 0.0  ;;  %v176_v14 = vmul.f32 %v3763_v38, %v170_v60  ;;  %v3986_v28 = vmax.f32 %v220_v58, 0.0 }
  0xb8   :  { %3331 = vset.pattern.permute.xlu1 %v3542_v11  ;;  %v196_v11 = vmax.f32 %v194_v40, 0.0  ;;  %v201_v25 = vmul.f32 %v3775_v42, %v195_v57  ;;  %v178_v41 = vadd.f32 %v176_v14, %v152_v36  ;;  %v240_v8 = vmul.f32 %v3880_v22, %v3986_v28 }
  0xb9   :  { %612 = vperm.xlu1 %3331, %v3665_v0   ;;  %v3550_v36 = vmov 20  }
  0xba   :  { %v3943_v20 = vpop.permute.xlu1 %245  ;;  %v202_v56 = vmul.f32 %v3775_v42, %v196_v11  ;;  %v203_v60 = vadd.f32 %v201_v25, %v177_v54  ;;  %v234_v42 = vmul.f32 %v3914_v53, %v3986_v28 }
  0xbb   :  { %v3945_v24 = vpop.permute.xlu2 %311 }
  0xbc   :  { %v204_v58 = vadd.f32 %v202_v56, %v178_v41  ;;  %v241_v61 = vadd.f32 %v239_v31, %v203_v60 }
  0xbd   :  { %593 = vrot.lane.b32.xlu2 %v3685_v10, %s3531_s22  ;;  %785 = vrot.lane.b32.xlu0 %v3685_v10, %s3543_s25  ;;  %s3545_s22 = smov 1  }
  0xbe   :  { %v270_v49 = vpop.permute.xlu0 %269  ;;  %v242_v11 = vadd.f32 %v240_v8, %v204_v58 }
  0xc1   :  { %3332 = vset.pattern.permute.xlu1 %v3544_v48 }
  0xc2   :  { %638 = vperm.xlu1 %3332, %v3665_v0   ;;  %v272_v16 = vpop.permute.xlu1 %271 }
  0xc3   :  { %v3983_v18 = vpop.permute.xlu2 %330  ;;  %v274_v34 = vsel %vm273_vm8, %v270_v49, %v272_v16  ;;  %v275_v33 = vsel %vm273_vm8, %v272_v16, %v270_v49  ;;  %v233_v49 = vmul.f32 %v3914_v53, %v3980_v15 }
  0xc4   :  { %v283_v38 = vmul.f32 %v6303_v46, %v275_v33  ;;  %v284_v35 = vmul.f32 %v6302_v4, %v274_v34  ;;  %v3548_v34 = vmov 25  }
  0xc5   :  { %619 = vrot.lane.b32.xlu2 %v3685_v10, %s3533_s23  ;;  %812 = vperm.xlu0 %3344, %v3665_v0  }
  0xc6   :  { %v4002_v37 = vmax.f32 %v283_v38, 0.0  ;;  %v4004_v39 = vmax.f32 %v284_v35, 0.0  ;;  %v297_v40 = vpop.permute.xlu0 %296  ;;  %v4036_v35 = vld [vmem:[%s6296_s2 + $0x12] ss:$8 sm:$0x3] }
  0xc7   :  { %6490 = vst [vmem:[#allocation19_spill] sm:$0xff] %v4036_v35  ;;  %v6301_v56 = vperm.slane %v4036_v35, 0  ;;  %v6300_v31 = vperm.slane %v4036_v35, 1 }
  0xc8   :  { %v299_v29 = vmul.f32 %v297_v40, %v4002_v37  ;;  %v300_v57 = vmul.f32 %v297_v40, %v4004_v39  ;;  %v3551_v40 = vmov 21  }
  0xca   :  { %v301_v5 = vadd.f32 %v299_v29, %v233_v49  ;;  %v4014_v6 = vadd.f32 %v300_v57, %v234_v42  ;;  %661 = vrot.lane.b32.xlu1 %v3685_v10, %s3545_s22  ;;  %v305_v22 = vpop.permute.xlu1 %304 }
  0xcb   :  { %v307_v48 = vmul.f32 %v305_v22, %v4002_v37  ;;  %v308_v50 = vmul.f32 %v305_v22, %v4004_v39  ;;  %3335 = vset.pattern.permute.xlu1 %v6324_v12  ;;  %v4063_v22 = vld [vmem:[%s6296_s2 + $0x7] ss:$8 sm:$0x3] }
  0xcc   :  { %v4020_v53 = vpop.permute.xlu2 %356  ;;  %6491 = vst [vmem:[#allocation20_spill] sm:$0xff] %v4063_v22 }
  0xcd   :  { %646 = vperm.xlu2 %3333, %v3665_v0   ;;  %v309_v14 = vadd.f32 %v307_v48, %v241_v61  ;;  %v310_v16 = vadd.f32 %v308_v50, %v242_v11  ;;  %853 = vrot.lane.b32.xlu0 %v3685_v10, %s3547_s28 }
  0xce   :  { %v338_v25 = vpop.permute.xlu0 %337  ;;  %3349 = vset.pattern.permute.xlu0 %v3548_v34 }
  0xd2   :  { %692 = vperm.xlu1 %3335, %v3665_v0   ;;  %v314_v33 = vpop.permute.xlu1 %313 }
  0xd4   :  { %v4027_v38 = vpop.permute.xlu2 %379 }
  0xd5   :  { %663 = vrot.lane.b32.xlu2 %v3681_v7, %s3545_s22  ;;  %879 = vrot.lane.b32.xlu0 %v3685_v10, %s3549_s29 }
  0xd6   :  { %3336 = vset.pattern.permute.xlu2 %v3550_v36  ;;  %v365_v54 = vpop.permute.xlu0 %364  ;;  %v3552_v36 = vmov 55  }
  0xda   :  { %3338 = vset.pattern.permute.xlu1 %v3551_v40  ;;  %v340_v41 = vpop.permute.xlu1 %339  ;;  %v6306_v40 = vperm.slane %v4063_v22, 0 }
  0xdb   :  { %v342_v60 = vsel %vm6423_vm9, %v338_v25, %v340_v41  ;;  %v343_v8 = vsel %vm6423_vm9, %v340_v41, %v338_v25  ;;  %716 = vperm.xlu1 %3338, %v3665_v0   ;;  %v249_v41 = vsel %vm247_vm10, %v3943_v20, %v3798_v52  ;;  %vm1047_vm9 = vcmp.lt.s32.totalorder %v3804_v55, 100 }
  0xdc   :  { %v4046_v49 = vpop.permute.xlu2 %398  ;;  %v351_v42 = vmul.f32 %v6301_v56, %v343_v8  ;;  %v352_v29 = vmul.f32 %v6300_v31, %v342_v60  ;;  %v3553_v60 = vmov 38   ;;  %v3557_v56 = vmov 22  }
  0xdd   :  { %700 = vperm.xlu2 %3336, %v3665_v0   ;;  %918 = vperm.xlu0 %3349, %v3665_v0  }
  0xde   :  { %v4054_v57 = vmax.f32 %v351_v42, 0.0  ;;  %v4056_v58 = vmax.f32 %v352_v29, 0.0  ;;  %v4066_v48 = vpop.permute.xlu0 %405 }
  0xe0   :  { %v367_v61 = vmul.f32 %v365_v54, %v4054_v57  ;;  %v368_v11 = vmul.f32 %v365_v54, %v4056_v58 }
  0xe2   :  { %v373_v50 = vpop.permute.xlu1 %372  ;;  %v4078_v8 = vadd.f32 %v367_v61, %v301_v5  ;;  %v248_v5 = vsel %vm247_vm10, %v3798_v52, %v3943_v20  ;;  %v317_v52 = vsel %vm315_vm11, %v314_v33, %v3945_v24 }
  0xe3   :  { %v375_v25 = vmul.f32 %v373_v50, %v4054_v57  ;;  %v376_v34 = vmul.f32 %v373_v50, %v4056_v58  ;;  %3340 = vset.pattern.permute.xlu1 %v3552_v36  ;;  %v4088_v50 = vadd.f32 %v368_v11, %v4014_v6  ;;  %v6305_v36 = vperm.slane %v4063_v22, 1 }
  0xe4   :  { %732 = vperm.xlu1 %3340, %v3665_v0  }
  0xe5   :  { %3339 = vset.pattern.permute.xlu2 %v3553_v60  ;;  %v4076_v54 = vpop.permute.xlu2 %424  ;;  %v4080_v42 = vadd.f32 %v375_v25, %v309_v14  ;;  %v4082_v29 = vadd.f32 %v376_v34, %v310_v16  ;;  %971 = vrot.lane.b32.xlu0 %v3685_v10, %s3554_s9  ;;  %v3555_v60 = vmov 27   ;;  %v4098_v14 = vld [vmem:[%s6296_s2 + $0x11] ss:$8 sm:$0x3]  ;;  %v257_v16 = vmul.f32 %v6306_v40, %v249_v41 }
  0xe6   :  { %724 = vperm.xlu2 %3339, %v3665_v0   ;;  %3353 = vset.pattern.permute.xlu0 %v3555_v60  ;;  %6492 = vst [vmem:[#allocation21_spill] sm:$0xff] %v4098_v14  ;;  %v258_v6 = vmul.f32 %v6305_v36, %v248_v5  ;;  %v6304_v61 = vperm.slane %v4098_v14, 0  ;;  %v6308_v25 = vperm.slane %v4098_v14, 1  ;;  %v316_v34 = vsel %vm315_vm11, %v3945_v24, %v314_v33  ;;  %v4115_v41 = vpop.permute.xlu0 %431  ;;  %v3127_v5 = vld [vmem:[%s6296_s2 + $0x15] ss:$8 sm:$0x3] }
  0xe7   :  { %v259_v20 = vmax.f32 %v257_v16, 0.0  ;;  %v6311_v60 = vmov 5   ;;  %v4132_v33 = vld [vmem:[%s6296_s2 + $0x14] ss:$8 sm:$0x3]  ;;  %vm449_vm12 = vcmp.gt.f32.partialorder %v3127_v5, 0.0 }
  0xe8   :  { %v260_v16 = vmax.f32 %v258_v6, 0.0  ;;  %v325_v24 = vmul.f32 %v6304_v61, %v317_v52  ;;  %6493 = vst [vmem:[#allocation22_spill] sm:$0xff] %v4132_v33  ;;  %v326_v4 = vmul.f32 %v6308_v25, %v316_v34  ;;  %v6310_v6 = vperm.slane %v4132_v33, 0 }
  0xe9   :  { %v265_v46 = vmul.f32 %v3817_v59, %v259_v20  ;;  %v227_v52 = vmul.f32 %v3786_v47, %v3980_v15  ;;  %v450_v32 = vsel %vm449_vm12, 1, %v6328_v43  ;;  %v291_v20 = vmul.f32 %v3882_v23, %v4002_v37 }
  0xea   :  { %v4106_v11 = vpop.permute.xlu1 %381  ;;  %v266_v61 = vmul.f32 %v3817_v59, %v260_v16  ;;  %v327_v36 = vmax.f32 %v325_v24, 0.0  ;;  %v328_v34 = vmax.f32 %v326_v4, 0.0  ;;  %v228_v59 = vmul.f32 %v3786_v47, %v3986_v28 }
  0xeb   :  { %v267_v15 = vadd.f32 %v265_v46, %v227_v52  ;;  %v6315_v16 = vperm.slane %v4132_v33, 1  ;;  %v451_v37 = vperm.slane %v450_v32, 0  ;;  %v452_v19 = vperm.slane %v450_v32, 1 }
  0xec   :  { %3341 = vset.pattern.permute.xlu1 %v6311_v60  ;;  %v292_v47 = vmul.f32 %v3882_v23, %v4004_v39  ;;  %v333_v46 = vmul.f32 %v3983_v18, %v327_v36  ;;  %v3559_v52 = vmov 59   ;;  %v334_v32 = vmul.f32 %v3983_v18, %v328_v34 }
  0xed   :  { %1010 = vperm.xlu0 %3353, %v3665_v0   ;;  %770 = vperm.xlu1 %3341, %v3665_v0   ;;  %v293_v60 = vadd.f32 %v291_v20, %v267_v15  ;;  %v4174_v23 = vperm.slane %v3127_v5, 0  ;;  %v4176_v39 = vperm.slane %v3127_v5, 1  ;;  %vm4183_vm1 = vcmp.eq.s32.totalorder %v451_v37, 1 }
  0xee   :  { %739 = vrot.lane.b32.xlu2 %v3685_v10, %s3539_s11  ;;  %v4124_v31 = vpop.permute.xlu2 %462  ;;  %v469_v28 = vpop.permute.xlu0 %468  ;;  %vm4187_vm2 = vcmp.eq.s32.totalorder %v452_v19, 1  ;;  %v359_v5 = vmul.f32 %v4020_v53, %v4054_v57  ;;  %vm525_vm12 = vcmp.lt.s32.totalorder %v3804_v55, 15 }
  0xef   :  { %3342 = vset.pattern.permute.xlu2 %v3557_v56  ;;  %v4146_v56 = vld [vmem:[%s6296_s2 + $0x16] ss:$8 sm:$0x3]  ;;  %6494 = vst [vmem:[#allocation23_spill] sm:$0xff] %v4174_v23  ;;  %v335_v20 = vadd.f32 %v333_v46, %v293_v60 }
  0xf0   :  { %vm493_vm14 = vcmp.gt.f32.partialorder %v4146_v56, 0.0  ;;  %6495 = vst [vmem:[#allocation24_spill] sm:$0xff] %v4176_v39 }
  0xf2   :  { %v408_v40 = vpop.permute.xlu1 %407 }
  0xf3   :  { %v411_v25 = vsel %vm6413_vm13, %v408_v40, %v4066_v48 }
  0xf4   :  { %v419_v24 = vmul.f32 %v6310_v6, %v411_v25  ;;  %v410_v25 = vsel %vm6413_vm13, %v4066_v48, %v408_v40  ;;  %v268_v6 = vadd.f32 %v266_v61, %v228_v59  ;;  %v494_v48 = vsel %vm493_vm14, 1, %v6328_v43 }
  0xf5   :  { %1045 = vrot.lane.b32.xlu0 %v3681_v7, %s3558_s8  ;;  %787 = vrot.lane.b32.xlu1 %v3681_v7, %s3543_s25  ;;  %v420_v40 = vmul.f32 %v6315_v16, %v410_v25  ;;  %v360_v59 = vmul.f32 %v4020_v53, %v4056_v58  ;;  %v496_v25 = vperm.slane %v494_v48, 1 }
  0xf6   :  { %778 = vperm.xlu2 %3342, %v3665_v0   ;;  %v4161_v4 = vpop.permute.xlu2 %477  ;;  %3358 = vset.pattern.permute.xlu0 %v3559_v52  ;;  %v421_v36 = vmax.f32 %v419_v24, 0.0  ;;  %v294_v18 = vadd.f32 %v292_v47, %v268_v6  ;;  %v495_v24 = vperm.slane %v494_v48, 0  ;;  %v361_v52 = vadd.f32 %v359_v5, %v335_v20 }
  0xf7   :  { %3345 = vset.pattern.permute.xlu1 %v3560_v2  ;;  %v422_v6 = vmax.f32 %v420_v40, 0.0  ;;  %v4218_v40 = vpop.permute.xlu0 %521  ;;  %vm4232_vm5 = vcmp.eq.s32.totalorder %v496_v25, 1 }
  0xf8   :  { %v336_v58 = vadd.f32 %v334_v32, %v294_v18  ;;  %v427_v47 = vmul.f32 %v4076_v54, %v421_v36  ;;  %v4222_v36 = vperm.slane %v4146_v56, 0  ;;  %v4225_v18 = vperm.slane %v4146_v56, 1 }
  0xf9   :  { %vm4227_vm4 = vcmp.eq.s32.totalorder %v495_v24, 1  ;;  %v428_v20 = vmul.f32 %v4076_v54, %v422_v6 }
  0xfa   :  { %v434_v34 = vpop.permute.xlu1 %433  ;;  %v362_v61 = vadd.f32 %v360_v59, %v336_v58  ;;  %6500 = vst [vmem:[#allocation25_spill] sm:$0xff] %v4222_v36  ;;  %v429_v5 = vadd.f32 %v427_v47, %v361_v52 }
  0xfb   :  { %v436_v15 = vsel %vm435_vm15, %v4115_v41, %v434_v34  ;;  %v437_v19 = vsel %vm435_vm15, %v434_v34, %v4115_v41  ;;  %v3562_v41 = vmov 23   ;;  %6501 = vst [vmem:[#allocation26_spill] sm:$0xff] %v4225_v18 }
  0xfc   :  { %v4202_v37 = vmul.f32 %v4174_v23, %v437_v19  ;;  %v4205_v60 = vmul.f32 %v4176_v39, %v436_v15  ;;  %v455_v57 = vsel %vm4183_vm1, %v437_v19, -1e+30  ;;  %v456_v53 = vsel %vm4187_vm2, %v436_v15, -1e+30 }
  0xfd   :  { %1071 = vrot.lane.b32.xlu0 %v3681_v7, %s3561_s10  ;;  %820 = vperm.xlu1 %3345, %v3665_v0   ;;  %v457_v59 = vmax.f32 %v3685_v10, %v455_v57  ;;  %v458_v15 = vmax.f32 %v3681_v7, %v456_v53  ;;  %v3129_v53 = vld [vmem:[%s6296_s2 + $0x17] ss:$8 sm:$0x3]  ;;  %v430_v52 = vadd.f32 %v428_v20, %v362_v61  ;;  %v3564_v61 = vmov 57  }
  0xfe   :  { %3343 = vset.pattern.permute.xlu2 %v3562_v41  ;;  %v515_v46 = vpop.permute.xlu2 %514  ;;  %v6317_v2 = vmax.f32 %v4202_v37, 0.0  ;;  %v6316_v32 = vmax.f32 %v4205_v60, 0.0  ;;  %v459_v19 = vadd.f32 %v4202_v37, %v3685_v10  ;;  %v460_v56 = vadd.f32 %v4205_v60, %v3681_v7 }
  0xff   :  { %804 = vperm.xlu2 %3343, %v3665_v0   ;;  %vm539_vm6 = vcmp.gt.f32.partialorder %v3129_v53, 0.0  ;;  %v6320_v20 = vmov 7   ;;  %vm383_vm2 = vcmp.lt.s32.totalorder %v3804_v55, 28 }
 0x100   :  { %v471_v58 = vmul.f32 %v469_v28, %v6317_v2  ;;  %v472_v54 = vmul.f32 %v469_v28, %v6316_v32 }
 0x102   :  { %v476_v24 = vpop.permute.xlu1 %475 }
 0x103   :  { %v480_v6 = vsel %vm479_vm3, %v476_v24, %v4161_v4  ;;  %v481_v57 = vsel %vm479_vm3, %v4161_v4, %v476_v24 }
 0x104   :  { %v4256_v47 = vmul.f32 %v4222_v36, %v481_v57  ;;  %v4259_v41 = vmul.f32 %v4225_v18, %v480_v6  ;;  %v499_v28 = vsel %vm4227_vm4, %v481_v57, -1e+30  ;;  %v500_v25 = vsel %vm4232_vm5, %v480_v6, -1e+30 }
 0x105   :  { %v501_v16 = vmax.f32 %v457_v59, %v499_v28  ;;  %v502_v32 = vmax.f32 %v458_v15, %v500_v25  ;;  %1104 = vperm.xlu0 %3358, %v3665_v0   ;;  %829 = vrot.lane.b32.xlu1 %v3681_v7, %s3563_s27  ;;  %v473_v0 = vadd.f32 %v471_v58, %v429_v5  ;;  %v540_v57 = vsel %vm539_vm6, 1, %v6328_v43 }
 0x106   :  { %v503_v4 = vadd.f32 %v4256_v47, %v459_v19  ;;  %v504_v24 = vadd.f32 %v4259_v41, %v460_v56  ;;  %v6319_v48 = vmax.f32 %v4256_v47, 0.0  ;;  %v6318_v34 = vmax.f32 %v4259_v41, 0.0  ;;  %3350 = vset.pattern.permute.xlu1 %v6320_v20  ;;  %v561_v56 = vpop.permute.xlu0 %560 }
 0x107   :  { %827 = vrot.lane.b32.xlu2 %v3685_v10, %s3563_s27  ;;  %v4270_v2 = vpop.permute.xlu2 %552  ;;  %v474_v59 = vadd.f32 %v472_v54, %v430_v52  ;;  %v542_v5 = vperm.slane %v540_v57, 1  ;;  %v3567_v54 = vmov 60   ;;  %v4295_v52 = vperm.slane %v3129_v53, 0  ;;  %s6388_s27 = smov 97  }
 0x108   :  { %3346 = vset.pattern.permute.xlu2 %v3564_v61  ;;  %v517_v15 = vmul.f32 %v515_v46, %v6319_v48  ;;  %v518_v19 = vmul.f32 %v515_v46, %v6318_v34  ;;  %v541_v61 = vperm.slane %v540_v57, 0  ;;  %v4289_v46 = vld [vmem:[%s6297_s3] sm:$0xff]  ;;  %v384_v43 = vsel %vm383_vm2, %v4027_v38, %v4106_v11 }
 0x109   :  { %6506 = vst [vmem:[#allocation27_spill] sm:$0xff] %v4295_v52  ;;  %vm544_vm1 = vcmp.eq.s32.totalorder %v542_v5, 1  ;;  %vm6390_vm4 = vcmp.lt.s32.totalorder %v3804_v55, 2  ;;  %vm597_vm5 = vcmp.lt.s32.totalorder %v3804_v55, 4  ;;  %vm6399_vm6 = vcmp.lt.s32.totalorder %v3804_v55, 14 }
 0x10a   :  { %v4279_v6 = vpop.permute.xlu1 %506  ;;  %v519_v28 = vadd.f32 %v517_v15, %v473_v0  ;;  %v520_v25 = vadd.f32 %v518_v19, %v474_v59  ;;  %v4297_v0 = vperm.slane %v3129_v53, 1  ;;  %vm543_vm14 = vcmp.eq.s32.totalorder %v541_v61, 1 }
 0x10c   :  { %6507 = vst [vmem:[#allocation28_spill] sm:$0xff] %v4297_v0 }
 0x10d   :  { %1139 = vrot.lane.b32.xlu0 %v3681_v7, %s6386_s1  ;;  %855 = vrot.lane.b32.xlu1 %v3681_v7, %s3547_s28 }
 0x10e   :  { %3362 = vset.pattern.permute.xlu0 %v3567_v54  ;;  %v596_v57 = vpop.permute.xlu0 %595 }
 0x10f   :  { %846 = vperm.xlu2 %3346, %v4289_v46   ;;  %v4292_v58 = vpop.permute.xlu2 %569 }
 0x112   :  { %v524_v59 = vpop.permute.xlu1 %523 }
 0x113   :  { %v526_v15 = vsel %vm525_vm12, %v4218_v40, %v524_v59  ;;  %v527_v19 = vsel %vm525_vm12, %v524_v59, %v4218_v40 }
 0x114   :  { %v4306_v54 = vmul.f32 %v4295_v52, %v527_v19  ;;  %v4309_v34 = vmul.f32 %v4297_v0, %v526_v15  ;;  %v545_v53 = vsel %vm543_vm14, %v527_v19, -1e+30  ;;  %v546_v48 = vsel %vm544_vm1, %v526_v15, -1e+30 }
 0x115   :  { %v4311_v61 = vmax.f32 %v501_v16, %v545_v53  ;;  %v4313_v5 = vmax.f32 %v502_v32, %v546_v48  ;;  %1172 = vperm.xlu0 %3362, %v4289_v46   ;;  %881 = vrot.lane.b32.xlu1 %v3681_v7, %s3549_s29  ;;  %v3568_v15 = vmov 24   ;;  %v3125_v32 = vld [vmem:[%s6296_s2 + $0x13] ss:$8 sm:$0x3]  ;;  %vm665_vm1 = vcmp.lt.s32.totalorder %v3804_v55, 1 }
 0x116   :  { %v6330_v20 = vmax.f32 %v4306_v54, 0.0  ;;  %v6331_v62 = vmax.f32 %v4309_v34, 0.0  ;;  %v4319_v40 = vadd.f32 %v4306_v54, %v503_v4  ;;  %v4322_v59 = vadd.f32 %v4309_v34, %v504_v24  ;;  %v4338_v48 = vld [vmem:[%s6296_s2 + $0x22] ss:$8 sm:$0x3] }
 0x117   :  { %3347 = vset.pattern.permute.xlu2 %v3568_v15  ;;  %v594_v16 = vpop.permute.xlu2 %593  ;;  %6508 = vst [vmem:[#allocation29_spill] sm:$0xff] %v4338_v48  ;;  %v389_v19 = vperm.slane %v3125_v32, 0  ;;  %v390_v30 = vperm.slane %v3125_v32, 1  ;;  %v6509_v14 = vperm.slane %v4338_v48, 0  ;;  %v6510_v22 = vperm.slane %v4338_v48, 1 }
 0x118   :  { %872 = vperm.xlu2 %3347, %v4289_v46   ;;  %v563_v4 = vmul.f32 %v561_v56, %v6330_v20  ;;  %v564_v24 = vmul.f32 %v561_v56, %v6331_v62  ;;  %v385_v20 = vsel %vm383_vm2, %v4106_v11, %v4027_v38  ;;  %v3571_v11 = vmov 61  }
 0x119   :  { %v393_v32 = vmul.f32 %v389_v19, %v385_v20  ;;  %v6346_v56 = vmov 6  }
 0x11a   :  { %v4340_v53 = vpop.permute.xlu1 %567  ;;  %v4342_v15 = vadd.f32 %v563_v4, %v519_v28  ;;  %v4344_v12 = vadd.f32 %v564_v24, %v520_v25  ;;  %v3131_v28 = vld [vmem:[%s6296_s2 + $0x21] ss:$8 sm:$0x3]  ;;  %v622_v25 = vpop.permute.xlu0 %621  ;;  %v394_v4 = vmul.f32 %v390_v30, %v384_v43  ;;  %v598_v30 = vsel %vm597_vm5, %v594_v16, %v596_v57 }
 0x11b   :  { %v603_v33 = vperm.slane %v3131_v28, 0  ;;  %v604_v35 = vperm.slane %v3131_v28, 1  ;;  %v599_v43 = vsel %vm597_vm5, %v596_v57, %v594_v16  ;;  %v395_v19 = vmax.f32 %v393_v32, 0.0 }
 0x11d   :  { %1207 = vrot.lane.b32.xlu0 %v3681_v7, %s3569_s7  ;;  %925 = vrot.lane.b32.xlu1 %v3685_v10, %s3570_s19 }
 0x11e   :  { %3366 = vset.pattern.permute.xlu0 %v3571_v11  ;;  %v401_v11 = vmul.f32 %v4046_v49, %v395_v19 }
 0x11f   :  { %v620_v38 = vpop.permute.xlu2 %619 }
 0x120   :  { %v624_v24 = vsel %vm6390_vm4, %v620_v38, %v622_v25  ;;  %v625_v62 = vsel %vm6390_vm4, %v622_v25, %v620_v38  ;;  %3348 = vset.pattern.permute.xlu2 %v6346_v56  ;;  %v396_v25 = vmax.f32 %v394_v4, 0.0  ;;  %vm6400_vm4 = vcmp.lt.s32.totalorder %v3804_v55, 114 }
 0x121   :  { %v633_v26 = vmul.f32 %v6509_v14, %v625_v62  ;;  %v634_v1 = vmul.f32 %v6510_v22, %v624_v24  ;;  %910 = vperm.xlu2 %3348, %v4289_v46   ;;  %v607_v62 = vmul.f32 %v603_v33, %v599_v43  ;;  %v608_v14 = vmul.f32 %v604_v35, %v598_v30 }
 0x122   :  { %v4375_v20 = vpop.permute.xlu1 %586  ;;  %v402_v24 = vmul.f32 %v4046_v49, %v396_v25  ;;  %v3573_v33 = vmov 26   ;;  %v655_v4 = vpop.permute.xlu0 %654  ;;  %v4399_v49 = vld [vmem:[%s6296_s2 + $0x20] ss:$8 sm:$0x3]  ;;  %v403_v43 = vadd.f32 %v401_v11, %v4080_v42  ;;  %v573_v11 = vsel %vm6399_vm6, %v4292_v58, %v4340_v53 }
 0x123   :  { %v4377_v38 = vmax.f32 %v633_v26, 0.0  ;;  %v4379_v28 = vmax.f32 %v634_v1, 0.0  ;;  %v609_v32 = vmax.f32 %v607_v62, 0.0  ;;  %v610_v26 = vmax.f32 %v608_v14, 0.0  ;;  %6511 = vst [vmem:[#allocation30_spill] sm:$0xff] %v4399_v49 }
 0x124   :  { %v404_v19 = vadd.f32 %v402_v24, %v4082_v29  ;;  %v3574_v14 = vmov 64   ;;  %v3133_v29 = vld [vmem:[%s6296_s2 + $0x23] ss:$8 sm:$0x3]  ;;  %v3575_v24 = vmov 28  }
 0x125   :  { %1240 = vperm.xlu0 %3366, %v4289_v46   ;;  %956 = vperm.xlu1 %3350, %v4289_v46   ;;  %v658_v62 = vmul.f32 %v655_v4, %v4379_v28  ;;  %vm679_vm14 = vcmp.gt.f32.partialorder %v3133_v29, 0.0 }
 0x127   :  { %v647_v22 = vpop.permute.xlu2 %646 }
 0x128   :  { %v649_v57 = vmul.f32 %v647_v22, %v4377_v38  ;;  %v650_v16 = vmul.f32 %v647_v22, %v4379_v28  ;;  %v6345_v22 = vperm.slane %v4399_v49, 0 }
 0x129   :  { %927 = vrot.lane.b32.xlu2 %v3681_v7, %s3570_s19 }
 0x12a   :  { %v4390_v1 = vadd.f32 %v649_v57, %v4078_v8  ;;  %v4393_v35 = vadd.f32 %v650_v16, %v4088_v50  ;;  %3351 = vset.pattern.permute.xlu2 %v3573_v33  ;;  %v657_v50 = vmul.f32 %v655_v4, %v4377_v38  ;;  %v6344_v33 = vperm.slane %v4399_v49, 1  ;;  %v4466_v48 = vpop.permute.xlu0 %708 }
 0x12b   :  { %v613_v30 = vpop.permute.xlu1 %612  ;;  %v581_v4 = vmul.f32 %v6345_v22, %v573_v11 }
 0x12c   :  { %v615_v8 = vmul.f32 %v613_v30, %v609_v32  ;;  %v616_v25 = vmul.f32 %v613_v30, %v610_v26  ;;  %v572_v30 = vsel %vm6399_vm6, %v4340_v53, %v4292_v58  ;;  %vm883_vm6 = vcmp.lt.s32.totalorder %v3804_v55, 113 }
 0x12d   :  { %3369 = vset.pattern.permute.xlu0 %v3574_v14  ;;  %973 = vrot.lane.b32.xlu1 %v3681_v7, %s3554_s9  ;;  %v6513_v14 = vmov 1  }
 0x12e   :  { %v617_v57 = vadd.f32 %v615_v8, %v403_v43  ;;  %v618_v16 = vadd.f32 %v616_v25, %v404_v19  ;;  %1304 = vperm.xlu0 %3369, %v4289_v46   ;;  %3354 = vset.pattern.permute.xlu1 %v3575_v24  ;;  %v4431_v19 = vld [vmem:[%s6298_s4] sm:$0xff]  ;;  %v6512_v8 = vmov 0   ;;  %v3577_v24 = vmov 8  }
 0x12f   :  { %v664_v42 = vpop.permute.xlu2 %663  ;;  %v680_v25 = vsel %vm679_vm14, 1, %v6512_v8 }
 0x130   :  { %v4417_v32 = vadd.f32 %v657_v50, %v617_v57  ;;  %v4419_v26 = vadd.f32 %v658_v62, %v618_v16  ;;  %v582_v50 = vmul.f32 %v6344_v33, %v572_v30  ;;  %v583_v62 = vmax.f32 %v581_v4, 0.0  ;;  %v3134_v16 = vld [vmem:[%s6296_s2 + $0x25] ss:$8 sm:$0x3] }
 0x131   :  { %964 = vperm.xlu2 %3351, %v4289_v46   ;;  %v681_v58 = vperm.slane %v680_v25, 0  ;;  %v682_v53 = vperm.slane %v680_v25, 1  ;;  %v4446_v30 = vperm.slane %v3133_v29, 0  ;;  %v4448_v33 = vperm.slane %v3133_v29, 1 }
 0x132   :  { %v589_v11 = vmul.f32 %v4375_v20, %v583_v62  ;;  %v584_v4 = vmax.f32 %v582_v50, 0.0  ;;  %vm757_vm2 = vcmp.gt.f32.partialorder %v3134_v16, 0.0  ;;  %v4459_v62 = vmax.f32 %v3681_v7, 0.0 }
 0x133   :  { %6514 = vst [vmem:[#allocation31_spill] sm:$0xff] %v4446_v30  ;;  %vm4450_vm5 = vcmp.eq.s32.totalorder %v681_v58, 1  ;;  %vm4454_vm14 = vcmp.eq.s32.totalorder %v682_v53, 1  ;;  %v758_v0 = vsel %vm757_vm2, 1, %v6512_v8  ;;  %vm743_vm2 = vcmp.lt.s32.totalorder %v3804_v55, 127 }
 0x134   :  { %v639_v43 = vpop.permute.xlu1 %638  ;;  %6515 = vst [vmem:[#allocation32_spill] sm:$0xff] %v4448_v33  ;;  %v590_v50 = vmul.f32 %v4375_v20, %v584_v4  ;;  %v591_v29 = vadd.f32 %v589_v11, %v4342_v15  ;;  %v6521_v4 = vmov 6  }
 0x135   :  { %1017 = vrot.lane.b32.xlu1 %v3685_v10, %s3576_s30  ;;  %6520 = vst [vmem:[#allocation33_spill] sm:$0xff] %v4459_v62  ;;  %v641_v58 = vmul.f32 %v639_v43, %v4377_v38  ;;  %v642_v11 = vmul.f32 %v639_v43, %v4379_v28  ;;  %v759_v43 = vperm.slane %v758_v0, 0 }
 0x136   :  { %3374 = vset.pattern.permute.xlu0 %v6513_v14  ;;  %v592_v28 = vadd.f32 %v590_v50, %v4344_v12 }
 0x137   :  { %v701_v57 = vpop.permute.xlu2 %700  ;;  %1388 = vperm.xlu0 %3374, %v4431_v19  }
 0x139   :  { %3352 = vset.pattern.permute.xlu2 %v3577_v24  ;;  %v4462_v24 = vmax.f32 %v3685_v10, 0.0 }
 0x13a   :  { %1002 = vperm.xlu2 %3352, %v4289_v46  }
 0x13c   :  { %v662_v56 = vpop.permute.xlu1 %661 }
 0x13d   :  { %v666_v53 = vsel %vm665_vm1, %v662_v56, %v664_v42  ;;  %v667_v49 = vsel %vm665_vm1, %v664_v42, %v662_v56  ;;  %1036 = vperm.xlu1 %3354, %v4289_v46  }
 0x13e   :  { %v4475_v52 = vmul.f32 %v4446_v30, %v667_v49  ;;  %v4478_v20 = vmul.f32 %v4448_v33, %v666_v53  ;;  %v685_v15 = vsel %vm4450_vm5, %v667_v49, -1e+30  ;;  %v686_v38 = vsel %vm4454_vm14, %v666_v53, -1e+30 }
 0x13f   :  { %v687_v56 = vmax.f32 %v4311_v61, %v685_v15  ;;  %v688_v42 = vmax.f32 %v4313_v5, %v686_v38  ;;  %3379 = vset.pattern.permute.xlu0 %v6521_v4  ;;  %v760_v53 = vperm.slane %v758_v0, 1  ;;  %v3578_v15 = vmov 40  }
 0x140   :  { %v725_v30 = vpop.permute.xlu2 %724  ;;  %v689_v33 = vadd.f32 %v4475_v52, %v4319_v40  ;;  %v690_v49 = vadd.f32 %v4478_v20, %v4322_v59  ;;  %1438 = vperm.xlu0 %3379, %v4431_v19   ;;  %v6363_v61 = vmax.f32 %v4475_v52, 0.0  ;;  %v6362_v5 = vmax.f32 %v4478_v20, 0.0 }
 0x141   :  { %v727_v22 = vmul.f32 %v725_v30, %v4462_v24  ;;  %v728_v25 = vmul.f32 %v725_v30, %v4459_v62  ;;  %v643_v30 = vadd.f32 %v641_v58, %v591_v29  ;;  %v644_v38 = vadd.f32 %v642_v11, %v592_v28  ;;  %v4521_v29 = vld [vmem:[%s6298_s4 + $0x8] sm:$0xff] }
 0x142   :  { %1019 = vrot.lane.b32.xlu2 %v3681_v7, %s3576_s30  ;;  %v703_v12 = vmul.f32 %v701_v57, %v6363_v61  ;;  %v704_v50 = vmul.f32 %v701_v57, %v6362_v5  ;;  %vm761_vm5 = vcmp.eq.s32.totalorder %v759_v43, 1  ;;  %vm762_vm14 = vcmp.eq.s32.totalorder %v760_v53, 1  ;;  %v742_v57 = vpop.permute.xlu0 %741 }
 0x143   :  { %v4502_v40 = vadd.f32 %v727_v22, %v4390_v1  ;;  %v4505_v59 = vadd.f32 %v728_v25, %v4393_v35  ;;  %3357 = vset.pattern.permute.xlu2 %v3578_v15  ;;  %v4514_v1 = vperm.slane %v3134_v16, 0  ;;  %v4516_v35 = vperm.slane %v3134_v16, 1 }
 0x144   :  { %v4511_v18 = vpop.permute.xlu1 %692  ;;  %v705_v22 = vadd.f32 %v703_v12, %v643_v30  ;;  %v706_v0 = vadd.f32 %v704_v50, %v644_v38  ;;  %v3579_v25 = vmov 58   ;;  %v6524_v28 = vmov 3  }
 0x145   :  { %6522 = vst [vmem:[#allocation34_spill] sm:$0xff] %v4514_v1  ;;  %3355 = vset.pattern.permute.xlu1 %v3579_v25  ;;  %v3580_v61 = vmov 29  }
 0x146   :  { %6523 = vst [vmem:[#allocation35_spill] sm:$0xff] %v4516_v35  ;;  %1062 = vperm.xlu1 %3355, %v4289_v46  }
 0x148   :  { %v740_v58 = vpop.permute.xlu2 %739  ;;  %3384 = vset.pattern.permute.xlu0 %v6524_v28 }
 0x149   :  { %v744_v11 = vsel %vm743_vm2, %v740_v58, %v742_v57  ;;  %v745_v16 = vsel %vm743_vm2, %v742_v57, %v740_v58  ;;  %1489 = vperm.xlu0 %3384, %v4521_v29  }
 0x14a   :  { %v4530_v43 = vmul.f32 %v4514_v1, %v744_v11  ;;  %v4533_v53 = vmul.f32 %v4516_v35, %v745_v16  ;;  %v763_v15 = vsel %vm761_vm5, %v744_v11, -1e+30  ;;  %v764_v30 = vsel %vm762_vm14, %v745_v16, -1e+30  ;;  %1043 = vrot.lane.b32.xlu2 %v3685_v10, %s3558_s8  ;;  %s3586_s8 = smov 95  }
 0x14b   :  { %v4538_v38 = vmax.f32 %v687_v56, %v763_v15  ;;  %v4540_v12 = vmax.f32 %v688_v42, %v764_v30  ;;  %vm6402_vm5 = vcmp.lt.s32.totalorder %v3804_v55, 126  ;;  %v3585_v1 = vmov 31  }
 0x14c   :  { %6525 = vst [vmem:[#allocation36_spill] sm:$0xff] %v4530_v43  ;;  %v4543_v50 = vadd.f32 %v4530_v43, %v689_v33  ;;  %v4546_v25 = vadd.f32 %v4533_v53, %v690_v49  ;;  %v6367_v57 = vmax.f32 %v4530_v43, 0.0  ;;  %v6366_v58 = vmax.f32 %v4533_v53, 0.0  ;;  %v4555_v33 = vld [vmem:[%s6298_s4 + $0x18] sm:$0xff] }
 0x14d   :  { %6526 = vst [vmem:[#allocation37_spill] sm:$0xff] %v4533_v53  ;;  %v717_v11 = vpop.permute.xlu1 %716  ;;  %v3139_v53 = vld [vmem:[%s6296_s2 + $0x32] ss:$8 sm:$0x3] }
 0x14e   :  { %v719_v16 = vmul.f32 %v717_v11, %v4462_v24  ;;  %v720_v5 = vmul.f32 %v717_v11, %v4459_v62  ;;  %3356 = vset.pattern.permute.xlu1 %v3580_v61  ;;  %v6527_v61 = vmov 2  }
 0x14f   :  { %1088 = vperm.xlu1 %3356, %v4289_v46  }
 0x150   :  { %v779_v56 = vpop.permute.xlu2 %778  ;;  %v721_v42 = vadd.f32 %v719_v16, %v705_v22  ;;  %v722_v49 = vadd.f32 %v720_v5, %v706_v0  ;;  %v786_v5 = vpop.permute.xlu0 %785 }
 0x151   :  { %v781_v15 = vmul.f32 %v779_v56, %v6367_v57  ;;  %v782_v30 = vmul.f32 %v779_v56, %v6366_v58  ;;  %3397 = vset.pattern.permute.xlu0 %v6527_v61 }
 0x152   :  { %1069 = vrot.lane.b32.xlu2 %v3685_v10, %s3561_s10  ;;  %1641 = vperm.xlu0 %3397, %v4555_v33  }
 0x153   :  { %v4565_v11 = vadd.f32 %v781_v15, %v721_v42  ;;  %v4567_v35 = vadd.f32 %v782_v30, %v722_v49  ;;  %v3582_v49 = vmov 30   ;;  %v6528_v15 = vmov 7  }
 0x156   :  { %v733_v22 = vpop.permute.xlu1 %732 }
 0x157   :  { %v735_v0 = vmul.f32 %v733_v22, %v4462_v24  ;;  %v736_v16 = vmul.f32 %v733_v22, %v4459_v62  ;;  %1111 = vrot.lane.b32.xlu1 %v3685_v10, %s6388_s27 }
 0x158   :  { %3359 = vset.pattern.permute.xlu1 %v3582_v49  ;;  %v813_v30 = vpop.permute.xlu0 %812 }
 0x159   :  { %v4574_v56 = vpop.permute.xlu2 %804  ;;  %v737_v58 = vadd.f32 %v735_v0, %v4417_v32  ;;  %v738_v42 = vadd.f32 %v736_v16, %v4419_v26  ;;  %v3583_v32 = vmov 41   ;;  %v4591_v26 = vld [vmem:[%s6296_s2 + $0x26] ss:$8 sm:$0x3]  ;;  %v3584_v0 = vmov 69  }
 0x15a   :  { %1096 = vperm.xlu2 %3357, %v4289_v46   ;;  %3402 = vset.pattern.permute.xlu0 %v6528_v15  ;;  %6530 = vst [vmem:[#allocation39_spill] sm:$0xff] %v4591_v26  ;;  %v6383_v16 = vperm.slane %v4591_v26, 0 }
 0x15b   :  { %1691 = vperm.xlu0 %3402, %v4555_v33  }
 0x15f   :  { %1130 = vperm.xlu1 %3359, %v4289_v46   ;;  %v4582_v22 = vpop.permute.xlu1 %770 }
 0x160   :  { %6529 = vst [vmem:[#allocation38_spill] sm:$0xff] %v4582_v22 }
 0x161   :  { %v4584_v57 = vpop.permute.xlu2 %827 }
 0x162   :  { %1113 = vrot.lane.b32.xlu2 %v3681_v7, %s6388_s27 }
 0x163   :  { %3361 = vset.pattern.permute.xlu2 %v3583_v32  ;;  %3405 = vset.pattern.permute.xlu0 %v3584_v0  ;;  %v854_v0 = vpop.permute.xlu0 %853 }
 0x164   :  { %1778 = vperm.xlu0 %3405, %v4289_v46  }
 0x167   :  { %3360 = vset.pattern.permute.xlu1 %v3585_v1  ;;  %v788_v36 = vpop.permute.xlu1 %787  ;;  %v6531_v1 = vperm.slane %v4591_v26, 1 }
 0x168   :  { %v790_v32 = vsel %vm6402_vm5, %v786_v5, %v788_v36  ;;  %v791_v23 = vsel %vm6402_vm5, %v788_v36, %v786_v5  ;;  %1156 = vperm.xlu1 %3360, %v4289_v46  }
 0x169   :  { %v4597_v39 = vpop.permute.xlu2 %846  ;;  %v799_v49 = vmul.f32 %v6383_v16, %v790_v32  ;;  %v800_v51 = vmul.f32 %v6531_v1, %v791_v23  ;;  %v3587_v32 = vmov 32  }
 0x16a   :  { %1137 = vrot.lane.b32.xlu2 %v3685_v10, %s6386_s1 }
 0x16b   :  { %v801_v27 = vmax.f32 %v799_v49, 0.0  ;;  %v802_v45 = vmax.f32 %v800_v51, 0.0 }
 0x16c   :  { %3406 = vset.pattern.permute.xlu0 %v6512_v8 }
 0x16d   :  { %1542 = vperm.xlu0 %3406, %v4613_v44   ;;  %v815_v36 = vmul.f32 %v813_v30, %v801_v27  ;;  %v816_v5 = vmul.f32 %v813_v30, %v802_v45 }
 0x16f   :  { %v821_v17 = vpop.permute.xlu1 %820  ;;  %v4621_v51 = vadd.f32 %v815_v36, %v4502_v40  ;;  %v4628_v30 = vadd.f32 %v816_v5, %v4505_v59  ;;  %v3588_v40 = vmov 42  }
 0x170   :  { %v823_v21 = vmul.f32 %v821_v17, %v801_v27  ;;  %v824_v3 = vmul.f32 %v821_v17, %v802_v45  ;;  %1179 = vrot.lane.b32.xlu1 %v3685_v10, %s3586_s8  ;;  %v880_v17 = vpop.permute.xlu0 %879 }
 0x171   :  { %3363 = vset.pattern.permute.xlu1 %v3587_v32 }
 0x172   :  { %1164 = vperm.xlu2 %3361, %v4289_v46   ;;  %v873_v23 = vpop.permute.xlu2 %872  ;;  %v4623_v49 = vadd.f32 %v823_v21, %v737_v58  ;;  %v4625_v1 = vadd.f32 %v824_v3, %v738_v42  ;;  %v3138_v21 = vld [vmem:[%s6296_s2 + $0x31] ss:$8 sm:$0x3]  ;;  %v4643_v3 = vld [vmem:[%s6296_s2 + $0x30] ss:$8 sm:$0x3] }
 0x173   :  { %6533 = vst [vmem:[#allocation41_spill] sm:$0xff] %v4643_v3  ;;  %vm897_vm14 = vcmp.gt.f32.partialorder %v3138_v21, 0.0  ;;  %v6403_v58 = vperm.slane %v4643_v3, 0  ;;  %v6401_v42 = vperm.slane %v4643_v3, 1 }
 0x174   :  { %v898_v5 = vsel %vm897_vm14, 1, %v6512_v8  ;;  %vm943_vm14 = vcmp.gt.f32.partialorder %v3139_v53, 0.0 }
 0x175   :  { %v899_v22 = vperm.slane %v898_v5, 0 }
 0x177   :  { %v4630_v16 = vpop.permute.xlu1 %829 }
 0x178   :  { %1198 = vperm.xlu1 %3363, %v4289_v46   ;;  %v919_v59 = vpop.permute.xlu0 %918 }
 0x17a   :  { %1181 = vrot.lane.b32.xlu2 %v3681_v7, %s3586_s8 }
 0x17b   :  { %v4635_v26 = vpop.permute.xlu2 %910  ;;  %3365 = vset.pattern.permute.xlu2 %v3588_v40 }
 0x17c   :  { %6532 = vst [vmem:[#allocation40_spill] sm:$0xff] %v4635_v26 }
 0x17f   :  { %v856_v36 = vpop.permute.xlu1 %855 }
 0x180   :  { %v858_v32 = vsel %vm6400_vm4, %v854_v0, %v856_v36  ;;  %v859_v40 = vsel %vm6400_vm4, %v856_v36, %v854_v0  ;;  %3364 = vset.pattern.permute.xlu1 %v3589_v13  ;;  %v900_v0 = vperm.slane %v898_v5, 1  ;;  %v807_v13 = vmul.f32 %v4574_v56, %v801_v27  ;;  %v4678_v27 = vpop.permute.xlu0 %971 }
 0x181   :  { %v867_v63 = vmul.f32 %v6403_v58, %v858_v32  ;;  %v868_v9 = vmul.f32 %v6401_v42, %v859_v40  ;;  %1224 = vperm.xlu1 %3364, %v4289_v46   ;;  %v808_v36 = vmul.f32 %v4574_v56, %v802_v45  ;;  %v4666_v32 = vperm.slane %v3138_v21, 0 }
 0x182   :  { %1205 = vrot.lane.b32.xlu2 %v3685_v10, %s3569_s7  ;;  %v4668_v40 = vperm.slane %v3138_v21, 1  ;;  %vm4670_vm4 = vcmp.eq.s32.totalorder %v899_v22, 1  ;;  %vm4674_vm5 = vcmp.eq.s32.totalorder %v900_v0, 1  ;;  %v944_v56 = vsel %vm943_vm14, 1, %v6512_v8 }
 0x183   :  { %v928_v26 = vpop.permute.xlu2 %927  ;;  %v869_v43 = vmax.f32 %v867_v63, 0.0  ;;  %v870_v62 = vmax.f32 %v868_v9, 0.0  ;;  %6534 = vst [vmem:[#allocation42_spill] sm:$0xff] %v4666_v32  ;;  %v809_v63 = vadd.f32 %v807_v13, %v4565_v11  ;;  %v810_v9 = vadd.f32 %v808_v36, %v4567_v35 }
 0x184   :  { %6535 = vst [vmem:[#allocation43_spill] sm:$0xff] %v4668_v40  ;;  %v945_v13 = vperm.slane %v944_v56, 0  ;;  %v946_v36 = vperm.slane %v944_v56, 1 }
 0x185   :  { %v875_v5 = vmul.f32 %v873_v23, %v869_v43  ;;  %v876_v21 = vmul.f32 %v873_v23, %v870_v62 }
 0x186   :  { %vm4720_vm14 = vcmp.eq.s32.totalorder %v946_v36, 1 }
 0x187   :  { %v882_v45 = vpop.permute.xlu1 %881  ;;  %v878_v56 = vadd.f32 %v876_v21, %v810_v9 }
 0x188   :  { %v884_v22 = vsel %vm883_vm6, %v880_v17, %v882_v45  ;;  %v885_v0 = vsel %vm883_vm6, %v882_v45, %v880_v17  ;;  %v3591_v45 = vmov 62  }
 0x189   :  { %v4689_v3 = vmul.f32 %v4666_v32, %v884_v22  ;;  %v4692_v11 = vmul.f32 %v4668_v40, %v885_v0  ;;  %v903_v35 = vsel %vm4670_vm4, %v884_v22, -1e+30  ;;  %v904_v62 = vsel %vm4674_vm5, %v885_v0, -1e+30  ;;  %1247 = vrot.lane.b32.xlu1 %v3685_v10, %s3590_s24 }
 0x18a   :  { %1232 = vperm.xlu2 %3365, %v4289_v46   ;;  %v905_v23 = vmax.f32 %v4538_v38, %v903_v35  ;;  %v906_v17 = vmax.f32 %v4540_v12, %v904_v62  ;;  %3367 = vset.pattern.permute.xlu1 %v3591_v45  ;;  %vm929_vm4 = vcmp.lt.s32.totalorder %v3804_v55, 112  ;;  %v4708_v0 = vperm.slane %v3139_v53, 0 }
 0x18b   :  { %v965_v43 = vpop.permute.xlu2 %964  ;;  %v6410_v40 = vmax.f32 %v4689_v3, 0.0  ;;  %v6409_v42 = vmax.f32 %v4692_v11, 0.0  ;;  %v907_v58 = vadd.f32 %v4689_v3, %v4543_v50  ;;  %v908_v22 = vadd.f32 %v4692_v11, %v4546_v25 }
 0x18c   :  { %6540 = vst [vmem:[#allocation44_spill] sm:$0xff] %v4708_v0  ;;  %v4710_v38 = vperm.slane %v3139_v53, 1  ;;  %v877_v12 = vadd.f32 %v875_v5, %v809_v63  ;;  %vm4716_vm5 = vcmp.eq.s32.totalorder %v945_v13, 1  ;;  %v1011_v5 = vpop.permute.xlu0 %1010 }
 0x18d   :  { %v921_v35 = vmul.f32 %v919_v59, %v6410_v40  ;;  %v922_v62 = vmul.f32 %v919_v59, %v6409_v42  ;;  %v3140_v59 = vld [vmem:[%s6296_s2 + $0x33] ss:$8 sm:$0x3] }
 0x18e   :  { %6541 = vst [vmem:[#allocation45_spill] sm:$0xff] %v4710_v38 }
 0x18f   :  { %v923_v25 = vadd.f32 %v921_v35, %v877_v12  ;;  %v924_v10 = vadd.f32 %v922_v62, %v878_v56  ;;  %v926_v53 = vpop.permute.xlu1 %925 }
 0x190   :  { %v930_v63 = vsel %vm929_vm4, %v926_v53, %v928_v26  ;;  %v931_v9 = vsel %vm929_vm4, %v928_v26, %v926_v53  ;;  %v3592_v26 = vmov 63  }
 0x191   :  { %v4733_v21 = vmul.f32 %v4708_v0, %v930_v63  ;;  %v4736_v13 = vmul.f32 %v4710_v38, %v931_v9  ;;  %v949_v36 = vsel %vm4716_vm5, %v930_v63, -1e+30  ;;  %v950_v12 = vsel %vm4720_vm14, %v931_v9, -1e+30  ;;  %1266 = vperm.xlu1 %3367, %v4289_v46  }
 0x192   :  { %1249 = vrot.lane.b32.xlu2 %v3681_v7, %s3590_s24  ;;  %v951_v56 = vmax.f32 %v905_v23, %v949_v36  ;;  %v952_v35 = vmax.f32 %v906_v17, %v950_v12  ;;  %vm989_vm5 = vcmp.gt.f32.partialorder %v3140_v59, 0.0  ;;  %vm975_vm14 = vcmp.lt.s32.totalorder %v3804_v55, 111 }
 0x193   :  { %6546 = vst [vmem:[#allocation46_spill] sm:$0xff] %v4736_v13  ;;  %3368 = vset.pattern.permute.xlu2 %v3592_v26  ;;  %v953_v53 = vadd.f32 %v4733_v21, %v907_v58  ;;  %v954_v42 = vadd.f32 %v4736_v13, %v908_v22  ;;  %v6411_v40 = vmax.f32 %v4733_v21, 0.0  ;;  %v6412_v45 = vmax.f32 %v4736_v13, 0.0 }
 0x194   :  { %v4743_v62 = vpop.permute.xlu2 %1002  ;;  %v990_v23 = vsel %vm989_vm5, 1, %v6512_v8  ;;  %v3593_v58 = vmov 65   ;;  %v3595_v38 = vmov 67  }
 0x195   :  { %6547 = vst [vmem:[#allocation47_spill] sm:$0xff] %v4743_v62  ;;  %v967_v50 = vmul.f32 %v965_v43, %v6411_v40  ;;  %v968_v63 = vmul.f32 %v965_v43, %v6412_v45  ;;  %v991_v12 = vperm.slane %v990_v23, 0  ;;  %v992_v26 = vperm.slane %v990_v23, 1  ;;  %v1046_v40 = vpop.permute.xlu0 %1045 }
 0x196   :  { %v4761_v43 = vperm.slane %v3140_v59, 0  ;;  %v4763_v45 = vperm.slane %v3140_v59, 1 }
 0x197   :  { %v4753_v9 = vpop.permute.xlu1 %956  ;;  %v969_v17 = vadd.f32 %v967_v50, %v923_v25  ;;  %v970_v36 = vadd.f32 %v968_v63, %v924_v10  ;;  %vm993_vm5 = vcmp.eq.s32.totalorder %v991_v12, 1  ;;  %vm994_vm13 = vcmp.eq.s32.totalorder %v992_v26, 1 }
 0x198   :  { %6548 = vst [vmem:[#allocation48_spill] sm:$0xff] %v4753_v9  ;;  %v3594_v63 = vmov 66  }
 0x199   :  { %3370 = vset.pattern.permute.xlu1 %v3593_v58  ;;  %6549 = vst [vmem:[#allocation49_spill] sm:$0xff] %v4761_v43 }
 0x19a   :  { %1285 = vperm.xlu2 %3368, %v4289_v46   ;;  %1323 = vperm.xlu1 %3370, %v4289_v46   ;;  %6550 = vst [vmem:[#allocation50_spill] sm:$0xff] %v4763_v45 }
 0x19c   :  { %v4758_v22 = vpop.permute.xlu2 %1019 }
 0x19f   :  { %v974_v10 = vpop.permute.xlu1 %973 }
 0x1a0   :  { %v976_v25 = vsel %vm975_vm14, %v4678_v27, %v974_v10  ;;  %v977_v50 = vsel %vm975_vm14, %v974_v10, %v4678_v27 }
 0x1a1   :  { %v4772_v23 = vmul.f32 %v4761_v43, %v976_v25  ;;  %v4775_v58 = vmul.f32 %v4763_v45, %v977_v50  ;;  %v995_v59 = vsel %vm993_vm5, %v976_v25, -1e+30  ;;  %v996_v12 = vsel %vm994_vm13, %v977_v50, -1e+30  ;;  %v1072_v25 = vpop.permute.xlu0 %1071 }
 0x1a2   :  { %3371 = vset.pattern.permute.xlu2 %v3594_v63  ;;  %v4778_v26 = vmax.f32 %v951_v56, %v995_v59  ;;  %v4780_v7 = vmax.f32 %v952_v35, %v996_v12  ;;  %3372 = vset.pattern.permute.xlu1 %v3595_v38  ;;  %vm831_vm13 = vcmp.lt.s32.totalorder %v3804_v55, 124  ;;  %v3136_v38 = vld [vmem:[%s6296_s2 + $0x27] ss:$8 sm:$0x3]  ;;  %vm6450_vm5 = vcmp.lt.s32.totalorder %v3804_v55, 98 }
 0x1a3   :  { %6551 = vst [vmem:[#allocation51_spill] sm:$0xff] %v4772_v23  ;;  %1342 = vperm.xlu2 %3371, %v4289_v46   ;;  %v6421_v27 = vmax.f32 %v4772_v23, 0.0  ;;  %v6422_v10 = vmax.f32 %v4775_v58, 0.0  ;;  %v4785_v63 = vadd.f32 %v4772_v23, %v953_v53  ;;  %v4788_v45 = vadd.f32 %v4775_v58, %v954_v42  ;;  %1361 = vperm.xlu1 %3372, %v4289_v46   ;;  %v4802_v42 = vld [vmem:[%s6296_s2 + $0x36] ss:$8 sm:$0x3] }
 0x1a4   :  { %6552 = vst [vmem:[#allocation52_spill] sm:$0xff] %v4775_v58  ;;  %v1044_v0 = vpop.permute.xlu2 %1043  ;;  %v837_v59 = vperm.slane %v3136_v38, 0  ;;  %v838_v12 = vperm.slane %v3136_v38, 1 }
 0x1a5   :  { %6553 = vst [vmem:[#allocation53_spill] sm:$0xff] %v4778_v26  ;;  %v1013_v56 = vmul.f32 %v1011_v5, %v6421_v27  ;;  %v1014_v35 = vmul.f32 %v1011_v5, %v6422_v10  ;;  %v833_v27 = vsel %vm831_vm13, %v4630_v16, %v4584_v57  ;;  %v6435_v5 = vperm.slane %v4802_v42, 0 }
 0x1a6   :  { %6554 = vst [vmem:[#allocation54_spill] sm:$0xff] %v4780_v7  ;;  %v6558_v7 = vperm.slane %v4802_v42, 1  ;;  %v1048_v43 = vsel %vm1047_vm9, %v1044_v0, %v1046_v40  ;;  %v1049_v32 = vsel %vm1047_vm9, %v1046_v40, %v1044_v0  ;;  %vm6433_vm9 = vcmp.lt.s32.totalorder %v3804_v55, 96 }
 0x1a7   :  { %6555 = vst [vmem:[#allocation55_spill] sm:$0xff] %v4785_v63  ;;  %v4804_v53 = vpop.permute.xlu1 %1017  ;;  %v4806_v46 = vadd.f32 %v1013_v56, %v969_v17  ;;  %v4808_v50 = vadd.f32 %v1014_v35, %v970_v36  ;;  %v3142_v17 = vld [vmem:[%s6296_s2 + $0x35] ss:$8 sm:$0x3] }
 0x1a8   :  { %6556 = vst [vmem:[#allocation56_spill] sm:$0xff] %v4788_v45  ;;  %v832_v45 = vsel %vm831_vm13, %v4584_v57, %v4630_v16  ;;  %v842_v16 = vmul.f32 %v838_v12, %v833_v27  ;;  %v1053_v35 = vperm.slane %v3142_v17, 0  ;;  %v1054_v10 = vperm.slane %v3142_v17, 1 }
 0x1a9   :  { %6557 = vst [vmem:[#allocation57_spill] sm:$0xff] %v4802_v42  ;;  %v841_v57 = vmul.f32 %v837_v59, %v832_v45  ;;  %v1105_v45 = vpop.permute.xlu0 %1104  ;;  %vm6441_vm13 = vcmp.lt.s32.totalorder %v3804_v55, 94 }
 0x1aa   :  { %v1057_v58 = vmul.f32 %v1053_v35, %v1048_v43  ;;  %v1058_v62 = vmul.f32 %v1054_v10, %v1049_v32 }
 0x1ab   :  { %3373 = vset.pattern.permute.xlu2 %v6512_v8  ;;  %3375 = vset.pattern.permute.xlu1 %v6527_v61 }
 0x1ac   :  { %1380 = vperm.xlu2 %3373, %v4431_v19   ;;  %v1070_v36 = vpop.permute.xlu2 %1069  ;;  %1398 = vperm.xlu1 %3375, %v4431_v19  }
 0x1ad   :  { %v1074_v38 = vsel %vm6450_vm5, %v1070_v36, %v1072_v25  ;;  %v1075_v56 = vsel %vm6450_vm5, %v1072_v25, %v1070_v36  ;;  %v843_v25 = vmax.f32 %v841_v57, 0.0  ;;  %v844_v36 = vmax.f32 %v842_v16, 0.0 }
 0x1ae   :  { %v1083_v63 = vmul.f32 %v6435_v5, %v1074_v38  ;;  %v1084_v26 = vmul.f32 %v6558_v7, %v1075_v56  ;;  %v1060_v57 = vmax.f32 %v1058_v62, 0.0  ;;  %vm6455_vm5 = vcmp.lt.s32.totalorder %v3804_v55, 95 }
 0x1af   :  { %v4837_v12 = vpop.permute.xlu1 %1036  ;;  %v849_v40 = vmul.f32 %v4597_v39, %v843_v25  ;;  %v850_v0 = vmul.f32 %v4597_v39, %v844_v36 }
 0x1b0   :  { %v4833_v27 = vmax.f32 %v1083_v63, 0.0  ;;  %v4835_v59 = vmax.f32 %v1084_v26, 0.0  ;;  %v6559_v26 = vmov 4   ;;  %v1059_v63 = vmax.f32 %v1057_v58, 0.0 }
 0x1b1   :  { %v851_v16 = vadd.f32 %v849_v40, %v4623_v49  ;;  %v852_v56 = vadd.f32 %v850_v0, %v4625_v1  ;;  %v1140_v35 = vpop.permute.xlu0 %1139  ;;  %v4861_v49 = vld [vmem:[%s6296_s2 + $0x40] ss:$8 sm:$0x3] }
 0x1b2   :  { %v1107_v39 = vmul.f32 %v1105_v45, %v4833_v27  ;;  %v1108_v36 = vmul.f32 %v1105_v45, %v4835_v59  ;;  %6561 = vst [vmem:[#allocation58_spill] sm:$0xff] %v4861_v49  ;;  %v6434_v1 = vperm.slane %v4861_v49, 0  ;;  %v6432_v45 = vperm.slane %v4861_v49, 1 }
 0x1b4   :  { %3376 = vset.pattern.permute.xlu2 %v6524_v28  ;;  %v1097_v17 = vpop.permute.xlu2 %1096  ;;  %3377 = vset.pattern.permute.xlu1 %v6559_v26 }
 0x1b5   :  { %v1099_v38 = vmul.f32 %v1097_v17, %v4833_v27  ;;  %v1100_v7 = vmul.f32 %v1097_v17, %v4835_v59  ;;  %1408 = vperm.xlu2 %3376, %v4431_v19   ;;  %1418 = vperm.xlu1 %3377, %v4431_v19  }
 0x1b7   :  { %v1101_v43 = vadd.f32 %v1099_v38, %v4621_v51  ;;  %v1102_v32 = vadd.f32 %v1100_v7, %v4628_v30  ;;  %v6560_v38 = vmov 5  }
 0x1b8   :  { %v1063_v10 = vpop.permute.xlu1 %1062 }
 0x1b9   :  { %v1065_v17 = vmul.f32 %v1063_v10, %v1059_v63  ;;  %v1066_v25 = vmul.f32 %v1063_v10, %v1060_v57  ;;  %v1173_v63 = vpop.permute.xlu0 %1172 }
 0x1bb   :  { %v1067_v62 = vadd.f32 %v1065_v17, %v851_v16  ;;  %v1068_v51 = vadd.f32 %v1066_v25, %v852_v56 }
 0x1bc   :  { %v4853_v58 = vpop.permute.xlu2 %1113 }
 0x1bd   :  { %3378 = vset.pattern.permute.xlu2 %v6560_v38  ;;  %v1109_v30 = vadd.f32 %v1107_v39, %v1067_v62  ;;  %v1110_v7 = vadd.f32 %v1108_v36, %v1068_v51  ;;  %3380 = vset.pattern.permute.xlu1 %v6528_v15 }
 0x1be   :  { %1428 = vperm.xlu2 %3378, %v4431_v19   ;;  %1448 = vperm.xlu1 %3380, %v4431_v19  }
 0x1c1   :  { %v4867_v40 = vpop.permute.xlu1 %1088 }
 0x1c4   :  { %v1138_v0 = vpop.permute.xlu2 %1137 }
 0x1c5   :  { %v1142_v57 = vsel %vm6433_vm9, %v1138_v0, %v1140_v35  ;;  %v1143_v10 = vsel %vm6433_vm9, %v1140_v35, %v1138_v0  ;;  %vm6457_vm9 = vcmp.lt.s32.totalorder %v3804_v55, 110 }
 0x1c6   :  { %v1151_v16 = vmul.f32 %v6434_v1, %v1142_v57  ;;  %v1152_v19 = vmul.f32 %v6432_v45, %v1143_v10  ;;  %3381 = vset.pattern.permute.xlu2 %v6512_v8  ;;  %3382 = vset.pattern.permute.xlu1 %v6513_v14  ;;  %v1208_v10 = vpop.permute.xlu0 %1207  ;;  %v1022_v23 = vsel %vm6457_vm9, %v4804_v53, %v4758_v22 }
 0x1c7   :  { %1461 = vperm.xlu2 %3381, %v4521_v29   ;;  %1469 = vperm.xlu1 %3382, %v4521_v29  }
 0x1c8   :  { %v4879_v56 = vmax.f32 %v1151_v16, 0.0  ;;  %v4881_v17 = vmax.f32 %v1152_v19, 0.0 }
 0x1c9   :  { %v1112_v39 = vpop.permute.xlu1 %1111 }
 0x1ca   :  { %v1175_v35 = vmul.f32 %v1173_v63, %v4879_v56  ;;  %v1176_v25 = vmul.f32 %v1173_v63, %v4881_v17 }
 0x1cc   :  { %v1165_v36 = vpop.permute.xlu2 %1164  ;;  %v1177_v62 = vadd.f32 %v1175_v35, %v1109_v30  ;;  %v1178_v51 = vadd.f32 %v1176_v25, %v1110_v7  ;;  %v4898_v30 = vld [vmem:[%s6296_s2 + $0x42] ss:$8 sm:$0x3]  ;;  %v4910_v35 = vld [vmem:[%s6296_s2 + $0x34] ss:$8 sm:$0x3] }
 0x1cd   :  { %v1167_v0 = vmul.f32 %v1165_v36, %v4879_v56  ;;  %v1168_v57 = vmul.f32 %v1165_v36, %v4881_v17  ;;  %6562 = vst [vmem:[#allocation59_spill] sm:$0xff] %v4898_v30  ;;  %v6442_v7 = vperm.slane %v4898_v30, 1  ;;  %v6449_v49 = vperm.slane %v4910_v35, 0 }
 0x1ce   :  { %6563 = vst [vmem:[#allocation60_spill] sm:$0xff] %v4910_v35  ;;  %v6448_v42 = vperm.slane %v4910_v35, 1 }
 0x1cf   :  { %v1169_v16 = vadd.f32 %v1167_v0, %v1101_v43  ;;  %v1170_v19 = vadd.f32 %v1168_v57, %v1102_v32  ;;  %3383 = vset.pattern.permute.xlu2 %v6527_v61  ;;  %3385 = vset.pattern.permute.xlu1 %v6559_v26  ;;  %v1241_v43 = vpop.permute.xlu0 %1240  ;;  %v6443_v32 = vperm.slane %v4898_v30, 0 }
 0x1d0   :  { %1479 = vperm.xlu2 %3383, %v4521_v29   ;;  %1499 = vperm.xlu1 %3385, %v4521_v29  }
 0x1d1   :  { %v4893_v63 = vpop.permute.xlu1 %1130 }
 0x1d4   :  { %v1182_v45 = vpop.permute.xlu2 %1181 }
 0x1d8   :  { %3386 = vset.pattern.permute.xlu2 %v6560_v38  ;;  %3387 = vset.pattern.permute.xlu1 %v6521_v4 }
 0x1d9   :  { %1509 = vperm.xlu2 %3386, %v4521_v29   ;;  %1519 = vperm.xlu1 %3387, %v4521_v29  }
 0x1da   :  { %v4912_v25 = vpop.permute.xlu1 %1156 }
 0x1dc   :  { %v1206_v36 = vpop.permute.xlu2 %1205 }
 0x1dd   :  { %v1210_v0 = vsel %vm6441_vm13, %v1206_v36, %v1208_v10  ;;  %v1211_v57 = vsel %vm6441_vm13, %v1208_v10, %v1206_v36  ;;  %v1023_v10 = vsel %vm6457_vm9, %v4758_v22, %v4804_v53  ;;  %vm6456_vm13 = vcmp.lt.s32.totalorder %v3804_v55, 97  ;;  %v4947_v22 = vpop.permute.xlu0 %1304 }
 0x1de   :  { %v1219_v1 = vmul.f32 %v6443_v32, %v1210_v0  ;;  %v1220_v5 = vmul.f32 %v6442_v7, %v1211_v57  ;;  %v4940_v57 = vld [vmem:[%s6296_s2 + $0x37] ss:$8 sm:$0x3]  ;;  %6564 = vst [vmem:[#allocation61_spill] sm:$0xff] %v4947_v22  ;;  %v1031_v53 = vmul.f32 %v6449_v49, %v1022_v23  ;;  %v1116_v23 = vsel %vm6456_vm13, %v1112_v39, %v4853_v58 }
 0x1e0   :  { %v4933_v36 = vmax.f32 %v1219_v1, 0.0  ;;  %v4935_v0 = vmax.f32 %v1220_v5, 0.0  ;;  %v1032_v5 = vmul.f32 %v6448_v42, %v1023_v10  ;;  %v6459_v1 = vperm.slane %v4940_v57, 0  ;;  %v4970_v42 = vld [vmem:[%s6296_s2 + $0x41] ss:$8 sm:$0x3] }
 0x1e1   :  { %3388 = vset.pattern.permute.xlu2 %v6528_v15  ;;  %3389 = vset.pattern.permute.xlu1 %v6513_v14  ;;  %v1117_v10 = vsel %vm6456_vm13, %v4853_v58, %v1112_v39  ;;  %v6569_v39 = vperm.slane %v4940_v57, 1  ;;  %v6458_v22 = vperm.slane %v4970_v42, 0 }
 0x1e2   :  { %1529 = vperm.xlu2 %3388, %v4521_v29   ;;  %v1243_v7 = vmul.f32 %v1241_v43, %v4933_v36  ;;  %v1244_v32 = vmul.f32 %v1241_v43, %v4935_v0  ;;  %1550 = vperm.xlu1 %3389, %v4613_v44   ;;  %v1180_v29 = vpop.permute.xlu1 %1179  ;;  %v1125_v58 = vmul.f32 %v6459_v1, %v1116_v23 }
 0x1e3   :  { %v1126_v35 = vmul.f32 %v6569_v39, %v1117_v10  ;;  %v1160_v39 = vmul.f32 %v4912_v25, %v4881_v17 }
 0x1e4   :  { %v1233_v13 = vpop.permute.xlu2 %1232  ;;  %v4957_v9 = vadd.f32 %v1243_v7, %v1177_v62  ;;  %v4959_v43 = vadd.f32 %v1244_v32, %v1178_v51  ;;  %v1033_v51 = vmax.f32 %v1031_v53, 0.0  ;;  %v1034_v32 = vmax.f32 %v1032_v5, 0.0 }
 0x1e5   :  { %v1235_v49 = vmul.f32 %v1233_v13, %v4933_v36  ;;  %v1236_v62 = vmul.f32 %v1233_v13, %v4935_v0  ;;  %v1091_v53 = vmul.f32 %v4867_v40, %v4833_v27  ;;  %v1092_v5 = vmul.f32 %v4867_v40, %v4835_v59 }
 0x1e6   :  { %6565 = vst [vmem:[#allocation62_spill] sm:$0xff] %v4957_v9  ;;  %v1039_v13 = vmul.f32 %v4837_v12, %v1033_v51  ;;  %v1040_v9 = vmul.f32 %v4837_v12, %v1034_v32  ;;  %v1127_v23 = vmax.f32 %v1125_v58, 0.0  ;;  %v1128_v12 = vmax.f32 %v1126_v35, 0.0 }
 0x1e7   :  { %6566 = vst [vmem:[#allocation63_spill] sm:$0xff] %v4959_v43  ;;  %v4975_v7 = vadd.f32 %v1235_v49, %v1169_v16  ;;  %v4977_v30 = vadd.f32 %v1236_v62, %v1170_v19  ;;  %v6454_v43 = vperm.slane %v4970_v42, 1  ;;  %v1184_v49 = vsel %vm6455_vm5, %v1180_v29, %v1182_v45  ;;  %v4992_v19 = vpop.permute.xlu0 %1388 }
 0x1e8   :  { %v1185_v16 = vsel %vm6455_vm5, %v1182_v45, %v1180_v29  ;;  %v1193_v10 = vmul.f32 %v6458_v22, %v1184_v49  ;;  %v1041_v27 = vadd.f32 %v1039_v13, %v4806_v46  ;;  %v1042_v51 = vadd.f32 %v1040_v9, %v4808_v50 }
 0x1e9   :  { %6567 = vst [vmem:[#allocation64_spill] sm:$0xff] %v4975_v7  ;;  %v1194_v45 = vmul.f32 %v6454_v43, %v1185_v16  ;;  %v1133_v59 = vmul.f32 %v4893_v63, %v1127_v23  ;;  %v1134_v40 = vmul.f32 %v4893_v63, %v1128_v12  ;;  %v1159_v58 = vmul.f32 %v4912_v25, %v4879_v56 }
 0x1ea   :  { %6568 = vst [vmem:[#allocation65_spill] sm:$0xff] %v4977_v30  ;;  %3390 = vset.pattern.permute.xlu2 %v6527_v61  ;;  %3391 = vset.pattern.permute.xlu1 %v6524_v28  ;;  %v1199_v29 = vpop.permute.xlu1 %1198  ;;  %v1093_v35 = vadd.f32 %v1091_v53, %v1041_v27  ;;  %v1094_v32 = vadd.f32 %v1092_v5, %v1042_v51  ;;  %v1195_v49 = vmax.f32 %v1193_v10, 0.0  ;;  %vm1251_vm5 = vcmp.lt.s32.totalorder %v3804_v55, 92 }
 0x1eb   :  { %1560 = vperm.xlu2 %3390, %v4613_v44   ;;  %1570 = vperm.xlu1 %3391, %v4613_v44   ;;  %v1196_v16 = vmax.f32 %v1194_v45, 0.0  ;;  %v3621_v7 = vmov 94  }
 0x1ec   :  { %v5004_v62 = vpop.permute.xlu2 %1249  ;;  %v1135_v43 = vadd.f32 %v1133_v59, %v1093_v35  ;;  %v1136_v46 = vadd.f32 %v1134_v40, %v1094_v32  ;;  %v1201_v13 = vmul.f32 %v1199_v29, %v1195_v49  ;;  %v6570_v35 = vmax.f32 %v4256_v47, 0.0 }
 0x1ed   :  { %v1202_v9 = vmul.f32 %v1199_v29, %v1196_v16  ;;  %v6572_v49 = vmax.f32 %v4202_v37, 0.0  ;;  %v6574_v47 = vmax.f32 %v4306_v54, 0.0  ;;  %v6576_v37 = vmax.f32 %v4475_v52, 0.0 }
 0x1ee   :  { %v1161_v50 = vadd.f32 %v1159_v58, %v1135_v43  ;;  %v1162_v23 = vadd.f32 %v1160_v39, %v1136_v46  ;;  %v509_v32 = vmul.f32 %v4279_v6, %v6570_v35  ;;  %v6573_v46 = vmax.f32 %v4205_v60, 0.0  ;;  %v6582_v35 = vld [vmem:[#allocation37_spill] sm:$0xff] }
 0x1ef   :  { %v5020_v53 = vpop.permute.xlu0 %1438  ;;  %v465_v16 = vmul.f32 %v4124_v31, %v6572_v49  ;;  %v6577_v60 = vmax.f32 %v4478_v20, 0.0  ;;  %v6579_v20 = vld [vmem:[#allocation36_spill] sm:$0xff] }
 0x1f0   :  { %v1203_v17 = vadd.f32 %v1201_v13, %v1161_v50  ;;  %v1204_v25 = vadd.f32 %v1202_v9, %v1162_v23  ;;  %v466_v13 = vmul.f32 %v4124_v31, %v6573_v46  ;;  %v555_v9 = vmul.f32 %v4270_v2, %v6574_v47  ;;  %v6585_v49 = vld [vmem:[#allocation40_spill] sm:$0xff] }
 0x1f1   :  { %v511_v50 = vadd.f32 %v509_v32, %v465_v16  ;;  %v696_v31 = vmul.f32 %v4511_v18, %v6577_v60  ;;  %v6583_v32 = vmax.f32 %v6582_v35, 0.0  ;;  %v6586_v46 = vmax.f32 %v4692_v11, 0.0 }
 0x1f3   :  { %3392 = vset.pattern.permute.xlu2 %v6559_v26  ;;  %3393 = vset.pattern.permute.xlu1 %v6521_v4  ;;  %v1225_v56 = vpop.permute.xlu1 %1224 }
 0x1f4   :  { %1580 = vperm.xlu2 %3392, %v4613_v44   ;;  %v5017_v63 = vpop.permute.xlu2 %1285  ;;  %v1227_v5 = vmul.f32 %v1225_v56, %v4933_v36  ;;  %v1228_v12 = vmul.f32 %v1225_v56, %v4935_v0  ;;  %1600 = vperm.xlu1 %3393, %v4613_v44   ;;  %v695_v56 = vmul.f32 %v4511_v18, %v6576_v37  ;;  %v6581_v18 = vld [vmem:[#allocation38_spill] sm:$0xff] }
 0x1f6   :  { %v5025_v10 = vadd.f32 %v1227_v5, %v1203_v17  ;;  %v5027_v43 = vadd.f32 %v1228_v12, %v1204_v25  ;;  %v557_v17 = vadd.f32 %v555_v9, %v511_v50  ;;  %v711_v25 = vmul.f32 %v4466_v48, %v4462_v24 }
 0x1f7   :  { %v1490_v36 = vpop.permute.xlu0 %1489  ;;  %v774_v24 = vmul.f32 %v6581_v18, %v6583_v32 }
 0x1f8   :  { %v1492_v45 = vperm.slane %v5025_v10, 3  ;;  %v1493_v29 = vperm.slane %v5027_v43, 3  ;;  %v697_v5 = vadd.f32 %v695_v56, %v557_v17  ;;  %v6591_v17 = vld [vmem:[#allocation51_spill] sm:$0xff] }
 0x1fa   :  { %v5039_v0 = vmul.f32 %v1492_v45, %v1490_v36  ;;  %v5041_v59 = vmul.f32 %v1493_v29, %v1490_v36  ;;  %v6580_v29 = vmax.f32 %v6579_v20, 0.0 }
 0x1fb   :  { %v5032_v27 = vpop.permute.xlu1 %1247 }
 0x1fc   :  { %3394 = vset.pattern.permute.xlu2 %v6528_v15  ;;  %3395 = vset.pattern.permute.xlu1 %v6512_v8  ;;  %v773_v36 = vmul.f32 %v6581_v18, %v6580_v29 }
 0x1fd   :  { %1610 = vperm.xlu2 %3394, %v4613_v44   ;;  %v5035_v51 = vpop.permute.xlu2 %1342  ;;  %1623 = vperm.xlu1 %3395, %v4555_v33   ;;  %v6571_v44 = vmax.f32 %v4259_v41, 0.0  ;;  %v6575_v41 = vmax.f32 %v4309_v34, 0.0  ;;  %v6578_v34 = vld [vmem:[#allocation33_spill] sm:$0xff] }
 0x1ff   :  { %v510_v58 = vmul.f32 %v4279_v6, %v6571_v44  ;;  %v556_v6 = vmul.f32 %v4270_v2, %v6575_v41  ;;  %v712_v2 = vmul.f32 %v4466_v48, %v6578_v34  ;;  %v713_v48 = vadd.f32 %v711_v25, %v697_v5  ;;  %v6594_v34 = vld [vmem:[#allocation52_spill] sm:$0xff] }
 0x200   :  { %v6587_v41 = vmax.f32 %v4733_v21, 0.0  ;;  %v6595_v11 = vmax.f32 %v6594_v34, 0.0 }
 0x201   :  { %v512_v23 = vadd.f32 %v510_v58, %v466_v13  ;;  %v6584_v58 = vmax.f32 %v4689_v3, 0.0  ;;  %v914_v13 = vmul.f32 %v6585_v49, %v6586_v46  ;;  %v775_v47 = vadd.f32 %v773_v36, %v713_v48 }
 0x202   :  { %v6592_v3 = vmax.f32 %v6591_v17, 0.0 }
 0x203   :  { %v5043_v40 = vpop.permute.xlu1 %1266  ;;  %v558_v54 = vadd.f32 %v556_v6, %v512_v23  ;;  %v913_v16 = vmul.f32 %v6585_v49, %v6584_v58  ;;  %v6588_v6 = vld [vmem:[#allocation48_spill] sm:$0xff]  ;;  %v6589_v23 = vld [vmem:[#allocation46_spill] sm:$0xff] }
 0x204   :  { %v959_v50 = vmul.f32 %v6588_v6, %v6587_v41  ;;  %v6590_v37 = vmax.f32 %v6589_v23, 0.0 }
 0x205   :  { %3396 = vset.pattern.permute.xlu2 %v6513_v14  ;;  %3398 = vset.pattern.permute.xlu1 %v6524_v28  ;;  %v698_v12 = vadd.f32 %v696_v31, %v558_v54  ;;  %v915_v60 = vadd.f32 %v913_v16, %v775_v47  ;;  %v6593_v54 = vld [vmem:[#allocation47_spill] sm:$0xff] }
 0x206   :  { %1631 = vperm.xlu2 %3396, %v4555_v33   ;;  %v1381_v39 = vpop.permute.xlu2 %1380  ;;  %1651 = vperm.xlu1 %3398, %v4555_v33   ;;  %v960_v56 = vmul.f32 %v6588_v6, %v6590_v37  ;;  %v1005_v25 = vmul.f32 %v6593_v54, %v6592_v3 }
 0x207   :  { %v714_v44 = vadd.f32 %v712_v2, %v698_v12  ;;  %v1006_v2 = vmul.f32 %v6593_v54, %v6595_v11  ;;  %v961_v21 = vadd.f32 %v959_v50, %v915_v60 }
 0x209   :  { %v776_v9 = vadd.f32 %v774_v24, %v714_v44  ;;  %v1007_v29 = vadd.f32 %v1005_v25, %v961_v21 }
 0x20b   :  { %v916_v31 = vadd.f32 %v914_v13, %v776_v9  ;;  %v1391_v35 = vperm.slane %v1007_v29, 1  ;;  %v1383_v32 = vperm.slane %v1007_v29, 0  ;;  %v1401_v49 = vperm.slane %v1007_v29, 2 }
 0x20c   :  { %v5077_v45 = vpop.permute.xlu1 %1323  ;;  %v1411_v50 = vperm.slane %v1007_v29, 3  ;;  %v1431_v21 = vperm.slane %v1007_v29, 5 }
 0x20d   :  { %v962_v12 = vadd.f32 %v960_v56, %v916_v31  ;;  %v1385_v48 = vmul.f32 %v1383_v32, %v1381_v39  ;;  %v1393_v13 = vmul.f32 %v1391_v35, %v4992_v19  ;;  %v1421_v31 = vperm.slane %v1007_v29, 4 }
 0x20e   :  { %3399 = vset.pattern.permute.xlu2 %v6559_v26  ;;  %3400 = vset.pattern.permute.xlu1 %v6560_v38 }
 0x20f   :  { %1661 = vperm.xlu2 %3399, %v4555_v33   ;;  %v1409_v52 = vpop.permute.xlu2 %1408  ;;  %1671 = vperm.xlu1 %3400, %v4555_v33   ;;  %v1008_v18 = vadd.f32 %v1006_v2, %v962_v12  ;;  %v1395_v41 = vadd.f32 %v1393_v13, %v1385_v48  ;;  %v1441_v48 = vperm.slane %v1007_v29, 6 }
 0x210   :  { %v1413_v60 = vmul.f32 %v1411_v50, %v1409_v52 }
 0x211   :  { %v1392_v36 = vperm.slane %v1008_v18, 1  ;;  %v1384_v24 = vperm.slane %v1008_v18, 0  ;;  %v1402_v16 = vperm.slane %v1008_v18, 2  ;;  %v1412_v23 = vperm.slane %v1008_v18, 3 }
 0x212   :  { %v1422_v17 = vperm.slane %v1008_v18, 4  ;;  %v1452_v13 = vperm.slane %v1008_v18, 7 }
 0x213   :  { %v1386_v44 = vmul.f32 %v1384_v24, %v1381_v39  ;;  %v1394_v47 = vmul.f32 %v1392_v36, %v4992_v19  ;;  %v1414_v39 = vmul.f32 %v1412_v23, %v1409_v52  ;;  %v1432_v19 = vperm.slane %v1008_v18, 5 }
 0x214   :  { %v1442_v24 = vperm.slane %v1008_v18, 6  ;;  %v1443_v52 = vmul.f32 %v1441_v48, %v5020_v53  ;;  %v1465_v18 = vperm.slane %v5027_v43, 0 }
 0x215   :  { %v5107_v5 = vpop.permute.xlu1 %1361  ;;  %v1396_v6 = vadd.f32 %v1394_v47, %v1386_v44 }
 0x217   :  { %3401 = vset.pattern.permute.xlu2 %v6521_v4 }
 0x218   :  { %1681 = vperm.xlu2 %3401, %v4555_v33   ;;  %v1429_v20 = vpop.permute.xlu2 %1428 }
 0x219   :  { %v1433_v35 = vmul.f32 %v1431_v21, %v1429_v20  ;;  %v1434_v32 = vmul.f32 %v1432_v19, %v1429_v20  ;;  %v3148_v20 = vld [vmem:[%s6296_s2 + $0x43] ss:$8 sm:$0x3] }
 0x21e   :  { %v1399_v58 = vpop.permute.xlu1 %1398 }
 0x21f   :  { %v1403_v33 = vmul.f32 %v1401_v49, %v1399_v58  ;;  %v1404_v9 = vmul.f32 %v1402_v16, %v1399_v58  ;;  %v1444_v49 = vmul.f32 %v1442_v24, %v5020_v53  ;;  %v1451_v16 = vperm.slane %v1007_v29, 7 }
 0x220   :  { %3403 = vset.pattern.permute.xlu2 %v6512_v8  ;;  %v1464_v29 = vperm.slane %v5025_v10, 0 }
 0x221   :  { %v1462_v46 = vpop.permute.xlu2 %1461  ;;  %v1405_v37 = vadd.f32 %v1403_v33, %v1395_v41  ;;  %v1406_v56 = vadd.f32 %v1404_v9, %v1396_v6 }
 0x223   :  { %v1415_v54 = vadd.f32 %v1413_v60, %v1405_v37  ;;  %v1416_v25 = vadd.f32 %v1414_v39, %v1406_v56  ;;  %v1472_v56 = vperm.slane %v5025_v10, 1  ;;  %v1473_v60 = vperm.slane %v5027_v43, 1 }
 0x224   :  { %v1257_v39 = vperm.slane %v3148_v20, 0 }
 0x227   :  { %v1419_v3 = vpop.permute.xlu1 %1418 }
 0x228   :  { %v1423_v34 = vmul.f32 %v1421_v31, %v1419_v3  ;;  %v1424_v11 = vmul.f32 %v1422_v17, %v1419_v3  ;;  %v1258_v31 = vperm.slane %v3148_v20, 1  ;;  %v1482_v17 = vperm.slane %v5025_v10, 2 }
 0x229   :  { %v1483_v3 = vperm.slane %v5027_v43, 2  ;;  %v1502_v20 = vperm.slane %v5025_v10, 4 }
 0x22a   :  { %v1480_v2 = vpop.permute.xlu2 %1479  ;;  %v1425_v12 = vadd.f32 %v1423_v34, %v1415_v54  ;;  %v1426_v36 = vadd.f32 %v1424_v11, %v1416_v25  ;;  %v3150_v25 = vld [vmem:[%s6296_s2 + $0x45] ss:$8 sm:$0x3]  ;;  %v1466_v34 = vmul.f32 %v1464_v29, %v1462_v46  ;;  %v1467_v11 = vmul.f32 %v1465_v18, %v1462_v46 }
 0x22b   :  { %v1485_v24 = vmul.f32 %v1483_v3, %v1480_v2  ;;  %v1296_v46 = vperm.slane %v3150_v25, 1  ;;  %v6596_v29 = vld [vmem:[#allocation9_spill] sm:$0xff]  ;;  %v1512_v3 = vperm.slane %v5025_v10, 5 }
 0x22c   :  { %v1435_v44 = vadd.f32 %v1433_v35, %v1425_v12  ;;  %v1436_v58 = vadd.f32 %v1434_v32, %v1426_v36  ;;  %v1252_v36 = vsel %vm1251_vm5, %v5032_v27, %v5004_v62  ;;  %v1253_v35 = vsel %vm1251_vm5, %v5004_v62, %v5032_v27 }
 0x22d   :  { %v1484_v32 = vmul.f32 %v1482_v17, %v1480_v2 }
 0x22e   :  { %v1445_v33 = vadd.f32 %v1443_v52, %v1435_v44  ;;  %v1446_v9 = vadd.f32 %v1444_v49, %v1436_v58  ;;  %v1295_v58 = vperm.slane %v3150_v25, 0  ;;  %v3149_v52 = vld [vmem:[%s6296_s2 + $0x44] ss:$8 sm:$0x3] }
 0x22f   :  { %v3151_v49 = vld [vmem:[%s6296_s2 + $0x46] ss:$8 sm:$0x3]  ;;  %v1277_v62 = vperm.slane %v3149_v52, 1 }
 0x230   :  { %v1449_v47 = vpop.permute.xlu1 %1448  ;;  %v1299_v18 = vmul.f32 %v1295_v58, %v6596_v29 }
 0x231   :  { %v1453_v41 = vmul.f32 %v1451_v16, %v1449_v47  ;;  %v1454_v6 = vmul.f32 %v1452_v13, %v1449_v47  ;;  %v1261_v16 = vmul.f32 %v1257_v39, %v1252_v36  ;;  %v1262_v13 = vmul.f32 %v1258_v31, %v1253_v35  ;;  %v3152_v36 = vld [vmem:[%s6296_s2 + $0x47] ss:$8 sm:$0x3] }
 0x233   :  { %v1510_v50 = vpop.permute.xlu2 %1509  ;;  %v5116_v23 = vadd.f32 %v1453_v41, %v1445_v33  ;;  %v5118_v37 = vadd.f32 %v1454_v6, %v1446_v9  ;;  %v1276_v9 = vperm.slane %v3149_v52, 0  ;;  %v1314_v41 = vperm.slane %v3151_v49, 0  ;;  %v6601_v52 = vld [vmem:[#allocation12_spill] sm:$0xff] }
 0x234   :  { %v1315_v6 = vperm.slane %v3151_v49, 1  ;;  %v1263_v39 = vmax.f32 %v1261_v16, 0.0  ;;  %v1264_v31 = vmax.f32 %v1262_v13, 0.0  ;;  %v6602_v16 = vld [vmem:[#allocation11_spill] sm:$0xff] }
 0x235   :  { %v1700_v53 = vadd.f32 %v5118_v37, %v5116_v23  ;;  %v1318_v49 = vmul.f32 %v1314_v41, %v6601_v52  ;;  %v1522_v41 = vperm.slane %v5025_v10, 6 }
 0x236   :  { %v1269_v35 = vmul.f32 %v5043_v40, %v1263_v39  ;;  %v1319_v13 = vmul.f32 %v1315_v6, %v6602_v16  ;;  %v1523_v6 = vperm.slane %v5027_v43, 6 }
 0x239   :  { %v1470_v54 = vpop.permute.xlu1 %1469  ;;  %1701 = vadd.xlane.f32.xlu1 %v1700_v53  ;;  %v1503_v53 = vperm.slane %v5027_v43, 4 }
 0x23a   :  { %v1474_v21 = vmul.f32 %v1472_v56, %v1470_v54  ;;  %v1475_v19 = vmul.f32 %v1473_v60, %v1470_v54  ;;  %v6597_v56 = vld [vmem:[#allocation7_spill] sm:$0xff]  ;;  %v1513_v54 = vperm.slane %v5027_v43, 5 }
 0x23b   :  { %v1300_v60 = vmul.f32 %v1296_v46, %v6597_v56 }
 0x23c   :  { %v5135_v12 = vpop.permute.xlu2 %1529  ;;  %v1476_v48 = vadd.f32 %v1474_v21, %v1466_v34  ;;  %v1477_v44 = vadd.f32 %v1475_v19, %v1467_v11  ;;  %v6599_v34 = vld [vmem:[#allocation10_spill] sm:$0xff]  ;;  %v6600_v21 = vld [vmem:[#allocation8_spill] sm:$0xff] }
 0x23d   :  { %v1280_v11 = vmul.f32 %v1276_v9, %v6599_v34  ;;  %v1281_v19 = vmul.f32 %v1277_v62, %v6600_v21  ;;  %v1532_v21 = vperm.slane %v5025_v10, 7 }
 0x23e   :  { %v1486_v47 = vadd.f32 %v1484_v32, %v1476_v48  ;;  %v1487_v33 = vadd.f32 %v1485_v24, %v1477_v44  ;;  %v1270_v32 = vmul.f32 %v5043_v40, %v1264_v31  ;;  %v3153_v24 = vld [vmem:[%s6296_s2 + $0x50] ss:$8 sm:$0x3]  ;;  %v1514_v48 = vmul.f32 %v1512_v3, %v1510_v50  ;;  %v6603_v31 = vld [vmem:[#allocation62_spill] sm:$0xff] }
 0x23f   :  { %v1515_v44 = vmul.f32 %v1513_v54, %v1510_v50  ;;  %v1352_v29 = vperm.slane %v3153_v24, 0  ;;  %v1353_v40 = vperm.slane %v3153_v24, 1  ;;  %v1282_v56 = vmax.f32 %v1280_v11, 0.0  ;;  %v6604_v3 = vld [vmem:[#allocation63_spill] sm:$0xff]  ;;  %v6605_v54 = vld [vmem:[#allocation14_spill] sm:$0xff]  ;;  %v6608_v24 = vld [vmem:[#allocation16_spill] sm:$0xff] }
 0x240   :  { %v1496_v27 = vadd.f32 %v5039_v0, %v1486_v47  ;;  %v1497_v2 = vadd.f32 %v5041_v59, %v1487_v33  ;;  %v1333_v47 = vperm.slane %v3152_v36, 0  ;;  %v1334_v33 = vperm.slane %v3152_v36, 1 }
 0x241   :  { %v1283_v39 = vmax.f32 %v1281_v19, 0.0  ;;  %v1272_v50 = vadd.f32 %v1270_v32, %v6604_v3  ;;  %v1533_v19 = vperm.slane %v5027_v43, 7 }
 0x242   :  { %v1500_v17 = vpop.permute.xlu1 %1499 }
 0x243   :  { %v1504_v0 = vmul.f32 %v1502_v20, %v1500_v17  ;;  %v1505_v25 = vmul.f32 %v1503_v53, %v1500_v17  ;;  %v1301_v20 = vmax.f32 %v1299_v18, 0.0  ;;  %v1302_v53 = vmax.f32 %v1300_v60, 0.0 }
 0x244   :  { %v1271_v17 = vadd.f32 %v1269_v35, %v6603_v31  ;;  %v1288_v18 = vmul.f32 %v5017_v63, %v1282_v56  ;;  %v1289_v60 = vmul.f32 %v5017_v63, %v1283_v39  ;;  %v1535_v16 = vmul.f32 %v1533_v19, %v5135_v12 }
 0x245   :  { %v5159_v59 = vpop.permute.xlu2 %1560  ;;  %v1506_v58 = vadd.f32 %v1504_v0, %v1496_v27  ;;  %v1507_v46 = vadd.f32 %v1505_v25, %v1497_v2  ;;  %v1320_v27 = vmax.f32 %v1318_v49, 0.0  ;;  %v1321_v2 = vmax.f32 %v1319_v13, 0.0  ;;  %v6606_v25 = vld [vmem:[#allocation13_spill] sm:$0xff] }
 0x246   :  { %6598 = vst [vmem:[#allocation33_spill] sm:$0xff] %v5159_v59  ;;  %v1337_v0 = vmul.f32 %v1333_v47, %v6605_v54  ;;  %v1338_v34 = vmul.f32 %v1334_v33, %v6606_v25  ;;  %v1291_v52 = vadd.f32 %v1289_v60, %v1272_v50  ;;  %v1534_v49 = vmul.f32 %v1532_v21, %v5135_v12  ;;  %v6610_v47 = vld [vmem:[#allocation61_spill] sm:$0xff] }
 0x247   :  { %v1516_v9 = vadd.f32 %v1514_v48, %v1506_v58  ;;  %v1517_v62 = vadd.f32 %v1515_v44, %v1507_v46  ;;  %v1356_v48 = vmul.f32 %v1352_v29, %v6608_v24  ;;  %v6609_v44 = vld [vmem:[#allocation15_spill] sm:$0xff]  ;;  %v1290_v46 = vadd.f32 %v1288_v18, %v1271_v17 }
 0x248   :  { %v1357_v58 = vmul.f32 %v1353_v40, %v6609_v44  ;;  %v1307_v10 = vmul.f32 %v6610_v47, %v1301_v20  ;;  %v1308_v43 = vmul.f32 %v6610_v47, %v1302_v53  ;;  %v1326_v33 = vmul.f32 %v5077_v45, %v1320_v27 }
 0x249   :  { %v1327_v56 = vmul.f32 %v5077_v45, %v1321_v2  ;;  %v1339_v17 = vmax.f32 %v1337_v0, 0.0  ;;  %v1340_v3 = vmax.f32 %v1338_v34, 0.0  ;;  %v1358_v50 = vmax.f32 %v1356_v48, 0.0 }
 0x24a   :  { %v1309_v40 = vadd.f32 %v1307_v10, %v1290_v46  ;;  %v1310_v31 = vadd.f32 %v1308_v43, %v1291_v52  ;;  %v1359_v12 = vmax.f32 %v1357_v58, 0.0 }
 0x24b   :  { %v1520_v11 = vpop.permute.xlu1 %1519  ;;  %v1345_v20 = vmul.f32 %v5035_v51, %v1339_v17  ;;  %v1346_v53 = vmul.f32 %v5035_v51, %v1340_v3  ;;  %v1364_v45 = vmul.f32 %v5107_v5, %v1358_v50 }
 0x24c   :  { %v1524_v36 = vmul.f32 %v1522_v41, %v1520_v11  ;;  %v1525_v35 = vmul.f32 %v1523_v6, %v1520_v11  ;;  %v1365_v27 = vmul.f32 %v5107_v5, %v1359_v12 }
 0x24e   :  { %v5183_v32 = vpop.permute.xlu2 %1580  ;;  %v1526_v63 = vadd.f32 %v1524_v36, %v1516_v9  ;;  %v1527_v13 = vadd.f32 %v1525_v35, %v1517_v62  ;;  %v1328_v9 = vadd.f32 %v1326_v33, %v1309_v40  ;;  %v1329_v62 = vadd.f32 %v1327_v56, %v1310_v31 }
 0x24f   :  { %6607 = vst [vmem:[#allocation36_spill] sm:$0xff] %v5183_v32 }
 0x250   :  { %v5193_v39 = vadd.f32 %v1534_v49, %v1526_v63  ;;  %v5195_v29 = vadd.f32 %v1535_v16, %v1527_v13  ;;  %v1347_v6 = vadd.f32 %v1345_v20, %v1328_v9  ;;  %v1348_v54 = vadd.f32 %v1346_v53, %v1329_v62  ;;  %v1642_v13 = vpop.permute.xlu0 %1641 }
 0x252   :  { %v1366_v0 = vadd.f32 %v1364_v45, %v1347_v6  ;;  %v1367_v25 = vadd.f32 %v1365_v27, %v1348_v54 }
 0x254   :  { %v5197_v41 = vpop.permute.xlu1 %1550  ;;  %v1634_v18 = vperm.slane %v1366_v0, 1  ;;  %v1635_v60 = vperm.slane %v1367_v25, 1  ;;  %v1664_v51 = vperm.slane %v1366_v0, 4  ;;  %v1665_v35 = vperm.slane %v1367_v25, 4 }
 0x255   :  { %6611 = vst [vmem:[#allocation38_spill] sm:$0xff] %v5197_v41  ;;  %v1626_v44 = vperm.slane %v1366_v0, 0  ;;  %v1627_v58 = vperm.slane %v1367_v25, 0  ;;  %v1644_v46 = vperm.slane %v1366_v0, 2  ;;  %v1645_v52 = vperm.slane %v1367_v25, 2 }
 0x256   :  { %v1654_v31 = vperm.slane %v1366_v0, 3  ;;  %v1655_v17 = vperm.slane %v1367_v25, 3  ;;  %v1674_v45 = vperm.slane %v1366_v0, 5  ;;  %v1675_v27 = vperm.slane %v1367_v25, 5 }
 0x257   :  { %v5203_v2 = vpop.permute.xlu2 %1610  ;;  %v1646_v43 = vmul.f32 %v1644_v46, %v1642_v13  ;;  %v1647_v33 = vmul.f32 %v1645_v52, %v1642_v13  ;;  %v1684_v54 = vperm.slane %v1366_v0, 6 }
 0x258   :  { %6612 = vst [vmem:[#allocation37_spill] sm:$0xff] %v5203_v2  ;;  %v1692_v46 = vpop.permute.xlu0 %1691 }
 0x25d   :  { %v5205_v34 = vpop.permute.xlu1 %1570 }
 0x25e   :  { %6613 = vst [vmem:[#allocation40_spill] sm:$0xff] %v5205_v34 }
 0x260   :  { %v1632_v11 = vpop.permute.xlu2 %1631 }
 0x261   :  { %v1636_v21 = vmul.f32 %v1634_v18, %v1632_v11  ;;  %v1637_v19 = vmul.f32 %v1635_v60, %v1632_v11  ;;  %v1685_v18 = vperm.slane %v1367_v25, 6 }
 0x266   :  { %v5207_v36 = vpop.permute.xlu1 %1600 }
 0x267   :  { %6614 = vst [vmem:[#allocation48_spill] sm:$0xff] %v5207_v36 }
 0x269   :  { %v1662_v24 = vpop.permute.xlu2 %1661 }
 0x26a   :  { %v1666_v48 = vmul.f32 %v1664_v51, %v1662_v24  ;;  %v1667_v5 = vmul.f32 %v1665_v35, %v1662_v24  ;;  %v1695_v51 = vperm.slane %v1367_v25, 7 }
 0x26f   :  { %v1624_v49 = vpop.permute.xlu1 %1623 }
 0x270   :  { %v1628_v16 = vmul.f32 %v1626_v44, %v1624_v49  ;;  %v1629_v63 = vmul.f32 %v1627_v58, %v1624_v49 }
 0x272   :  { %v1638_v47 = vadd.f32 %v1636_v21, %v1628_v16  ;;  %v1639_v10 = vadd.f32 %v1637_v19, %v1629_v63  ;;  %v1682_v6 = vpop.permute.xlu2 %1681  ;;  %v1694_v19 = vperm.slane %v1366_v0, 7 }
 0x273   :  { %v1686_v35 = vmul.f32 %v1684_v54, %v1682_v6  ;;  %v1687_v24 = vmul.f32 %v1685_v18, %v1682_v6  ;;  %v3600_v6 = vmov 71  }
 0x274   :  { %v1648_v56 = vadd.f32 %v1646_v43, %v1638_v47  ;;  %v1649_v40 = vadd.f32 %v1647_v33, %v1639_v10  ;;  %v1696_v16 = vmul.f32 %v1694_v19, %v1692_v46 }
 0x278   :  { %v1652_v3 = vpop.permute.xlu1 %1651 }
 0x279   :  { %v1656_v50 = vmul.f32 %v1654_v31, %v1652_v3  ;;  %v1657_v12 = vmul.f32 %v1655_v17, %v1652_v3 }
 0x27b   :  { %v1658_v9 = vadd.f32 %v1656_v50, %v1648_v56  ;;  %v1659_v62 = vadd.f32 %v1657_v12, %v1649_v40  ;;  %v3596_v50 = vmov 68   ;;  %v5227_v12 = vld [vmem:[%s6297_s3] sm:$0xff] }
 0x27c   :  { %3404 = vset.pattern.permute.xlu1 %v3596_v50 }
 0x27d   :  { %v1668_v20 = vadd.f32 %v1666_v48, %v1658_v9  ;;  %v1669_v53 = vadd.f32 %v1667_v5, %v1659_v62  ;;  %v1697_v48 = vmul.f32 %v1695_v51, %v1692_v46  ;;  %1762 = vperm.xlu1 %3404, %v5227_v12   ;;  %v3598_v9 = vmov 70  }
 0x281   :  { %v1672_v60 = vpop.permute.xlu1 %1671 }
 0x282   :  { %v1676_v11 = vmul.f32 %v1674_v45, %v1672_v60  ;;  %v1677_v21 = vmul.f32 %v1675_v27, %v1672_v60  ;;  %v3599_v27 = vmov 73   ;;  %v5237_v60 = vld [vmem:[%s6298_s4 + $0x20] sm:$0xff] }
 0x284   :  { %v1678_v44 = vadd.f32 %v1676_v11, %v1668_v20  ;;  %v1679_v58 = vadd.f32 %v1677_v21, %v1669_v53  ;;  %v3601_v21 = vmov 74  }
 0x286   :  { %v1688_v52 = vadd.f32 %v1686_v35, %v1678_v44  ;;  %v1689_v49 = vadd.f32 %v1687_v24, %v1679_v58  ;;  %v3602_v58 = vmov 75  }
 0x288   :  { %v5209_v5 = vadd.f32 %v1696_v16, %v1688_v52  ;;  %v5211_v63 = vadd.f32 %v1697_v48, %v1689_v49  ;;  %v3603_v52 = vmov 76   ;;  %v1779_v49 = vpop.permute.xlu0 %1778 }
 0x28a   :  { %6615 = vst [vmem:[#allocation46_spill] sm:$0xff] %v5209_v5 }
 0x28b   :  { %6616 = vst [vmem:[#allocation51_spill] sm:$0xff] %v5211_v63 }
 0x290   :  { %v5256_v16 = vpop.permute.xlu0 %1542 }
 0x291   :  { %6617 = vst [vmem:[#allocation47_spill] sm:$0xff] %v5256_v16 }
 0x2ac   :  { %v1702_v13 = vpop.xlane.xlu1 %1701 }
 0x2ad   :  { %v1704_v47 = vrot.slane %v1702_v13, 4 }
 0x2af   :  { %v1706_v10 = vadd.f32 %v1704_v47, %v1702_v13 }
 0x2b1   :  { %v1707_v43 = vmul.f32 0.001953125, %v1706_v10 }
 0x2b3   :  { %v1709_v33 = vrot.slane %v1707_v43, 4 }
 0x2b5   :  { %v1711_v0 = vsel %vm43_vm0, %v1707_v43, %v1709_v33 }
 0x2b6   :  { %1714 = vperm.xlu2 %3403, %v1711_v0   ;;  %v1984_v0 = vadd.f32 %v5195_v29, %v5193_v39 }
 0x2be   :  { %3407 = vset.pattern.permute.xlu2 %v3598_v9 }
 0x2ef   :  { %v1763_v10 = vpop.permute.xlu1 %1762 }
 0x310   :  { %v1715_v25 = vpop.permute.xlu2 %1714 }
 0x311   :  { %v5215_v56 = vsub.f32 %v5116_v23, %v1715_v25  ;;  %v5218_v40 = vsub.f32 %v5118_v37, %v1715_v25  ;;  %v3597_v37 = vmov 72  }
 0x312   :  { %3409 = vset.pattern.permute.xlu1 %v3597_v37 }
 0x313   :  { %v1719_v31 = vmul.f32 %v5215_v56, %v5215_v56  ;;  %v1720_v17 = vmul.f32 %v5218_v40, %v5218_v40  ;;  %1824 = vperm.xlu1 %3409, %v5227_v12  }
 0x315   :  { %v1721_v3 = vadd.f32 %v1720_v17, %v1719_v31 }
 0x317   :  { %1722 = vadd.xlane.f32.xlu2 %v1721_v3 }
 0x31b   :  { %3410 = vset.pattern.permute.xlu1 %v3599_v27 }
 0x31c   :  { %1842 = vperm.xlu1 %3410, %v5227_v12  }
 0x324   :  { %3411 = vset.pattern.permute.xlu1 %v3601_v21 }
 0x325   :  { %1860 = vperm.xlu1 %3411, %v5227_v12  }
 0x32d   :  { %3412 = vset.pattern.permute.xlu1 %v3602_v58  ;;  %v6625_v58 = vld [vmem:[#allocation25_spill] sm:$0xff] }
 0x32e   :  { %1878 = vperm.xlu1 %3412, %v5227_v12  }
 0x32f   :  { %1796 = vperm.xlu2 %3407, %v5227_v12  }
 0x336   :  { %3413 = vset.pattern.permute.xlu1 %v3603_v52  ;;  %v6626_v52 = vld [vmem:[#allocation26_spill] sm:$0xff] }
 0x337   :  { %3408 = vset.pattern.permute.xlu2 %v3600_v6  ;;  %1896 = vperm.xlu1 %3413, %v5227_v12   ;;  %v6623_v6 = vld [vmem:[#allocation23_spill] sm:$0xff] }
 0x338   :  { %1814 = vperm.xlu2 %3408, %v5227_v12  }
 0x33f   :  { %3415 = vset.pattern.permute.xlu1 %v6527_v61 }
 0x340   :  { %3414 = vset.pattern.permute.xlu2 %v6513_v14  ;;  %1925 = vperm.xlu1 %3415, %v5237_v60  }
 0x341   :  { %1915 = vperm.xlu2 %3414, %v5237_v60  }
 0x348   :  { %3417 = vset.pattern.permute.xlu1 %v6559_v26 }
 0x349   :  { %3416 = vset.pattern.permute.xlu2 %v6524_v28  ;;  %1945 = vperm.xlu1 %3417, %v5237_v60  }
 0x34a   :  { %1935 = vperm.xlu2 %3416, %v5237_v60  }
 0x351   :  { %3419 = vset.pattern.permute.xlu1 %v6528_v15 }
 0x352   :  { %3418 = vset.pattern.permute.xlu2 %v6521_v4  ;;  %1975 = vperm.xlu1 %3419, %v5237_v60  }
 0x353   :  { %1965 = vperm.xlu2 %3418, %v5237_v60  }
 0x35a   :  { %3420 = vset.pattern.permute.xlu1 %v6512_v8 }
 0x385   :  { %v5294_v43 = vpop.permute.xlu1 %1824 }
 0x38a   :  { %v1723_v23 = vpop.xlane.xlu2 %1722 }
 0x38b   :  { %v1725_v62 = vrot.slane %v1723_v23, 4 }
 0x38d   :  { %v1727_v20 = vadd.f32 %v1725_v62, %v1723_v23 }
 0x38e   :  { %v5298_v33 = vpop.permute.xlu1 %1842 }
 0x38f   :  { %v1728_v53 = vmul.f32 0.001953125, %v1727_v20 }
 0x391   :  { %v1729_v45 = vadd.f32 1e-05, %v1728_v53 }
 0x393   :  { %3457 = vrsqrt.f32 %v1729_v45  ;;  %vm1736_vm13 = vweird.f32 %v1729_v45 }
 0x397   :  { %v5302_v25 = vpop.permute.xlu1 %1860 }
 0x399   :  { %v3458_v54 = vpop.eup %3457 }
 0x39a   :  { %v1731_v18 = vmul.f32 %v3458_v54, %v1729_v45  ;;  %vm1737_vm5 = vweird.f32 %v3458_v54 }
 0x39b   :  { %vm1738_vm9 = vmor %vm1736_vm13, %vm1737_vm5 }
 0x39c   :  { %v1732_v11 = vmul.f32 %v3458_v54, %v1731_v18  ;;  %v6624_v18 = vld [vmem:[#allocation24_spill] sm:$0xff] }
 0x39e   :  { %v1733_v19 = vmul.f32 0.5, %v1732_v11 }
 0x3a0   :  { %v1734_v51 = vsub.f32 1.5, %v1733_v19 }
 0x3a2   :  { %v1735_v35 = vmul.f32 %v3458_v54, %v1734_v51 }
 0x3a4   :  { %v1739_v24 = vsel %vm1738_vm9, %v3458_v54, %v1735_v35 }
 0x3a5   :  { %v1741_v44 = vrot.slane %v1739_v24, 4 }
 0x3a7   :  { %v1743_v46 = vsel %vm43_vm0, %v1739_v24, %v1741_v44 }
 0x3a8   :  { %1746 = vperm.xlu0 %3406, %v1743_v46  }
 0x41a   :  { %v1747_v48 = vpop.permute.xlu0 %1746 }
 0x41b   :  { %v5259_v13 = vmul.f32 %v1747_v48, %v5215_v56  ;;  %v5262_v47 = vmul.f32 %v1747_v48, %v5218_v40  ;;  %v1797_v56 = vpop.permute.xlu2 %1796  ;;  %v5304_v40 = vpop.permute.xlu1 %1878 }
 0x41d   :  { %1769 = vrot.lane.b32.xlu2 %v5262_v47, %s3529_s21  ;;  %1785 = vrot.lane.b32.xlu1 %v5259_v13, %s3526_s20 }
 0x41e   :  { %1751 = vrot.lane.b32.xlu0 %v5259_v13, %s3522_s18 }
 0x423   :  { %v1815_v31 = vpop.permute.xlu2 %1814  ;;  %v5306_v17 = vpop.permute.xlu1 %1896 }
 0x425   :  { %1833 = vrot.lane.b32.xlu2 %v5262_v47, %s3539_s11  ;;  %1803 = vrot.lane.b32.xlu1 %v5259_v13, %s3545_s22 }
 0x426   :  { %1753 = vrot.lane.b32.xlu0 %v5262_v47, %s3522_s18 }
 0x42b   :  { %v5308_v3 = vpop.permute.xlu2 %1915  ;;  %v5310_v50 = vpop.permute.xlu1 %1925 }
 0x42c   :  { %6618 = vst [vmem:[#allocation52_spill] sm:$0xff] %v5310_v50 }
 0x42d   :  { %1851 = vrot.lane.b32.xlu2 %v5262_v47, %s3549_s29 }
 0x42e   :  { %1767 = vrot.lane.b32.xlu0 %v5259_v13, %s3529_s21 }
 0x433   :  { %v5312_v23 = vpop.permute.xlu2 %1935  ;;  %v5314_v9 = vpop.permute.xlu1 %1945 }
 0x434   :  { %6619 = vst [vmem:[#allocation9_spill] sm:$0xff] %v5312_v23  ;;  %v3618_v23 = vmov 91  }
 0x435   :  { %1869 = vrot.lane.b32.xlu2 %v5262_v47, %s3570_s19  ;;  %6620 = vst [vmem:[#allocation7_spill] sm:$0xff] %v5314_v9  ;;  %v3617_v9 = vmov 90  }
 0x436   :  { %1787 = vrot.lane.b32.xlu0 %v5262_v47, %s3526_s20 }
 0x43b   :  { %v5316_v62 = vpop.permute.xlu2 %1965  ;;  %v5322_v27 = vpop.permute.xlu1 %1975 }
 0x43c   :  { %6621 = vst [vmem:[#allocation10_spill] sm:$0xff] %v5316_v62 }
 0x43d   :  { %1887 = vrot.lane.b32.xlu2 %v5262_v47, %s3554_s9  ;;  %6622 = vst [vmem:[#allocation8_spill] sm:$0xff] %v5322_v27 }
 0x43e   :  { %1805 = vrot.lane.b32.xlu0 %v5262_v47, %s3545_s22 }
 0x446   :  { %1831 = vrot.lane.b32.xlu0 %v5259_v13, %s3539_s11 }
 0x44e   :  { %1849 = vrot.lane.b32.xlu0 %v5259_v13, %s3549_s29 }
 0x456   :  { %1867 = vrot.lane.b32.xlu0 %v5259_v13, %s3570_s19 }
 0x45e   :  { %1885 = vrot.lane.b32.xlu0 %v5259_v13, %s3554_s9 }
 0x466   :  { %1985 = vadd.xlane.f32.xlu2 %v1984_v0 }
 0x477   :  { %v1770_v21 = vpop.permute.xlu2 %1769 }
 0x490   :  { %v1752_v37 = vpop.permute.xlu0 %1751 }
 0x498   :  { %v1754_v20 = vpop.permute.xlu0 %1753 }
 0x499   :  { %v1755_v53 = vsel %vm435_vm15, %v1752_v37, %v1754_v20  ;;  %v1756_v45 = vsel %vm435_vm15, %v1754_v20, %v1752_v37  ;;  %v1786_v20 = vpop.permute.xlu1 %1785 }
 0x49a   :  { %v1757_v54 = vmul.f32 %v1756_v45, %v6623_v6  ;;  %v1758_v11 = vmul.f32 %v1755_v53, %v6624_v18 }
 0x49c   :  { %v1759_v24 = vmax.f32 %v1757_v54, 0.0  ;;  %v1760_v44 = vmax.f32 %v1758_v11, 0.0  ;;  %v6627_v11 = vld [vmem:[#allocation27_spill] sm:$0xff] }
 0x49e   :  { %v1765_v45 = vmul.f32 %v1763_v10, %v1759_v24  ;;  %v1766_v22 = vmul.f32 %v1763_v10, %v1760_v44 }
 0x4a0   :  { %v1768_v19 = vpop.permute.xlu0 %1767 }
 0x4a1   :  { %v1771_v51 = vsel %vm479_vm3, %v1768_v19, %v1770_v21  ;;  %v1772_v35 = vsel %vm479_vm3, %v1770_v21, %v1768_v19  ;;  %v6628_v19 = vld [vmem:[#allocation28_spill] sm:$0xff]  ;;  %v1804_v10 = vpop.permute.xlu1 %1803 }
 0x4a2   :  { %v1773_v46 = vmul.f32 %v1772_v35, %v6625_v58  ;;  %v1774_v48 = vmul.f32 %v1771_v51, %v6626_v52 }
 0x4a4   :  { %v1775_v0 = vmax.f32 %v1773_v46, 0.0  ;;  %v1776_v37 = vmax.f32 %v1774_v48, 0.0 }
 0x4a6   :  { %v1781_v53 = vmul.f32 %v1779_v49, %v1775_v0  ;;  %v1782_v1 = vmul.f32 %v1779_v49, %v1776_v37  ;;  %v1834_v37 = vpop.permute.xlu2 %1833 }
 0x4a8   :  { %v1783_v63 = vadd.f32 %v1781_v53, %v1765_v45  ;;  %v1784_v5 = vadd.f32 %v1782_v1, %v1766_v22  ;;  %v1788_v2 = vpop.permute.xlu0 %1787  ;;  %v6630_v45 = vld [vmem:[#allocation32_spill] sm:$0xff] }
 0x4a9   :  { %v1789_v36 = vsel %vm525_vm12, %v1786_v20, %v1788_v2  ;;  %v1790_v54 = vsel %vm525_vm12, %v1788_v2, %v1786_v20  ;;  %v6629_v2 = vld [vmem:[#allocation31_spill] sm:$0xff] }
 0x4aa   :  { %v1791_v21 = vmul.f32 %v1790_v54, %v6627_v11  ;;  %v1792_v51 = vmul.f32 %v1789_v36, %v6628_v19  ;;  %v1822_v36 = vmax.f32 %v5262_v47, 0.0 }
 0x4ac   :  { %v1793_v35 = vmax.f32 %v1791_v21, 0.0  ;;  %v1794_v46 = vmax.f32 %v1792_v51, 0.0 }
 0x4ae   :  { %v1799_v48 = vmul.f32 %v1797_v56, %v1793_v35  ;;  %v1800_v24 = vmul.f32 %v1797_v56, %v1794_v46 }
 0x4b0   :  { %v1801_v44 = vadd.f32 %v1799_v48, %v1783_v63  ;;  %v1802_v49 = vadd.f32 %v1800_v24, %v1784_v5  ;;  %v1806_v0 = vpop.permute.xlu0 %1805  ;;  %v1821_v5 = vmax.f32 %v5259_v13, 0.0  ;;  %v1828_v63 = vmul.f32 %v5294_v43, %v1822_v36 }
 0x4b1   :  { %v1807_v22 = vsel %vm665_vm1, %v1804_v10, %v1806_v0  ;;  %v1808_v1 = vsel %vm665_vm1, %v1806_v0, %v1804_v10 }
 0x4b2   :  { %v1809_v20 = vmul.f32 %v1808_v1, %v6629_v2  ;;  %v1810_v53 = vmul.f32 %v1807_v22, %v6630_v45  ;;  %v6631_v22 = vld [vmem:[#allocation34_spill] sm:$0xff]  ;;  %v6632_v1 = vld [vmem:[#allocation35_spill] sm:$0xff] }
 0x4b4   :  { %v1811_v54 = vmax.f32 %v1809_v20, 0.0  ;;  %v1812_v21 = vmax.f32 %v1810_v53, 0.0  ;;  %v1852_v53 = vpop.permute.xlu2 %1851 }
 0x4b6   :  { %v1817_v56 = vmul.f32 %v1815_v31, %v1811_v54  ;;  %v1818_v51 = vmul.f32 %v1815_v31, %v1812_v21  ;;  %v1827_v31 = vmul.f32 %v5294_v43, %v1821_v5  ;;  %v6634_v43 = vld [vmem:[#allocation43_spill] sm:$0xff] }
 0x4b8   :  { %v1819_v35 = vadd.f32 %v1817_v56, %v1801_v44  ;;  %v1820_v46 = vadd.f32 %v1818_v51, %v1802_v49  ;;  %v1832_v48 = vpop.permute.xlu0 %1831 }
 0x4b9   :  { %v1835_v24 = vsel %vm743_vm2, %v1832_v48, %v1834_v37  ;;  %v1836_v10 = vsel %vm743_vm2, %v1834_v37, %v1832_v48 }
 0x4ba   :  { %v1830_v0 = vadd.f32 %v1828_v63, %v1820_v46  ;;  %v1837_v47 = vmul.f32 %v1835_v24, %v6631_v22  ;;  %v1838_v20 = vmul.f32 %v1836_v10, %v6632_v1  ;;  %v1829_v36 = vadd.f32 %v1827_v31, %v1819_v35  ;;  %v6633_v46 = vld [vmem:[#allocation42_spill] sm:$0xff] }
 0x4bc   :  { %v1839_v13 = vmax.f32 %v1837_v47, 0.0  ;;  %v1840_v54 = vmax.f32 %v1838_v20, 0.0  ;;  %v1870_v35 = vpop.permute.xlu2 %1869 }
 0x4be   :  { %v1845_v44 = vmul.f32 %v5298_v33, %v1839_v13  ;;  %v1846_v49 = vmul.f32 %v5298_v33, %v1840_v54  ;;  %v6635_v54 = vld [vmem:[#allocation44_spill] sm:$0xff] }
 0x4c0   :  { %v1847_v21 = vadd.f32 %v1845_v44, %v1829_v36  ;;  %v1848_v56 = vadd.f32 %v1846_v49, %v1830_v0  ;;  %v1850_v51 = vpop.permute.xlu0 %1849  ;;  %v6636_v44 = vld [vmem:[#allocation45_spill] sm:$0xff] }
 0x4c1   :  { %v1853_v37 = vsel %vm883_vm6, %v1850_v51, %v1852_v53  ;;  %v1854_v63 = vsel %vm883_vm6, %v1852_v53, %v1850_v51 }
 0x4c2   :  { %v1855_v48 = vmul.f32 %v1853_v37, %v6633_v46  ;;  %v1856_v5 = vmul.f32 %v1854_v63, %v6634_v43 }
 0x4c4   :  { %v1857_v24 = vmax.f32 %v1855_v48, 0.0  ;;  %v1858_v10 = vmax.f32 %v1856_v5, 0.0 }
 0x4c6   :  { %v1863_v47 = vmul.f32 %v5302_v25, %v1857_v24  ;;  %v1864_v33 = vmul.f32 %v5302_v25, %v1858_v10  ;;  %v1888_v25 = vpop.permute.xlu2 %1887 }
 0x4c8   :  { %v1865_v20 = vadd.f32 %v1863_v47, %v1847_v21  ;;  %v1866_v0 = vadd.f32 %v1864_v33, %v1848_v56  ;;  %v1868_v31 = vpop.permute.xlu0 %1867  ;;  %v6638_v33 = vld [vmem:[#allocation50_spill] sm:$0xff] }
 0x4c9   :  { %v1871_v13 = vsel %vm929_vm4, %v1868_v31, %v1870_v35  ;;  %v1872_v53 = vsel %vm929_vm4, %v1870_v35, %v1868_v31  ;;  %v6637_v35 = vld [vmem:[#allocation49_spill] sm:$0xff] }
 0x4ca   :  { %v1873_v36 = vmul.f32 %v1871_v13, %v6635_v54  ;;  %v1874_v49 = vmul.f32 %v1872_v53, %v6636_v44 }
 0x4cc   :  { %v1875_v51 = vmax.f32 %v1873_v36, 0.0  ;;  %v1876_v37 = vmax.f32 %v1874_v49, 0.0 }
 0x4ce   :  { %v1881_v63 = vmul.f32 %v5304_v40, %v1875_v51  ;;  %v1882_v48 = vmul.f32 %v5304_v40, %v1876_v37 }
 0x4d0   :  { %v1883_v21 = vadd.f32 %v1881_v63, %v1865_v20  ;;  %v1884_v56 = vadd.f32 %v1882_v48, %v1866_v0  ;;  %v1886_v5 = vpop.permute.xlu0 %1885 }
 0x4d1   :  { %v1889_v24 = vsel %vm975_vm14, %v1886_v5, %v1888_v25  ;;  %v1890_v10 = vsel %vm975_vm14, %v1888_v25, %v1886_v5  ;;  %v3604_v5 = vmov 78  }
 0x4d2   :  { %v1891_v47 = vmul.f32 %v1889_v24, %v6637_v35  ;;  %v1892_v31 = vmul.f32 %v1890_v10, %v6638_v33  ;;  %3422 = vset.pattern.permute.xlu0 %v3604_v5 }
 0x4d4   :  { %v1893_v13 = vmax.f32 %v1891_v47, 0.0  ;;  %v1894_v53 = vmax.f32 %v1892_v31, 0.0 }
 0x4d6   :  { %v1899_v36 = vmul.f32 %v5306_v17, %v1893_v13  ;;  %v1900_v40 = vmul.f32 %v5306_v17, %v1894_v53 }
 0x4d8   :  { %v5380_v49 = vadd.f32 %v1899_v36, %v1883_v21  ;;  %v5382_v20 = vadd.f32 %v1900_v40, %v1884_v56  ;;  %v3605_v56 = vmov 81  }
 0x4d9   :  { %v1986_v0 = vpop.xlane.xlu2 %1985 }
 0x4da   :  { %v1988_v51 = vrot.slane %v1986_v0, 4 }
 0x4dc   :  { %v1990_v37 = vadd.f32 %v1988_v51, %v1986_v0 }
 0x4de   :  { %v1991_v63 = vmul.f32 0.001953125, %v1990_v37 }
 0x4e0   :  { %v1993_v48 = vrot.slane %v1991_v63, 4 }
 0x4e2   :  { %v1995_v25 = vsel %vm43_vm0, %v1991_v63, %v1993_v48 }
 0x4e3   :  { %1998 = vperm.xlu1 %3420, %v1995_v25  }
 0x555   :  { %v1999_v24 = vpop.permute.xlu1 %1998 }
 0x556   :  { %v2001_v10 = vsub.f32 %v5193_v39, %v1999_v24  ;;  %v2002_v47 = vsub.f32 %v5195_v29, %v1999_v24 }
 0x558   :  { %v2003_v17 = vmul.f32 %v2001_v10, %v2001_v10  ;;  %v2004_v21 = vmul.f32 %v2002_v47, %v2002_v47 }
 0x55a   :  { %v2005_v31 = vadd.f32 %v2004_v21, %v2003_v17  ;;  %v3606_v17 = vmov 77   ;;  %v3607_v21 = vmov 79  }
 0x55b   :  { %3423 = vset.pattern.permute.xlu2 %v3607_v21 }
 0x55c   :  { %2006 = vadd.xlane.f32.xlu0 %v2005_v31 }
 0x570   :  { %2062 = vperm.xlu0 %3422, %v5227_v12  }
 0x578   :  { %3425 = vset.pattern.permute.xlu0 %v3605_v56 }
 0x579   :  { %2116 = vperm.xlu0 %3425, %v5227_v12  }
 0x581   :  { %3426 = vset.pattern.permute.xlu0 %v6512_v8 }
 0x582   :  { %1907 = vperm.xlu0 %3426, %v5237_v60  }
 0x5cf   :  { %v2007_v13 = vpop.xlane.xlu0 %2006 }
 0x5d0   :  { %v2009_v53 = vrot.slane %v2007_v13, 4 }
 0x5d2   :  { %v2011_v36 = vadd.f32 %v2009_v53, %v2007_v13  ;;  %v3610_v53 = vmov 83  }
 0x5d4   :  { %v2012_v39 = vmul.f32 0.001953125, %v2011_v36  ;;  %v3611_v36 = vmov 84  }
 0x5d6   :  { %v2013_v40 = vadd.f32 1e-05, %v2012_v39  ;;  %v3612_v39 = vmov 85  }
 0x5d8   :  { %3459 = vrsqrt.f32 %v2013_v40  ;;  %vm2020_vm13 = vweird.f32 %v2013_v40 }
 0x5de   :  { %v3460_v29 = vpop.eup %3459 }
 0x5df   :  { %v2015_v0 = vmul.f32 %v3460_v29, %v2013_v40  ;;  %vm2021_vm9 = vweird.f32 %v3460_v29  ;;  %v3613_v40 = vmov 86  }
 0x5e0   :  { %vm2022_vm5 = vmor %vm2020_vm13, %vm2021_vm9  ;;  %vm6667_vm9 = vcmp.lt.s32.totalorder %v3804_v55, 14 }
 0x5e1   :  { %v2016_v51 = vmul.f32 %v3460_v29, %v2015_v0  ;;  %vm6668_vm13 = vmmov %vm6667_vm9 }
 0x5e2   :  { %v2063_v0 = vpop.permute.xlu0 %2062 }
 0x5e3   :  { %v2017_v37 = vmul.f32 0.5, %v2016_v51  ;;  %v3615_v51 = vmov 89  }
 0x5e5   :  { %v2018_v63 = vsub.f32 1.5, %v2017_v37 }
 0x5e7   :  { %v2019_v48 = vmul.f32 %v3460_v29, %v2018_v63  ;;  %v3616_v63 = vmov 88  }
 0x5e9   :  { %v2023_v25 = vsel %vm2022_vm5, %v3460_v29, %v2019_v48  ;;  %v3614_v29 = vmov 87   ;;  %vm6672_vm5 = vcmp.lt.s32.totalorder %v3804_v55, 2 }
 0x5ea   :  { %v2025_v5 = vrot.slane %v2023_v25, 4 }
 0x5eb   :  { %v5460_v48 = vpop.permute.xlu0 %2116 }
 0x5ec   :  { %v2027_v24 = vsel %vm43_vm0, %v2023_v25, %v2025_v5 }
 0x5ed   :  { %2030 = vperm.xlu1 %3420, %v2027_v24  }
 0x5f4   :  { %v5475_v24 = vpop.permute.xlu0 %1907 }
 0x5f5   :  { %3421 = vset.pattern.permute.xlu1 %v3606_v17 }
 0x5f6   :  { %2046 = vperm.xlu1 %3421, %v5227_v12  }
 0x65f   :  { %v2031_v31 = vpop.permute.xlu1 %2030 }
 0x660   :  { %v5393_v56 = vmul.f32 %v2031_v31, %v2001_v10  ;;  %v5395_v13 = vmul.f32 %v2031_v31, %v2002_v47  ;;  %v3608_v10 = vmov 80   ;;  %v3609_v47 = vmov 82  }
 0x661   :  { %3424 = vset.pattern.permute.xlu1 %v3608_v10 }
 0x662   :  { %2143 = vrot.lane.b32.xlu0 %v5395_v13, %s3522_s18  ;;  %2051 = vrot.lane.b32.xlu2 %v5393_v56, %s3508_s13 }
 0x663   :  { %2035 = vrot.lane.b32.xlu1 %v5393_v56, %s3506_s12 }
 0x668   :  { %v2047_v5 = vpop.permute.xlu1 %2046 }
 0x66a   :  { %2161 = vrot.lane.b32.xlu0 %v5395_v13, %s3529_s21  ;;  %2080 = vperm.xlu2 %3423, %v5227_v12  }
 0x66b   :  { %2037 = vrot.lane.b32.xlu1 %v5395_v13, %s3506_s12  ;;  %s6639_s12 = smov 97  }
 0x672   :  { %2179 = vrot.lane.b32.xlu0 %v5395_v13, %s3526_s20  ;;  %2089 = vrot.lane.b32.xlu2 %v5395_v13, %s3516_s16 }
 0x673   :  { %2053 = vrot.lane.b32.xlu1 %v5395_v13, %s3508_s13  ;;  %3427 = vset.pattern.permute.xlu2 %v3609_v47  ;;  %s6640_s13 = smov 96  }
 0x67a   :  { %2197 = vrot.lane.b32.xlu0 %v5395_v13, %s3536_s26  ;;  %2105 = vrot.lane.b32.xlu2 %v5393_v56, %s3514_s15 }
 0x67b   :  { %2069 = vrot.lane.b32.xlu1 %v5393_v56, %s3511_s14 }
 0x682   :  { %2215 = vrot.lane.b32.xlu0 %v5395_v13, %s3533_s23  ;;  %2123 = vrot.lane.b32.xlu2 %v5393_v56, %s3519_s17 }
 0x683   :  { %2071 = vrot.lane.b32.xlu1 %v5395_v13, %s3511_s14 }
 0x68a   :  { %2233 = vrot.lane.b32.xlu0 %v5395_v13, %s3545_s22  ;;  %2134 = vperm.xlu2 %3427, %v5227_v12  }
 0x68b   :  { %2087 = vrot.lane.b32.xlu1 %v5393_v56, %s3516_s16 }
 0x692   :  { %2259 = vrot.lane.b32.xlu0 %v5393_v56, %s3539_s11  ;;  %3428 = vset.pattern.permute.xlu2 %v3610_v53 }
 0x693   :  { %2098 = vperm.xlu1 %3424, %v5227_v12   ;;  %2152 = vperm.xlu2 %3428, %v5227_v12  }
 0x69a   :  { %2277 = vrot.lane.b32.xlu0 %v5393_v56, %s3543_s25 }
 0x69b   :  { %2107 = vrot.lane.b32.xlu1 %v5395_v13, %s3514_s15  ;;  %3429 = vset.pattern.permute.xlu2 %v3611_v36 }
 0x69c   :  { %2170 = vperm.xlu2 %3429, %v5227_v12   ;;  %3434 = vset.pattern.permute.xlu1 %v3615_v51 }
 0x6a2   :  { %2295 = vrot.lane.b32.xlu0 %v5393_v56, %s3547_s28 }
 0x6a3   :  { %2125 = vrot.lane.b32.xlu1 %v5395_v13, %s3519_s17 }
 0x6a4   :  { %3430 = vset.pattern.permute.xlu2 %v3612_v39 }
 0x6a5   :  { %2188 = vperm.xlu2 %3430, %v5227_v12  }
 0x6aa   :  { %2313 = vrot.lane.b32.xlu0 %v5393_v56, %s3549_s29 }
 0x6ab   :  { %2141 = vrot.lane.b32.xlu1 %v5393_v56, %s3522_s18 }
 0x6ad   :  { %3431 = vset.pattern.permute.xlu2 %v3613_v40  ;;  %v6641_v40 = vld [vmem:[#allocation17_spill] sm:$0xff] }
 0x6ae   :  { %2206 = vperm.xlu2 %3431, %v5227_v12  }
 0x6b2   :  { %2331 = vrot.lane.b32.xlu0 %v5393_v56, %s3570_s19 }
 0x6b3   :  { %2159 = vrot.lane.b32.xlu1 %v5393_v56, %s3529_s21  ;;  %s3161_s21 = sld [smem:[#allocation2 + $0x2]] }
 0x6b6   :  { %3432 = vset.pattern.permute.xlu2 %v3614_v29  ;;  %v6642_v29 = vperm.slane %v6641_v40, 0 }
 0x6b7   :  { %2224 = vperm.xlu2 %3432, %v5227_v12  }
 0x6ba   :  { %2349 = vrot.lane.b32.xlu0 %v5393_v56, %s3554_s9 }
 0x6bb   :  { %2177 = vrot.lane.b32.xlu1 %v5393_v56, %s3526_s20 }
 0x6bc   :  { %v2052_v37 = vpop.permute.xlu2 %2051 }
 0x6bf   :  { %3433 = vset.pattern.permute.xlu2 %v3616_v63  ;;  %v6643_v63 = vperm.slane %v6641_v40, 1  ;;  %v6644_v40 = vld [vmem:[#allocation20_spill] sm:$0xff] }
 0x6c0   :  { %2242 = vperm.xlu2 %3433, %v5227_v12  }
 0x6c2   :  { %2367 = vrot.lane.b32.xlu0 %v5393_v56, %s3576_s30 }
 0x6c3   :  { %2195 = vrot.lane.b32.xlu1 %v5393_v56, %s3536_s26  ;;  %s3165_s26 = sld [smem:[#allocation2 + $0x6]] }
 0x6c4   :  { %v5466_v25 = vpop.permute.xlu2 %2080 }
 0x6c8   :  { %2261 = vrot.lane.b32.xlu2 %v5395_v13, %s3539_s11  ;;  %s3164_s11 = sld [smem:[#allocation2 + $0x5]] }
 0x6c9   :  { %3448 = vset.pattern.permute.xlu2 %v6513_v14 }
 0x6ca   :  { %2385 = vrot.lane.b32.xlu0 %v5393_v56, %s3561_s10 }
 0x6cb   :  { %2213 = vrot.lane.b32.xlu1 %v5393_v56, %s3533_s23  ;;  %s3163_s23 = sld [smem:[#allocation2 + $0x4]] }
 0x6cc   :  { %v5477_v17 = vpop.permute.xlu2 %2089 }
 0x6d0   :  { %2279 = vrot.lane.b32.xlu2 %v5395_v13, %s3543_s25  ;;  %s3162_s25 = sld [smem:[#allocation2 + $0x3]] }
 0x6d2   :  { %2403 = vrot.lane.b32.xlu0 %v5393_v56, %s6639_s12 }
 0x6d3   :  { %2231 = vrot.lane.b32.xlu1 %v5393_v56, %s3545_s22  ;;  %s3166_s22 = sld [smem:[#allocation2 + $0x7]] }
 0x6d4   :  { %v5485_v14 = vpop.permute.xlu2 %2105  ;;  %v5487_v21 = vpop.permute.xlu0 %2143 }
 0x6d5   :  { %v2036_v31 = vpop.permute.xlu1 %2035 }
 0x6d8   :  { %2297 = vrot.lane.b32.xlu2 %v5395_v13, %s3547_s28 }
 0x6da   :  { %2421 = vrot.lane.b32.xlu0 %v5393_v56, %s6640_s13 }
 0x6db   :  { %2252 = vperm.xlu1 %3434, %v5227_v12  }
 0x6dc   :  { %v5494_v10 = vpop.permute.xlu2 %2123  ;;  %v5496_v47 = vpop.permute.xlu0 %2161 }
 0x6dd   :  { %v2038_v53 = vpop.permute.xlu1 %2037 }
 0x6de   :  { %v2039_v36 = vsel %vm209_vm7, %v2036_v31, %v2038_v53  ;;  %v2040_v39 = vsel %vm209_vm7, %v2038_v53, %v2036_v31  ;;  %vm6653_vm7 = vcmp.lt.s32.totalorder %v3804_v55, 30 }
 0x6df   :  { %v2041_v51 = vmul.f32 %v2040_v39, %v6642_v29  ;;  %v2042_v27 = vmul.f32 %v2039_v36, %v6643_v63  ;;  %v6645_v29 = vperm.slane %v6644_v40, 0 }
 0x6e0   :  { %2315 = vrot.lane.b32.xlu2 %v5395_v13, %s3549_s29 }
 0x6e1   :  { %v2043_v32 = vmax.f32 %v2041_v51, 0.0  ;;  %v2044_v62 = vmax.f32 %v2042_v27, 0.0 }
 0x6e2   :  { %2439 = vrot.lane.b32.xlu0 %v5393_v56, %s3586_s8 }
 0x6e3   :  { %v2049_v34 = vmul.f32 %v2047_v5, %v2043_v32  ;;  %v2050_v59 = vmul.f32 %v2047_v5, %v2044_v62  ;;  %3435 = vset.pattern.permute.xlu1 %v3617_v9  ;;  %v6646_v32 = vperm.slane %v6644_v40, 1  ;;  %v5535_v40 = vld [vmem:[%s6298_s4 + $0x28] sm:$0xff] }
 0x6e4   :  { %2270 = vperm.xlu1 %3435, %v5227_v12   ;;  %v5511_v31 = vpop.permute.xlu2 %2134  ;;  %v5513_v53 = vpop.permute.xlu0 %2179 }
 0x6e5   :  { %v2054_v39 = vpop.permute.xlu1 %2053 }
 0x6e6   :  { %v2055_v36 = vsel %vm247_vm10, %v2052_v37, %v2054_v39  ;;  %v2056_v27 = vsel %vm247_vm10, %v2054_v39, %v2052_v37  ;;  %vm6658_vm10 = vcmp.lt.s32.totalorder %v3804_v55, 18 }
 0x6e7   :  { %v2057_v51 = vmul.f32 %v2056_v27, %v6645_v29  ;;  %v2058_v62 = vmul.f32 %v2055_v36, %v6646_v32  ;;  %v6647_v29 = vld [vmem:[#allocation18_spill] sm:$0xff] }
 0x6e8   :  { %2333 = vrot.lane.b32.xlu2 %v5395_v13, %s3570_s19 }
 0x6e9   :  { %v2059_v9 = vmax.f32 %v2057_v51, 0.0  ;;  %v2060_v5 = vmax.f32 %v2058_v62, 0.0  ;;  %v6648_v51 = vperm.slane %v6647_v29, 0  ;;  %v6649_v62 = vperm.slane %v6647_v29, 1 }
 0x6ea   :  { %2457 = vrot.lane.b32.xlu0 %v5393_v56, %s3569_s7 }
 0x6eb   :  { %v2065_v63 = vmul.f32 %v2063_v0, %v2059_v9  ;;  %v2066_v16 = vmul.f32 %v2063_v0, %v2060_v5 }
 0x6ec   :  { %3436 = vset.pattern.permute.xlu1 %v3618_v23  ;;  %v5527_v41 = vpop.permute.xlu0 %2197  ;;  %v3619_v23 = vmov 92  }
 0x6ed   :  { %v2067_v37 = vadd.f32 %v2065_v63, %v2049_v34  ;;  %v2068_v39 = vadd.f32 %v2066_v16, %v2050_v59  ;;  %2288 = vperm.xlu1 %3436, %v5227_v12   ;;  %v2070_v27 = vpop.permute.xlu1 %2069  ;;  %v5530_v36 = vpop.permute.xlu2 %2152 }
 0x6f0   :  { %2351 = vrot.lane.b32.xlu2 %v5395_v13, %s3554_s9 }
 0x6f2   :  { %2479 = vperm.xlu0 %3426, %v5535_v40  }
 0x6f4   :  { %v5551_v5 = vpop.permute.xlu0 %2215 }
 0x6f5   :  { %3437 = vset.pattern.permute.xlu1 %v3619_v23  ;;  %v2072_v0 = vpop.permute.xlu1 %2071 }
 0x6f6   :  { %v2073_v59 = vsel %vm273_vm8, %v2070_v27, %v2072_v0  ;;  %v2074_v34 = vsel %vm273_vm8, %v2072_v0, %v2070_v27  ;;  %2306 = vperm.xlu1 %3437, %v5227_v12   ;;  %v5545_v16 = vpop.permute.xlu2 %2170  ;;  %vm6654_vm8 = vmmov %vm6653_vm7 }
 0x6f7   :  { %v2075_v32 = vmul.f32 %v2074_v34, %v6648_v51  ;;  %v2076_v9 = vmul.f32 %v2073_v59, %v6649_v62  ;;  %v3475_v34 = vld [vmem:[%s6298_s4 + $0x10] sm:$0xff] }
 0x6f8   :  { %2369 = vrot.lane.b32.xlu2 %v5395_v13, %s3576_s30 }
 0x6f9   :  { %v2077_v63 = vmax.f32 %v2075_v32, 0.0  ;;  %v2078_v23 = vmax.f32 %v2076_v9, 0.0  ;;  %v3620_v32 = vmov 93   ;;  %v6650_v9 = vld [vmem:[#allocation21_spill] sm:$0xff] }
 0x6fa   :  { %3447 = vset.pattern.permute.xlu0 %v6560_v38 }
 0x6fb   :  { %v2083_v27 = vmul.f32 %v5466_v25, %v2077_v63  ;;  %v2084_v0 = vmul.f32 %v5466_v25, %v2078_v23  ;;  %1590 = vperm.xlu0 %3447, %v3475_v34   ;;  %v6651_v63 = vperm.slane %v6650_v9, 0 }
 0x6fd   :  { %v2088_v29 = vpop.permute.xlu1 %2087  ;;  %v2085_v59 = vadd.f32 %v2083_v27, %v2067_v37  ;;  %v2086_v51 = vadd.f32 %v2084_v0, %v2068_v39  ;;  %v6652_v37 = vperm.slane %v6650_v9, 1  ;;  %v5576_v27 = vpop.permute.xlu0 %2233 }
 0x6fe   :  { %v2091_v62 = vsel %vm315_vm11, %v2088_v29, %v5477_v17  ;;  %v2092_v38 = vsel %vm315_vm11, %v5477_v17, %v2088_v29  ;;  %3438 = vset.pattern.permute.xlu1 %v3620_v32  ;;  %vm6659_vm11 = vmmov %vm6658_vm10 }
 0x6ff   :  { %2324 = vperm.xlu1 %3438, %v5227_v12   ;;  %v5568_v25 = vpop.permute.xlu2 %2188  ;;  %v2093_v23 = vmul.f32 %v2092_v38, %v6651_v63  ;;  %v2094_v39 = vmul.f32 %v2091_v62, %v6652_v37 }
 0x700   :  { %2387 = vrot.lane.b32.xlu2 %v5395_v13, %s3561_s10 }
 0x701   :  { %v2095_v17 = vmax.f32 %v2093_v23, 0.0  ;;  %v2096_v0 = vmax.f32 %v2094_v39, 0.0  ;;  %v3622_v39 = vmov 95  }
 0x703   :  { %1955 = vperm.xlu0 %3447, %v5237_v60  }
 0x705   :  { %v2099_v34 = vpop.permute.xlu1 %2098  ;;  %v2260_v38 = vpop.permute.xlu0 %2259 }
 0x706   :  { %v2101_v29 = vmul.f32 %v2099_v34, %v2095_v17  ;;  %v2102_v32 = vmul.f32 %v2099_v34, %v2096_v0 }
 0x707   :  { %3439 = vset.pattern.permute.xlu1 %v3621_v7 }
 0x708   :  { %v2103_v30 = vadd.f32 %v2101_v29, %v2085_v59  ;;  %v2104_v50 = vadd.f32 %v2102_v32, %v2086_v51  ;;  %2342 = vperm.xlu1 %3439, %v5227_v12   ;;  %2405 = vrot.lane.b32.xlu2 %v5395_v13, %s6639_s12  ;;  %v5582_v62 = vpop.permute.xlu2 %2206  ;;  %v6655_v59 = vld [vmem:[#allocation19_spill] sm:$0xff] }
 0x709   :  { %v6656_v51 = vperm.slane %v6655_v59, 0  ;;  %v6657_v23 = vperm.slane %v6655_v59, 1 }
 0x70b   :  { %2527 = vperm.xlu0 %3447, %v5535_v40  }
 0x70d   :  { %v2108_v60 = vpop.permute.xlu1 %2107 }
 0x70e   :  { %v2109_v9 = vsel %vm6653_vm7, %v5485_v14, %v2108_v60  ;;  %v2110_v7 = vsel %vm6654_vm8, %v2108_v60, %v5485_v14  ;;  %vm6673_vm7 = vmmov %vm6672_vm5  ;;  %vm6689_vm8 = vcmp.lt.s32.totalorder %v3804_v55, 97 }
 0x70f   :  { %v2111_v63 = vmul.f32 %v2110_v7, %v6656_v51  ;;  %v2112_v37 = vmul.f32 %v2109_v9, %v6657_v23  ;;  %v2278_v9 = vpop.permute.xlu0 %2277 }
 0x710   :  { %3440 = vset.pattern.permute.xlu1 %v3622_v39  ;;  %2423 = vrot.lane.b32.xlu2 %v5395_v13, %s6640_s13 }
 0x711   :  { %v2113_v17 = vmax.f32 %v2111_v63, 0.0  ;;  %v2114_v0 = vmax.f32 %v2112_v37, 0.0  ;;  %2360 = vperm.xlu1 %3440, %v5227_v12   ;;  %v5598_v34 = vpop.permute.xlu2 %2224  ;;  %v6660_v63 = vld [vmem:[#allocation22_spill] sm:$0xff] }
 0x712   :  { %v6661_v23 = vperm.slane %v6660_v63, 0  ;;  %v6662_v39 = vperm.slane %v6660_v63, 1 }
 0x713   :  { %v2119_v29 = vmul.f32 %v5460_v48, %v2113_v17  ;;  %v2120_v14 = vmul.f32 %v5460_v48, %v2114_v0  ;;  %3456 = vset.pattern.permute.xlu0 %v6512_v8  ;;  %v3623_v17 = vmov 96  }
 0x715   :  { %v2121_v32 = vadd.f32 %v2119_v29, %v2103_v30  ;;  %v2122_v60 = vadd.f32 %v2120_v14, %v2104_v50  ;;  %v2126_v7 = vpop.permute.xlu1 %2125 }
 0x716   :  { %v2127_v59 = vsel %vm6658_vm10, %v5494_v10, %v2126_v7  ;;  %v2128_v51 = vsel %vm6659_vm11, %v2126_v7, %v5494_v10  ;;  %vm6690_vm10 = vmmov %vm6689_vm8  ;;  %vm6691_vm11 = vcmp.lt.s32.totalorder %v3804_v55, 96 }
 0x717   :  { %v2129_v37 = vmul.f32 %v2128_v51, %v6661_v23  ;;  %v2130_v48 = vmul.f32 %v2127_v59, %v6662_v39  ;;  %v2296_v23 = vpop.permute.xlu0 %2295 }
 0x718   :  { %2441 = vrot.lane.b32.xlu2 %v5395_v13, %s3586_s8 }
 0x719   :  { %v2131_v30 = vmax.f32 %v2129_v37, 0.0  ;;  %v2132_v50 = vmax.f32 %v2130_v48, 0.0  ;;  %3441 = vset.pattern.permute.xlu1 %v3623_v17 }
 0x71a   :  { %2378 = vperm.xlu1 %3441, %v5227_v12   ;;  %v5616_v0 = vpop.permute.xlu2 %2242 }
 0x71b   :  { %v2137_v29 = vmul.f32 %v5511_v31, %v2131_v30  ;;  %v2138_v10 = vmul.f32 %v5511_v31, %v2132_v50 }
 0x71d   :  { %v2139_v14 = vadd.f32 %v2137_v29, %v2121_v32  ;;  %v2140_v7 = vadd.f32 %v2138_v10, %v2122_v60  ;;  %v2142_v51 = vpop.permute.xlu1 %2141  ;;  %v3624_v60 = vmov 97  }
 0x71e   :  { %v2145_v59 = vsel %vm435_vm15, %v2142_v51, %v5487_v21  ;;  %v2146_v63 = vsel %vm435_vm15, %v5487_v21, %v2142_v51  ;;  %vm6663_vm15 = vcmp.lt.s32.totalorder %v3804_v55, 126 }
 0x71f   :  { %v2147_v37 = vmul.f32 %v2146_v63, %v6623_v6  ;;  %v2148_v39 = vmul.f32 %v2145_v59, %v6624_v18 }
 0x720   :  { %2459 = vrot.lane.b32.xlu2 %v5395_v13, %s3569_s7 }
 0x721   :  { %v2149_v31 = vmax.f32 %v2147_v37, 0.0  ;;  %v2150_v32 = vmax.f32 %v2148_v39, 0.0 }
 0x722   :  { %3442 = vset.pattern.permute.xlu1 %v3624_v60  ;;  %v2262_v48 = vpop.permute.xlu2 %2261 }
 0x723   :  { %v2155_v30 = vmul.f32 %v5530_v36, %v2149_v31  ;;  %v2156_v50 = vmul.f32 %v5530_v36, %v2150_v32  ;;  %v5634_v21 = vsel %vm743_vm2, %v2260_v38, %v2262_v48  ;;  %v5638_v6 = vsel %vm743_vm2, %v2262_v48, %v2260_v38  ;;  %2396 = vperm.xlu1 %3442, %v5227_v12   ;;  %v2314_v38 = vpop.permute.xlu0 %2313 }
 0x724   :  { %vm6665_vm2 = vcmp.lt.s32.totalorder %v3804_v55, 114 }
 0x725   :  { %v2157_v18 = vadd.f32 %v2155_v30, %v2139_v14  ;;  %v2158_v17 = vadd.f32 %v2156_v50, %v2140_v7  ;;  %v2160_v29 = vpop.permute.xlu1 %2159 }
 0x726   :  { %v2163_v10 = vsel %vm479_vm3, %v2160_v29, %v5496_v47  ;;  %v2164_v36 = vsel %vm479_vm3, %v5496_v47, %v2160_v29  ;;  %vm6664_vm3 = vmmov %vm6663_vm15 }
 0x727   :  { %v2165_v51 = vmul.f32 %v2164_v36, %v6625_v58  ;;  %v2166_v59 = vmul.f32 %v2163_v10, %v6626_v52  ;;  %v3625_v58 = vmov 98  }
 0x728   :  { %2487 = vperm.xlu2 %3448, %v5535_v40  }
 0x729   :  { %v2167_v63 = vmax.f32 %v2165_v51, 0.0  ;;  %v2168_v37 = vmax.f32 %v2166_v59, 0.0 }
 0x72a   :  { %v2280_v14 = vpop.permute.xlu2 %2279 }
 0x72b   :  { %v2173_v7 = vmul.f32 %v5545_v16, %v2167_v63  ;;  %v2174_v39 = vmul.f32 %v5545_v16, %v2168_v37  ;;  %v5654_v31 = vsel %vm6663_vm15, %v2278_v9, %v2280_v14  ;;  %v5658_v47 = vsel %vm6664_vm3, %v2280_v14, %v2278_v9  ;;  %3443 = vset.pattern.permute.xlu1 %v3625_v58  ;;  %v6669_v37 = vld [vmem:[#allocation30_spill] sm:$0xff]  ;;  %vm6692_vm15 = vmmov %vm6691_vm11 }
 0x72c   :  { %2414 = vperm.xlu1 %3443, %v5227_v12   ;;  %v6670_v14 = vperm.slane %v6669_v37, 0  ;;  %vm6693_vm3 = vcmp.lt.s32.totalorder %v3804_v55, 95 }
 0x72d   :  { %v2175_v52 = vadd.f32 %v2173_v7, %v2157_v18  ;;  %v2176_v32 = vadd.f32 %v2174_v39, %v2158_v17  ;;  %v2178_v60 = vpop.permute.xlu1 %2177  ;;  %v2332_v17 = vpop.permute.xlu0 %2331 }
 0x72e   :  { %v2181_v48 = vsel %vm525_vm12, %v2178_v60, %v5513_v53  ;;  %v2182_v16 = vsel %vm525_vm12, %v5513_v53, %v2178_v60  ;;  %vm6666_vm12 = vmmov %vm6665_vm2 }
 0x72f   :  { %v2183_v30 = vmul.f32 %v2182_v16, %v6627_v11  ;;  %v2184_v9 = vmul.f32 %v2181_v48, %v6628_v19  ;;  %v3626_v19 = vmov 99  }
 0x730   :  { %3450 = vset.pattern.permute.xlu2 %v6524_v28 }
 0x731   :  { %v2185_v50 = vmax.f32 %v2183_v30, 0.0  ;;  %v2186_v29 = vmax.f32 %v2184_v9, 0.0  ;;  %2507 = vperm.xlu2 %3450, %v5535_v40  }
 0x732   :  { %v2298_v18 = vpop.permute.xlu2 %2297 }
 0x733   :  { %v2191_v10 = vmul.f32 %v5568_v25, %v2185_v50  ;;  %v2192_v36 = vmul.f32 %v5568_v25, %v2186_v29  ;;  %v5675_v51 = vsel %vm6665_vm2, %v2296_v23, %v2298_v18  ;;  %v5679_v11 = vsel %vm6666_vm12, %v2298_v18, %v2296_v23  ;;  %v3476_v18 = vld [vmem:[%s6297_s3] sm:$0xff]  ;;  %vm6694_vm2 = vmmov %vm6693_vm3 }
 0x734   :  { %3444 = vset.pattern.permute.xlu1 %v3626_v19  ;;  %v6671_v23 = vperm.slane %v6669_v37, 1  ;;  %v3627_v50 = vmov 100   ;;  %vm6695_vm12 = vcmp.lt.s32.totalorder %v3804_v55, 94 }
 0x735   :  { %v2193_v28 = vadd.f32 %v2191_v10, %v2175_v52  ;;  %v2194_v53 = vadd.f32 %v2192_v36, %v2176_v32  ;;  %2432 = vperm.xlu1 %3444, %v5227_v12   ;;  %v2196_v59 = vpop.permute.xlu1 %2195  ;;  %v2350_v16 = vpop.permute.xlu0 %2349 }
 0x736   :  { %v2199_v63 = vsel %vm6667_vm9, %v2196_v59, %v5527_v41  ;;  %v2200_v25 = vsel %vm6668_vm13, %v5527_v41, %v2196_v59  ;;  %vm6696_vm9 = vmmov %vm6695_vm12 }
 0x737   :  { %v2201_v7 = vmul.f32 %v2200_v25, %v6670_v14  ;;  %v2202_v39 = vmul.f32 %v2199_v63, %v6671_v23 }
 0x739   :  { %v2203_v58 = vmax.f32 %v2201_v7, 0.0  ;;  %v2204_v52 = vmax.f32 %v2202_v39, 0.0  ;;  %3452 = vset.pattern.permute.xlu2 %v6521_v4 }
 0x73a   :  { %2537 = vperm.xlu2 %3452, %v5535_v40   ;;  %v2316_v12 = vpop.permute.xlu2 %2315 }
 0x73b   :  { %v2209_v32 = vmul.f32 %v5582_v62, %v2203_v58  ;;  %v2210_v60 = vmul.f32 %v5582_v62, %v2204_v52  ;;  %v5698_v41 = vsel %vm883_vm6, %v2314_v38, %v2316_v12  ;;  %v5702_v48 = vsel %vm883_vm6, %v2316_v12, %v2314_v38  ;;  %v6674_v38 = vld [vmem:[#allocation29_spill] sm:$0xff] }
 0x73c   :  { %v6675_v10 = vperm.slane %v6674_v38, 0  ;;  %v6676_v19 = vperm.slane %v6674_v38, 1  ;;  %vm6677_vm6 = vcmp.lt.s32.totalorder %v3804_v55, 110 }
 0x73d   :  { %v2211_v30 = vadd.f32 %v2209_v32, %v2193_v28  ;;  %v2212_v9 = vadd.f32 %v2210_v60, %v2194_v53  ;;  %3445 = vset.pattern.permute.xlu1 %v3627_v50  ;;  %v2214_v4 = vpop.permute.xlu1 %2213  ;;  %v2368_v12 = vpop.permute.xlu0 %2367 }
 0x73e   :  { %v2217_v29 = vsel %vm6672_vm5, %v2214_v4, %v5551_v5  ;;  %v2218_v62 = vsel %vm6673_vm7, %v5551_v5, %v2214_v4  ;;  %2450 = vperm.xlu1 %3445, %v3476_v18  }
 0x73f   :  { %v2219_v36 = vmul.f32 %v2218_v62, %v6675_v10  ;;  %v2220_v28 = vmul.f32 %v2217_v29, %v6676_v19 }
 0x741   :  { %v2221_v53 = vmax.f32 %v2219_v36, 0.0  ;;  %v2222_v59 = vmax.f32 %v2220_v28, 0.0  ;;  %v2265_v28 = vmul.f32 %v5634_v21, %v6631_v22 }
 0x742   :  { %v2334_v63 = vpop.permute.xlu2 %2333  ;;  %3455 = vset.pattern.permute.xlu2 %v6512_v8 }
 0x743   :  { %v2227_v25 = vmul.f32 %v5598_v34, %v2221_v53  ;;  %v2228_v5 = vmul.f32 %v5598_v34, %v2222_v59  ;;  %v5722_v37 = vsel %vm929_vm4, %v2332_v17, %v2334_v63  ;;  %v5726_v14 = vsel %vm929_vm4, %v2334_v63, %v2332_v17 }
 0x744   :  { %v3628_v34 = vmov 101   ;;  %vm6682_vm4 = vcmp.lt.s32.totalorder %v3804_v55, 98 }
 0x745   :  { %v2229_v7 = vadd.f32 %v2227_v25, %v2211_v30  ;;  %v2230_v23 = vadd.f32 %v2228_v5, %v2212_v9  ;;  %v2232_v39 = vpop.permute.xlu1 %2231 }
 0x746   :  { %v2235_v58 = vsel %vm665_vm1, %v2232_v39, %v5576_v27  ;;  %v2236_v52 = vsel %vm665_vm1, %v5576_v27, %v2232_v39  ;;  %3446 = vset.pattern.permute.xlu1 %v3628_v34  ;;  %vm6678_vm1 = vmmov %vm6677_vm6 }
 0x747   :  { %v2237_v32 = vmul.f32 %v2236_v52, %v6629_v2  ;;  %v2238_v60 = vmul.f32 %v2235_v58, %v6630_v45  ;;  %2468 = vperm.xlu1 %3446, %v3476_v18   ;;  %v2249_v2 = vmax.f32 %v5393_v56, 0.0  ;;  %v2250_v45 = vmax.f32 %v5395_v13, 0.0  ;;  %v2386_v56 = vpop.permute.xlu0 %2385 }
 0x749   :  { %v2239_v17 = vmax.f32 %v2237_v32, 0.0  ;;  %v2240_v30 = vmax.f32 %v2238_v60, 0.0 }
 0x74a   :  { %v2352_v9 = vpop.permute.xlu2 %2351 }
 0x74b   :  { %v2245_v50 = vmul.f32 %v5616_v0, %v2239_v17  ;;  %v2246_v4 = vmul.f32 %v5616_v0, %v2240_v30  ;;  %v5740_v29 = vsel %vm975_vm14, %v2350_v16, %v2352_v9  ;;  %v5744_v27 = vsel %vm975_vm14, %v2352_v9, %v2350_v16  ;;  %vm6683_vm14 = vmmov %vm6682_vm4 }
 0x74c   :  { %v2266_v16 = vmul.f32 %v5638_v6, %v6632_v1  ;;  %v6679_v1 = vld [vmem:[#allocation39_spill] sm:$0xff] }
 0x74d   :  { %v2253_v62 = vpop.permute.xlu1 %2252  ;;  %v2247_v18 = vadd.f32 %v2245_v50, %v2229_v7  ;;  %v2248_v38 = vadd.f32 %v2246_v4, %v2230_v23  ;;  %v6680_v6 = vperm.slane %v6679_v1, 0  ;;  %v6681_v39 = vperm.slane %v6679_v1, 1  ;;  %v6685_v50 = vld [vmem:[#allocation54_spill] sm:$0xff] }
 0x74e   :  { %v2255_v10 = vmul.f32 %v2253_v62, %v2249_v2  ;;  %v2256_v36 = vmul.f32 %v2253_v62, %v2250_v45  ;;  %v2268_v63 = vmax.f32 %v2266_v16, 0.0  ;;  %v6686_v62 = vld [vmem:[#allocation41_spill] sm:$0xff] }
 0x74f   :  { %3449 = vset.pattern.permute.xlu1 %v6527_v61  ;;  %v2267_v61 = vmax.f32 %v2265_v28, 0.0  ;;  %v2283_v23 = vmul.f32 %v5654_v31, %v6680_v6  ;;  %v2284_v58 = vmul.f32 %v5658_v47, %v6681_v39  ;;  %v2404_v34 = vpop.permute.xlu0 %2403  ;;  %v6684_v31 = vld [vmem:[#allocation53_spill] sm:$0xff] }
 0x750   :  { %v2257_v0 = vadd.f32 %v2255_v10, %v2247_v18  ;;  %v2258_v19 = vadd.f32 %v2256_v36, %v2248_v38  ;;  %2497 = vperm.xlu1 %3449, %v5535_v40   ;;  %v2566_v47 = vadd.f32 %v6685_v50, %v6684_v31  ;;  %v6687_v18 = vperm.slane %v6686_v62, 0 }
 0x751   :  { %v2285_v32 = vmax.f32 %v2283_v23, 0.0  ;;  %v2286_v60 = vmax.f32 %v2284_v58, 0.0  ;;  %v6688_v10 = vperm.slane %v6686_v62, 1 }
 0x752   :  { %v2370_v53 = vpop.permute.xlu2 %2369  ;;  %v2301_v38 = vmul.f32 %v5675_v51, %v6687_v18 }
 0x753   :  { %v5756_v13 = vsel %vm6677_vm6, %v2368_v12, %v2370_v53  ;;  %v5760_v59 = vsel %vm6678_vm1, %v2370_v53, %v2368_v12  ;;  %v2302_v36 = vmul.f32 %v5679_v11, %v6688_v10 }
 0x755   :  { %v2304_v28 = vmax.f32 %v2302_v36, 0.0 }
 0x756   :  { %v2271_v25 = vpop.permute.xlu1 %2270 }
 0x757   :  { %v2273_v5 = vmul.f32 %v2271_v25, %v2267_v61  ;;  %v2274_v7 = vmul.f32 %v2271_v25, %v2268_v63 }
 0x758   :  { %3451 = vset.pattern.permute.xlu1 %v6559_v26 }
 0x759   :  { %v2275_v22 = vadd.f32 %v2273_v5, %v2257_v0  ;;  %v2276_v21 = vadd.f32 %v2274_v7, %v2258_v19  ;;  %2517 = vperm.xlu1 %3451, %v5535_v40   ;;  %v2422_v19 = vpop.permute.xlu0 %2421  ;;  %v2319_v5 = vmul.f32 %v5698_v41, %v6633_v46  ;;  %v2320_v7 = vmul.f32 %v5702_v48, %v6634_v43 }
 0x75a   :  { %v2388_v52 = vpop.permute.xlu2 %2387  ;;  %v2337_v46 = vmul.f32 %v5722_v37, %v6635_v54  ;;  %v2338_v43 = vmul.f32 %v5726_v14, %v6636_v44  ;;  %v2355_v54 = vmul.f32 %v5740_v29, %v6637_v35  ;;  %v2356_v44 = vmul.f32 %v5744_v27, %v6638_v33 }
 0x75b   :  { %v5772_v12 = vsel %vm6682_vm4, %v2386_v56, %v2388_v52  ;;  %v5776_v26 = vsel %vm6683_vm14, %v2388_v52, %v2386_v56  ;;  %v2322_v1 = vmax.f32 %v2320_v7, 0.0 }
 0x75c   :  { %v2339_v41 = vmax.f32 %v2337_v46, 0.0  ;;  %v2340_v48 = vmax.f32 %v2338_v43, 0.0  ;;  %v2357_v37 = vmax.f32 %v2355_v54, 0.0  ;;  %v2358_v14 = vmax.f32 %v2356_v44, 0.0 }
 0x75d   :  { %v6704_v46 = vperm.slane %v4940_v57, 1 }
 0x75f   :  { %v2289_v17 = vpop.permute.xlu1 %2288 }
 0x760   :  { %v2291_v30 = vmul.f32 %v2289_v17, %v2285_v32  ;;  %v2292_v9 = vmul.f32 %v2289_v17, %v2286_v60 }
 0x761   :  { %3453 = vset.pattern.permute.xlu1 %v6528_v15 }
 0x762   :  { %v2293_v4 = vadd.f32 %v2291_v30, %v2275_v22  ;;  %v2294_v2 = vadd.f32 %v2292_v9, %v2276_v21  ;;  %2547 = vperm.xlu1 %3453, %v5535_v40   ;;  %v2406_v45 = vpop.permute.xlu2 %2405  ;;  %v2303_v40 = vmax.f32 %v2301_v38, 0.0  ;;  %v2440_v22 = vpop.permute.xlu0 %2439  ;;  %v2321_v21 = vmax.f32 %v2319_v5, 0.0 }
 0x763   :  { %v5790_v0 = vsel %vm6689_vm8, %v2404_v34, %v2406_v45  ;;  %v5794_v15 = vsel %vm6690_vm10, %v2406_v45, %v2404_v34  ;;  %2567 = vadd.xlane.f32.xlu2 %v2566_v47 }
 0x764   :  { %v2410_v43 = vmul.f32 %v5794_v15, %v6704_v46 }
 0x768   :  { %v2307_v16 = vpop.permute.xlu1 %2306 }
 0x769   :  { %v2309_v56 = vmul.f32 %v2307_v16, %v2303_v40  ;;  %v2310_v53 = vmul.f32 %v2307_v16, %v2304_v28  ;;  %v6697_v40 = vld [vmem:[#allocation60_spill] sm:$0xff] }
 0x76a   :  { %v2424_v51 = vpop.permute.xlu2 %2423  ;;  %3454 = vset.pattern.permute.xlu1 %v6512_v8  ;;  %v2458_v60 = vpop.permute.xlu0 %2457  ;;  %v6698_v28 = vperm.slane %v6697_v40, 0  ;;  %v6699_v16 = vperm.slane %v6697_v40, 1 }
 0x76b   :  { %v2311_v61 = vadd.f32 %v2309_v56, %v2293_v4  ;;  %v2312_v11 = vadd.f32 %v2310_v53, %v2294_v2  ;;  %v5799_v63 = vsel %vm6691_vm11, %v2422_v19, %v2424_v51  ;;  %v5803_v25 = vsel %vm6692_vm15, %v2424_v51, %v2422_v19 }
 0x76c   :  { %v2373_v55 = vmul.f32 %v5756_v13, %v6698_v28  ;;  %v2374_v56 = vmul.f32 %v5760_v59, %v6699_v16 }
 0x76e   :  { %v2375_v53 = vmax.f32 %v2373_v55, 0.0  ;;  %v2376_v35 = vmax.f32 %v2374_v56, 0.0 }
 0x771   :  { %v2325_v8 = vpop.permute.xlu1 %2324 }
 0x772   :  { %v2327_v6 = vmul.f32 %v2325_v8, %v2321_v21  ;;  %v2328_v23 = vmul.f32 %v2325_v8, %v2322_v1  ;;  %v2442_v39 = vpop.permute.xlu2 %2441  ;;  %v2480_v40 = vpop.permute.xlu0 %2479 }
 0x773   :  { %v2443_v58 = vsel %vm6693_vm3, %v2440_v22, %v2442_v39  ;;  %v2444_v52 = vsel %vm6694_vm2, %v2442_v39, %v2440_v22 }
 0x774   :  { %v2329_v34 = vadd.f32 %v2327_v6, %v2311_v61  ;;  %v2330_v32 = vadd.f32 %v2328_v23, %v2312_v11  ;;  %v6700_v11 = vld [vmem:[#allocation57_spill] sm:$0xff] }
 0x775   :  { %v6701_v5 = vperm.slane %v6700_v11, 0  ;;  %v6702_v22 = vperm.slane %v6700_v11, 1 }
 0x777   :  { %v2391_v7 = vmul.f32 %v5772_v12, %v6701_v5  ;;  %v2392_v21 = vmul.f32 %v5776_v26, %v6702_v22 }
 0x779   :  { %v2393_v13 = vmax.f32 %v2391_v7, 0.0  ;;  %v2394_v1 = vmax.f32 %v2392_v21, 0.0 }
 0x77a   :  { %v2343_v17 = vpop.permute.xlu1 %2342  ;;  %v2460_v30 = vpop.permute.xlu2 %2459 }
 0x77b   :  { %v2345_v9 = vmul.f32 %v2343_v17, %v2339_v41  ;;  %v2346_v47 = vmul.f32 %v2343_v17, %v2340_v48  ;;  %v2461_v4 = vsel %vm6695_vm12, %v2458_v60, %v2460_v30  ;;  %v2462_v2 = vsel %vm6696_vm9, %v2460_v30, %v2458_v60  ;;  %v5857_v11 = vpop.permute.xlu0 %1590 }
 0x77c   :  { %v2412_v41 = vmax.f32 %v2410_v43, 0.0 }
 0x77d   :  { %v2347_v45 = vadd.f32 %v2345_v9, %v2329_v34  ;;  %v2348_v62 = vadd.f32 %v2346_v47, %v2330_v32  ;;  %v6703_v34 = vperm.slane %v4940_v57, 0  ;;  %v6705_v9 = vld [vmem:[#allocation58_spill] sm:$0xff] }
 0x77e   :  { %v6706_v47 = vperm.slane %v6705_v9, 0 }
 0x77f   :  { %v2409_v32 = vmul.f32 %v5790_v0, %v6703_v34 }
 0x781   :  { %v2411_v12 = vmax.f32 %v2409_v32, 0.0 }
 0x782   :  { %v2488_v55 = vpop.permute.xlu2 %2487 }
 0x783   :  { %v2361_v18 = vpop.permute.xlu1 %2360 }
 0x784   :  { %v2363_v38 = vmul.f32 %v2361_v18, %v2357_v37  ;;  %v2364_v10 = vmul.f32 %v2361_v18, %v2358_v14 }
 0x786   :  { %v2365_v36 = vadd.f32 %v2363_v38, %v2347_v45  ;;  %v2366_v19 = vadd.f32 %v2364_v10, %v2348_v62  ;;  %v2427_v45 = vmul.f32 %v5799_v63, %v6706_v47  ;;  %v6707_v62 = vperm.slane %v6705_v9, 1 }
 0x787   :  { %v6708_v38 = vperm.slane %v4970_v42, 0 }
 0x788   :  { %v2428_v54 = vmul.f32 %v5803_v25, %v6707_v62  ;;  %v2429_v0 = vmax.f32 %v2427_v45, 0.0 }
 0x789   :  { %v2445_v10 = vmul.f32 %v2443_v58, %v6708_v38 }
 0x78a   :  { %v2430_v44 = vmax.f32 %v2428_v54, 0.0 }
 0x78b   :  { %v2447_v28 = vmax.f32 %v2445_v10, 0.0 }
 0x78c   :  { %v2379_v29 = vpop.permute.xlu1 %2378 }
 0x78d   :  { %v2381_v51 = vmul.f32 %v2379_v29, %v2375_v53  ;;  %v2382_v33 = vmul.f32 %v2379_v29, %v2376_v35  ;;  %v6710_v29 = vld [vmem:[#allocation59_spill] sm:$0xff] }
 0x78f   :  { %v2383_v27 = vadd.f32 %v2381_v51, %v2365_v36  ;;  %v2384_v61 = vadd.f32 %v2382_v33, %v2366_v19  ;;  %v6709_v36 = vperm.slane %v4970_v42, 1  ;;  %v6711_v51 = vperm.slane %v6710_v29, 0 }
 0x791   :  { %v2446_v19 = vmul.f32 %v2444_v52, %v6709_v36  ;;  %v2463_v33 = vmul.f32 %v2461_v4, %v6711_v51  ;;  %v2508_v52 = vpop.permute.xlu2 %2507 }
 0x793   :  { %v2448_v63 = vmax.f32 %v2446_v19, 0.0  ;;  %v2465_v58 = vmax.f32 %v2463_v33, 0.0 }
 0x795   :  { %v2397_v8 = vpop.permute.xlu1 %2396 }
 0x796   :  { %v2399_v6 = vmul.f32 %v2397_v8, %v2393_v13  ;;  %v2400_v59 = vmul.f32 %v2397_v8, %v2394_v1 }
 0x798   :  { %v2401_v23 = vadd.f32 %v2399_v6, %v2383_v27  ;;  %v2402_v39 = vadd.f32 %v2400_v59, %v2384_v61  ;;  %v6712_v27 = vperm.slane %v6710_v29, 1 }
 0x79a   :  { %v2464_v61 = vmul.f32 %v2462_v2, %v6712_v27 }
 0x79c   :  { %v2466_v42 = vmax.f32 %v2464_v61, 0.0 }
 0x79e   :  { %v2415_v48 = vpop.permute.xlu1 %2414 }
 0x79f   :  { %v2417_v60 = vmul.f32 %v2415_v48, %v2411_v12  ;;  %v2418_v26 = vmul.f32 %v2415_v48, %v2412_v41 }
 0x7a1   :  { %v2419_v17 = vadd.f32 %v2417_v60, %v2401_v23  ;;  %v2420_v30 = vadd.f32 %v2418_v26, %v2402_v39  ;;  %v5859_v60 = vpop.permute.xlu0 %1955  ;;  %v2538_v26 = vpop.permute.xlu2 %2537 }
 0x7a7   :  { %v2433_v57 = vpop.permute.xlu1 %2432 }
 0x7a8   :  { %v2435_v37 = vmul.f32 %v2433_v57, %v2429_v0  ;;  %v2436_v15 = vmul.f32 %v2433_v57, %v2430_v44 }
 0x7a9   :  { %v2528_v36 = vpop.permute.xlu0 %2527 }
 0x7aa   :  { %v2437_v14 = vadd.f32 %v2435_v37, %v2419_v17  ;;  %v2438_v18 = vadd.f32 %v2436_v15, %v2420_v30 }
 0x7b0   :  { %v2451_v16 = vpop.permute.xlu1 %2450 }
 0x7b1   :  { %v2453_v56 = vmul.f32 %v2451_v16, %v2447_v28  ;;  %v2454_v25 = vmul.f32 %v2451_v16, %v2448_v63 }
 0x7b3   :  { %v2455_v53 = vadd.f32 %v2453_v56, %v2437_v14  ;;  %v2456_v35 = vadd.f32 %v2454_v25, %v2438_v18 }
 0x7b9   :  { %v2469_v5 = vpop.permute.xlu1 %2468 }
 0x7ba   :  { %v2471_v7 = vmul.f32 %v2469_v5, %v2465_v58  ;;  %v2472_v22 = vmul.f32 %v2469_v5, %v2466_v42 }
 0x7bc   :  { %v2473_v21 = vadd.f32 %v2471_v7, %v2455_v53  ;;  %v2474_v13 = vadd.f32 %v2472_v22, %v2456_v35 }
 0x7be   :  { %v2482_v1 = vperm.slane %v2473_v21, 0  ;;  %v2483_v8 = vperm.slane %v2474_v13, 0  ;;  %v2490_v6 = vperm.slane %v2473_v21, 1  ;;  %v2491_v59 = vperm.slane %v2474_v13, 1 }
 0x7bf   :  { %v2500_v4 = vperm.slane %v2473_v21, 2  ;;  %v2501_v34 = vperm.slane %v2474_v13, 2  ;;  %v2510_v46 = vperm.slane %v2473_v21, 3  ;;  %v2511_v43 = vperm.slane %v2474_v13, 3 }
 0x7c0   :  { %v2484_v23 = vmul.f32 %v2482_v1, %v2480_v40  ;;  %v2485_v39 = vmul.f32 %v2483_v8, %v2480_v40  ;;  %v2492_v32 = vmul.f32 %v2490_v6, %v2488_v55  ;;  %v2493_v2 = vmul.f32 %v2491_v59, %v2488_v55 }
 0x7c1   :  { %v2540_v41 = vperm.slane %v2473_v21, 6  ;;  %v2541_v48 = vperm.slane %v2474_v13, 6  ;;  %v2512_v45 = vmul.f32 %v2510_v46, %v2508_v52  ;;  %v2513_v62 = vmul.f32 %v2511_v43, %v2508_v52 }
 0x7c2   :  { %v2498_v12 = vpop.permute.xlu1 %2497  ;;  %v2494_v17 = vadd.f32 %v2492_v32, %v2484_v23  ;;  %v2495_v30 = vadd.f32 %v2493_v2, %v2485_v39  ;;  %v2530_v14 = vperm.slane %v2473_v21, 5  ;;  %v2531_v18 = vperm.slane %v2474_v13, 5 }
 0x7c3   :  { %v2502_v9 = vmul.f32 %v2500_v4, %v2498_v12  ;;  %v2503_v47 = vmul.f32 %v2501_v34, %v2498_v12  ;;  %v2542_v54 = vmul.f32 %v2540_v41, %v2538_v26  ;;  %v2543_v0 = vmul.f32 %v2541_v48, %v2538_v26  ;;  %v6713_v41 = vld [vmem:[#allocation52_spill] sm:$0xff] }
 0x7c4   :  { %v2520_v38 = vperm.slane %v2473_v21, 4  ;;  %v2521_v10 = vperm.slane %v2474_v13, 4  ;;  %v2532_v63 = vmul.f32 %v2530_v14, %v2528_v36  ;;  %v2533_v55 = vmul.f32 %v2531_v18, %v2528_v36 }
 0x7c5   :  { %v2504_v44 = vadd.f32 %v2502_v9, %v2494_v17  ;;  %v2505_v57 = vadd.f32 %v2503_v47, %v2495_v30  ;;  %v2550_v51 = vperm.slane %v2473_v21, 7  ;;  %v2551_v33 = vperm.slane %v2474_v13, 7  ;;  %v6714_v9 = vld [vmem:[#allocation65_spill] sm:$0xff]  ;;  %v6715_v47 = vld [vmem:[#allocation64_spill] sm:$0xff] }
 0x7c6   :  { %v1910_v21 = vperm.slane %v5380_v49, 0  ;;  %v1911_v13 = vperm.slane %v5382_v20, 0  ;;  %v1918_v59 = vperm.slane %v5380_v49, 1  ;;  %v1919_v23 = vperm.slane %v5382_v20, 1 }
 0x7c7   :  { %v2514_v37 = vadd.f32 %v2512_v45, %v2504_v44  ;;  %v2515_v15 = vadd.f32 %v2513_v62, %v2505_v57  ;;  %v1928_v2 = vperm.slane %v5380_v49, 2  ;;  %v1929_v46 = vperm.slane %v5382_v20, 2  ;;  %v6716_v57 = vld [vmem:[#allocation38_spill] sm:$0xff] }
 0x7c8   :  { %v1912_v39 = vmul.f32 %v1910_v21, %v5475_v24  ;;  %v1913_v4 = vmul.f32 %v1911_v13, %v5475_v24  ;;  %v1920_v34 = vmul.f32 %v1918_v59, %v5308_v3  ;;  %v1921_v32 = vmul.f32 %v1919_v23, %v5308_v3  ;;  %v3154_v24 = vld [vmem:[%s6296_s2 + $0x51] ss:$8 sm:$0x3]  ;;  %s3160_s2 = sld [smem:[#allocation2 + $0x1]] }
 0x7c9   :  { %v1930_v48 = vmul.f32 %v1928_v2, %v6713_v41  ;;  %v1931_v26 = vmul.f32 %v1929_v46, %v6713_v41  ;;  %v1938_v17 = vperm.slane %v5380_v49, 3  ;;  %v1939_v30 = vperm.slane %v5382_v20, 3  ;;  %v6721_v59 = vld [vmem:[#allocation40_spill] sm:$0xff] }
 0x7ca   :  { %v1922_v43 = vadd.f32 %v1920_v34, %v1912_v39  ;;  %v1923_v12 = vadd.f32 %v1921_v32, %v1913_v4  ;;  %v1546_v3 = vperm.slane %v6714_v9, 0  ;;  %v1545_v45 = vperm.slane %v6715_v47, 0 }
 0x7cb   :  { %v2518_v19 = vpop.permute.xlu1 %2517  ;;  %v1553_v62 = vperm.slane %v6715_v47, 1  ;;  %v1371_v14 = vperm.slane %v3154_v24, 0  ;;  %v1372_v18 = vperm.slane %v3154_v24, 1  ;;  %v1968_v32 = vperm.slane %v5380_v49, 6 }
 0x7cc   :  { %v2522_v40 = vmul.f32 %v2520_v38, %v2518_v19  ;;  %v2523_v28 = vmul.f32 %v2521_v10, %v2518_v19  ;;  %v1933_v44 = vadd.f32 %v1931_v26, %v1923_v12  ;;  %v6717_v38 = vld [vmem:[#allocation9_spill] sm:$0xff]  ;;  %v1948_v19 = vperm.slane %v5380_v49, 4  ;;  %v6722_v12 = vld [vmem:[#allocation55_spill] sm:$0xff] }
 0x7cd   :  { %v1940_v10 = vmul.f32 %v1938_v17, %v6717_v38  ;;  %v1941_v36 = vmul.f32 %v1939_v30, %v6717_v38  ;;  %v1969_v2 = vperm.slane %v5382_v20, 6  ;;  %v5915_v41 = vmul.f32 %v1371_v14, %v6722_v12  ;;  %v6725_v14 = vld [vmem:[#allocation36_spill] sm:$0xff] }
 0x7ce   :  { %v2524_v16 = vadd.f32 %v2522_v40, %v2514_v37  ;;  %v2525_v56 = vadd.f32 %v2523_v28, %v2515_v15  ;;  %v1555_v37 = vmul.f32 %v1553_v62, %v6716_v57  ;;  %v1949_v40 = vperm.slane %v5382_v20, 4  ;;  %v6718_v28 = vld [vmem:[#allocation47_spill] sm:$0xff] }
 0x7cf   :  { %v1583_v26 = vperm.slane %v6715_v47, 4  ;;  %v1584_v17 = vperm.slane %v6714_v9, 4  ;;  %v1593_v62 = vperm.slane %v6715_v47, 5 }
 0x7d0   :  { %v2534_v25 = vadd.f32 %v2532_v63, %v2524_v16  ;;  %v2535_v53 = vadd.f32 %v2533_v55, %v2525_v56  ;;  %v1547_v63 = vmul.f32 %v1545_v45, %v6718_v28  ;;  %v1548_v55 = vmul.f32 %v1546_v3, %v6718_v28 }
 0x7d1   :  { %v1563_v16 = vperm.slane %v6715_v47, 2  ;;  %v1564_v56 = vperm.slane %v6714_v9, 2  ;;  %v1586_v38 = vmul.f32 %v1584_v17, %v6725_v14 }
 0x7d2   :  { %v2544_v35 = vadd.f32 %v2542_v54, %v2534_v25  ;;  %v2545_v29 = vadd.f32 %v2543_v0, %v2535_v53  ;;  %v1554_v54 = vperm.slane %v6714_v9, 1  ;;  %v1932_v0 = vadd.f32 %v1930_v48, %v1922_v43 }
 0x7d3   :  { %v1943_v53 = vadd.f32 %v1941_v36, %v1933_v44  ;;  %v1595_v36 = vmul.f32 %v1593_v62, %v5857_v11 }
 0x7d4   :  { %v2548_v27 = vpop.permute.xlu1 %2547  ;;  %v1556_v15 = vmul.f32 %v1554_v54, %v6716_v57  ;;  %v1942_v25 = vadd.f32 %v1940_v10, %v1932_v0  ;;  %v1594_v54 = vperm.slane %v6714_v9, 5  ;;  %v6724_v0 = vld [vmem:[#allocation10_spill] sm:$0xff] }
 0x7d5   :  { %v2552_v61 = vmul.f32 %v2550_v51, %v2548_v27  ;;  %v2553_v58 = vmul.f32 %v2551_v33, %v2548_v27  ;;  %v1557_v51 = vadd.f32 %v1555_v37, %v1547_v63  ;;  %v1573_v27 = vperm.slane %v6715_v47, 3 }
 0x7d6   :  { %v2568_v42 = vpop.xlane.xlu2 %2567  ;;  %v1558_v33 = vadd.f32 %v1556_v15, %v1548_v55  ;;  %v1970_v44 = vmul.f32 %v1968_v32, %v6724_v0  ;;  %v1971_v57 = vmul.f32 %v1969_v2, %v6724_v0  ;;  %v1978_v37 = vperm.slane %v5380_v49, 7 }
 0x7d7   :  { %v5861_v52 = vadd.f32 %v2552_v61, %v2544_v35  ;;  %v5863_v5 = vadd.f32 %v2553_v58, %v2545_v29  ;;  %v2570_v7 = vrot.slane %v2568_v42, 4  ;;  %v1958_v35 = vperm.slane %v5380_v49, 5  ;;  %v6719_v58 = vld [vmem:[#allocation7_spill] sm:$0xff] }
 0x7d8   :  { %v1959_v29 = vperm.slane %v5382_v20, 5  ;;  %v1574_v61 = vperm.slane %v6714_v9, 3  ;;  %v1575_v23 = vmul.f32 %v1573_v27, %v6721_v59  ;;  %v1979_v15 = vperm.slane %v5382_v20, 7 }
 0x7d9   :  { %v2572_v22 = vadd.f32 %v2570_v7, %v2568_v42  ;;  %v1950_v42 = vmul.f32 %v1948_v19, %v6719_v58  ;;  %v1951_v7 = vmul.f32 %v1949_v40, %v6719_v58  ;;  %v1596_v19 = vmul.f32 %v1594_v54, %v5857_v11  ;;  %v6727_v11 = vld [vmem:[#allocation48_spill] sm:$0xff] }
 0x7da   :  { %v1576_v39 = vmul.f32 %v1574_v61, %v6721_v59  ;;  %v1603_v20 = vperm.slane %v6715_v47, 6  ;;  %v1613_v61 = vperm.slane %v6715_v47, 7  ;;  %v1614_v58 = vperm.slane %v6714_v9, 7  ;;  %v6729_v47 = vld [vmem:[#allocation46_spill] sm:$0xff] }
 0x7db   :  { %v2573_v1 = vmul.f32 0.001953125, %v2572_v22  ;;  %v1960_v22 = vmul.f32 %v1958_v35, %v5859_v60  ;;  %v1952_v4 = vadd.f32 %v1950_v42, %v1942_v25  ;;  %v1953_v34 = vadd.f32 %v1951_v7, %v1943_v53 }
 0x7dc   :  { %v1604_v25 = vperm.slane %v6714_v9, 6  ;;  %v6730_v9 = vld [vmem:[#allocation51_spill] sm:$0xff] }
 0x7dd   :  { %v2575_v8 = vrot.slane %v2573_v1, 4  ;;  %v1962_v30 = vadd.f32 %v1960_v22, %v1952_v4 }
 0x7de   :  { %v1606_v27 = vmul.f32 %v1604_v25, %v6727_v11  ;;  %v2610_v25 = vstv %s3160_s2 }
 0x7df   :  { %v5866_v6 = vsel %vm43_vm0, %v2573_v1, %v2575_v8  ;;  %v1961_v1 = vmul.f32 %v1959_v29, %v5859_v60  ;;  %v6720_v8 = vld [vmem:[#allocation33_spill] sm:$0xff]  ;;  %v6723_v60 = vld [vmem:[#allocation56_spill] sm:$0xff]  ;;  %v1972_v40 = vadd.f32 %v1970_v44, %v1962_v30 }
 0x7e0   :  { %2580 = vperm.xlu1 %3454, %v5866_v6   ;;  %v1565_v21 = vmul.f32 %v1563_v16, %v6720_v8  ;;  %v1566_v13 = vmul.f32 %v1564_v56, %v6720_v8  ;;  %v5918_v48 = vmul.f32 %v1372_v18, %v6723_v60  ;;  %v1585_v18 = vmul.f32 %v1583_v26, %v6725_v14  ;;  %v6726_v16 = vld [vmem:[#allocation8_spill] sm:$0xff] }
 0x7e1   :  { %v1963_v24 = vadd.f32 %v1961_v1, %v1953_v34  ;;  %v1980_v56 = vmul.f32 %v1978_v37, %v6726_v16  ;;  %v1981_v49 = vmul.f32 %v1979_v15, %v6726_v16  ;;  %v6728_v1 = vld [vmem:[#allocation37_spill] sm:$0xff] }
 0x7e2   :  { %v1567_v46 = vadd.f32 %v1565_v21, %v1557_v51  ;;  %v1568_v43 = vadd.f32 %v1566_v13, %v1558_v33  ;;  %v2622_v10 = vadd.f32 %v5918_v48, %v5915_v41  ;;  %v1605_v33 = vmul.f32 %v1603_v20, %v6727_v11 }
 0x7e3   :  { %v1973_v28 = vadd.f32 %v1971_v57, %v1963_v24  ;;  %v5938_v29 = vadd.f32 %v1980_v56, %v1972_v40  ;;  %v1615_v8 = vmul.f32 %v1613_v61, %v6728_v1  ;;  %v1616_v21 = vmul.f32 %v1614_v58, %v6728_v1 }
 0x7e4   :  { %v1577_v3 = vadd.f32 %v1575_v23, %v1567_v46  ;;  %v1578_v45 = vadd.f32 %v1576_v39, %v1568_v43  ;;  %v2850_v39 = vadd.f32 %v6730_v9, %v6729_v47 }
 0x7e5   :  { %v5940_v51 = vadd.f32 %v1981_v49, %v1973_v28 }
 0x7e6   :  { %v1587_v63 = vadd.f32 %v1585_v18, %v1577_v3  ;;  %v1588_v55 = vadd.f32 %v1586_v38, %v1578_v45  ;;  %v2736_v3 = vadd.f32 %v5863_v5, %v5861_v52 }
 0x7e7   :  { %v2679_v22 = vadd.f32 %v5940_v51, %v5938_v29 }
 0x7e8   :  { %v1597_v53 = vadd.f32 %v1595_v36, %v1587_v63  ;;  %v1598_v35 = vadd.f32 %v1596_v19, %v1588_v55 }
 0x7ea   :  { %v1607_v42 = vadd.f32 %v1605_v33, %v1597_v53  ;;  %v1608_v7 = vadd.f32 %v1606_v27, %v1598_v35 }
 0x7ec   :  { %v5950_v13 = vadd.f32 %v1615_v8, %v1607_v42  ;;  %v5952_v59 = vadd.f32 %v1616_v21, %v1608_v7 }
 0x7ee   :  { %v2793_v23 = vadd.f32 %v5952_v59, %v5950_v13 }
 0x80a   :  { %2623 = vadd.xlane.f32.xlu1 %v2622_v10 }
 0x812   :  { %2680 = vadd.xlane.f32.xlu1 %v2679_v22 }
 0x81a   :  { %2794 = vadd.xlane.f32.xlu1 %v2793_v23 }
 0x822   :  { %2851 = vadd.xlane.f32.xlu1 %v2850_v39 }
 0x852   :  { %v2581_v4 = vpop.permute.xlu1 %2580 }
 0x853   :  { %v2583_v34 = vsub.f32 %v6684_v31, %v2581_v4  ;;  %v2584_v32 = vsub.f32 %v6685_v50, %v2581_v4 }
 0x855   :  { %v2585_v2 = vmul.f32 %v2583_v34, %v2583_v34  ;;  %v2586_v46 = vmul.f32 %v2584_v32, %v2584_v32 }
 0x857   :  { %v2587_v43 = vadd.f32 %v2586_v46, %v2585_v2 }
 0x859   :  { %2588 = vadd.xlane.f32.xlu0 %v2587_v43 }
 0x87d   :  { %v2624_v12 = vpop.xlane.xlu1 %2623 }
 0x87e   :  { %v2626_v60 = vrot.slane %v2624_v12, 4 }
 0x880   :  { %v2628_v26 = vadd.f32 %v2626_v60, %v2624_v12 }
 0x882   :  { %v2629_v17 = vmul.f32 0.001953125, %v2628_v26 }
 0x884   :  { %v2631_v30 = vrot.slane %v2629_v17, 4 }
 0x885   :  { %v2681_v14 = vpop.xlane.xlu1 %2680 }
 0x886   :  { %v5961_v24 = vsel %vm43_vm0, %v2629_v17, %v2631_v30  ;;  %v2683_v40 = vrot.slane %v2681_v14, 4 }
 0x887   :  { %2636 = vperm.xlu2 %3455, %v5961_v24  }
 0x888   :  { %v2685_v49 = vadd.f32 %v2683_v40, %v2681_v14 }
 0x88a   :  { %v2686_v11 = vmul.f32 0.001953125, %v2685_v49 }
 0x88c   :  { %v2688_v33 = vrot.slane %v2686_v11, 4 }
 0x88d   :  { %v2795_v61 = vpop.xlane.xlu1 %2794 }
 0x88e   :  { %v5973_v27 = vsel %vm43_vm0, %v2686_v11, %v2688_v33  ;;  %v2797_v42 = vrot.slane %v2795_v61, 4  ;;  %v2666_v11 = vstv %s3161_s21 }
 0x890   :  { %v2799_v1 = vadd.f32 %v2797_v42, %v2795_v61 }
 0x892   :  { %v2800_v39 = vmul.f32 0.001953125, %v2799_v1 }
 0x894   :  { %v2802_v32 = vrot.slane %v2800_v39, 4 }
 0x895   :  { %v2852_v21 = vpop.xlane.xlu1 %2851 }
 0x896   :  { %v2854_v4 = vrot.slane %v2852_v21, 4  ;;  %v5981_v43 = vsel %vm43_vm0, %v2800_v39, %v2802_v32 }
 0x898   :  { %v2856_v2 = vadd.f32 %v2854_v4, %v2852_v21 }
 0x89a   :  { %v2857_v46 = vmul.f32 0.001953125, %v2856_v2 }
 0x89c   :  { %v2859_v12 = vrot.slane %v2857_v46, 4 }
 0x89e   :  { %v5985_v60 = vsel %vm43_vm0, %v2857_v46, %v2859_v12  ;;  %v2723_v46 = vstv %s3163_s23 }
 0x8b0   :  { %2737 = vadd.xlane.f32.xlu2 %v2736_v3 }
 0x8cc   :  { %v2589_v45 = vpop.xlane.xlu0 %2588 }
 0x8cd   :  { %v2591_v62 = vrot.slane %v2589_v45, 4 }
 0x8cf   :  { %v2593_v54 = vadd.f32 %v2591_v62, %v2589_v45 }
 0x8d1   :  { %v2594_v0 = vmul.f32 0.001953125, %v2593_v54 }
 0x8d3   :  { %v2595_v44 = vadd.f32 1e-05, %v2594_v0 }
 0x8d5   :  { %3461 = vrsqrt.f32 %v2595_v44  ;;  %vm2602_vm5 = vweird.f32 %v2595_v44 }
 0x8db   :  { %v3462_v57 = vpop.eup %3461 }
 0x8dc   :  { %v2597_v37 = vmul.f32 %v3462_v57, %v2595_v44  ;;  %vm2603_vm13 = vweird.f32 %v3462_v57 }
 0x8dd   :  { %vm2604_vm7 = vmor %vm2602_vm5, %vm2603_vm13 }
 0x8de   :  { %v2598_v15 = vmul.f32 %v3462_v57, %v2597_v37 }
 0x8e0   :  { %v2599_v18 = vmul.f32 0.5, %v2598_v15 }
 0x8e1   :  { %v2637_v38 = vpop.permute.xlu2 %2636 }
 0x8e2   :  { %v2600_v10 = vsub.f32 1.5, %v2599_v18  ;;  %v2639_v36 = vsub.f32 %v5915_v41, %v2637_v38  ;;  %v2640_v19 = vsub.f32 %v5918_v48, %v2637_v38 }
 0x8e4   :  { %v2601_v28 = vmul.f32 %v3462_v57, %v2600_v10  ;;  %v2641_v63 = vmul.f32 %v2639_v36, %v2639_v36  ;;  %v2642_v55 = vmul.f32 %v2640_v19, %v2640_v19 }
 0x8e6   :  { %v2605_v16 = vsel %vm2604_vm7, %v3462_v57, %v2601_v28  ;;  %v2643_v56 = vadd.f32 %v2642_v55, %v2641_v63 }
 0x8e7   :  { %v2607_v20 = vrot.slane %v2605_v16, 4 }
 0x8e8   :  { %2644 = vadd.xlane.f32.xlu0 %v2643_v56 }
 0x8e9   :  { %v2609_v53 = vsel %vm43_vm0, %v2605_v16, %v2607_v20 }
 0x8ea   :  { %v5969_v35 = vmul.f32 %v2610_v25, %v2609_v53 }
 0x8ec   :  { %2614 = vperm.xlu1 %3454, %v5969_v35  }
 0x8f4   :  { %2693 = vperm.xlu1 %3454, %v5973_v27  }
 0x923   :  { %v2738_v58 = vpop.xlane.xlu2 %2737 }
 0x924   :  { %v2740_v7 = vrot.slane %v2738_v58, 4 }
 0x926   :  { %v2742_v22 = vadd.f32 %v2740_v7, %v2738_v58 }
 0x928   :  { %v2743_v8 = vmul.f32 0.001953125, %v2742_v22 }
 0x92a   :  { %v2745_v23 = vrot.slane %v2743_v8, 4 }
 0x92c   :  { %v5977_v34 = vsel %vm43_vm0, %v2743_v8, %v2745_v23 }
 0x92d   :  { %2750 = vperm.xlu1 %3454, %v5977_v34  }
 0x935   :  { %2807 = vperm.xlu1 %3454, %v5981_v43  }
 0x93d   :  { %2864 = vperm.xlu1 %3454, %v5985_v60  }
 0x95b   :  { %v2645_v0 = vpop.xlane.xlu0 %2644 }
 0x95c   :  { %v2647_v44 = vrot.slane %v2645_v0, 4 }
 0x95e   :  { %v5988_v26 = vpop.permute.xlu1 %2614  ;;  %v2649_v57 = vadd.f32 %v2647_v44, %v2645_v0 }
 0x960   :  { %v2650_v37 = vmul.f32 0.001953125, %v2649_v57 }
 0x962   :  { %v2651_v15 = vadd.f32 1e-05, %v2650_v37 }
 0x964   :  { %3463 = vrsqrt.f32 %v2651_v15  ;;  %vm2658_vm1 = vweird.f32 %v2651_v15 }
 0x966   :  { %v2694_v17 = vpop.permute.xlu1 %2693 }
 0x967   :  { %v2696_v30 = vsub.f32 %v5938_v29, %v2694_v17  ;;  %v2697_v3 = vsub.f32 %v5940_v51, %v2694_v17 }
 0x969   :  { %v2698_v45 = vmul.f32 %v2696_v30, %v2696_v30  ;;  %v2699_v62 = vmul.f32 %v2697_v3, %v2697_v3  ;;  %v2621_v30 = vmul.f32 %v5969_v35, %v5866_v6 }
 0x96a   :  { %v3464_v14 = vpop.eup %3463 }
 0x96b   :  { %v2700_v54 = vadd.f32 %v2699_v62, %v2698_v45  ;;  %v2653_v38 = vmul.f32 %v3464_v14, %v2651_v15  ;;  %vm2659_vm6 = vweird.f32 %v3464_v14 }
 0x96c   :  { %vm2660_vm4 = vmor %vm2658_vm1, %vm2659_vm6  ;;  %vm2976_vm6 = vcmask 1040384   ;;  %vm2979_vm1 = vcmask 1041408  }
 0x96d   :  { %2701 = vadd.xlane.f32.xlu0 %v2700_v54  ;;  %v2654_v10 = vmul.f32 %v3464_v14, %v2653_v38 }
 0x96f   :  { %v2655_v28 = vmul.f32 0.5, %v2654_v10 }
 0x971   :  { %v2656_v56 = vsub.f32 1.5, %v2655_v28 }
 0x973   :  { %v2657_v49 = vmul.f32 %v3464_v14, %v2656_v56 }
 0x975   :  { %v2661_v20 = vsel %vm2660_vm4, %v3464_v14, %v2657_v49  ;;  %vm2982_vm4 = vcmask 1042432  }
 0x976   :  { %v2663_v25 = vrot.slane %v2661_v20, 4 }
 0x978   :  { %v2665_v53 = vsel %vm43_vm0, %v2661_v20, %v2663_v25 }
 0x979   :  { %v2667_v33 = vmul.f32 %v2666_v11, %v2665_v53 }
 0x97b   :  { %v2677_v12 = vmul.f32 %v2667_v33, %v5961_v24 }
 0x97d   :  { %v2678_v45 = vadd.f32 %v2677_v12, %v2621_v30 }
 0x99f   :  { %v2751_v18 = vpop.permute.xlu1 %2750 }
 0x9a0   :  { %v2753_v0 = vsub.f32 %v5861_v52, %v2751_v18  ;;  %v2754_v44 = vsub.f32 %v5863_v5, %v2751_v18 }
 0x9a2   :  { %v2755_v15 = vmul.f32 %v2753_v0, %v2753_v0  ;;  %v2756_v14 = vmul.f32 %v2754_v44, %v2754_v44  ;;  %v2563_v44 = vstv %s3162_s25 }
 0x9a4   :  { %v2757_v10 = vadd.f32 %v2756_v14, %v2755_v15  ;;  %v6732_v14 = vld [vmem:[#allocation5_spill] sm:$0xff] }
 0x9a7   :  { %v2808_v36 = vpop.permute.xlu1 %2807 }
 0x9a8   :  { %v2810_v19 = vsub.f32 %v5950_v13, %v2808_v36  ;;  %v2811_v40 = vsub.f32 %v5952_v59, %v2808_v36 }
 0x9aa   :  { %v2812_v63 = vmul.f32 %v2810_v19, %v2810_v19  ;;  %v2813_v55 = vmul.f32 %v2811_v40, %v2811_v40 }
 0x9ac   :  { %v2814_v16 = vadd.f32 %v2813_v55, %v2812_v63  ;;  %v2837_v55 = vstv %s3165_s26 }
 0x9ae   :  { %2815 = vadd.xlane.f32.xlu0 %v2814_v16 }
 0x9c2   :  { %2670 = vperm.xlu0 %3456, %v2667_v33  }
 0x9e0   :  { %v2702_v61 = vpop.xlane.xlu0 %2701 }
 0x9e1   :  { %v2704_v58 = vrot.slane %v2702_v61, 4 }
 0x9e3   :  { %v2706_v42 = vadd.f32 %v2704_v58, %v2702_v61 }
 0x9e5   :  { %v2707_v7 = vmul.f32 0.001953125, %v2706_v42 }
 0x9e7   :  { %v2708_v22 = vadd.f32 1e-05, %v2707_v7 }
 0x9e9   :  { %3465 = vrsqrt.f32 %v2708_v22  ;;  %vm2715_vm8 = vweird.f32 %v2708_v22 }
 0x9ef   :  { %v3466_v1 = vpop.eup %3465 }
 0x9f0   :  { %v2710_v8 = vmul.f32 %v3466_v1, %v2708_v22  ;;  %vm2716_vm14 = vweird.f32 %v3466_v1 }
 0x9f1   :  { %vm2717_vm10 = vmor %vm2715_vm8, %vm2716_vm14  ;;  %vm2987_vm14 = vcmask 1044480   ;;  %vm2990_vm8 = vcmask 1045504  }
 0x9f2   :  { %v2711_v21 = vmul.f32 %v3466_v1, %v2710_v8 }
 0x9f4   :  { %v2712_v23 = vmul.f32 0.5, %v2711_v21 }
 0x9f6   :  { %v2713_v39 = vsub.f32 1.5, %v2712_v23  ;;  %v2780_v23 = vstv %s3164_s11 }
 0x9f8   :  { %v2714_v4 = vmul.f32 %v3466_v1, %v2713_v39 }
 0x9fa   :  { %v2718_v32 = vsel %vm2717_vm10, %v3466_v1, %v2714_v4  ;;  %vm2993_vm10 = vcmask 1046528  }
 0x9fb   :  { %v2720_v2 = vrot.slane %v2718_v32, 4 }
 0x9fd   :  { %v2722_v17 = vsel %vm43_vm0, %v2718_v32, %v2720_v2 }
 0x9fe   :  { %v2724_v3 = vmul.f32 %v2723_v46, %v2722_v17  ;;  %v2865_v17 = vpop.permute.xlu1 %2864 }
 0x9ff   :  { %v2867_v30 = vsub.f32 %v6729_v47, %v2865_v17 }
 0xa00   :  { %2727 = vperm.xlu2 %3455, %v2724_v3   ;;  %v2734_v62 = vmul.f32 %v2724_v3, %v5973_v27  ;;  %v2868_v3 = vsub.f32 %v6730_v9, %v2865_v17 }
 0xa02   :  { %v2735_v54 = vadd.f32 %v2734_v62, %v2678_v45  ;;  %v2869_v45 = vmul.f32 %v2867_v30, %v2867_v30  ;;  %v2870_v62 = vmul.f32 %v2868_v3, %v2868_v3 }
 0xa04   :  { %v2871_v0 = vadd.f32 %v2870_v62, %v2869_v45 }
 0xa21   :  { %v2816_v57 = vpop.xlane.xlu0 %2815 }
 0xa22   :  { %v2818_v37 = vrot.slane %v2816_v57, 4 }
 0xa24   :  { %v2820_v24 = vadd.f32 %v2818_v37, %v2816_v57  ;;  %v6731_v37 = vld [vmem:[#allocation6_spill] sm:$0xff] }
 0xa25   :  { %v2564_v15 = vmul.f32 %v2563_v44, %v6731_v37 }
 0xa26   :  { %v2821_v38 = vmul.f32 0.001953125, %v2820_v24 }
 0xa28   :  { %v2822_v36 = vadd.f32 1e-05, %v2821_v38 }
 0xa29   :  { %2758 = vadd.xlane.f32.xlu2 %v2757_v10 }
 0xa2a   :  { %3467 = vrsqrt.f32 %v2822_v36  ;;  %vm2829_vm15 = vweird.f32 %v2822_v36 }
 0xa30   :  { %v3468_v6 = vpop.eup %3467 }
 0xa31   :  { %v2824_v35 = vmul.f32 %v3468_v6, %v2822_v36  ;;  %vm2830_vm11 = vweird.f32 %v3468_v6 }
 0xa32   :  { %vm2831_vm3 = vmor %vm2829_vm15, %vm2830_vm11 }
 0xa33   :  { %v2825_v19 = vmul.f32 %v3468_v6, %v2824_v35 }
 0xa34   :  { %v2671_v57 = vpop.permute.xlu0 %2670 }
 0xa35   :  { %v2826_v27 = vmul.f32 0.5, %v2825_v19  ;;  %v2673_v24 = vmul.f32 %v2671_v57, %v5915_v41  ;;  %v2674_v38 = vmul.f32 %v2671_v57, %v5918_v48  ;;  %v6078_v57 = vld [vmem:[%s6294_s0 + $0x30] sm:$0xf] }
 0xa37   :  { %v2827_v40 = vsub.f32 1.5, %v2826_v27 }
 0xa39   :  { %v2828_v28 = vmul.f32 %v3468_v6, %v2827_v40 }
 0xa3b   :  { %v2832_v18 = vsel %vm2831_vm3, %v3468_v6, %v2828_v28 }
 0xa3c   :  { %v2834_v63 = vrot.slane %v2832_v18, 4 }
 0xa3e   :  { %v2836_v16 = vsel %vm43_vm0, %v2832_v18, %v2834_v63 }
 0xa3f   :  { %v2838_v56 = vmul.f32 %v2837_v55, %v2836_v16 }
 0xa41   :  { %2841 = vperm.xlu0 %3456, %v2838_v56   ;;  %v2848_v2 = vmul.f32 %v2838_v56, %v5981_v43  ;;  %v2617_v43 = vmul.f32 %v5988_v26, %v6684_v31 }
 0xa43   :  { %v2619_v10 = vadd.f32 %v2617_v43, %v2564_v15  ;;  %v6087_v43 = vld [vmem:[%s6294_s0 + $0x38] sm:$0xf] }
 0xa45   :  { %v2675_v19 = vadd.f32 %v2673_v24, %v2619_v10 }
 0xa5a   :  { %v2728_v49 = vpop.permute.xlu2 %2727 }
 0xa5b   :  { %v2730_v6 = vmul.f32 %v2728_v49, %v5938_v29  ;;  %v2731_v35 = vmul.f32 %v2728_v49, %v5940_v51 }
 0xa5d   :  { %v2732_v28 = vadd.f32 %v2730_v6, %v2675_v19  ;;  %v6099_v6 = vld [vmem:[%s6294_s0 + $0x38] sm:$0xf0] }
 0xa9c   :  { %v2759_v20 = vpop.xlane.xlu2 %2758 }
 0xa9d   :  { %v2761_v25 = vrot.slane %v2759_v20, 4 }
 0xa9f   :  { %v2763_v53 = vadd.f32 %v2761_v25, %v2759_v20 }
 0xaa1   :  { %v2764_v11 = vmul.f32 0.001953125, %v2763_v53 }
 0xaa3   :  { %v2765_v33 = vadd.f32 1e-05, %v2764_v11  ;;  %v2894_v11 = vstv %s3166_s22 }
 0xaa5   :  { %3469 = vrsqrt.f32 %v2765_v33  ;;  %vm2772_vm12 = vweird.f32 %v2765_v33 }
 0xaab   :  { %v3470_v61 = vpop.eup %3469 }
 0xaac   :  { %v2767_v58 = vmul.f32 %v3470_v61, %v2765_v33  ;;  %vm2773_vm2 = vweird.f32 %v3470_v61 }
 0xaad   :  { %vm2774_vm9 = vmor %vm2772_vm12, %vm2773_vm2 }
 0xaae   :  { %v2768_v42 = vmul.f32 %v3470_v61, %v2767_v58 }
 0xab0   :  { %v2769_v7 = vmul.f32 0.5, %v2768_v42 }
 0xab2   :  { %v2770_v22 = vsub.f32 1.5, %v2769_v7 }
 0xab3   :  { %v2842_v7 = vpop.permute.xlu0 %2841 }
 0xab4   :  { %v2771_v1 = vmul.f32 %v3470_v61, %v2770_v22  ;;  %v6025_v22 = vld [vmem:[%s6294_s0] sm:$0xf0] }
 0xab6   :  { %v2775_v8 = vsel %vm2774_vm9, %v3470_v61, %v2771_v1  ;;  %v6030_v1 = vld [vmem:[%s6294_s0 + $0x8] sm:$0xf0] }
 0xab7   :  { %v2777_v21 = vrot.slane %v2775_v8, 4  ;;  %v2957_v37 = vrot.slane %v6030_v1, 5 }
 0xab9   :  { %v2779_v39 = vsel %vm43_vm0, %v2775_v8, %v2777_v21  ;;  %v6035_v8 = vld [vmem:[%s6294_s0 + $0x10] sm:$0xf]  ;;  %v6045_v21 = vld [vmem:[%s6294_s0 + $0x10] sm:$0xf0] }
 0xaba   :  { %v2781_v4 = vmul.f32 %v2780_v23, %v2779_v39  ;;  %v6050_v23 = vld [vmem:[%s6294_s0 + $0x18] sm:$0xf0]  ;;  %v2844_v39 = vmul.f32 %v2842_v7, %v5950_v13  ;;  %v2934_v17 = vrot.slane %v6045_v21, 1  ;;  %v2944_v3 = vrot.slane %v6035_v8, 3  ;;  %v6064_v13 = vld [vmem:[%s6294_s0 + $0x20] sm:$0xf0] }
 0xabb   :  { %v2935_v30 = vrot.slane %v6050_v23, 1  ;;  %v2948_v62 = vrot.slane %v6045_v21, 6  ;;  %v2960_v15 = vrot.slane %v6045_v21, 3  ;;  %v2972_v10 = vrot.slane %v6035_v8, 5 }
 0xabc   :  { %2784 = vperm.xlu1 %3454, %v2781_v4   ;;  %v2791_v32 = vmul.f32 %v2781_v4, %v5977_v34  ;;  %v2565_v34 = vmul.f32 %v2563_v44, %v6732_v14  ;;  %v2845_v4 = vmul.f32 %v2842_v7, %v5952_v59  ;;  %v6069_v59 = vld [vmem:[%s6294_s0 + $0x28] sm:$0xf0]  ;;  %v2956_v44 = vrot.slane %v6025_v22, 5 }
 0xabd   :  { %v2961_v14 = vrot.slane %v6050_v23, 3 }
 0xabe   :  { %v2792_v46 = vadd.f32 %v2791_v32, %v2735_v54  ;;  %v2618_v54 = vmul.f32 %v5988_v26, %v6685_v50  ;;  %v2922_v32 = vrot.slane %v6025_v22, 3 }
 0xac0   :  { %v2849_v12 = vadd.f32 %v2848_v2, %v2792_v46  ;;  %v2620_v36 = vadd.f32 %v2618_v54, %v2565_v34  ;;  %v2923_v2 = vrot.slane %v6030_v1, 3  ;;  %v2928_v46 = vrot.slane %v6035_v8, 6 }
 0xac1   :  { %v2968_v34 = vrot.slane %v6025_v22, 2 }
 0xac2   :  { %v2676_v27 = vadd.f32 %v2674_v38, %v2620_v36  ;;  %v2969_v38 = vrot.slane %v6030_v1, 2  ;;  %v6094_v36 = vld [vmem:[%s6294_s0 + $0x30] sm:$0xf0] }
 0xac4   :  { %v2733_v18 = vadd.f32 %v2731_v35, %v2676_v27  ;;  %v3026_v27 = vrot.slane %v6064_v13, 3 }
 0xae6   :  { %2872 = vadd.xlane.f32.xlu1 %v2871_v0  ;;  %v2949_v0 = vrot.slane %v6050_v23, 6 }
 0xb2e   :  { %v2785_v40 = vpop.permute.xlu1 %2784 }
 0xb2f   :  { %v2787_v31 = vmul.f32 %v2785_v40, %v5861_v52  ;;  %v2788_v63 = vmul.f32 %v2785_v40, %v5863_v5  ;;  %v3027_v40 = vrot.slane %v6069_v59, 3 }
 0xb31   :  { %v2789_v50 = vadd.f32 %v2787_v31, %v2732_v28  ;;  %v2790_v26 = vadd.f32 %v2788_v63, %v2733_v18  ;;  %v3032_v31 = vrot.slane %v6078_v57, 6  ;;  %v3033_v63 = vrot.slane %v6087_v43, 6 }
 0xb33   :  { %v2846_v54 = vadd.f32 %v2844_v39, %v2789_v50  ;;  %v2847_v24 = vadd.f32 %v2845_v4, %v2790_v26  ;;  %v3038_v50 = vrot.slane %v6094_v36, 1  ;;  %v3039_v26 = vrot.slane %v6099_v6, 1 }
 0xb59   :  { %v2873_v41 = vpop.xlane.xlu1 %2872 }
 0xb5a   :  { %v2875_v55 = vrot.slane %v2873_v41, 4 }
 0xb5c   :  { %v2877_v48 = vadd.f32 %v2875_v55, %v2873_v41  ;;  %v3046_v41 = vrot.slane %v6078_v57, 3  ;;  %v3047_v55 = vrot.slane %v6087_v43, 3 }
 0xb5e   :  { %v2878_v16 = vmul.f32 0.001953125, %v2877_v48 }
 0xb60   :  { %v2879_v56 = vadd.f32 1e-05, %v2878_v16 }
 0xb62   :  { %3471 = vrsqrt.f32 %v2879_v56  ;;  %vm2886_vm5 = vweird.f32 %v2879_v56 }
 0xb68   :  { %v3472_v29 = vpop.eup %3471 }
 0xb69   :  { %v2881_v20 = vmul.f32 %v3472_v29, %v2879_v56  ;;  %vm2887_vm13 = vweird.f32 %v3472_v29 }
 0xb6a   :  { %vm2888_vm7 = vmor %vm2886_vm5, %vm2887_vm13 }
 0xb6b   :  { %v2882_v51 = vmul.f32 %v3472_v29, %v2881_v20  ;;  %v3059_v20 = vrot.slane %v6069_v59, 5 }
 0xb6d   :  { %v2883_v49 = vmul.f32 0.5, %v2882_v51  ;;  %v3062_v51 = vrot.slane %v6094_v36, 3 }
 0xb6f   :  { %v2884_v25 = vsub.f32 1.5, %v2883_v49  ;;  %v3063_v49 = vrot.slane %v6099_v6, 3 }
 0xb71   :  { %v2885_v53 = vmul.f32 %v3472_v29, %v2884_v25 }
 0xb73   :  { %v2889_v52 = vsel %vm2888_vm7, %v3472_v29, %v2885_v53  ;;  %v3058_v29 = vrot.slane %v6064_v13, 5 }
 0xb74   :  { %v2891_v5 = vrot.slane %v2889_v52, 4 }
 0xb76   :  { %v2893_v33 = vsel %vm43_vm0, %v2889_v52, %v2891_v5  ;;  %v3070_v52 = vrot.slane %v6064_v13, 2  ;;  %v3071_v5 = vrot.slane %v6069_v59, 2 }
 0xb77   :  { %v2895_v61 = vmul.f32 %v2894_v11, %v2893_v33  ;;  %v3074_v11 = vrot.slane %v6078_v57, 5  ;;  %v3075_v33 = vrot.slane %v6087_v43, 5 }
 0xb79   :  { %2898 = vperm.xlu0 %3456, %v2895_v61   ;;  %v2905_v58 = vmul.f32 %v2895_v61, %v5985_v60  ;;  %v6040_v60 = vld [vmem:[%s6294_s0 + $0x18] sm:$0xf] }
 0xb7a   :  { %v2945_v45 = vrot.slane %v6040_v60, 3  ;;  %v2973_v35 = vrot.slane %v6040_v60, 5 }
 0xb7b   :  { %v2906_v42 = vadd.f32 %v2905_v58, %v2849_v12  ;;  %v2929_v12 = vrot.slane %v6040_v60, 6 }
 0xb7d   :  { %2909 = vperm.xlu2 %3455, %v2906_v42  }
 0xbd7   :  { %v2910_v56 = vpop.permute.xlu2 %2909 }
 0xbeb   :  { %v2899_v19 = vpop.permute.xlu0 %2898 }
 0xbec   :  { %v2901_v28 = vmul.f32 %v2899_v19, %v6729_v47  ;;  %v2902_v18 = vmul.f32 %v2899_v19, %v6730_v9  ;;  %v3050_v47 = vrot.slane %v6094_v36, 6  ;;  %v3051_v9 = vrot.slane %v6099_v6, 6 }
 0xbee   :  { %v2903_v48 = vadd.f32 %v2901_v28, %v2846_v54  ;;  %v2904_v16 = vadd.f32 %v2902_v18, %v2847_v24 }
 0xbf0   :  { %v6118_v25 = vsub.f32 %v2903_v48, %v2910_v56  ;;  %v6120_v53 = vsub.f32 %v2904_v16, %v2910_v56 }
 0xbf2   :  { %v2940_v61 = vrot.slane %v6118_v25, 5  ;;  %v2941_v58 = vrot.slane %v6120_v53, 5  ;;  %v2952_v42 = vrot.slane %v6118_v25, 2  ;;  %v2953_v7 = vrot.slane %v6120_v53, 2 }
 0xbf3   :  { %v2964_v39 = vrot.slane %v6118_v25, 7  ;;  %v2965_v4 = vrot.slane %v6120_v53, 7  ;;  %v2977_v54 = vsel %vm2976_vm6, %v6118_v25, %v2922_v32  ;;  %v2978_v24 = vsel %vm2976_vm6, %v6120_v53, %v2923_v2 }
 0xbf4   :  { %v2980_v19 = vsel %vm2979_vm1, %v2977_v54, %v2928_v46  ;;  %v2981_v28 = vsel %vm2979_vm1, %v2978_v24, %v2929_v12  ;;  %v2996_v18 = vsel %vm2976_vm6, %v2952_v42, %v2956_v44  ;;  %v2997_v48 = vsel %vm2976_vm6, %v2953_v7, %v2957_v37 }
 0xbf5   :  { %v2983_v32 = vsel %vm2982_vm4, %v2980_v19, %v2934_v17  ;;  %v2984_v2 = vsel %vm2982_vm4, %v2981_v28, %v2935_v30  ;;  %v2998_v16 = vsel %vm2979_vm1, %v2996_v18, %v6035_v8  ;;  %v2999_v46 = vsel %vm2979_vm1, %v2997_v48, %v6040_v60 }
 0xbf6   :  { %v2985_v12 = vsel %vm43_vm0, %v2983_v32, %v2940_v61  ;;  %v2986_v44 = vsel %vm43_vm0, %v2984_v2, %v2941_v58  ;;  %v3000_v37 = vsel %vm2982_vm4, %v2998_v16, %v2960_v15  ;;  %v3001_v56 = vsel %vm2982_vm4, %v2999_v46, %v2961_v14 }
 0xbf7   :  { %v2988_v17 = vsel %vm2987_vm14, %v2985_v12, %v6025_v22  ;;  %v2989_v30 = vsel %vm2987_vm14, %v2986_v44, %v6030_v1  ;;  %v3002_v42 = vsel %vm43_vm0, %v3000_v37, %v2964_v39  ;;  %v3003_v7 = vsel %vm43_vm0, %v3001_v56, %v2965_v4 }
 0xbf8   :  { %v2991_v61 = vsel %vm2990_vm8, %v2988_v17, %v2944_v3  ;;  %v2992_v15 = vsel %vm2990_vm8, %v2989_v30, %v2945_v45  ;;  %v3004_v14 = vsel %vm2987_vm14, %v3002_v42, %v2968_v34  ;;  %v3005_v58 = vsel %vm2987_vm14, %v3003_v7, %v2969_v38 }
 0xbf9   :  { %v2994_v39 = vsel %vm2993_vm10, %v2991_v61, %v2948_v62  ;;  %v2995_v3 = vsel %vm2993_vm10, %v2992_v15, %v2949_v0  ;;  %v3006_v45 = vsel %vm2990_vm8, %v3004_v14, %v2972_v10  ;;  %v3007_v22 = vsel %vm2990_vm8, %v3005_v58, %v2973_v35 }
 0xbfa   :  { %v3008_v1 = vsel %vm2993_vm10, %v3006_v45, %v6045_v21  ;;  %v3009_v34 = vsel %vm2993_vm10, %v3007_v22, %v6050_v23  ;;  %3010 = vst [vmem:[%s6299_s5] sm:$0xff] %v2994_v39  ;;  %v3020_v62 = vrot.slane %v6118_v25, 4  ;;  %v3021_v8 = vrot.slane %v6120_v53, 4 }
 0xbfb   :  { %3011 = vst [vmem:[%s6299_s5 + $0x8] sm:$0xff] %v2995_v3  ;;  %v3042_v60 = vrot.slane %v6118_v25, 1  ;;  %v3043_v0 = vrot.slane %v6120_v53, 1  ;;  %v3054_v21 = vrot.slane %v6118_v25, 6  ;;  %v3055_v23 = vrot.slane %v6120_v53, 6 }
 0xbfc   :  { %3012 = vst [vmem:[%s6299_s5 + $0x10] sm:$0xff] %v3008_v1  ;;  %v3066_v38 = vrot.slane %v6118_v25, 3  ;;  %v3067_v10 = vrot.slane %v6120_v53, 3  ;;  %v3078_v35 = vsel %vm2976_vm6, %v3020_v62, %v3026_v27  ;;  %v3079_v4 = vsel %vm2976_vm6, %v3021_v8, %v3027_v40 }
 0xbfd   :  { %3013 = vst [vmem:[%s6299_s5 + $0x18] sm:$0xff] %v3009_v34  ;;  %v3080_v54 = vsel %vm2979_vm1, %v3078_v35, %v3032_v31  ;;  %v3081_v25 = vsel %vm2979_vm1, %v3079_v4, %v3033_v63  ;;  %v3092_v53 = vsel %vm2976_vm6, %v3054_v21, %v3058_v29  ;;  %v3093_v27 = vsel %vm2976_vm6, %v3055_v23, %v3059_v20 }
 0xbfe   :  { %v3082_v40 = vsel %vm2982_vm4, %v3080_v54, %v3038_v50  ;;  %v3083_v24 = vsel %vm2982_vm4, %v3081_v25, %v3039_v26  ;;  %v3094_v19 = vsel %vm2979_vm1, %v3092_v53, %v6078_v57  ;;  %v3095_v31 = vsel %vm2979_vm1, %v3093_v27, %v6087_v43 }
 0xbff   :  { %v3084_v63 = vsel %vm43_vm0, %v3082_v40, %v3042_v60  ;;  %v3085_v29 = vsel %vm43_vm0, %v3083_v24, %v3043_v0  ;;  %v3096_v20 = vsel %vm2982_vm4, %v3094_v19, %v3062_v51  ;;  %v3097_v50 = vsel %vm2982_vm4, %v3095_v31, %v3063_v49 }
 0xc00   :  { %v3086_v26 = vsel %vm2987_vm14, %v3084_v63, %v6064_v13  ;;  %v3087_v28 = vsel %vm2987_vm14, %v3085_v29, %v6069_v59  ;;  %v3098_v18 = vsel %vm43_vm0, %v3096_v20, %v3066_v38  ;;  %v3099_v48 = vsel %vm43_vm0, %v3097_v50, %v3067_v10 }
 0xc01   :  { %v3088_v32 = vsel %vm2990_vm8, %v3086_v26, %v3046_v41  ;;  %v3089_v51 = vsel %vm2990_vm8, %v3087_v28, %v3047_v55  ;;  %v3100_v49 = vsel %vm2987_vm14, %v3098_v18, %v3070_v52  ;;  %v3101_v2 = vsel %vm2987_vm14, %v3099_v48, %v3071_v5 }
 0xc02   :  { %v3090_v16 = vsel %vm2993_vm10, %v3088_v32, %v3050_v47  ;;  %v3091_v41 = vsel %vm2993_vm10, %v3089_v51, %v3051_v9  ;;  %v3102_v55 = vsel %vm2990_vm8, %v3100_v49, %v3074_v11  ;;  %v3103_v13 = vsel %vm2990_vm8, %v3101_v2, %v3075_v33 }
 0xc03   :  { %v3104_v59 = vsel %vm2993_vm10, %v3102_v55, %v6094_v36  ;;  %v3105_v52 = vsel %vm2993_vm10, %v3103_v13, %v6099_v6  ;;  %3106 = vst [vmem:[%s6299_s5 + $0x20] sm:$0xff] %v3090_v16 }
 0xc04   :  { %3107 = vst [vmem:[%s6299_s5 + $0x28] sm:$0xff] %v3091_v41 }
 0xc05   :  { %3108 = vst [vmem:[%s6299_s5 + $0x30] sm:$0xff] %v3104_v59 }
 0xc06   :  { %3109 = vst [vmem:[%s6299_s5 + $0x38] sm:$0xff] %v3105_v52 }
 0xc07   :  { %3114 = vsyncpa [#allocation3], 1 }

</bundles_post_ra>
